<compile_context>
chip_gen: v6e
topology: v6e:2x2x1
jax: 0.10.0
libtpu: 0.0.40
codegen_flags: <defaults>
</compile_context>

<pallas_src>
import functools

import jax
import jax.numpy as jnp
from jax.experimental import pallas as pl
from jax.experimental.pallas import tpu as pltpu


def _round_up(x, m):
    return (x + m - 1) // m * m


def _pick_tile(total, candidates):
    for c in candidates:
        if total % c == 0:
            return c
    return total


# ----------------------------------------------------------------------------
# Pooler: single-level ROIAlign (plain JAX glue; gather is data dependent).
# TODO(synk): move ROIAlign into a scalar-prefetch Pallas kernel (per-ROI sample
# indices in SMEM + bilinear blend on the VPU); the XLA gathers here are the
# likely wall-clock dominator at realistic ROI counts.
# TODO(synk): multi-level FPN level assignment (LevelMapper) not implemented;
# a single pooling scale is used, matching Pooler with scales=(0.25,).
# TODO(synk): samples falling outside the feature map are clipped instead of
# zeroed (tiny border difference vs the reference CUDA ROIAlign).
# ----------------------------------------------------------------------------
def roi_align_nhwc(feat_nchw, rois, out_size, spatial_scale, sampling_ratio,
                   out_dtype=jnp.float32):
    """feat_nchw: (B, C, H, W); rois: (R, 5) = [batch_idx, x1, y1, x2, y2].
    Returns pooled features in NHWC: (R, out_size, out_size, C) in out_dtype
    (bilinear blend is done in f32; the cast is fused into the final mean so no
    separate f32 HBM round trip happens before the conv kernel)."""
    B, C, H, W = feat_nchw.shape
    feat = jnp.transpose(feat_nchw, (0, 2, 3, 1))  # NHWC for gather
    bidx = rois[:, 0].astype(jnp.int32)
    x1 = rois[:, 1] * spatial_scale
    y1 = rois[:, 2] * spatial_scale
    x2 = rois[:, 3] * spatial_scale
    y2 = rois[:, 4] * spatial_scale
    roi_w = jnp.maximum(x2 - x1, 1.0)
    roi_h = jnp.maximum(y2 - y1, 1.0)
    bin_w = roi_w / out_size
    bin_h = roi_h / out_size
    s = sampling_ratio
    grid1d = (jnp.arange(out_size, dtype=jnp.float32)[:, None]
              + (jnp.arange(s, dtype=jnp.float32)[None, :] + 0.5) / s).reshape(-1)
    ys = jnp.clip(y1[:, None] + grid1d[None, :] * bin_h[:, None], 0.0, H - 1)
    xs = jnp.clip(x1[:, None] + grid1d[None, :] * bin_w[:, None], 0.0, W - 1)
    y0 = jnp.floor(ys)
    x0 = jnp.floor(xs)
    y0i = y0.astype(jnp.int32)
    x0i = x0.astype(jnp.int32)
    y1i = jnp.minimum(y0i + 1, H - 1)
    x1i = jnp.minimum(x0i + 1, W - 1)
    ly = ys - y0
    lx = xs - x0
    hy = 1.0 - ly
    hx = 1.0 - lx
    b_ = bidx[:, None, None]

    def gather(yi, xi):
        return feat[b_, yi[:, :, None], xi[:, None, :]]  # (R, P, P, C)

    v00 = gather(y0i, x0i)
    v01 = gather(y0i, x1i)
    v10 = gather(y1i, x0i)
    v11 = gather(y1i, x1i)
    wy0 = hy[:, :, None, None]
    wy1 = ly[:, :, None, None]
    wx0 = hx[:, None, :, None]
    wx1 = lx[:, None, :, None]
    vals = v00 * wy0 * wx0 + v01 * wy0 * wx1 + v10 * wy1 * wx0 + v11 * wy1 * wx1
    vals = vals.reshape(-1, out_size, s, out_size, s, C).mean(axis=(2, 4))
    return vals.astype(out_dtype)  # (R, out, out, C)


# ----------------------------------------------------------------------------
# Fused xconvs Pallas kernel: all stacked [3x3 conv + bias + ReLU] layers in one
# kernel.  Grid over ROI tiles; activation stays in VMEM; halo padding done in a
# VMEM scratch (only the 4 border strips are zeroed per step; the interior is
# fully overwritten every layer, so no full-scratch vst pass and no dependence
# on program_id==0 — correct under megacore grid partitioning).  Each layer is
# computed as a handful of MXU dots with contraction depth group*C >= 256
# (accumulated in f32), instead of materializing a big (M, 9C) im2col buffer.
# Output is already flattened per ROI as (R, H*W, C) in NHWC order.
# ----------------------------------------------------------------------------
def make_xconvs_kernel(num_layers, group):
    def kernel(*refs):
        x_ref = refs[0]
        o_ref = refs[1 + 2 * num_layers]
        pad_ref = refs[2 + 2 * num_layers]
        RT, H, W, C = x_ref.shape
        M = RT * H * W

        # Zero only the halo border; the interior is fully overwritten each
        # layer, so the border stays zero for the whole step.
        zrow = jnp.zeros((RT, 1, W + 2, C), pad_ref.dtype)
        zcol = jnp.zeros((RT, H + 2, 1, C), pad_ref.dtype)
        pad_ref[:, 0:1, :, :] = zrow
        pad_ref[:, H + 1:H + 2, :, :] = zrow
        pad_ref[:, :, 0:1, :] = zcol
        pad_ref[:, :, W + 1:W + 2, :] = zcol

        offsets = [(kh, kw) for kh in range(3) for kw in range(3)]
        act = x_ref[...]  # (RT, H, W, C) bf16
        for layer in range(num_layers):
            w_ref = refs[1 + 2 * layer]   # (9*C, C) bf16, patch-major rows
            b_ref = refs[2 + 2 * layer]   # (1, C)  f32
            pad_ref[:, 1:H + 1, 1:W + 1, :] = act
            acc = jnp.zeros((M, C), jnp.float32)
            for g0 in range(0, 9, group):
                g1 = min(g0 + group, 9)
                slabs = [pad_ref[:, kh:kh + H, kw:kw + W, :]
                         for kh, kw in offsets[g0:g1]]
                cols = slabs[0] if len(slabs) == 1 else jnp.concatenate(slabs,
                                                                        axis=-1)
                cols = cols.reshape(M, (g1 - g0) * C)
                acc += jnp.dot(cols, w_ref[g0 * C:g1 * C, :],
                               preferred_element_type=jnp.float32)
            y = jnp.maximum(acc + b_ref[...], 0.0)           # bias + ReLU, f32
            act = y.astype(jnp.bfloat16).reshape(RT, H, W, C)

        o_ref[...] = act.reshape(RT, H * W, C)               # NHWC flatten per ROI
    return kernel


def xconvs_fused(x_bf16, conv_w, conv_b, *, roi_tile):
    """x_bf16: (R_pad, H, W, C_pad) bf16; conv_w[i]: (9*C_pad, C_pad) bf16;
    conv_b[i]: (1, C_pad) f32.  Returns (R_pad, H*W, C_pad) bf16."""
    R_pad, H, W, C = x_bf16.shape
    P = H * W
    num_layers = len(conv_w)
    # Keep every MXU dot's contraction depth >= 256 (full v6e/v7x MXU) while
    # avoiding the full (M, 9C) im2col temp: group consecutive 3x3 patches.
    group = max(1, 256 // C)

    in_specs = [pl.BlockSpec((roi_tile, H, W, C), lambda r: (r, 0, 0, 0))]
    args = [x_bf16]
    for w, b in zip(conv_w, conv_b):
        in_specs.append(pl.BlockSpec(w.shape, lambda r: (0, 0)))
        in_specs.append(pl.BlockSpec(b.shape, lambda r: (0, 0)))
        args += [w, b]

    flops = 2 * R_pad * P * (9 * C) * C * num_layers
    bytes_accessed = (x_bf16.size + R_pad * P * C) * 2 + sum(
        w.size * 2 + b.size * 4 for w, b in zip(conv_w, conv_b))

    return pl.pallas_call(
        make_xconvs_kernel(num_layers, group),
        out_shape=jax.ShapeDtypeStruct((R_pad, P, C), jnp.bfloat16),
        grid=(R_pad // roi_tile,),
        in_specs=in_specs,
        out_specs=pl.BlockSpec((roi_tile, P, C), lambda r: (r, 0, 0)),
        scratch_shapes=[pltpu.VMEM((roi_tile, H + 2, W + 2, C), jnp.bfloat16)],
        compiler_params=pltpu.CompilerParams(
            dimension_semantics=("parallel",),
            vmem_limit_bytes=48 * 1024 * 1024),
        cost_estimate=pl.CostEstimate(flops=flops, transcendentals=0,
                                      bytes_accessed=bytes_accessed),
    )(*args)


# ----------------------------------------------------------------------------
# Tiled fc6 + ReLU Pallas kernel over the MERGED contraction.
# x: (R_pad, K=P*C_pad) bf16 (NHWC-flattened conv output), w: (K, N_pad) bf16
# (fc weight pre-permuted to NHWC flatten order), grid (R/tm, N/tn, K/tk) with
# f32 accumulator scratch, pl.when init/finalize and a SINGLE streaming MXU dot
# per grid step (tk = 512..2048 keeps the 256-deep MXU full on v6e/v7x and
# removes the per-p VPU accumulate of the previous version).
# ----------------------------------------------------------------------------
def fc_kernel(x_ref, w_ref, b_ref, o_ref, acc_ref):
    @pl.when(pl.program_id(2) == 0)
    def _():
        acc_ref[...] = jnp.zeros_like(acc_ref)

    acc_ref[...] += jnp.dot(x_ref[...], w_ref[...],
                            preferred_element_type=jnp.float32)

    @pl.when(pl.program_id(2) == pl.num_programs(2) - 1)
    def _():
        o_ref[...] = jnp.maximum(acc_ref[...] + b_ref[...],
                                 0.0).astype(o_ref.dtype)


def fc_relu_fused(x2_bf16, wfc_bf16, bias, *, tm, tn, tk):
    R_pad, K = x2_bf16.shape
    N_pad = wfc_bf16.shape[-1]
    return pl.pallas_call(
        fc_kernel,
        out_shape=jax.ShapeDtypeStruct((R_pad, N_pad), jnp.float32),
        grid=(R_pad // tm, N_pad // tn, K // tk),
        in_specs=[
            pl.BlockSpec((tm, tk), lambda i, j, k: (i, k)),
            pl.BlockSpec((tk, tn), lambda i, j, k: (k, j)),
            pl.BlockSpec((1, tn), lambda i, j, k: (0, j)),
        ],
        out_specs=pl.BlockSpec((tm, tn), lambda i, j, k: (i, j)),
        scratch_shapes=[pltpu.VMEM((tm, tn), jnp.float32)],
        compiler_params=pltpu.CompilerParams(
            dimension_semantics=("parallel", "parallel", "arbitrary"),
            vmem_limit_bytes=48 * 1024 * 1024),
        cost_estimate=pl.CostEstimate(
            flops=2 * R_pad * K * N_pad, transcendentals=0,
            bytes_accessed=(x2_bf16.size + wfc_bf16.size) * 2
                           + R_pad * N_pad * 4 + bias.size * 4),
    )(x2_bf16, wfc_bf16, bias)


# ----------------------------------------------------------------------------
# Full forward: pooler -> fused xconvs -> tiled fc6 + relu
# ----------------------------------------------------------------------------
@functools.partial(jax.jit, static_argnames=("resolution", "spatial_scale",
                                             "sampling_ratio",
                                             "representation_size", "roi_tile"))
def fpn_xconv1fc_forward(feat_nchw, rois, prep, *, resolution, spatial_scale,
                         sampling_ratio, representation_size, roi_tile=32):
    # 1) Pooler (ROIAlign) -> (R, res, res, Cin) NHWC, already bf16 (no extra
    #    f32 round trip before the conv kernel).
    pooled = roi_align_nhwc(feat_nchw, rois, resolution, spatial_scale,
                            sampling_ratio, out_dtype=jnp.bfloat16)
    R, _, _, Cin = pooled.shape
    C_pad = prep["conv_w"][0].shape[1]

    # ROI tiling: big tiles (default 32) amortize per-step overhead and feed the
    # MXU more rows; shrink to the padded ROI count when R is small.
    if R >= roi_tile:
        R_pad = _round_up(R, roi_tile)
        rt = roi_tile
    else:
        R_pad = _round_up(max(R, 1), 8)
        rt = R_pad
    # v7x has 2 TensorCores: give the parallel ROI axis >= 2 grid steps when
    # the whole workload would otherwise fit one step.
    if R_pad // rt < 2 and rt % 2 == 0:
        rt //= 2

    # single bf16 pad of ROI & channel tails (zeros)
    x = jnp.pad(pooled, ((0, R_pad - R), (0, 0), (0, 0), (0, C_pad - Cin)))

    # 2) fused stacked 3x3 convs + ReLU -> (R_pad, P, C_pad) bf16 (NHWC flatten)
    x = xconvs_fused(x, prep["conv_w"], prep["conv_b"], roi_tile=rt)

    # 3) tiled fc6 + ReLU over the merged contraction K = P * C_pad
    #    (weight pre-permuted + pre-flattened -> no NCHW transpose needed)
    P = resolution * resolution
    K = P * C_pad
    N_pad = prep["fc_w"].shape[-1]
    x2 = x.reshape(R_pad, K)                       # contiguous merge, free
    tm = _pick_tile(R_pad, (1024, 512, 256, 128, 64, 32, 16, 8))
    tn = _pick_tile(N_pad, (256, 128))
    tk = _pick_tile(K, (2048, 1024, 512, 256, 128))
    # v7x: keep >= 2 parallel grid steps so both TensorCores get work.
    if (R_pad // tm) * (N_pad // tn) < 2 and N_pad // 128 >= 2:
        tn = 128
    y = fc_relu_fused(x2, prep["fc_w"], prep["fc_b"], tm=tm, tn=tn, tk=tk)
    return y[:R, :representation_size]


# ----------------------------------------------------------------------------
# Parameters: canonical (PyTorch-equivalent) init + device-side preparation
# (channel padding to 128, im2col weight reshape, fc weight permutation to the
# NHWC flatten order and pre-flattening to (P*C_pad, N_pad), bf16).
# ----------------------------------------------------------------------------
def init_params(key, in_channels, conv_head_dim, num_stacked_convs,
                resolution, representation_size):
    keys = jax.random.split(key, num_stacked_convs + 2)
    xconvs = []
    cin = in_channels
    for i in range(num_stacked_convs):
        # nn.init.normal_(weight, std=0.01), bias = 0  (use_gn=False)
        w = 0.01 * jax.random.normal(keys[i], (3, 3, cin, conv_head_dim),
                                     dtype=jnp.float32)   # HWIO
        b = jnp.zeros((conv_head_dim,), jnp.float32)
        xconvs.append((w, b))
        cin = conv_head_dim
    input_size = conv_head_dim * resolution * resolution
    # make_fc: kaiming_uniform(a=1) -> deterministic synthetic init here.
    # fc6_w rows are in PyTorch NCHW flatten order (c * res^2 + h * res + w).
    bound = 1.0 / jnp.sqrt(jnp.float32(input_size))
    fc_w = jax.random.uniform(keys[-2], (input_size, representation_size),
                              jnp.float32, -bound, bound)
    fc_b = jnp.zeros((representation_size,), jnp.float32)
    return {"xconvs": xconvs, "fc6_w": fc_w, "fc6_b": fc_b}


def prepare_params(params, resolution):
    """Pad channels/head dims to multiples of 128, reshape conv weights for
    im2col, and permute+flatten fc6_w so the fc kernel consumes the NHWC
    flatten order with one merged contraction dimension."""
    P = resolution * resolution
    cin0 = params["xconvs"][0][0].shape[2]
    chd = params["xconvs"][0][0].shape[3]
    C_pad = max(_round_up(cin0, 128), _round_up(chd, 128))

    conv_w, conv_b = [], []
    for w, b in params["xconvs"]:
        _, _, ci, co = w.shape
        wp = jnp.zeros((3, 3, C_pad, C_pad), jnp.float32)
        wp = wp.at[:, :, :ci, :co].set(w)
        conv_w.append(wp.reshape(9 * C_pad, C_pad).astype(jnp.bfloat16))
        bp = jnp.zeros((1, C_pad), jnp.float32).at[0, :co].set(b)
        conv_b.append(bp)

    fc_w = params["fc6_w"]                      # (chd*P, rep), NCHW row order
    rep = fc_w.shape[1]
    N_pad = _round_up(rep, 128)
    w3 = fc_w.reshape(chd, P, rep).transpose(1, 0, 2)      # (P, chd, rep)
    w3p = jnp.zeros((P, C_pad, N_pad), jnp.float32)
    w3p = w3p.at[:, :chd, :rep].set(w3)
    fc_w2 = w3p.reshape(P * C_pad, N_pad).astype(jnp.bfloat16)  # merged K rows
    fcb = jnp.zeros((1, N_pad), jnp.float32).at[0, :rep].set(params["fc6_b"])

    return {"conv_w": conv_w, "conv_b": conv_b, "fc_w": fc_w2, "fc_b": fcb}


# ----------------------------------------------------------------------------
# Pure-JAX f32 reference (module semantics) for correctness checking.
# ----------------------------------------------------------------------------
def reference_forward(feat, rois, params, resolution, spatial_scale,
                      sampling_ratio):
    x = roi_align_nhwc(feat, rois, resolution, spatial_scale, sampling_ratio)
    for w, b in params["xconvs"]:
        x = jax.lax.conv_general_dilated(
            x, w, window_strides=(1, 1), padding="SAME",
            dimension_numbers=("NHWC", "HWIO", "NHWC"))
        x = jnp.maximum(x + b, 0.0)
    R = x.shape[0]
    x_flat = jnp.transpose(x, (0, 3, 1, 2)).reshape(R, -1)   # NCHW flatten
    return jnp.maximum(x_flat @ params["fc6_w"] + params["fc6_b"], 0.0)


if __name__ == "__main__":
    # Small synthetic config (mirrors cfg.MODEL.ROI_BOX_HEAD.*)
    resolution = 8            # POOLER_RESOLUTION
    spatial_scale = 0.25      # POOLER_SCALES[0]
    sampling_ratio = 2        # POOLER_SAMPLING_RATIO
    in_channels = 16
    conv_head_dim = 32        # CONV_HEAD_DIM
    num_stacked_convs = 2     # NUM_STACKED_CONVS
    representation_size = 64  # MLP_HEAD_DIM

    key = jax.random.PRNGKey(0)
    k_feat, k_par = jax.random.split(key)

    # Backbone feature map (NCHW): [2, 16, 16, 16]
    feat = jax.random.normal(k_feat, (2, in_channels, 16, 16), jnp.float32)

    # Proposals: (R, 5) = [batch_idx, x1, y1, x2, y2] in image coords
    # (image is 64x64 at scale 0.25).
    rois = jnp.array([
        [0.,  4.,  4., 36., 40.],
        [0., 10., 16., 58., 50.],
        [1.,  0.,  0., 30., 30.],
        [1., 20.,  8., 60., 60.],
    ], dtype=jnp.float32)

    params = init_params(k_par, in_channels, conv_head_dim, num_stacked_convs,
                         resolution, representation_size)
    prep = prepare_params(params, resolution)

    out = fpn_xconv1fc_forward(feat, rois, prep, resolution=resolution,
                               spatial_scale=spatial_scale,
                               sampling_ratio=sampling_ratio,
                               representation_size=representation_size,
                               roi_tile=32)
    out = jax.block_until_ready(out)
    assert out.shape == (rois.shape[0], representation_size), out.shape
    assert bool(jnp.all(jnp.isfinite(out)))

    # Correctness vs f32 reference (bf16 MXU inputs -> generous tolerance).
    ref = reference_forward(feat, rois, params, resolution, spatial_scale,
                            sampling_ratio)
    err = float(jnp.max(jnp.abs(out - ref)))
    scale = float(jnp.max(jnp.abs(ref))) + 1e-6
    assert err <= 0.05 * scale + 1e-3, (err, scale)

    print("KERNEL_OK")
</pallas_src>

<mosaic_0001>
module attributes {stable_mosaic.version = 11 : i64} {
  func.func @kernel(%arg0: i32, %arg1: memref<4x8x8x128xbf16, #tpu.memory_space<vmem>>, %arg2: memref<1152x128xbf16, #tpu.memory_space<vmem>>, %arg3: memref<1x128xf32, #tpu.memory_space<vmem>>, %arg4: memref<1152x128xbf16, #tpu.memory_space<vmem>>, %arg5: memref<1x128xf32, #tpu.memory_space<vmem>>, %arg6: memref<4x64x128xbf16, #tpu.memory_space<vmem>>, %arg7: memref<4x10x10x128xbf16, #tpu.memory_space<vmem>>) attributes {dimension_semantics = [#tpu.dimension_semantics<parallel>], iteration_bounds = array<i64: 2>, scalar_prefetch = 0 : i64, scratch_operands = 1 : i64, tpu.core_type = #tpu.core_type<tc>, window_params = [{transform_indices = @transform_0, window_bounds = array<i64: 4, 8, 8, 128>}, {pipeline_mode = #tpu.pipeline_mode<synchronous>, transform_indices = @transform_1, window_bounds = array<i64: 1152, 128>}, {pipeline_mode = #tpu.pipeline_mode<synchronous>, transform_indices = @transform_2, window_bounds = array<i64: 1, 128>}, {pipeline_mode = #tpu.pipeline_mode<synchronous>, transform_indices = @transform_3, window_bounds = array<i64: 1152, 128>}, {pipeline_mode = #tpu.pipeline_mode<synchronous>, transform_indices = @transform_4, window_bounds = array<i64: 1, 128>}, {transform_indices = @transform_5, window_bounds = array<i64: 4, 64, 128>}]} {
    %cst = arith.constant 0.000000e+00 : bf16
    %0 = vector.broadcast %cst : bf16 to vector<4x1x10x128xbf16>
    %cst_0 = arith.constant 0.000000e+00 : bf16
    %1 = vector.broadcast %cst_0 : bf16 to vector<4x10x1x128xbf16>
    %c0 = arith.constant 0 : index
    %c0_1 = arith.constant 0 : index
    %c0_2 = arith.constant 0 : index
    %c0_3 = arith.constant 0 : index
    %2 = vector.load %arg7[%c0, %c0_1, %c0_2, %c0_3] : memref<4x10x10x128xbf16, #tpu.memory_space<vmem>>, vector<4x1x10x128xbf16>
    tpu.vector_store %arg7[%c0, %c0_1, %c0_2, %c0_3], %0 {strides = array<i32>} : memref<4x10x10x128xbf16, #tpu.memory_space<vmem>>, vector<4x1x10x128xbf16>,
    %c0_4 = arith.constant 0 : index
    %c9 = arith.constant 9 : index
    %c0_5 = arith.constant 0 : index
    %c0_6 = arith.constant 0 : index
    %3 = vector.load %arg7[%c0_4, %c9, %c0_5, %c0_6] : memref<4x10x10x128xbf16, #tpu.memory_space<vmem>>, vector<4x1x10x128xbf16>
    tpu.vector_store %arg7[%c0_4, %c9, %c0_5, %c0_6], %0 {strides = array<i32>} : memref<4x10x10x128xbf16, #tpu.memory_space<vmem>>, vector<4x1x10x128xbf16>,
    %c0_7 = arith.constant 0 : index
    %c0_8 = arith.constant 0 : index
    %c0_9 = arith.constant 0 : index
    %c0_10 = arith.constant 0 : index
    %4 = vector.load %arg7[%c0_7, %c0_8, %c0_9, %c0_10] : memref<4x10x10x128xbf16, #tpu.memory_space<vmem>>, vector<4x10x1x128xbf16>
    tpu.vector_store %arg7[%c0_7, %c0_8, %c0_9, %c0_10], %1 {strides = array<i32>} : memref<4x10x10x128xbf16, #tpu.memory_space<vmem>>, vector<4x10x1x128xbf16>,
    %c0_11 = arith.constant 0 : index
    %c0_12 = arith.constant 0 : index
    %c9_13 = arith.constant 9 : index
    %c0_14 = arith.constant 0 : index
    %5 = vector.load %arg7[%c0_11, %c0_12, %c9_13, %c0_14] : memref<4x10x10x128xbf16, #tpu.memory_space<vmem>>, vector<4x10x1x128xbf16>
    tpu.vector_store %arg7[%c0_11, %c0_12, %c9_13, %c0_14], %1 {strides = array<i32>} : memref<4x10x10x128xbf16, #tpu.memory_space<vmem>>, vector<4x10x1x128xbf16>,
    %c0_15 = arith.constant 0 : index
    %c0_16 = arith.constant 0 : index
    %c0_17 = arith.constant 0 : index
    %c0_18 = arith.constant 0 : index
    %6 = vector.load %arg1[%c0_15, %c0_16, %c0_17, %c0_18] : memref<4x8x8x128xbf16, #tpu.memory_space<vmem>>, vector<4x8x8x128xbf16>
    %c0_19 = arith.constant 0 : index
    %c1 = arith.constant 1 : index
    %c1_20 = arith.constant 1 : index
    %c0_21 = arith.constant 0 : index
    %7 = vector.load %arg7[%c0_19, %c1, %c1_20, %c0_21] : memref<4x10x10x128xbf16, #tpu.memory_space<vmem>>, vector<4x8x8x128xbf16>
    tpu.vector_store %arg7[%c0_19, %c1, %c1_20, %c0_21], %6 {strides = array<i32>} : memref<4x10x10x128xbf16, #tpu.memory_space<vmem>>, vector<4x8x8x128xbf16>,
    %cst_22 = arith.constant 0.000000e+00 : f32
    %8 = vector.broadcast %cst_22 : f32 to vector<256x128xf32>
    %c0_23 = arith.constant 0 : index
    %c0_24 = arith.constant 0 : index
    %c0_25 = arith.constant 0 : index
    %c0_26 = arith.constant 0 : index
    %9 = vector.load %arg7[%c0_23, %c0_24, %c0_25, %c0_26] : memref<4x10x10x128xbf16, #tpu.memory_space<vmem>>, vector<4x8x8x128xbf16>
    %c0_27 = arith.constant 0 : index
    %c0_28 = arith.constant 0 : index
    %c1_29 = arith.constant 1 : index
    %c0_30 = arith.constant 0 : index
    %10 = vector.load %arg7[%c0_27, %c0_28, %c1_29, %c0_30] : memref<4x10x10x128xbf16, #tpu.memory_space<vmem>>, vector<4x8x8x128xbf16>
    %11 = tpu.concatenate %9, %10 in 3 : vector<4x8x8x128xbf16>, vector<4x8x8x128xbf16> -> vector<4x8x8x256xbf16>
    %12 = vector.shape_cast %11 : vector<4x8x8x256xbf16> to vector<256x256xbf16>
    %c0_31 = arith.constant 0 : index
    %c0_32 = arith.constant 0 : index
    %13 = vector.load %arg2[%c0_31, %c0_32] : memref<1152x128xbf16, #tpu.memory_space<vmem>>, vector<256x128xbf16>
    %cst_33 = arith.constant dense<0.000000e+00> : vector<256x128xf32>
    %14 = tpu.matmul %12, %13, %cst_33 {dimension_numbers = #tpu.dot_dimension_numbers<[1], [0], [0], [1], [0, 0, 1, 1], [], []>} : vector<256x256xbf16>, vector<256x128xbf16>, vector<256x128xf32> -> vector<256x128xf32>
    %15 = arith.addf %8, %14 : vector<256x128xf32>
    %c0_34 = arith.constant 0 : index
    %c0_35 = arith.constant 0 : index
    %c2 = arith.constant 2 : index
    %c0_36 = arith.constant 0 : index
    %16 = vector.load %arg7[%c0_34, %c0_35, %c2, %c0_36] : memref<4x10x10x128xbf16, #tpu.memory_space<vmem>>, vector<4x8x8x128xbf16>
    %c0_37 = arith.constant 0 : index
    %c1_38 = arith.constant 1 : index
    %c0_39 = arith.constant 0 : index
    %c0_40 = arith.constant 0 : index
    %17 = vector.load %arg7[%c0_37, %c1_38, %c0_39, %c0_40] : memref<4x10x10x128xbf16, #tpu.memory_space<vmem>>, vector<4x8x8x128xbf16>
    %18 = tpu.concatenate %16, %17 in 3 : vector<4x8x8x128xbf16>, vector<4x8x8x128xbf16> -> vector<4x8x8x256xbf16>
    %19 = vector.shape_cast %18 : vector<4x8x8x256xbf16> to vector<256x256xbf16>
    %c256 = arith.constant 256 : index
    %c0_41 = arith.constant 0 : index
    %20 = vector.load %arg2[%c256, %c0_41] : memref<1152x128xbf16, #tpu.memory_space<vmem>>, vector<256x128xbf16>
    %cst_42 = arith.constant dense<0.000000e+00> : vector<256x128xf32>
    %21 = tpu.matmul %19, %20, %cst_42 {dimension_numbers = #tpu.dot_dimension_numbers<[1], [0], [0], [1], [0, 0, 1, 1], [], []>} : vector<256x256xbf16>, vector<256x128xbf16>, vector<256x128xf32> -> vector<256x128xf32>
    %22 = arith.addf %15, %21 : vector<256x128xf32>
    %c0_43 = arith.constant 0 : index
    %c1_44 = arith.constant 1 : index
    %c1_45 = arith.constant 1 : index
    %c0_46 = arith.constant 0 : index
    %23 = vector.load %arg7[%c0_43, %c1_44, %c1_45, %c0_46] : memref<4x10x10x128xbf16, #tpu.memory_space<vmem>>, vector<4x8x8x128xbf16>
    %c0_47 = arith.constant 0 : index
    %c1_48 = arith.constant 1 : index
    %c2_49 = arith.constant 2 : index
    %c0_50 = arith.constant 0 : index
    %24 = vector.load %arg7[%c0_47, %c1_48, %c2_49, %c0_50] : memref<4x10x10x128xbf16, #tpu.memory_space<vmem>>, vector<4x8x8x128xbf16>
    %25 = tpu.concatenate %23, %24 in 3 : vector<4x8x8x128xbf16>, vector<4x8x8x128xbf16> -> vector<4x8x8x256xbf16>
    %26 = vector.shape_cast %25 : vector<4x8x8x256xbf16> to vector<256x256xbf16>
    %c512 = arith.constant 512 : index
    %c0_51 = arith.constant 0 : index
    %27 = vector.load %arg2[%c512, %c0_51] : memref<1152x128xbf16, #tpu.memory_space<vmem>>, vector<256x128xbf16>
    %cst_52 = arith.constant dense<0.000000e+00> : vector<256x128xf32>
    %28 = tpu.matmul %26, %27, %cst_52 {dimension_numbers = #tpu.dot_dimension_numbers<[1], [0], [0], [1], [0, 0, 1, 1], [], []>} : vector<256x256xbf16>, vector<256x128xbf16>, vector<256x128xf32> -> vector<256x128xf32>
    %29 = arith.addf %22, %28 : vector<256x128xf32>
    %c0_53 = arith.constant 0 : index
    %c2_54 = arith.constant 2 : index
    %c0_55 = arith.constant 0 : index
    %c0_56 = arith.constant 0 : index
    %30 = vector.load %arg7[%c0_53, %c2_54, %c0_55, %c0_56] : memref<4x10x10x128xbf16, #tpu.memory_space<vmem>>, vector<4x8x8x128xbf16>
    %c0_57 = arith.constant 0 : index
    %c2_58 = arith.constant 2 : index
    %c1_59 = arith.constant 1 : index
    %c0_60 = arith.constant 0 : index
    %31 = vector.load %arg7[%c0_57, %c2_58, %c1_59, %c0_60] : memref<4x10x10x128xbf16, #tpu.memory_space<vmem>>, vector<4x8x8x128xbf16>
    %32 = tpu.concatenate %30, %31 in 3 : vector<4x8x8x128xbf16>, vector<4x8x8x128xbf16> -> vector<4x8x8x256xbf16>
    %33 = vector.shape_cast %32 : vector<4x8x8x256xbf16> to vector<256x256xbf16>
    %c768 = arith.constant 768 : index
    %c0_61 = arith.constant 0 : index
    %34 = vector.load %arg2[%c768, %c0_61] : memref<1152x128xbf16, #tpu.memory_space<vmem>>, vector<256x128xbf16>
    %cst_62 = arith.constant dense<0.000000e+00> : vector<256x128xf32>
    %35 = tpu.matmul %33, %34, %cst_62 {dimension_numbers = #tpu.dot_dimension_numbers<[1], [0], [0], [1], [0, 0, 1, 1], [], []>} : vector<256x256xbf16>, vector<256x128xbf16>, vector<256x128xf32> -> vector<256x128xf32>
    %36 = arith.addf %29, %35 : vector<256x128xf32>
    %c0_63 = arith.constant 0 : index
    %c2_64 = arith.constant 2 : index
    %c2_65 = arith.constant 2 : index
    %c0_66 = arith.constant 0 : index
    %37 = vector.load %arg7[%c0_63, %c2_64, %c2_65, %c0_66] : memref<4x10x10x128xbf16, #tpu.memory_space<vmem>>, vector<4x8x8x128xbf16>
    %38 = vector.shape_cast %37 : vector<4x8x8x128xbf16> to vector<256x128xbf16>
    %c1024 = arith.constant 1024 : index
    %c0_67 = arith.constant 0 : index
    %39 = vector.load %arg2[%c1024, %c0_67] : memref<1152x128xbf16, #tpu.memory_space<vmem>>, vector<128x128xbf16>
    %cst_68 = arith.constant dense<0.000000e+00> : vector<256x128xf32>
    %40 = tpu.matmul %38, %39, %cst_68 {dimension_numbers = #tpu.dot_dimension_numbers<[1], [0], [0], [1], [0, 0, 1, 1], [], []>} : vector<256x128xbf16>, vector<128x128xbf16>, vector<256x128xf32> -> vector<256x128xf32>
    %41 = arith.addf %36, %40 : vector<256x128xf32>
    %c0_69 = arith.constant 0 : index
    %c0_70 = arith.constant 0 : index
    %42 = vector.load %arg3[%c0_69, %c0_70] : memref<1x128xf32, #tpu.memory_space<vmem>>, vector<1x128xf32>
    %43 = vector.broadcast %42 : vector<1x128xf32> to vector<256x128xf32>
    %44 = arith.addf %41, %43 : vector<256x128xf32>
    %cst_71 = arith.constant 0.000000e+00 : f32
    %45 = vector.broadcast %cst_71 : f32 to vector<256x128xf32>
    %46 = arith.maximumf %44, %45 : vector<256x128xf32>
    %47 = arith.truncf %46 : vector<256x128xf32> to vector<256x128xbf16>
    %48 = vector.shape_cast %47 : vector<256x128xbf16> to vector<4x8x8x128xbf16>
    %c0_72 = arith.constant 0 : index
    %c1_73 = arith.constant 1 : index
    %c1_74 = arith.constant 1 : index
    %c0_75 = arith.constant 0 : index
    %49 = vector.load %arg7[%c0_72, %c1_73, %c1_74, %c0_75] : memref<4x10x10x128xbf16, #tpu.memory_space<vmem>>, vector<4x8x8x128xbf16>
    tpu.vector_store %arg7[%c0_72, %c1_73, %c1_74, %c0_75], %48 {strides = array<i32>} : memref<4x10x10x128xbf16, #tpu.memory_space<vmem>>, vector<4x8x8x128xbf16>,
    %cst_76 = arith.constant 0.000000e+00 : f32
    %50 = vector.broadcast %cst_76 : f32 to vector<256x128xf32>
    %c0_77 = arith.constant 0 : index
    %c0_78 = arith.constant 0 : index
    %c0_79 = arith.constant 0 : index
    %c0_80 = arith.constant 0 : index
    %51 = vector.load %arg7[%c0_77, %c0_78, %c0_79, %c0_80] : memref<4x10x10x128xbf16, #tpu.memory_space<vmem>>, vector<4x8x8x128xbf16>
    %c0_81 = arith.constant 0 : index
    %c0_82 = arith.constant 0 : index
    %c1_83 = arith.constant 1 : index
    %c0_84 = arith.constant 0 : index
    %52 = vector.load %arg7[%c0_81, %c0_82, %c1_83, %c0_84] : memref<4x10x10x128xbf16, #tpu.memory_space<vmem>>, vector<4x8x8x128xbf16>
    %53 = tpu.concatenate %51, %52 in 3 : vector<4x8x8x128xbf16>, vector<4x8x8x128xbf16> -> vector<4x8x8x256xbf16>
    %54 = vector.shape_cast %53 : vector<4x8x8x256xbf16> to vector<256x256xbf16>
    %c0_85 = arith.constant 0 : index
    %c0_86 = arith.constant 0 : index
    %55 = vector.load %arg4[%c0_85, %c0_86] : memref<1152x128xbf16, #tpu.memory_space<vmem>>, vector<256x128xbf16>
    %cst_87 = arith.constant dense<0.000000e+00> : vector<256x128xf32>
    %56 = tpu.matmul %54, %55, %cst_87 {dimension_numbers = #tpu.dot_dimension_numbers<[1], [0], [0], [1], [0, 0, 1, 1], [], []>} : vector<256x256xbf16>, vector<256x128xbf16>, vector<256x128xf32> -> vector<256x128xf32>
    %57 = arith.addf %50, %56 : vector<256x128xf32>
    %c0_88 = arith.constant 0 : index
    %c0_89 = arith.constant 0 : index
    %c2_90 = arith.constant 2 : index
    %c0_91 = arith.constant 0 : index
    %58 = vector.load %arg7[%c0_88, %c0_89, %c2_90, %c0_91] : memref<4x10x10x128xbf16, #tpu.memory_space<vmem>>, vector<4x8x8x128xbf16>
    %c0_92 = arith.constant 0 : index
    %c1_93 = arith.constant 1 : index
    %c0_94 = arith.constant 0 : index
    %c0_95 = arith.constant 0 : index
    %59 = vector.load %arg7[%c0_92, %c1_93, %c0_94, %c0_95] : memref<4x10x10x128xbf16, #tpu.memory_space<vmem>>, vector<4x8x8x128xbf16>
    %60 = tpu.concatenate %58, %59 in 3 : vector<4x8x8x128xbf16>, vector<4x8x8x128xbf16> -> vector<4x8x8x256xbf16>
    %61 = vector.shape_cast %60 : vector<4x8x8x256xbf16> to vector<256x256xbf16>
    %c256_96 = arith.constant 256 : index
    %c0_97 = arith.constant 0 : index
    %62 = vector.load %arg4[%c256_96, %c0_97] : memref<1152x128xbf16, #tpu.memory_space<vmem>>, vector<256x128xbf16>
    %cst_98 = arith.constant dense<0.000000e+00> : vector<256x128xf32>
    %63 = tpu.matmul %61, %62, %cst_98 {dimension_numbers = #tpu.dot_dimension_numbers<[1], [0], [0], [1], [0, 0, 1, 1], [], []>} : vector<256x256xbf16>, vector<256x128xbf16>, vector<256x128xf32> -> vector<256x128xf32>
    %64 = arith.addf %57, %63 : vector<256x128xf32>
    %c0_99 = arith.constant 0 : index
    %c1_100 = arith.constant 1 : index
    %c1_101 = arith.constant 1 : index
    %c0_102 = arith.constant 0 : index
    %65 = vector.load %arg7[%c0_99, %c1_100, %c1_101, %c0_102] : memref<4x10x10x128xbf16, #tpu.memory_space<vmem>>, vector<4x8x8x128xbf16>
    %c0_103 = arith.constant 0 : index
    %c1_104 = arith.constant 1 : index
    %c2_105 = arith.constant 2 : index
    %c0_106 = arith.constant 0 : index
    %66 = vector.load %arg7[%c0_103, %c1_104, %c2_105, %c0_106] : memref<4x10x10x128xbf16, #tpu.memory_space<vmem>>, vector<4x8x8x128xbf16>
    %67 = tpu.concatenate %65, %66 in 3 : vector<4x8x8x128xbf16>, vector<4x8x8x128xbf16> -> vector<4x8x8x256xbf16>
    %68 = vector.shape_cast %67 : vector<4x8x8x256xbf16> to vector<256x256xbf16>
    %c512_107 = arith.constant 512 : index
    %c0_108 = arith.constant 0 : index
    %69 = vector.load %arg4[%c512_107, %c0_108] : memref<1152x128xbf16, #tpu.memory_space<vmem>>, vector<256x128xbf16>
    %cst_109 = arith.constant dense<0.000000e+00> : vector<256x128xf32>
    %70 = tpu.matmul %68, %69, %cst_109 {dimension_numbers = #tpu.dot_dimension_numbers<[1], [0], [0], [1], [0, 0, 1, 1], [], []>} : vector<256x256xbf16>, vector<256x128xbf16>, vector<256x128xf32> -> vector<256x128xf32>
    %71 = arith.addf %64, %70 : vector<256x128xf32>
    %c0_110 = arith.constant 0 : index
    %c2_111 = arith.constant 2 : index
    %c0_112 = arith.constant 0 : index
    %c0_113 = arith.constant 0 : index
    %72 = vector.load %arg7[%c0_110, %c2_111, %c0_112, %c0_113] : memref<4x10x10x128xbf16, #tpu.memory_space<vmem>>, vector<4x8x8x128xbf16>
    %c0_114 = arith.constant 0 : index
    %c2_115 = arith.constant 2 : index
    %c1_116 = arith.constant 1 : index
    %c0_117 = arith.constant 0 : index
    %73 = vector.load %arg7[%c0_114, %c2_115, %c1_116, %c0_117] : memref<4x10x10x128xbf16, #tpu.memory_space<vmem>>, vector<4x8x8x128xbf16>
    %74 = tpu.concatenate %72, %73 in 3 : vector<4x8x8x128xbf16>, vector<4x8x8x128xbf16> -> vector<4x8x8x256xbf16>
    %75 = vector.shape_cast %74 : vector<4x8x8x256xbf16> to vector<256x256xbf16>
    %c768_118 = arith.constant 768 : index
    %c0_119 = arith.constant 0 : index
    %76 = vector.load %arg4[%c768_118, %c0_119] : memref<1152x128xbf16, #tpu.memory_space<vmem>>, vector<256x128xbf16>
    %cst_120 = arith.constant dense<0.000000e+00> : vector<256x128xf32>
    %77 = tpu.matmul %75, %76, %cst_120 {dimension_numbers = #tpu.dot_dimension_numbers<[1], [0], [0], [1], [0, 0, 1, 1], [], []>} : vector<256x256xbf16>, vector<256x128xbf16>, vector<256x128xf32> -> vector<256x128xf32>
    %78 = arith.addf %71, %77 : vector<256x128xf32>
    %c0_121 = arith.constant 0 : index
    %c2_122 = arith.constant 2 : index
    %c2_123 = arith.constant 2 : index
    %c0_124 = arith.constant 0 : index
    %79 = vector.load %arg7[%c0_121, %c2_122, %c2_123, %c0_124] : memref<4x10x10x128xbf16, #tpu.memory_space<vmem>>, vector<4x8x8x128xbf16>
    %80 = vector.shape_cast %79 : vector<4x8x8x128xbf16> to vector<256x128xbf16>
    %c1024_125 = arith.constant 1024 : index
    %c0_126 = arith.constant 0 : index
    %81 = vector.load %arg4[%c1024_125, %c0_126] : memref<1152x128xbf16, #tpu.memory_space<vmem>>, vector<128x128xbf16>
    %cst_127 = arith.constant dense<0.000000e+00> : vector<256x128xf32>
    %82 = tpu.matmul %80, %81, %cst_127 {dimension_numbers = #tpu.dot_dimension_numbers<[1], [0], [0], [1], [0, 0, 1, 1], [], []>} : vector<256x128xbf16>, vector<128x128xbf16>, vector<256x128xf32> -> vector<256x128xf32>
    %83 = arith.addf %78, %82 : vector<256x128xf32>
    %c0_128 = arith.constant 0 : index
    %c0_129 = arith.constant 0 : index
    %84 = vector.load %arg5[%c0_128, %c0_129] : memref<1x128xf32, #tpu.memory_space<vmem>>, vector<1x128xf32>
    %85 = vector.broadcast %84 : vector<1x128xf32> to vector<256x128xf32>
    %86 = arith.addf %83, %85 : vector<256x128xf32>
    %cst_130 = arith.constant 0.000000e+00 : f32
    %87 = vector.broadcast %cst_130 : f32 to vector<256x128xf32>
    %88 = arith.maximumf %86, %87 : vector<256x128xf32>
    %89 = arith.truncf %88 : vector<256x128xf32> to vector<256x128xbf16>
    %90 = vector.shape_cast %89 : vector<256x128xbf16> to vector<4x8x8x128xbf16>
    %91 = vector.shape_cast %90 : vector<4x8x8x128xbf16> to vector<4x64x128xbf16>
    %c0_131 = arith.constant 0 : index
    %c0_132 = arith.constant 0 : index
    %c0_133 = arith.constant 0 : index
    %92 = vector.load %arg6[%c0_131, %c0_132, %c0_133] : memref<4x64x128xbf16, #tpu.memory_space<vmem>>, vector<4x64x128xbf16>
    tpu.vector_store %arg6[%c0_131, %c0_132, %c0_133], %91 {strides = array<i32>} : memref<4x64x128xbf16, #tpu.memory_space<vmem>>, vector<4x64x128xbf16>,
    return
  }
  func.func @transform_0(%arg0: i32) -> (i32, i32, i32, i32) {
    %c0_i32 = arith.constant 0 : i32
    %c0_i32_0 = arith.constant 0 : i32
    %c0_i32_1 = arith.constant 0 : i32
    %c0_i32_2 = arith.constant 0 : i32
    return %arg0, %c0_i32, %c0_i32_0, %c0_i32_1 : i32, i32, i32, i32
  }
  func.func @transform_1(%arg0: i32) -> (i32, i32) {
    %c0_i32 = arith.constant 0 : i32
    %c0_i32_0 = arith.constant 0 : i32
    %c0_i32_1 = arith.constant 0 : i32
    return %c0_i32, %c0_i32_0 : i32, i32
  }
  func.func @transform_2(%arg0: i32) -> (i32, i32) {
    %c0_i32 = arith.constant 0 : i32
    %c0_i32_0 = arith.constant 0 : i32
    %c0_i32_1 = arith.constant 0 : i32
    return %c0_i32, %c0_i32_0 : i32, i32
  }
  func.func @transform_3(%arg0: i32) -> (i32, i32) {
    %c0_i32 = arith.constant 0 : i32
    %c0_i32_0 = arith.constant 0 : i32
    %c0_i32_1 = arith.constant 0 : i32
    return %c0_i32, %c0_i32_0 : i32, i32
  }
  func.func @transform_4(%arg0: i32) -> (i32, i32) {
    %c0_i32 = arith.constant 0 : i32
    %c0_i32_0 = arith.constant 0 : i32
    %c0_i32_1 = arith.constant 0 : i32
    return %c0_i32, %c0_i32_0 : i32, i32
  }
  func.func @transform_5(%arg0: i32) -> (i32, i32, i32) {
    %c0_i32 = arith.constant 0 : i32
    %c0_i32_0 = arith.constant 0 : i32
    %c0_i32_1 = arith.constant 0 : i32
    return %arg0, %c0_i32, %c0_i32_0 : i32, i32, i32
  }
}

module attributes {stable_mosaic.version = 11 : i64} {
  func.func @fc_kernel(%arg0: i32, %arg1: i32, %arg2: i32, %arg3: memref<8x2048xbf16, #tpu.memory_space<vmem>>, %arg4: memref<2048x128xbf16, #tpu.memory_space<vmem>>, %arg5: memref<1x128xf32, #tpu.memory_space<vmem>>, %arg6: memref<8x128xf32, #tpu.memory_space<vmem>>, %arg7: memref<8x128xf32, #tpu.memory_space<vmem>>) attributes {dimension_semantics = [#tpu.dimension_semantics<parallel>, #tpu.dimension_semantics<parallel>, #tpu.dimension_semantics<arbitrary>], iteration_bounds = array<i64: 1, 1, 4>, scalar_prefetch = 0 : i64, scratch_operands = 1 : i64, tpu.core_type = #tpu.core_type<tc>, window_params = [{transform_indices = @transform_0, window_bounds = array<i64: 8, 2048>}, {transform_indices = @transform_1, window_bounds = array<i64: 2048, 128>}, {transform_indices = @transform_2, window_bounds = array<i64: 1, 128>}, {transform_indices = @transform_3, window_bounds = array<i64: 8, 128>}]} {
    %c0_i32 = arith.constant 0 : i32
    %0 = arith.cmpi eq, %arg2, %c0_i32 : i32
    %1 = arith.extui %0 : i1 to i32
    %c0_i32_0 = arith.constant 0 : i32
    %2 = arith.cmpi ne, %1, %c0_i32_0 : i32
    scf.if %2 {
      %cst_9 = arith.constant 0.000000e+00 : f32
      %12 = vector.broadcast %cst_9 : f32 to vector<8x128xf32>
      %c0_10 = arith.constant 0 : index
      %c0_11 = arith.constant 0 : index
      %13 = vector.load %arg7[%c0_10, %c0_11] : memref<8x128xf32, #tpu.memory_space<vmem>>, vector<8x128xf32>
      tpu.vector_store %arg7[%c0_10, %c0_11], %12 {strides = array<i32>} : memref<8x128xf32, #tpu.memory_space<vmem>>, vector<8x128xf32>,
    } else {
    }
    %c0 = arith.constant 0 : index
    %c0_1 = arith.constant 0 : index
    %3 = vector.load %arg7[%c0, %c0_1] : memref<8x128xf32, #tpu.memory_space<vmem>>, vector<8x128xf32>
    %c0_2 = arith.constant 0 : index
    %c0_3 = arith.constant 0 : index
    %4 = vector.load %arg3[%c0_2, %c0_3] : memref<8x2048xbf16, #tpu.memory_space<vmem>>, vector<8x2048xbf16>
    %c0_4 = arith.constant 0 : index
    %c0_5 = arith.constant 0 : index
    %5 = vector.load %arg4[%c0_4, %c0_5] : memref<2048x128xbf16, #tpu.memory_space<vmem>>, vector<2048x128xbf16>
    %cst = arith.constant dense<0.000000e+00> : vector<8x128xf32>
    %6 = tpu.matmul %4, %5, %cst {dimension_numbers = #tpu.dot_dimension_numbers<[1], [0], [0], [1], [0, 0, 1, 1], [], []>} : vector<8x2048xbf16>, vector<2048x128xbf16>, vector<8x128xf32> -> vector<8x128xf32>
    %7 = arith.addf %3, %6 : vector<8x128xf32>
    %c0_6 = arith.constant 0 : index
    %c0_7 = arith.constant 0 : index
    %8 = vector.load %arg7[%c0_6, %c0_7] : memref<8x128xf32, #tpu.memory_space<vmem>>, vector<8x128xf32>
    tpu.vector_store %arg7[%c0_6, %c0_7], %7 {strides = array<i32>} : memref<8x128xf32, #tpu.memory_space<vmem>>, vector<8x128xf32>,
    %c3_i32 = arith.constant 3 : i32
    %9 = arith.cmpi eq, %arg2, %c3_i32 : i32
    %10 = arith.extui %9 : i1 to i32
    %c0_i32_8 = arith.constant 0 : i32
    %11 = arith.cmpi ne, %10, %c0_i32_8 : i32
    scf.if %11 {
      %c0_9 = arith.constant 0 : index
      %c0_10 = arith.constant 0 : index
      %12 = vector.load %arg7[%c0_9, %c0_10] : memref<8x128xf32, #tpu.memory_space<vmem>>, vector<8x128xf32>
      %c0_11 = arith.constant 0 : index
      %c0_12 = arith.constant 0 : index
      %13 = vector.load %arg5[%c0_11, %c0_12] : memref<1x128xf32, #tpu.memory_space<vmem>>, vector<1x128xf32>
      %14 = vector.broadcast %13 : vector<1x128xf32> to vector<8x128xf32>
      %15 = arith.addf %12, %14 : vector<8x128xf32>
      %cst_13 = arith.constant 0.000000e+00 : f32
      %16 = vector.broadcast %cst_13 : f32 to vector<8x128xf32>
      %17 = arith.maximumf %15, %16 : vector<8x128xf32>
      %c0_14 = arith.constant 0 : index
      %c0_15 = arith.constant 0 : index
      %18 = vector.load %arg6[%c0_14, %c0_15] : memref<8x128xf32, #tpu.memory_space<vmem>>, vector<8x128xf32>
      tpu.vector_store %arg6[%c0_14, %c0_15], %17 {strides = array<i32>} : memref<8x128xf32, #tpu.memory_space<vmem>>, vector<8x128xf32>,
    } else {
    }
    return
  }
  func.func @transform_0(%arg0: i32, %arg1: i32, %arg2: i32) -> (i32, i32) {
    %c0_i32 = arith.constant 0 : i32
    return %arg0, %arg2 : i32, i32
  }
  func.func @transform_1(%arg0: i32, %arg1: i32, %arg2: i32) -> (i32, i32) {
    %c0_i32 = arith.constant 0 : i32
    return %arg2, %arg1 : i32, i32
  }
  func.func @transform_2(%arg0: i32, %arg1: i32, %arg2: i32) -> (i32, i32) {
    %c0_i32 = arith.constant 0 : i32
    %c0_i32_0 = arith.constant 0 : i32
    return %c0_i32, %arg1 : i32, i32
  }
  func.func @transform_3(%arg0: i32, %arg1: i32, %arg2: i32) -> (i32, i32) {
    %c0_i32 = arith.constant 0 : i32
    return %arg0, %arg1 : i32, i32
  }
}

</mosaic_0001>

<bundles_post_ra>
// kernel: fpn_xconv1fc_forward.3
= control target key start
LH: loop header
LB: loop body
LE: loop exit
PB: predicated region body
PF: predicated region fallthrough
CT: control target
= control target key end

     0   :  { %s2345_s12 = smov 0   ;;  %s2347_s13 = smov 0   ;;  %s2530_s0 = inlined_call_operand.vmem [shape: bf16[8,8192], index: 0, kind: input, shape index: {}]   ;;  %s2531_s1 = inlined_call_operand.vmem [shape: bf16[8192,128], index: 1, kind: input, shape index: {}]   ;;  %s2532_s2 = inlined_call_operand.vmem [shape: f32[1,128], index: 2, kind: input, shape index: {}]   ;;  %s2533_s3 = inlined_call_operand.vmem [shape: f32[8,128], index: 3, kind: output, shape index: {}]  }
   0x1   :  { %s2349_s14 = smov 0  }
   0x2 LB: > { %s25_s15 = sadd.s32 1, %s2318_s13  ;;  %p1800_p0 = scmp.ge.s32.totalorder %s2322_s14, 1  ;;  %s2322_s14 = sphi %s2349_s14, %s13_s14   ;;  %s2318_s13 = sphi %s2347_s13, %s2535_s13   ;;  %s2314_s12 = sphi %s2345_s12, %s2534_s12  }
   0x3   : > { %p26_p1 = scmp.ge.s32.totalorder %s25_s15, 4  ;;  %p189_p2 = scmp.lt.s32.totalorder %s2322_s14, 5 }
   0x5   : > { %s2537_s15 = smov (%p26_p1, %s25_s15), 0  ;;  %p190_p3 = pnand %p1800_p0, %p189_p2 }
   0x6   : > { %s1801_s16 = sshll.u32 (!%p190_p3), %s2314_s12, 4  ;;  %s1803_s17 = sshll.u32 (!%p190_p3), %s2314_s12, 8 }
   0x7   : > { %193 = sbr.rel (%p190_p3) target bundleno = 368 (0x170), region = 32  ;;  %p233_p4 = scmp.lt.s32.totalorder (!%p190_p3), %s1801_s16, 63 }
   0x8   : > { %p241_p5 = scmp.lt.s32.totalorder (!%p190_p3), %s1803_s17, 1023  ;;  %p1805_p6 = scmp.ne.s32.totalorder (!%p190_p3), %s2314_s12, 0 }
   0xc   : > { %s2539_s16 = smov (!%p233_p4, %s1801_s16), 63  ;;  %s2541_s17 = smov (!%p241_p5, %s1803_s17), 1023 }
   0xd   : > { %s1802_s18 = sshll.u32 %s2539_s16, 2  ;;  %s1804_s22 = sshll.u32 %s2541_s17, 2 }
   0xe   : > { %s2370_s21 = scalar_lea.vmem %s2530_s0, %s1802_s18  ;;  %s2375_s25 = scalar_lea.vmem %s2531_s1, %s1804_s22 }
   0xf   : > { %263 = sbr.rel (%p1805_p6) target bundleno = 22 (0x16), region = 36 }
  0x14   : > { %v2324_v0 = vmov 0.0  }
  0x15   : > { %264 = vst [vmem:[#allocation2] sm:$0xff] %v2324_v0 }
  0x16 PF: > { %v2156_v1 = vld [vmem:[%s2375_s25 + $0x78] sm:$0xff]   ;;  %v2160_v5 = vld [vmem:[%s2375_s25 + $0x70] sm:$0xff]   ;;  %v2164_v9 = vld [vmem:[%s2375_s25 + $0x68] sm:$0xff]   ;;  %p1950_p7 = scmp.ne.s32.totalorder %s2314_s12, 3 }
  0x17   : > { %v2157_v2 = vld [vmem:[%s2375_s25 + $0xf8] sm:$0xff]   ;;  %1955 = vmatprep.subr.bf16.mxu0 %v2156_v1  ;;  %v2161_v6 = vld [vmem:[%s2375_s25 + $0xf0] sm:$0xff]   ;;  %v2165_v10 = vld [vmem:[%s2375_s25 + $0xe8] sm:$0xff]  }
  0x18   : > { %v2158_v3 = vld [vmem:[%s2375_s25 + $0x38] sm:$0xff]   ;;  %1977 = vmatprep.subr.bf16.mxu1 %v2157_v2  ;;  %v2162_v7 = vld [vmem:[%s2375_s25 + $0x30] sm:$0xff]   ;;  %v2166_v11 = vld [vmem:[%s2375_s25 + $0x28] sm:$0xff]  }
  0x19   : > { %v2159_v4 = vld [vmem:[%s2375_s25 + $0xb8] sm:$0xff]   ;;  %1956 = vmatpush3.bf16.msra.mxu0 %v2158_v3  ;;  %v2163_v8 = vld [vmem:[%s2375_s25 + $0xb0] sm:$0xff]   ;;  %v2167_v12 = vld [vmem:[%s2375_s25 + $0xa8] sm:$0xff]  }
  0x1a   : > { %1978 = vmatpush3.bf16.msra.mxu1 %v2159_v4  ;;  %1957 = vmatprep.subr.bf16.mxu0 %v2160_v5  ;;  %v2168_v13 = vld [vmem:[%s2375_s25 + $0x60] sm:$0xff]   ;;  %v2172_v17 = vld [vmem:[%s2375_s25 + $0x58] sm:$0xff]   ;;  %v2176_v21 = vld [vmem:[%s2375_s25 + $0x50] sm:$0xff]  }
  0x1b   : > { %1979 = vmatprep.subr.bf16.mxu1 %v2161_v6  ;;  %v2169_v14 = vld [vmem:[%s2375_s25 + $0xe0] sm:$0xff]   ;;  %v2173_v18 = vld [vmem:[%s2375_s25 + $0xd8] sm:$0xff]   ;;  %v2177_v22 = vld [vmem:[%s2375_s25 + $0xd0] sm:$0xff]  }
  0x1c   : > { %v2170_v15 = vld [vmem:[%s2375_s25 + $0x20] sm:$0xff]   ;;  %v2174_v19 = vld [vmem:[%s2375_s25 + $0x18] sm:$0xff]   ;;  %v2178_v23 = vld [vmem:[%s2375_s25 + $0x10] sm:$0xff]  }
  0x1d   : > { %1958 = vmatpush3.bf16.msra.mxu0 %v2162_v7  ;;  %v2171_v16 = vld [vmem:[%s2375_s25 + $0xa0] sm:$0xff]   ;;  %v2175_v20 = vld [vmem:[%s2375_s25 + $0x98] sm:$0xff]   ;;  %v2179_v24 = vld [vmem:[%s2375_s25 + $0x90] sm:$0xff]  }
  0x1e   : > { %1980 = vmatpush3.bf16.msra.mxu1 %v2163_v8  ;;  %1959 = vmatprep.subr.bf16.mxu0 %v2164_v9  ;;  %v2180_v25 = vld [vmem:[%s2375_s25 + $0x48] sm:$0xff]   ;;  %v2184_v29 = vld [vmem:[%s2375_s25 + $0x40] sm:$0xff]   ;;  %v2192_v39 = vld [vmem:[%s2375_s25 + $0x178] sm:$0xff]  }
  0x1f   : > { %1981 = vmatprep.subr.bf16.mxu1 %v2165_v10  ;;  %v2181_v26 = vld [vmem:[%s2375_s25 + $0xc8] sm:$0xff]   ;;  %v2185_v30 = vld [vmem:[%s2375_s25 + $0xc0] sm:$0xff]   ;;  %v2193_v40 = vld [vmem:[%s2375_s25 + $0x1f8] sm:$0xff]  }
  0x20   : > { %v2182_v27 = vld [vmem:[%s2375_s25 + $0x8] sm:$0xff]   ;;  %v2186_v31 = vld [vmem:[%s2375_s25] sm:$0xff]   ;;  %v2194_v41 = vld [vmem:[%s2375_s25 + $0x138] sm:$0xff]  }
  0x21   : > { %1960 = vmatpush3.bf16.msra.mxu0 %v2166_v11  ;;  %v2183_v28 = vld [vmem:[%s2375_s25 + $0x88] sm:$0xff]   ;;  %v2187_v32 = vld [vmem:[%s2375_s25 + $0x80] sm:$0xff]   ;;  %v2195_v42 = vld [vmem:[%s2375_s25 + $0x1b8] sm:$0xff]  }
  0x22   : > { %1982 = vmatpush3.bf16.msra.mxu1 %v2167_v12  ;;  %1961 = vmatprep.subr.bf16.mxu0 %v2168_v13  ;;  %v266_v33 = vld [vmem:[%s2370_s21] sm:$0xff]  ;;  %v267_v34 = vld [vmem:[%s2370_s21 + $0x8] sm:$0xff]  ;;  %v2196_v43 = vld [vmem:[%s2375_s25 + $0x170] sm:$0xff]  }
  0x23   : > { %1983 = vmatprep.subr.bf16.mxu1 %v2169_v14  ;;  %v1806_v35 = vcombine.low %v266_v33, %v266_v33  ;;  %v1807_v36 = vcombine.high %v266_v33, %v266_v33  ;;  %v1808_v37 = vcombine.low %v267_v34, %v267_v34  ;;  %v1809_v38 = vcombine.high %v267_v34, %v267_v34  ;;  %v2197_v44 = vld [vmem:[%s2375_s25 + $0x1f0] sm:$0xff]   ;;  %v2200_v47 = vld [vmem:[%s2375_s25 + $0x168] sm:$0xff]   ;;  %v2204_v51 = vld [vmem:[%s2375_s25 + $0x160] sm:$0xff]  }
  0x24   : > { %v2198_v45 = vld [vmem:[%s2375_s25 + $0x130] sm:$0xff]   ;;  %v2201_v48 = vld [vmem:[%s2375_s25 + $0x1e8] sm:$0xff]   ;;  %v2205_v52 = vld [vmem:[%s2375_s25 + $0x1e0] sm:$0xff]  }
  0x25   : > { %1962 = vmatpush3.bf16.msra.mxu0 %v2170_v15  ;;  %1386 = vmatprep.mubr.bf16.mxu0 %v1807_v36  ;;  %v2199_v46 = vld [vmem:[%s2375_s25 + $0x1b0] sm:$0xff]   ;;  %v2202_v49 = vld [vmem:[%s2375_s25 + $0x128] sm:$0xff]   ;;  %v2206_v53 = vld [vmem:[%s2375_s25 + $0x120] sm:$0xff]  }
  0x26   : > { %1984 = vmatpush3.bf16.msra.mxu1 %v2171_v16  ;;  %1963 = vmatprep.subr.bf16.mxu0 %v2172_v17  ;;  %v2203_v50 = vld [vmem:[%s2375_s25 + $0x1a8] sm:$0xff]   ;;  %v2207_v54 = vld [vmem:[%s2375_s25 + $0x1a0] sm:$0xff]   ;;  %v2208_v55 = vld [vmem:[%s2375_s25 + $0x158] sm:$0xff]  }
  0x27   : > { %1985 = vmatprep.subr.bf16.mxu1 %v2173_v18  ;;  %1426 = vmatprep.mubr.bf16.mxu1 %v1809_v38  ;;  %v2209_v56 = vld [vmem:[%s2375_s25 + $0x1d8] sm:$0xff]   ;;  %v2212_v59 = vld [vmem:[%s2375_s25 + $0x150] sm:$0xff]   ;;  %v2216_v63 = vld [vmem:[%s2375_s25 + $0x148] sm:$0xff]  }
  0x28   : > { %v2210_v57 = vld [vmem:[%s2375_s25 + $0x118] sm:$0xff]   ;;  %v2213_v60 = vld [vmem:[%s2375_s25 + $0x1d0] sm:$0xff]   ;;  %v2217_v0 = vld [vmem:[%s2375_s25 + $0x1c8] sm:$0xff]  }
  0x29   : > { %1964 = vmatpush3.bf16.msra.mxu0 %v2174_v19  ;;  %v2211_v58 = vld [vmem:[%s2375_s25 + $0x198] sm:$0xff]   ;;  %v2214_v61 = vld [vmem:[%s2375_s25 + $0x110] sm:$0xff]   ;;  %v2218_v1 = vld [vmem:[%s2375_s25 + $0x108] sm:$0xff]  }
  0x2a   : > { %1986 = vmatpush3.bf16.msra.mxu1 %v2175_v20  ;;  %1965 = vmatprep.subr.bf16.mxu0 %v2176_v21  ;;  %v2215_v62 = vld [vmem:[%s2375_s25 + $0x190] sm:$0xff]   ;;  %v2219_v2 = vld [vmem:[%s2375_s25 + $0x188] sm:$0xff]   ;;  %v2220_v3 = vld [vmem:[%s2375_s25 + $0x140] sm:$0xff]  }
  0x2b   : > { %1987 = vmatprep.subr.bf16.mxu1 %v2177_v22  ;;  %v2221_v4 = vld [vmem:[%s2375_s25 + $0x1c0] sm:$0xff]   ;;  %v268_v7 = vld [vmem:[%s2370_s21 + $0x10] sm:$0xff]  ;;  %v269_v10 = vld [vmem:[%s2370_s21 + $0x18] sm:$0xff] }
  0x2c   : > { %v2222_v5 = vld [vmem:[%s2375_s25 + $0x100] sm:$0xff]   ;;  %v1810_v8 = vcombine.low %v268_v7, %v268_v7  ;;  %v1811_v9 = vcombine.high %v268_v7, %v268_v7  ;;  %v1812_v11 = vcombine.low %v269_v10, %v269_v10  ;;  %v1813_v12 = vcombine.high %v269_v10, %v269_v10  ;;  %v2228_v13 = vld [vmem:[%s2375_s25 + $0x278] sm:$0xff]   ;;  %v2232_v17 = vld [vmem:[%s2375_s25 + $0x270] sm:$0xff]  }
  0x2d   : > { %1966 = vmatpush3.bf16.msra.mxu0 %v2178_v23  ;;  %v2223_v6 = vld [vmem:[%s2375_s25 + $0x180] sm:$0xff]   ;;  %v2229_v14 = vld [vmem:[%s2375_s25 + $0x2f8] sm:$0xff]   ;;  %v2233_v18 = vld [vmem:[%s2375_s25 + $0x2f0] sm:$0xff]  }
  0x2e   : > { %1988 = vmatpush3.bf16.msra.mxu1 %v2179_v24  ;;  %1967 = vmatprep.subr.bf16.mxu0 %v2180_v25  ;;  %v2230_v15 = vld [vmem:[%s2375_s25 + $0x238] sm:$0xff]   ;;  %v2234_v19 = vld [vmem:[%s2375_s25 + $0x230] sm:$0xff]   ;;  %v2236_v21 = vld [vmem:[%s2375_s25 + $0x268] sm:$0xff]  }
  0x2f   : > { %1989 = vmatprep.subr.bf16.mxu1 %v2181_v26  ;;  %v2231_v16 = vld [vmem:[%s2375_s25 + $0x2b8] sm:$0xff]   ;;  %v2235_v20 = vld [vmem:[%s2375_s25 + $0x2b0] sm:$0xff]   ;;  %v2237_v22 = vld [vmem:[%s2375_s25 + $0x2e8] sm:$0xff]  }
  0x30   : > { %v2238_v23 = vld [vmem:[%s2375_s25 + $0x228] sm:$0xff]   ;;  %v2240_v25 = vld [vmem:[%s2375_s25 + $0x260] sm:$0xff]   ;;  %v2248_v33 = vld [vmem:[%s2375_s25 + $0x250] sm:$0xff]  }
  0x31   : > { %1968 = vmatpush3.bf16.msra.mxu0 %v2182_v27  ;;  %v2239_v24 = vld [vmem:[%s2375_s25 + $0x2a8] sm:$0xff]   ;;  %v2241_v26 = vld [vmem:[%s2375_s25 + $0x2e0] sm:$0xff]   ;;  %v2249_v34 = vld [vmem:[%s2375_s25 + $0x2d0] sm:$0xff]  }
  0x32   : > { %1990 = vmatpush3.bf16.msra.mxu1 %v2183_v28  ;;  %1969 = vmatprep.subr.bf16.mxu0 %v2184_v29  ;;  %v2242_v27 = vld [vmem:[%s2375_s25 + $0x220] sm:$0xff]   ;;  %v2244_v29 = vld [vmem:[%s2375_s25 + $0x258] sm:$0xff]   ;;  %v2251_v36 = vld [vmem:[%s2375_s25 + $0x290] sm:$0xff]  }
  0x33   : > { %1991 = vmatprep.subr.bf16.mxu1 %v2185_v30  ;;  %v2243_v28 = vld [vmem:[%s2375_s25 + $0x2a0] sm:$0xff]   ;;  %v2245_v30 = vld [vmem:[%s2375_s25 + $0x2d8] sm:$0xff]   ;;  %v2253_v38 = vld [vmem:[%s2375_s25 + $0x2c8] sm:$0xff]  }
  0x34   : > { %v2284_v7 = vld [vmem:[%s2375_s25 + $0x350] sm:$0xff]  }
  0x35   : > { %1970 = vmatpush3.bf16.msra.mxu0 %v2186_v31  ;;  %v2246_v31 = vld [vmem:[%s2375_s25 + $0x218] sm:$0xff]   ;;  %v2287_v10 = vld [vmem:[%s2375_s25 + $0x390] sm:$0xff]  }
  0x36   : > { %1992 = vmatpush3.bf16.msra.mxu1 %v2187_v32  ;;  %1999 = vmatprep.subr.bf16.mxu0 %v2192_v39  ;;  %v2247_v32 = vld [vmem:[%s2375_s25 + $0x298] sm:$0xff]   ;;  %v2254_v39 = vld [vmem:[%s2375_s25 + $0x208] sm:$0xff]  }
  0x37   : > { %2021 = vmatprep.subr.bf16.mxu1 %v2193_v40  ;;  %v2255_v40 = vld [vmem:[%s2375_s25 + $0x288] sm:$0xff]  }
  0x38   : > { %1387 = vmatmul.mubr.bf16.vlgmr.msra.gmra.mxu0 %v1806_v35  ;;  %v2250_v35 = vld [vmem:[%s2375_s25 + $0x210] sm:$0xff]  }
  0x39   : > { %1427 = vmatmul.mubr.bf16.vlgmr.msra.gmra.mxu1 %v1808_v37  ;;  %2000 = vmatpush3.bf16.msra.mxu0 %v2194_v41  ;;  %v2252_v37 = vld [vmem:[%s2375_s25 + $0x248] sm:$0xff]   ;;  %v2256_v41 = vld [vmem:[%s2375_s25 + $0x240] sm:$0xff]  }
  0x3a   : > { %2022 = vmatpush3.bf16.msra.mxu1 %v2195_v42  ;;  %2001 = vmatprep.subr.bf16.mxu0 %v2196_v43  ;;  %v2257_v42 = vld [vmem:[%s2375_s25 + $0x2c0] sm:$0xff]  }
  0x3b   : > { %2023 = vmatprep.subr.bf16.mxu1 %v2197_v44  ;;  %1466 = vmatprep.mubr.bf16.mxu0 %v1811_v9  ;;  %v2258_v43 = vld [vmem:[%s2375_s25 + $0x200] sm:$0xff]   ;;  %v2286_v9 = vld [vmem:[%s2375_s25 + $0x310] sm:$0xff]  }
  0x3c   : > { %1506 = vmatprep.mubr.bf16.mxu1 %v1813_v12  ;;  %v2259_v44 = vld [vmem:[%s2375_s25 + $0x280] sm:$0xff]   ;;  %v2289_v12 = vld [vmem:[%s2375_s25 + $0x3c8] sm:$0xff]  }
  0x3d   : > { %2002 = vmatpush3.bf16.msra.mxu0 %v2198_v45  ;;  %v270_v45 = vld [vmem:[%s2370_s21 + $0x20] sm:$0xff] }
  0x3e   : > { %2024 = vmatpush3.bf16.msra.mxu1 %v2199_v46  ;;  %2003 = vmatprep.subr.bf16.mxu0 %v2200_v47  ;;  %v271_v46 = vld [vmem:[%s2370_s21 + $0x28] sm:$0xff]  ;;  %v1814_v47 = vcombine.low %v270_v45, %v270_v45 }
  0x3f   : > { %2025 = vmatprep.subr.bf16.mxu1 %v2201_v48  ;;  %v1815_v48 = vcombine.high %v270_v45, %v270_v45 }
  0x41   : > { %2004 = vmatpush3.bf16.msra.mxu0 %v2202_v49  ;;  %v1816_v49 = vcombine.low %v271_v46, %v271_v46 }
  0x42   : > { %2026 = vmatpush3.bf16.msra.mxu1 %v2203_v50  ;;  %2005 = vmatprep.subr.bf16.mxu0 %v2204_v51  ;;  %v1817_v50 = vcombine.high %v271_v46, %v271_v46  ;;  %v2264_v51 = vld [vmem:[%s2375_s25 + $0x378] sm:$0xff]  }
  0x43   : > { %2027 = vmatprep.subr.bf16.mxu1 %v2205_v52  ;;  %v2265_v52 = vld [vmem:[%s2375_s25 + $0x3f8] sm:$0xff]  }
  0x45   : > { %2006 = vmatpush3.bf16.msra.mxu0 %v2206_v53  ;;  %v2266_v53 = vld [vmem:[%s2375_s25 + $0x338] sm:$0xff]  }
  0x46   : > { %2028 = vmatpush3.bf16.msra.mxu1 %v2207_v54  ;;  %2007 = vmatprep.subr.bf16.mxu0 %v2208_v55  ;;  %v2267_v54 = vld [vmem:[%s2375_s25 + $0x3b8] sm:$0xff]   ;;  %v2268_v55 = vld [vmem:[%s2375_s25 + $0x370] sm:$0xff]  }
  0x47   : > { %2029 = vmatprep.subr.bf16.mxu1 %v2209_v56  ;;  %v2269_v56 = vld [vmem:[%s2375_s25 + $0x3f0] sm:$0xff]  }
  0x49   : > { %2008 = vmatpush3.bf16.msra.mxu0 %v2210_v57  ;;  %v2270_v57 = vld [vmem:[%s2375_s25 + $0x330] sm:$0xff]  }
  0x4a   : > { %2030 = vmatpush3.bf16.msra.mxu1 %v2211_v58  ;;  %2009 = vmatprep.subr.bf16.mxu0 %v2212_v59  ;;  %v2271_v58 = vld [vmem:[%s2375_s25 + $0x3b0] sm:$0xff]   ;;  %v2272_v59 = vld [vmem:[%s2375_s25 + $0x368] sm:$0xff]  }
  0x4b   : > { %2031 = vmatprep.subr.bf16.mxu1 %v2213_v60  ;;  %v2273_v60 = vld [vmem:[%s2375_s25 + $0x3e8] sm:$0xff]  }
  0x4d   : > { %2010 = vmatpush3.bf16.msra.mxu0 %v2214_v61  ;;  %v2274_v61 = vld [vmem:[%s2375_s25 + $0x328] sm:$0xff]  }
  0x4e   : > { %2032 = vmatpush3.bf16.msra.mxu1 %v2215_v62  ;;  %2011 = vmatprep.subr.bf16.mxu0 %v2216_v63  ;;  %v2275_v62 = vld [vmem:[%s2375_s25 + $0x3a8] sm:$0xff]   ;;  %v2276_v63 = vld [vmem:[%s2375_s25 + $0x360] sm:$0xff]  }
  0x4f   : > { %2033 = vmatprep.subr.bf16.mxu1 %v2217_v0  ;;  %v2277_v0 = vld [vmem:[%s2375_s25 + $0x3e0] sm:$0xff]  }
  0x51   : > { %2012 = vmatpush3.bf16.msra.mxu0 %v2218_v1  ;;  %v2278_v1 = vld [vmem:[%s2375_s25 + $0x320] sm:$0xff]  }
  0x52   : > { %2034 = vmatpush3.bf16.msra.mxu1 %v2219_v2  ;;  %2013 = vmatprep.subr.bf16.mxu0 %v2220_v3  ;;  %v2279_v2 = vld [vmem:[%s2375_s25 + $0x3a0] sm:$0xff]   ;;  %v2280_v3 = vld [vmem:[%s2375_s25 + $0x358] sm:$0xff]  }
  0x53   : > { %2035 = vmatprep.subr.bf16.mxu1 %v2221_v4  ;;  %v2281_v4 = vld [vmem:[%s2375_s25 + $0x3d8] sm:$0xff]  }
  0x55   : > { %2014 = vmatpush3.bf16.msra.mxu0 %v2222_v5  ;;  %v2282_v5 = vld [vmem:[%s2375_s25 + $0x318] sm:$0xff]  }
  0x56   : > { %2036 = vmatpush3.bf16.msra.mxu1 %v2223_v6  ;;  %2043 = vmatprep.subr.bf16.mxu0 %v2228_v13  ;;  %v2283_v6 = vld [vmem:[%s2375_s25 + $0x398] sm:$0xff]   ;;  %v2290_v13 = vld [vmem:[%s2375_s25 + $0x308] sm:$0xff]  }
  0x57   : > { %2065 = vmatprep.subr.bf16.mxu1 %v2229_v14  ;;  %v2291_v14 = vld [vmem:[%s2375_s25 + $0x388] sm:$0xff]  }
  0x58   : > { %1467 = vmatmul.mubr.bf16.vlgmr.msra.gmra.mxu0 %v1810_v8  ;;  %v2285_v8 = vld [vmem:[%s2375_s25 + $0x3d0] sm:$0xff]  }
  0x59   : > { %1507 = vmatmul.mubr.bf16.vlgmr.msra.gmra.mxu1 %v1812_v11  ;;  %2044 = vmatpush3.bf16.msra.mxu0 %v2230_v15  ;;  %v2288_v11 = vld [vmem:[%s2375_s25 + $0x348] sm:$0xff]   ;;  %v2292_v15 = vld [vmem:[%s2375_s25 + $0x340] sm:$0xff]  }
  0x5a   : > { %2066 = vmatpush3.bf16.msra.mxu1 %v2231_v16  ;;  %2045 = vmatprep.subr.bf16.mxu0 %v2232_v17  ;;  %v2293_v16 = vld [vmem:[%s2375_s25 + $0x3c0] sm:$0xff]  }
  0x5b   : > { %2067 = vmatprep.subr.bf16.mxu1 %v2233_v18  ;;  %1546 = vmatprep.mubr.bf16.mxu0 %v1815_v48  ;;  %v2294_v17 = vld [vmem:[%s2375_s25 + $0x300] sm:$0xff]  }
  0x5c   : > { %1586 = vmatprep.mubr.bf16.mxu1 %v1817_v50  ;;  %v2295_v18 = vld [vmem:[%s2375_s25 + $0x380] sm:$0xff]  }
  0x5d   : > { %2046 = vmatpush3.bf16.msra.mxu0 %v2234_v19  ;;  %v272_v19 = vld [vmem:[%s2370_s21 + $0x30] sm:$0xff] }
  0x5e   : > { %2068 = vmatpush3.bf16.msra.mxu1 %v2235_v20  ;;  %2047 = vmatprep.subr.bf16.mxu0 %v2236_v21  ;;  %v273_v20 = vld [vmem:[%s2370_s21 + $0x38] sm:$0xff]  ;;  %v1818_v21 = vcombine.low %v272_v19, %v272_v19 }
  0x5f   : > { %2069 = vmatprep.subr.bf16.mxu1 %v2237_v22  ;;  %v1819_v22 = vcombine.high %v272_v19, %v272_v19 }
  0x61   : > { %2048 = vmatpush3.bf16.msra.mxu0 %v2238_v23  ;;  %v1820_v23 = vcombine.low %v273_v20, %v273_v20 }
  0x62   : > { %2070 = vmatpush3.bf16.msra.mxu1 %v2239_v24  ;;  %2049 = vmatprep.subr.bf16.mxu0 %v2240_v25  ;;  %v1821_v24 = vcombine.high %v273_v20, %v273_v20 }
  0x63   : > { %2071 = vmatprep.subr.bf16.mxu1 %v2241_v26 }
  0x65   : > { %2050 = vmatpush3.bf16.msra.mxu0 %v2242_v27 }
  0x66   : > { %2072 = vmatpush3.bf16.msra.mxu1 %v2243_v28  ;;  %2051 = vmatprep.subr.bf16.mxu0 %v2244_v29 }
  0x67   : > { %2073 = vmatprep.subr.bf16.mxu1 %v2245_v30 }
  0x69   : > { %2052 = vmatpush3.bf16.msra.mxu0 %v2246_v31 }
  0x6a   : > { %2074 = vmatpush3.bf16.msra.mxu1 %v2247_v32  ;;  %2053 = vmatprep.subr.bf16.mxu0 %v2248_v33 }
  0x6b   : > { %2075 = vmatprep.subr.bf16.mxu1 %v2249_v34 }
  0x6d   : > { %2054 = vmatpush3.bf16.msra.mxu0 %v2250_v35 }
  0x6e   : > { %2076 = vmatpush3.bf16.msra.mxu1 %v2251_v36  ;;  %2055 = vmatprep.subr.bf16.mxu0 %v2252_v37 }
  0x6f   : > { %2077 = vmatprep.subr.bf16.mxu1 %v2253_v38 }
  0x71   : > { %2056 = vmatpush3.bf16.msra.mxu0 %v2254_v39 }
  0x72   : > { %2078 = vmatpush3.bf16.msra.mxu1 %v2255_v40  ;;  %2057 = vmatprep.subr.bf16.mxu0 %v2256_v41 }
  0x73   : > { %2079 = vmatprep.subr.bf16.mxu1 %v2257_v42 }
  0x75   : > { %2058 = vmatpush3.bf16.msra.mxu0 %v2258_v43 }
  0x76   : > { %2080 = vmatpush3.bf16.msra.mxu1 %v2259_v44  ;;  %2087 = vmatprep.subr.bf16.mxu0 %v2264_v51 }
  0x77   : > { %2109 = vmatprep.subr.bf16.mxu1 %v2265_v52 }
  0x78   : > { %1547 = vmatmul.mubr.bf16.vlgmr.msra.gmra.mxu0 %v1814_v47 }
  0x79   : > { %1587 = vmatmul.mubr.bf16.vlgmr.msra.gmra.mxu1 %v1816_v49  ;;  %2088 = vmatpush3.bf16.msra.mxu0 %v2266_v53 }
  0x7a   : > { %2110 = vmatpush3.bf16.msra.mxu1 %v2267_v54  ;;  %2089 = vmatprep.subr.bf16.mxu0 %v2268_v55 }
  0x7b   : > { %2111 = vmatprep.subr.bf16.mxu1 %v2269_v56  ;;  %1626 = vmatprep.mubr.bf16.mxu0 %v1819_v22 }
  0x7c   : > { %1666 = vmatprep.mubr.bf16.mxu1 %v1821_v24 }
  0x7d   : > { %2090 = vmatpush3.bf16.msra.mxu0 %v2270_v57 }
  0x7e   : > { %2112 = vmatpush3.bf16.msra.mxu1 %v2271_v58  ;;  %2091 = vmatprep.subr.bf16.mxu0 %v2272_v59 }
  0x7f   : > { %2113 = vmatprep.subr.bf16.mxu1 %v2273_v60 }
  0x81   : > { %2092 = vmatpush3.bf16.msra.mxu0 %v2274_v61 }
  0x82   : > { %2114 = vmatpush3.bf16.msra.mxu1 %v2275_v62  ;;  %2093 = vmatprep.subr.bf16.mxu0 %v2276_v63 }
  0x83   : > { %2115 = vmatprep.subr.bf16.mxu1 %v2277_v0 }
  0x85   : > { %2094 = vmatpush3.bf16.msra.mxu0 %v2278_v1 }
  0x86   : > { %2116 = vmatpush3.bf16.msra.mxu1 %v2279_v2  ;;  %2095 = vmatprep.subr.bf16.mxu0 %v2280_v3 }
  0x87   : > { %2117 = vmatprep.subr.bf16.mxu1 %v2281_v4 }
  0x89   : > { %2096 = vmatpush3.bf16.msra.mxu0 %v2282_v5  ;;  %v265_v5 = vld [vmem:[#allocation2] sm:$0xff] }
  0x8a   : > { %2118 = vmatpush3.bf16.msra.mxu1 %v2283_v6  ;;  %2097 = vmatprep.subr.bf16.mxu0 %v2284_v7 }
  0x8b   : > { %2119 = vmatprep.subr.bf16.mxu1 %v2285_v8 }
  0x8d   : > { %2098 = vmatpush3.bf16.msra.mxu0 %v2286_v9 }
  0x8e   : > { %2120 = vmatpush3.bf16.msra.mxu1 %v2287_v10  ;;  %2099 = vmatprep.subr.bf16.mxu0 %v2288_v11 }
  0x8f   : > { %2121 = vmatprep.subr.bf16.mxu1 %v2289_v12 }
  0x91   : > { %2100 = vmatpush3.bf16.msra.mxu0 %v2290_v13 }
  0x92   : > { %2122 = vmatpush3.bf16.msra.mxu1 %v2291_v14  ;;  %2101 = vmatprep.subr.bf16.mxu0 %v2292_v15 }
  0x93   : > { %2123 = vmatprep.subr.bf16.mxu1 %v2293_v16 }
  0x95   : > { %2102 = vmatpush3.bf16.msra.mxu0 %v2294_v17 }
  0x96   : > { %2124 = vmatpush3.bf16.msra.mxu1 %v2295_v18 }
  0x98   : > { %1627 = vmatmul.mubr.bf16.vlgmr.msra.gmra.mxu0 %v1818_v21 }
  0x99   : > { %1667 = vmatmul.mubr.bf16.vlgmr.msra.gmra.mxu1 %v1820_v23 }
  0xf8   : > { %v1971_v25 = vpop.f32.mrf.mxu0 }
  0xf9   : > { %v1993_v26 = vpop.f32.mrf.mxu1 }
  0xfa   : > { %v1972_v27 = vpop.f32.mrf.mxu0 }
  0xfb   : > { %v1994_v28 = vpop.f32.mrf.mxu1  ;;  %v1973_v29 = vadd.f32 %v1972_v27, %v1971_v25 }
  0xfc   : > { %v1995_v30 = vadd.f32 %v1994_v28, %v1993_v26  ;;  %v1974_v31 = vpop.f32.mrf.mxu0 }
  0xfd   : > { %v1996_v32 = vpop.f32.mrf.mxu1 }
  0xfe   : > { %v1429_v33 = vadd.f32 %v1995_v30, %v1973_v29  ;;  %v1975_v34 = vpop.f32.mrf.mxu0 }
  0xff   : > { %v1997_v35 = vpop.f32.mrf.mxu1 }
 0x118   : > { %v2015_v36 = vpop.f32.mrf.mxu0 }
 0x119   : > { %v2037_v37 = vpop.f32.mrf.mxu1 }
 0x11a   : > { %v2016_v38 = vpop.f32.mrf.mxu0 }
 0x11b   : > { %v2038_v39 = vpop.f32.mrf.mxu1  ;;  %v2017_v52 = vadd.f32 %v2016_v38, %v2015_v36 }
 0x11c   : > { %v2018_v40 = vpop.f32.mrf.mxu0  ;;  %v2039_v54 = vadd.f32 %v2038_v39, %v2037_v37 }
 0x11d   : > { %v2040_v41 = vpop.f32.mrf.mxu1  ;;  %v1469_v53 = vadd.f32 %v2017_v52, %v1429_v33 }
 0x11e   : > { %v2019_v42 = vpop.f32.mrf.mxu0 }
 0x11f   : > { %v2041_v43 = vpop.f32.mrf.mxu1  ;;  %v1509_v56 = vadd.f32 %v2039_v54, %v1469_v53 }
 0x138   : > { %v2059_v44 = vpop.f32.mrf.mxu0 }
 0x139   : > { %v2081_v45 = vpop.f32.mrf.mxu1 }
 0x13a   : > { %v2060_v46 = vpop.f32.mrf.mxu0 }
 0x13b   : > { %v2082_v47 = vpop.f32.mrf.mxu1  ;;  %v2061_v55 = vadd.f32 %v2060_v46, %v2059_v44 }
 0x13c   : > { %v2062_v48 = vpop.f32.mrf.mxu0  ;;  %v2083_v58 = vadd.f32 %v2082_v47, %v2081_v45 }
 0x13d   : > { %v2084_v49 = vpop.f32.mrf.mxu1  ;;  %v1549_v57 = vadd.f32 %v2061_v55, %v1509_v56 }
 0x13e   : > { %v2063_v50 = vpop.f32.mrf.mxu0 }
 0x13f   : > { %v2085_v51 = vpop.f32.mrf.mxu1  ;;  %v1589_v62 = vadd.f32 %v2083_v58, %v1549_v57 }
 0x158   : > { %v2103_v59 = vpop.f32.mrf.mxu0 }
 0x159   : > { %v2125_v60 = vpop.f32.mrf.mxu1 }
 0x15a   : > { %v2104_v61 = vpop.f32.mrf.mxu0 }
 0x15b   : > { %v2105_v63 = vadd.f32 %v2104_v61, %v2103_v59  ;;  %v2126_v0 = vpop.f32.mrf.mxu1 }
 0x15c   : > { %v2106_v1 = vpop.f32.mrf.mxu0  ;;  %v2127_v3 = vadd.f32 %v2126_v0, %v2125_v60 }
 0x15d   : > { %v1629_v2 = vadd.f32 %v2105_v63, %v1589_v62  ;;  %v2128_v4 = vpop.f32.mrf.mxu1 }
 0x15e   : > { %v2107_v6 = vpop.f32.mrf.mxu0 }
 0x15f   : > { %v1669_v7 = vadd.f32 %v2127_v3, %v1629_v2  ;;  %v2129_v8 = vpop.f32.mrf.mxu1  ;;  %1679 = sbr.rel (%p1950_p7) target bundleno = 368 (0x170), region = 40 }
 0x161   : > { %v1674_v9 = vadd.f32 %v1669_v7, %v265_v5 }
 0x163   : > { %1675 = vst [vmem:[#allocation2] sm:$0xff] %v1674_v9 }
 0x164   : > { %v1951_v11 = vld [vmem:[%s2532_s2] ss:$0 sm:$0xff] }
 0x16a   : > { %v1680_v10 = vld [vmem:[#allocation2] sm:$0xff] }
 0x16b   : > { %v1688_v12 = vadd.f32 %v1951_v11, %v1680_v10 }
 0x16d   : > { %v1689_v13 = vmax.f32 %v1688_v12, 0.0 }
 0x16f   : > { %1690 = vst [vmem:[%s2533_s3] sm:$0xff] %v1689_v13 }
 0x170 PF: > { %s13_s14 = sadd.s32 1, %s2322_s14   ;;  %s2534_s12 = smov %s2318_s13 }
 0x171   : > { %p10_p8 = scmp.ge.s32.totalorder %s13_s14, 6   ;;  %s2535_s13 = smov %s2537_s15 }
 0x173   :  { %12 = sbr.rel (!%p10_p8) target bundleno = 2 (0x2), region = 76 }

// kernel: fpn_xconv1fc_forward.2
= control target key start
LH: loop header
LB: loop body
LE: loop exit
PB: predicated region body
PF: predicated region fallthrough
CT: control target
= control target key end

     0   :  { %s14483_s18 = smov 0   ;;  %s18948_s0 = inlined_call_operand.vmem [shape: bf16[8,8,8,128], index: 0, kind: input, shape index: {}]   ;;  %s18949_s1 = inlined_call_operand.vmem [shape: bf16[1152,128], index: 1, kind: input, shape index: {}]   ;;  %s18950_s2 = inlined_call_operand.vmem [shape: f32[1,128], index: 2, kind: input, shape index: {}]   ;;  %s18951_s3 = inlined_call_operand.vmem [shape: bf16[1152,128], index: 3, kind: input, shape index: {}]   ;;  %s18952_s4 = inlined_call_operand.vmem [shape: f32[1,128], index: 4, kind: input, shape index: {}]   ;;  %s18953_s5 = inlined_call_operand.vmem [shape: bf16[8,64,128], index: 5, kind: output, shape index: {}]  }
   0x1 LB: > { %s11435_s19 = sadd.s32 4294967295, %s14450_s18   ;;  %p11439_p0 = scmp.ge.s32.totalorder %s14450_s18, 1  ;;  %s14450_s18 = sphi %s14483_s18, %s15_s18  }
   0x2   : > { %p189_p1 = scmp.lt.s32.totalorder %s14450_s18, 3 }
   0x4   : > { %p190_p2 = pnand %p11439_p0, %p189_p1 }
   0x6   : > { %193 = sbr.rel (%p190_p2) target bundleno = 1350 (0x546), region = 40 }
   0xb   : > { %v13924_v0 = vld [vmem:[%s18949_s1 + $0xf8] sm:$0xff]   ;;  %v14452_v4 = vmov 0   ;;  %v13928_v5 = vld [vmem:[%s18949_s1 + $0xf0] sm:$0xff]   ;;  %v13932_v9 = vld [vmem:[%s18949_s1 + $0xe8] sm:$0xff]   ;;  %s11440_s8 = sshll.u32 %s11435_s19, 2  ;;  %vm251_vm0 = vcmask 1040384  }
   0xc   : > { %v13925_v1 = vld [vmem:[%s18949_s1 + $0x78] sm:$0xff]   ;;  %12875 = vmatprep.subr.bf16.mxu0 %v13924_v0  ;;  %234 = vst [vmem:[#allocation2] sm:$0xf] %v14452_v4  ;;  %235 = vst [vmem:[#allocation2 + $0x4] sm:$0x1] %v14452_v4  ;;  %v13929_v6 = vld [vmem:[%s18949_s1 + $0x70] sm:$0xff]  }
   0xd   : > { %v13926_v2 = vld [vmem:[%s18949_s1 + $0xb8] sm:$0xff]   ;;  %12987 = vmatprep.subr.bf16.mxu1 %v13925_v1  ;;  %236 = vst [vmem:[#allocation2 + $0x50] sm:$0xf] %v14452_v4  ;;  %237 = vst [vmem:[#allocation2 + $0x54] sm:$0x1] %v14452_v4  ;;  %v13930_v7 = vld [vmem:[%s18949_s1 + $0xb0] sm:$0xff]  }
   0xe   : > { %v13927_v3 = vld [vmem:[%s18949_s1 + $0x38] sm:$0xff]   ;;  %238 = vst [vmem:[#allocation2 + $0xa0] sm:$0xf] %v14452_v4  ;;  %239 = vst [vmem:[#allocation2 + $0xa4] sm:$0x1] %v14452_v4  ;;  %12876 = vmatpush3.bf16.msra.mxu0 %v13926_v2  ;;  %v13931_v8 = vld [vmem:[%s18949_s1 + $0x30] sm:$0xff]  }
   0xf   : > { %240 = vst [vmem:[#allocation2 + $0xf0] sm:$0xf] %v14452_v4  ;;  %241 = vst [vmem:[#allocation2 + $0xf4] sm:$0x1] %v14452_v4  ;;  %12988 = vmatpush3.bf16.msra.mxu1 %v13927_v3  ;;  %12877 = vmatprep.subr.bf16.mxu0 %v13928_v5  ;;  %v13933_v10 = vld [vmem:[%s18949_s1 + $0x68] sm:$0xff]   ;;  %v13936_v13 = vld [vmem:[%s18949_s1 + $0xe0] sm:$0xff]  }
  0x10   : > { %243 = vst [vmem:[#allocation2 + $0x48] sm:$0xf] %v14452_v4  ;;  %244 = vst [vmem:[#allocation2 + $0x4c] sm:$0x1] %v14452_v4  ;;  %12989 = vmatprep.subr.bf16.mxu1 %v13929_v6  ;;  %v13934_v11 = vld [vmem:[%s18949_s1 + $0xa8] sm:$0xff]   ;;  %v13937_v14 = vld [vmem:[%s18949_s1 + $0x60] sm:$0xff]  }
  0x11   : > { %245 = vst [vmem:[#allocation2 + $0x98] sm:$0xf] %v14452_v4  ;;  %246 = vst [vmem:[#allocation2 + $0x9c] sm:$0x1] %v14452_v4  ;;  %v13935_v12 = vld [vmem:[%s18949_s1 + $0x28] sm:$0xff]   ;;  %v13938_v15 = vld [vmem:[%s18949_s1 + $0xa0] sm:$0xff]  }
  0x12   : > { %247 = vst [vmem:[#allocation2 + $0xe8] sm:$0xf] %v14452_v4  ;;  %248 = vst [vmem:[#allocation2 + $0xec] sm:$0x1] %v14452_v4  ;;  %12878 = vmatpush3.bf16.msra.mxu0 %v13930_v7  ;;  %v13939_v16 = vld [vmem:[%s18949_s1 + $0x20] sm:$0xff]   ;;  %v13940_v17 = vld [vmem:[%s18949_s1 + $0xd8] sm:$0xff]  }
  0x13   : > { %249 = vst [vmem:[#allocation2 + $0x138] sm:$0xf] %v14452_v4  ;;  %250 = vst [vmem:[#allocation2 + $0x13c] sm:$0x1] %v14452_v4  ;;  %12990 = vmatpush3.bf16.msra.mxu1 %v13931_v8  ;;  %12879 = vmatprep.subr.bf16.mxu0 %v13932_v9  ;;  %v13941_v18 = vld [vmem:[%s18949_s1 + $0x58] sm:$0xff]   ;;  %v13944_v21 = vld [vmem:[%s18949_s1 + $0xd0] sm:$0xff]  }
  0x14   : > { %12991 = vmatprep.subr.bf16.mxu1 %v13933_v10  ;;  %v13942_v19 = vld [vmem:[%s18949_s1 + $0x98] sm:$0xff]   ;;  %p220_p3 = scmp.lt.s32.totalorder %s11440_s8, 7  ;;  %v13945_v22 = vld [vmem:[%s18949_s1 + $0x50] sm:$0xff]   ;;  %v13948_v25 = vld [vmem:[%s18949_s1 + $0xc8] sm:$0xff]   ;;  %vm252_vm1 = vsmask.f32 256 }
  0x15   : > { %v13943_v20 = vld [vmem:[%s18949_s1 + $0x18] sm:$0xff]   ;;  %v13946_v23 = vld [vmem:[%s18949_s1 + $0x90] sm:$0xff]   ;;  %v13949_v26 = vld [vmem:[%s18949_s1 + $0x48] sm:$0xff]   ;;  %v18975_v35 = vmov 0  ;;  %vm374_vm3 = vsmask.f32 7938 }
  0x16   : > { %12880 = vmatpush3.bf16.msra.mxu0 %v13934_v11  ;;  %v13947_v24 = vld [vmem:[%s18949_s1 + $0x10] sm:$0xff]   ;;  %s19529_s8 = smov (!%p220_p3, %s11440_s8), 7  ;;  %v13950_v27 = vld [vmem:[%s18949_s1 + $0x88] sm:$0xff]   ;;  %v13952_v29 = vld [vmem:[%s18949_s1 + $0xc0] sm:$0xff]   ;;  %vm849_vm5 = vcmask 1043456   ;;  %v18980_v59 = vmov 0 }
  0x17   : > { %12992 = vmatpush3.bf16.msra.mxu1 %v13935_v12  ;;  %12881 = vmatprep.subr.bf16.mxu0 %v13936_v13  ;;  %v13951_v28 = vld [vmem:[%s18949_s1 + $0x8] sm:$0xff]   ;;  %s12714_s7 = sshll.u32 %s19529_s8, 5  ;;  %v13953_v30 = vld [vmem:[%s18949_s1 + $0x40] sm:$0xff]   ;;  %v260_v34 = vld [vmem:[#allocation2 + $0x10] sm:$0x1]  ;;  %vm1939_vm7 = vcmask 1042432  }
  0x18   : > { %12993 = vmatprep.subr.bf16.mxu1 %v13937_v14  ;;  %v13954_v31 = vld [vmem:[%s18949_s1 + $0x80] sm:$0xff]   ;;  %s14597_s19 = scalar_lea.vmem %s18948_s0, %s12714_s7  ;;  %v257_v33 = vld [vmem:[#allocation2 + $0x8] sm:$0x1]  ;;  %vm14600_vm2 = vmand %vm251_vm0, %vm252_vm1  ;;  %vm1940_vm8 = vcmask 1046532   ;;  %vm3480_vm10 = vsmask.f32 3328  ;;  %s18810_s14 = scalar_lea.vmem %s18953_s5, %s12714_s7 }
  0x19   : > { %v13955_v32 = vld [vmem:[%s18949_s1] sm:$0xff]   ;;  %v18976_v35 = vsel %vm14600_vm2, 4294967295, %v18975_v35  ;;  %v379_v37 = vld [vmem:[#allocation2 + $0xc] sm:$0x1]  ;;  %v258_v38 = vsel %vm14600_vm2, 0, %v257_v33  ;;  %v261_v39 = vsel %vm14600_vm2, 0, %v260_v34  ;;  %vm14610_vm4 = vmand %vm251_vm0, %vm374_vm3 }
  0x1a   : > { %12882 = vmatpush3.bf16.msra.mxu0 %v13938_v15  ;;  %18977 = vst [vmem:[#allocation3_spill] sm:$0xff] %v18976_v35  ;;  %v376_v36 = vld [vmem:[#allocation2 + $0x4] sm:$0x1]  ;;  %v496_v41 = vld [vmem:[%s14597_s19] sm:$0xf]  ;;  %v380_v44 = vsel %vm14610_vm4, 0, %v379_v37  ;;  %vm14630_vm6 = vmand %vm849_vm5, %vm374_vm3 }
  0x1b   : > { %12994 = vmatpush3.bf16.msra.mxu1 %v13939_v16  ;;  %12883 = vmatprep.subr.bf16.mxu0 %v13940_v17  ;;  %v497_v42 = vld [vmem:[%s14597_s19 + $0x4] sm:$0xf]  ;;  %259 = vst [vmem:[#allocation2 + $0x8] sm:$0x1] %v258_v38  ;;  %262 = vst [vmem:[#allocation2 + $0x10] sm:$0x1] %v261_v39 }
  0x1c   : > { %12995 = vmatprep.subr.bf16.mxu1 %v13941_v18  ;;  %v377_v43 = vsel %vm14610_vm4, 0, %v376_v36  ;;  %v529_v45 = vshrl.u32 %v496_v41, 16  ;;  %v532_v46 = vshll.u32 %v496_v41, 16  ;;  %381 = vst [vmem:[#allocation2 + $0xc] sm:$0x1] %v380_v44  ;;  %v537_v47 = vshrl.u32 %v497_v42, 16  ;;  %vm14694_vm9 = vmor %vm1939_vm7, %vm1940_vm8 }
  0x1d   : > { %378 = vst [vmem:[#allocation2 + $0x4] sm:$0x1] %v377_v43  ;;  %v540_v48 = vshll.u32 %v497_v42, 16  ;;  %v254_v49 = vld [vmem:[#allocation2] sm:$0x1]  ;;  %v13960_v52 = vld [vmem:[%s18949_s1 + $0x178] sm:$0xff]  }
  0x1e   : > { %12884 = vmatpush3.bf16.msra.mxu0 %v13942_v19  ;;  %v531_v50 = vrot.slane %v529_v45, 7  ;;  %v255_v51 = vsel %vm14600_vm2, 0, %v254_v49  ;;  %v14625_v53 = vrot.slane %v537_v47, 7  ;;  %v263_v56 = vld [vmem:[#allocation2 + $0x18] sm:$0x1]  ;;  %v18981_v59 = vsel %vm14630_vm6, 4294967295, %v18980_v59 }
  0x1f   : > { %12996 = vmatpush3.bf16.msra.mxu1 %v13943_v20  ;;  %12885 = vmatprep.subr.bf16.mxu0 %v13944_v21  ;;  %256 = vst [vmem:[#allocation2] sm:$0x1] %v255_v51  ;;  %v266_v57 = vld [vmem:[#allocation2 + $0x20] sm:$0x1]  ;;  %18982 = vst [vmem:[#allocation4_spill] sm:$0xff] %v18981_v59  ;;  %v264_v60 = vsel %vm14600_vm2, 0, %v263_v56 }
  0x20   : > { %12997 = vmatprep.subr.bf16.mxu1 %v13945_v22  ;;  %v534_v54 = vor.u32 %v532_v46, %v531_v50  ;;  %v535_v55 = vrot.slane %v531_v50, 4  ;;  %v542_v58 = vor.u32 %v540_v48, %v14625_v53  ;;  %v267_v61 = vsel %vm14600_vm2, 0, %v266_v57  ;;  %v382_v62 = vld [vmem:[#allocation2 + $0x14] sm:$0x1]  ;;  %v385_v63 = vld [vmem:[#allocation2 + $0x1c] sm:$0x1] }
  0x21   : > { %265 = vst [vmem:[#allocation2 + $0x18] sm:$0x1] %v264_v60  ;;  %268 = vst [vmem:[#allocation2 + $0x20] sm:$0x1] %v267_v61  ;;  %v383_v0 = vsel %vm14610_vm4, 0, %v382_v62  ;;  %v386_v1 = vsel %vm14610_vm4, 0, %v385_v63 }
  0x22   : > { %12886 = vmatpush3.bf16.msra.mxu0 %v13946_v23  ;;  %v498_v2 = vld [vmem:[%s14597_s19 + $0x8] sm:$0xf]  ;;  %v499_v3 = vld [vmem:[%s14597_s19 + $0xc] sm:$0xf]  ;;  %v857_v5 = vld [vmem:[#allocation2 + $0x10] sm:$0xf] }
  0x23   : > { %12998 = vmatpush3.bf16.msra.mxu1 %v13947_v24  ;;  %12887 = vmatprep.subr.bf16.mxu0 %v13948_v25  ;;  %v851_v4 = vld [vmem:[#allocation2 + $0x8] sm:$0xf]  ;;  %384 = vst [vmem:[#allocation2 + $0x14] sm:$0x1] %v383_v0  ;;  %387 = vst [vmem:[#allocation2 + $0x1c] sm:$0x1] %v386_v1  ;;  %v858_v9 = vsel %vm14630_vm6, %v542_v58, %v857_v5 }
  0x24   : > { %12999 = vmatprep.subr.bf16.mxu1 %v13949_v26  ;;  %v545_v6 = vshrl.u32 %v498_v2, 16  ;;  %v852_v7 = vsel %vm14630_vm6, %v534_v54, %v851_v4  ;;  %v854_v8 = vld [vmem:[#allocation2 + $0xc] sm:$0x1]  ;;  %v14648_v10 = vld [vmem:[#allocation2 + $0x4] sm:$0x1]  ;;  %v548_v11 = vshll.u32 %v498_v2, 16 }
  0x25   : > { %v553_v12 = vshrl.u32 %v499_v3, 16  ;;  %853 = vst [vmem:[#allocation2 + $0x8] sm:$0xf] %v852_v7  ;;  %v855_v13 = vsel %vm14600_vm2, %v535_v55, %v854_v8  ;;  %859 = vst [vmem:[#allocation2 + $0x10] sm:$0xf] %v858_v9  ;;  %v556_v15 = vshll.u32 %v499_v3, 16 }
  0x26   : > { %12888 = vmatpush3.bf16.msra.mxu0 %v13950_v27  ;;  %v547_v14 = vrot.slane %v545_v6, 7  ;;  %v269_v16 = vld [vmem:[#allocation2 + $0x28] sm:$0x1]  ;;  %v272_v17 = vld [vmem:[#allocation2 + $0x30] sm:$0x1]  ;;  %v543_v22 = vrot.slane %v14625_v53, 4 }
  0x27   : > { %13000 = vmatpush3.bf16.msra.mxu1 %v13951_v28  ;;  %12889 = vmatprep.subr.bf16.mxu0 %v13952_v29  ;;  %856 = vst [vmem:[#allocation2 + $0xc] sm:$0x1] %v855_v13  ;;  %v14652_v18 = vld [vmem:[#allocation2] sm:$0xf]  ;;  %v14654_v19 = vrot.slane %v553_v12, 7  ;;  %v270_v20 = vsel %vm14600_vm2, 0, %v269_v16 }
  0x28   : > { %13001 = vmatprep.subr.bf16.mxu1 %v13953_v30  ;;  %v273_v21 = vsel %vm14600_vm2, 0, %v272_v17  ;;  %v550_v23 = vor.u32 %v548_v11, %v547_v14  ;;  %v551_v24 = vrot.slane %v547_v14, 4  ;;  %271 = vst [vmem:[#allocation2 + $0x28] sm:$0x1] %v270_v20  ;;  %v388_v25 = vld [vmem:[#allocation2 + $0x24] sm:$0x1]  ;;  %v11446_v27 = vcombine.low %v14652_v18, %v14648_v10 }
  0x29   : > { %274 = vst [vmem:[#allocation2 + $0x30] sm:$0x1] %v273_v21  ;;  %v391_v26 = vld [vmem:[#allocation2 + $0x2c] sm:$0x1]  ;;  %v558_v28 = vor.u32 %v556_v15, %v14654_v19  ;;  %v389_v29 = vsel %vm14610_vm4, 0, %v388_v25  ;;  %v559_v51 = vrot.slane %v14654_v19, 4 }
  0x2a   : > { %12890 = vmatpush3.bf16.msra.mxu0 %v13954_v31  ;;  %v392_v30 = vsel %vm14610_vm4, 0, %v391_v26  ;;  %v863_v31 = vld [vmem:[#allocation2 + $0x18] sm:$0xf]  ;;  %390 = vst [vmem:[#allocation2 + $0x24] sm:$0x1] %v389_v29  ;;  %v1270_v44 = vshll.u32 %v11446_v27, 16 }
  0x2b   : > { %13002 = vmatpush3.bf16.msra.mxu1 %v13955_v32  ;;  %13099 = vmatprep.subr.bf16.mxu0 %v13960_v52  ;;  %v869_v32 = vld [vmem:[#allocation2 + $0x20] sm:$0xf]  ;;  %393 = vst [vmem:[#allocation2 + $0x2c] sm:$0x1] %v392_v30  ;;  %v500_v33 = vld [vmem:[%s14597_s19 + $0x10] sm:$0xf]  ;;  %v864_v36 = vsel %vm14630_vm6, %v550_v23, %v863_v31 }
  0x2c   : > { %v860_v34 = vld [vmem:[#allocation2 + $0x14] sm:$0x1]  ;;  %v866_v37 = vld [vmem:[#allocation2 + $0x1c] sm:$0x1]  ;;  %v870_v38 = vsel %vm14630_vm6, %v558_v28, %v869_v32  ;;  %865 = vst [vmem:[#allocation2 + $0x18] sm:$0xf] %v864_v36 }
  0x2d   : > { %v861_v39 = vsel %vm14600_vm2, %v543_v22, %v860_v34  ;;  %v867_v41 = vsel %vm14600_vm2, %v551_v24, %v866_v37  ;;  %871 = vst [vmem:[#allocation2 + $0x20] sm:$0xf] %v870_v38  ;;  %v14678_v42 = vld [vmem:[%s14597_s19 + $0x14] sm:$0xf]  ;;  %v1555_v43 = vld [vmem:[#allocation2] sm:$0xe] }
  0x2e   : > { %862 = vst [vmem:[#allocation2 + $0x14] sm:$0x1] %v861_v39  ;;  %868 = vst [vmem:[#allocation2 + $0x1c] sm:$0x1] %v867_v41  ;;  %v561_v45 = vshrl.u32 %v500_v33, 16  ;;  %v564_v55 = vshll.u32 %v500_v33, 16 }
  0x2f   : > { %v1076_v46 = vld [vmem:[#allocation2 + $0xc] sm:$0x1]  ;;  %v13956_v47 = vld [vmem:[#allocation2 + $0x8] ss:$0 sps:$4 sm:$0xff]   ;;  %v13957_v48 = vld [vmem:[#allocation2 + $0x10] ss:$0 sps:$4 sm:$0xff]  }
  0x30   : > { %v1556_v49 = vld [vmem:[#allocation2 + $0x8] sm:$0xe]  ;;  %v1779_v52 = vrot.slane %v13956_v47, 7  ;;  %v1780_v53 = vrot.slane %v13957_v48, 7  ;;  %v1268_v56 = vshrl.u32 %v11446_v27, 16  ;;  %v1272_v57 = vrot.slane %v1270_v44, 1 }
  0x31   : > { %v14680_v50 = vld [vmem:[#allocation2 + $0x8] sm:$0xf]  ;;  %v14684_v58 = vrot.slane %v561_v45, 7  ;;  %v569_v60 = vshrl.u32 %v14678_v42, 16  ;;  %v872_v61 = vld [vmem:[#allocation2 + $0x24] sm:$0x1] }
  0x32   : > { %v11447_v54 = vcombine.low %v14680_v50, %v1076_v46  ;;  %v11510_v62 = vcombine.low %v1555_v43, %v1779_v52  ;;  %v11512_v63 = vsel %vm849_vm5, %v14648_v10, %v1779_v52  ;;  %v11513_v0 = vcombine.low %v1556_v49, %v1780_v53  ;;  %v14690_v2 = vld [vmem:[#allocation2 + $0x10] sm:$0xf]  ;;  %v875_v8 = vld [vmem:[#allocation2 + $0x28] sm:$0xf]  ;;  %v13961_v30 = vld [vmem:[%s18949_s1 + $0x138] sm:$0xff]  }
  0x33   : > { %v11515_v1 = vsel %vm849_vm5, %v1076_v46, %v1780_v53  ;;  %v18983_v3 = vmov 0  ;;  %v1944_v4 = vrot.slane %v11512_v63, 5  ;;  %v566_v13 = vor.u32 %v564_v55, %v14684_v58  ;;  %v13962_v23 = vld [vmem:[#allocation2 + $0x18] ss:$0 sps:$4 sm:$0xff]   ;;  %v1557_v31 = vld [vmem:[#allocation2 + $0x10] sm:$0xe] }
  0x34   : > { %v18984_v3 = vsel %vm14694_vm9, 4294967295, %v18983_v3  ;;  %v1948_v5 = vrot.slane %v11515_v1, 5  ;;  %v1275_v6 = vshrl.u32 %v11447_v54, 16  ;;  %v1277_v7 = vshll.u32 %v11447_v54, 16  ;;  %v13963_v24 = vld [vmem:[#allocation2 + $0x20] ss:$0 sps:$4 sm:$0xff]  }
  0x35   : > { %18985 = vst [vmem:[#allocation5_spill] sm:$0xff] %v18984_v3  ;;  %v11606_v9 = vrot.slane %v11510_v62, 9  ;;  %v11607_v11 = vrot.slane %v11513_v0, 9  ;;  %v1077_v12 = vld [vmem:[#allocation2 + $0x14] sm:$0x1]  ;;  %v873_v14 = vsel %vm14600_vm2, %v559_v51, %v872_v61  ;;  %v1273_v15 = vor.u32 %v1272_v57, %v1268_v56  ;;  %v13983_v1 = vld [vmem:[%s18949_s1 + $0x168] sm:$0xff]  }
  0x36   : > { %v1078_v10 = vld [vmem:[#allocation2 + $0x1c] sm:$0x1]  ;;  %v1279_v16 = vrot.slane %v1277_v7, 1  ;;  %v11448_v17 = vcombine.low %v14690_v2, %v1077_v12  ;;  %v572_v19 = vshll.u32 %v14678_v42, 16  ;;  %874 = vst [vmem:[#allocation2 + $0x24] sm:$0x1] %v873_v14  ;;  %v11686_v22 = vcombine.low %v14652_v18, %v14680_v50 }
  0x37   : > { %v1945_v20 = vsel %vm14694_vm9, %v11606_v9, %v1944_v4  ;;  %v1949_v21 = vsel %vm14694_vm9, %v11607_v11, %v1948_v5  ;;  %v14709_v25 = vld [vmem:[#allocation2 + $0x18] sm:$0xf]  ;;  %v876_v26 = vsel %vm14630_vm6, %v566_v13, %v875_v8  ;;  %v1781_v18 = vrot.slane %v13962_v23, 7  ;;  %v13972_v38 = vld [vmem:[%s18949_s1 + $0x170] sm:$0xff]   ;;  %v878_v45 = vld [vmem:[#allocation2 + $0x2c] sm:$0x1] }
  0x38   : > { %v11638_v27 = vcombine.low %v1945_v20, %v1949_v21  ;;  %v11639_v28 = vcombine.high %v1945_v20, %v1949_v21  ;;  %v1280_v29 = vor.u32 %v1279_v16, %v1275_v6  ;;  %v1558_v32 = vld [vmem:[#allocation2 + $0x18] sm:$0xe]  ;;  %v11449_v33 = vcombine.low %v14709_v25, %v1078_v10  ;;  %877 = vst [vmem:[#allocation2 + $0x28] sm:$0xf] %v876_v26  ;;  %v14723_v50 = vld [vmem:[#allocation2 + $0x20] sm:$0xf] }
  0x39   : > { %v1782_v34 = vrot.slane %v13963_v24, 7  ;;  %v1284_v36 = vshll.u32 %v11448_v17, 16  ;;  %v567_v37 = vrot.slane %v14684_v58, 4  ;;  %v1282_v41 = vshrl.u32 %v11448_v17, 16  ;;  %v13973_v51 = vld [vmem:[%s18949_s1 + $0x130] sm:$0xff]   ;;  %v13984_v8 = vld [vmem:[%s18949_s1 + $0x128] sm:$0xff]  }
  0x3a   : > { %2358 = vmatprep.mubr.bf16.mxu0 %v11639_v28  ;;  %v11687_v39 = vcombine.low %v1273_v15, %v1280_v29  ;;  %v1289_v43 = vshrl.u32 %v11449_v33, 16  ;;  %v1291_v44 = vshll.u32 %v11449_v33, 16  ;;  %v11516_v46 = vcombine.low %v1557_v31, %v1781_v18  ;;  %v275_v52 = vld [vmem:[#allocation2 + $0x38] sm:$0x1]  ;;  %v881_v57 = vld [vmem:[#allocation2 + $0x30] sm:$0xf] }
  0x3b   : > { %2359 = vmatmul.mubr.bf16.vlgmr.msra.gmra.mxu0 %v11638_v27  ;;  %v11518_v47 = vsel %vm849_vm5, %v1077_v12, %v1781_v18  ;;  %v11519_v48 = vcombine.low %v1558_v32, %v1782_v34  ;;  %v11521_v49 = vsel %vm849_vm5, %v1078_v10, %v1782_v34  ;;  %v1286_v55 = vrot.slane %v1284_v36, 1  ;;  %v394_v7 = vld [vmem:[#allocation2 + $0x34] sm:$0x1]  ;;  %v397_v13 = vld [vmem:[#allocation2 + $0x3c] sm:$0x1]  ;;  %v13995_v14 = vld [vmem:[%s18949_s1 + $0x160] sm:$0xff]  }
  0x3c   : > { %2679 = vmatprep.mubr.bf16.mxu1 %v11687_v39  ;;  %13100 = vmatpush3.bf16.msra.mxu0 %v13961_v30  ;;  %v1952_v53 = vrot.slane %v11518_v47, 5  ;;  %v1956_v54 = vrot.slane %v11521_v49, 5  ;;  %v1293_v56 = vrot.slane %v1291_v44, 1  ;;  %v11608_v58 = vrot.slane %v11516_v46, 9  ;;  %v1559_v20 = vld [vmem:[#allocation2 + $0x20] sm:$0xe] }
  0x3d   : > { %2680 = vmatmul.mubr.bf16.vlgmr.msra.gmra.mxu1 %v11686_v22  ;;  %v11609_v61 = vrot.slane %v11519_v48, 9  ;;  %v14730_v62 = vrot.slane %v569_v60, 7  ;;  %v879_v63 = vsel %vm14600_vm2, %v567_v37, %v878_v45  ;;  %v1079_v0 = vld [vmem:[#allocation2 + $0x24] sm:$0x1]  ;;  %13101 = vmatprep.subr.bf16.mxu0 %v13972_v38  ;;  %v1287_v4 = vor.u32 %v1286_v55, %v1282_v41  ;;  %v278_v60 = vld [vmem:[#allocation2 + $0x40] sm:$0x1] }
  0x3e   : > { %v1294_v5 = vor.u32 %v1293_v56, %v1289_v43  ;;  %880 = vst [vmem:[#allocation2 + $0x2c] sm:$0x1] %v879_v63  ;;  %v14738_v6 = vcombine.low %v14723_v50, %v1079_v0  ;;  %v276_v42 = vsel %vm14600_vm2, 0, %v275_v52  ;;  %v1953_v9 = vsel %vm14694_vm9, %v11608_v58, %v1952_v53  ;;  %v502_v21 = vld [vmem:[%s14597_s19 + $0x18] sm:$0xf]  ;;  %v13996_v43 = vld [vmem:[%s18949_s1 + $0x120] sm:$0xff]  }
  0x3f   : > { %v1957_v11 = vsel %vm14694_vm9, %v11609_v61, %v1956_v54  ;;  %v574_v12 = vor.u32 %v572_v19, %v14730_v62  ;;  %v13967_v10 = vld [vmem:[#allocation2 + $0x28] ss:$0 sps:$4 sm:$0xff]   ;;  %277 = vst [vmem:[#allocation2 + $0x38] sm:$0x1] %v276_v42  ;;  %v503_v22 = vld [vmem:[%s14597_s19 + $0x1c] sm:$0xf]  ;;  %v11688_v24 = vcombine.low %v14690_v2, %v14709_v25 }
  0x40   : > { %v11641_v15 = vcombine.high %v1953_v9, %v1957_v11  ;;  %v11689_v16 = vcombine.low %v1287_v4, %v1294_v5  ;;  %v11640_v17 = vcombine.low %v1953_v9, %v1957_v11  ;;  %13102 = vmatpush3.bf16.msra.mxu0 %v13973_v51  ;;  %v287_v23 = vld [vmem:[#allocation2 + $0x58] sm:$0x1]  ;;  %v1783_v26 = vrot.slane %v13967_v10, 7  ;;  %v290_v28 = vld [vmem:[#allocation2 + $0x60] sm:$0x1]  ;;  %v14168_v3 = vld [vmem:[%s18951_s3 + $0x30] sm:$0xff]  }
  0x41   : > { %v882_v19 = vsel %vm14630_vm6, %v574_v12, %v881_v57  ;;  %v1298_v27 = vshll.u32 %v14738_v6, 16  ;;  %v406_v29 = vld [vmem:[#allocation2 + $0x54] sm:$0x1]  ;;  %13103 = vmatprep.subr.bf16.mxu0 %v13983_v1  ;;  %v14760_v30 = vld [vmem:[#allocation2 + $0x28] sm:$0xf]  ;;  %v1296_v31 = vshrl.u32 %v14738_v6, 16 }
  0x42   : > { %2366 = vmatprep.mubr.bf16.mxu0 %v11641_v15  ;;  %2687 = vmatprep.mubr.bf16.mxu1 %v11689_v16  ;;  %883 = vst [vmem:[#allocation2 + $0x30] sm:$0xf] %v882_v19  ;;  %v279_v2 = vsel %vm14600_vm2, 0, %v278_v60  ;;  %v395_v25 = vsel %vm14610_vm4, 0, %v394_v7  ;;  %v398_v32 = vsel %vm14610_vm4, 0, %v397_v13  ;;  %v575_v18 = vrot.slane %v14730_v62, 4 }
  0x43   : > { %v409_v33 = vld [vmem:[#allocation2 + $0x5c] sm:$0x1]  ;;  %2367 = vmatmul.mubr.bf16.gmra.mxu0 %v11640_v17  ;;  %280 = vst [vmem:[#allocation2 + $0x40] sm:$0x1] %v279_v2  ;;  %396 = vst [vmem:[#allocation2 + $0x34] sm:$0x1] %v395_v25  ;;  %v14774_v37 = vsel %vm849_vm5, %v1079_v0, %v1783_v26  ;;  %v14779_v45 = vcombine.low %v1559_v20, %v1783_v26  ;;  %v11690_v12 = vcombine.low %v14723_v50, %v14760_v30 }
  0x44   : > { %399 = vst [vmem:[#allocation2 + $0x3c] sm:$0x1] %v398_v32  ;;  %v577_v34 = vshrl.u32 %v502_v21, 16  ;;  %v14771_v36 = vld [vmem:[%s14597_s19 + $0x20] sm:$0xf]  ;;  %v580_v38 = vshll.u32 %v502_v21, 16  ;;  %13104 = vmatpush3.bf16.msra.mxu0 %v13984_v8 }
  0x45   : > { %v585_v39 = vshrl.u32 %v503_v22, 16  ;;  %v588_v41 = vshll.u32 %v503_v22, 16  ;;  %2688 = vmatmul.mubr.bf16.gmra.mxu1 %v11688_v24  ;;  %v1080_v44 = vld [vmem:[#allocation2 + $0x2c] sm:$0x1]  ;;  %v1300_v46 = vrot.slane %v1298_v27, 1  ;;  %v288_v48 = vsel %vm14600_vm2, 0, %v287_v23  ;;  %13105 = vmatprep.subr.bf16.mxu0 %v13995_v14 }
  0x46   : > { %v579_v47 = vrot.slane %v577_v34, 7  ;;  %v14006_v49 = vld [vmem:[%s18949_s1 + $0x158] sm:$0xff]   ;;  %v11451_v51 = vcombine.low %v14760_v30, %v1080_v44  ;;  %289 = vst [vmem:[#allocation2 + $0x58] sm:$0x1] %v288_v48  ;;  %v291_v54 = vsel %vm14600_vm2, 0, %v290_v28  ;;  %v407_v55 = vsel %vm14610_vm4, 0, %v406_v29 }
  0x47   : > { %v14787_v52 = vrot.slane %v585_v39, 7  ;;  %v887_v53 = vld [vmem:[#allocation2 + $0x38] sm:$0xf]  ;;  %v1960_v56 = vrot.slane %v14774_v37, 5  ;;  %292 = vst [vmem:[#allocation2 + $0x60] sm:$0x1] %v291_v54  ;;  %v1301_v9 = vor.u32 %v1300_v46, %v1296_v31 }
  0x48   : > { %v582_v57 = vor.u32 %v580_v38, %v579_v47  ;;  %v583_v58 = vrot.slane %v579_v47, 4  ;;  %408 = vst [vmem:[#allocation2 + $0x54] sm:$0x1] %v407_v55  ;;  %v410_v61 = vsel %vm14610_vm4, 0, %v409_v33  ;;  %v1560_v62 = vld [vmem:[#allocation2 + $0x28] sm:$0xe]  ;;  %13106 = vmatpush3.bf16.msra.mxu0 %v13996_v43 }
  0x49   : > { %v1303_v63 = vshrl.u32 %v11451_v51, 16  ;;  %v1305_v0 = vshll.u32 %v11451_v51, 16  ;;  %v590_v1 = vor.u32 %v588_v41, %v14787_v52  ;;  %411 = vst [vmem:[#allocation2 + $0x5c] sm:$0x1] %v410_v61  ;;  %v505_v4 = vld [vmem:[%s14597_s19 + $0x24] sm:$0xf]  ;;  %13107 = vmatprep.subr.bf16.mxu0 %v14006_v49 }
  0x4a   : > { %v593_v5 = vshrl.u32 %v14771_v36, 16  ;;  %v14007_v6 = vld [vmem:[%s18949_s1 + $0x118] sm:$0xff]   ;;  %v13968_v42 = vld [vmem:[#allocation2 + $0x30] ss:$0 sps:$4 sm:$0xff]   ;;  %v11610_v60 = vrot.slane %v14779_v45, 9  ;;  %v888_v7 = vsel %vm14630_vm6, %v582_v57, %v887_v53  ;;  %v596_v22 = vshll.u32 %v14771_v36, 16 }
  0x4b   : > { %v14018_v8 = vld [vmem:[%s18949_s1 + $0x150] sm:$0xff]   ;;  %v1307_v11 = vrot.slane %v1305_v0, 1  ;;  %889 = vst [vmem:[#allocation2 + $0x38] sm:$0xf] %v888_v7  ;;  %v890_v13 = vld [vmem:[#allocation2 + $0x3c] sm:$0x1] }
  0x4c   : > { %v884_v10 = vld [vmem:[#allocation2 + $0x34] sm:$0x1]  ;;  %v595_v14 = vrot.slane %v593_v5, 7  ;;  %v284_v15 = vld [vmem:[#allocation2 + $0x50] sm:$0x1]  ;;  %v1784_v16 = vrot.slane %v13968_v42, 7  ;;  %v891_v20 = vsel %vm14600_vm2, %v583_v58, %v890_v13  ;;  %13108 = vmatpush3.bf16.msra.mxu0 %v14007_v6  ;;  %v1961_v33 = vsel %vm14694_vm9, %v11610_v60, %v1960_v56 }
  0x4d   : > { %v885_v17 = vsel %vm14600_vm2, %v575_v18, %v884_v10  ;;  %v893_v21 = vld [vmem:[#allocation2 + $0x40] sm:$0xf]  ;;  %v14019_v23 = vld [vmem:[%s18949_s1 + $0x110] sm:$0xff]   ;;  %v1308_v50 = vor.u32 %v1307_v11, %v1303_v63  ;;  %892 = vst [vmem:[#allocation2 + $0x3c] sm:$0x1] %v891_v20  ;;  %v601_v26 = vshrl.u32 %v505_v4, 16  ;;  %13109 = vmatprep.subr.bf16.mxu0 %v14018_v8 }
  0x4e   : > { %886 = vst [vmem:[#allocation2 + $0x34] sm:$0x1] %v885_v17  ;;  %v894_v24 = vsel %vm14630_vm6, %v590_v1, %v893_v21  ;;  %v599_v19 = vrot.slane %v595_v14, 4  ;;  %v293_v27 = vld [vmem:[#allocation2 + $0x68] sm:$0x1]  ;;  %v11525_v29 = vcombine.low %v1560_v62, %v1784_v16  ;;  %v11527_v30 = vsel %vm849_vm5, %v1080_v44, %v1784_v16 }
  0x4f   : > { %v296_v28 = vld [vmem:[#allocation2 + $0x70] sm:$0x1]  ;;  %895 = vst [vmem:[#allocation2 + $0x40] sm:$0xf] %v894_v24  ;;  %v598_v31 = vor.u32 %v596_v22, %v595_v14  ;;  %v604_v2 = vshll.u32 %v505_v4, 16  ;;  %v1964_v18 = vrot.slane %v11527_v30, 5  ;;  %v11691_v34 = vcombine.low %v1301_v9, %v1308_v50 }
  0x50   : > { %v899_v25 = vld [vmem:[#allocation2 + $0x58] sm:$0xf]  ;;  %v412_v32 = vld [vmem:[#allocation2 + $0x64] sm:$0x1]  ;;  %v14823_v36 = vrot.slane %v601_v26, 7  ;;  %v11611_v39 = vrot.slane %v11525_v29, 9  ;;  %13110 = vmatpush3.bf16.msra.mxu0 %v14019_v23 }
  0x51   : > { %v905_v37 = vld [vmem:[#allocation2 + $0x60] sm:$0xf]  ;;  %v415_v38 = vld [vmem:[#allocation2 + $0x6c] sm:$0x1]  ;;  %v900_v41 = vsel %vm14630_vm6, %v598_v31, %v899_v25  ;;  %v902_v43 = vld [vmem:[#allocation2 + $0x5c] sm:$0x1]  ;;  %2695 = vmatprep.mubr.bf16.mxu1 %v11691_v34 }
  0x52   : > { %v285_v44 = vsel %vm14600_vm2, 0, %v284_v15  ;;  %v294_v45 = vsel %vm14600_vm2, 0, %v293_v27  ;;  %v14029_v46 = vld [vmem:[%s18949_s1 + $0x148] sm:$0xff]   ;;  %v1561_v47 = vld [vmem:[#allocation2 + $0x30] sm:$0xe]  ;;  %v606_v49 = vor.u32 %v604_v2, %v14823_v36  ;;  %v903_v51 = vsel %vm14600_vm2, %v599_v19, %v902_v43  ;;  %2696 = vmatmul.mubr.bf16.gmra.mxu1 %v11690_v12 }
  0x53   : > { %v14834_v48 = vld [vmem:[#allocation2 + $0x30] sm:$0xf]  ;;  %901 = vst [vmem:[#allocation2 + $0x58] sm:$0xf] %v900_v41  ;;  %286 = vst [vmem:[#allocation2 + $0x50] sm:$0x1] %v285_v44  ;;  %v1965_v55 = vsel %vm14694_vm9, %v11611_v39, %v1964_v18  ;;  %13111 = vmatprep.subr.bf16.mxu0 %v14029_v46 }
  0x54   : > { %295 = vst [vmem:[#allocation2 + $0x68] sm:$0x1] %v294_v45  ;;  %v297_v53 = vsel %vm14600_vm2, 0, %v296_v28  ;;  %v413_v54 = vsel %vm14610_vm4, 0, %v412_v32  ;;  %v13974_v56 = vld [vmem:[#allocation2 + $0x38] ss:$0 sps:$4 sm:$0xff]   ;;  %v11643_v58 = vcombine.high %v1961_v33, %v1965_v55  ;;  %v11642_v61 = vcombine.low %v1961_v33, %v1965_v55 }
  0x55   : > { %904 = vst [vmem:[#allocation2 + $0x5c] sm:$0x1] %v903_v51  ;;  %298 = vst [vmem:[#allocation2 + $0x70] sm:$0x1] %v297_v53  ;;  %v506_v57 = vld [vmem:[%s14597_s19 + $0x28] sm:$0xf]  ;;  %v906_v63 = vsel %vm14630_vm6, %v606_v49, %v905_v37 }
  0x56   : > { %414 = vst [vmem:[#allocation2 + $0x64] sm:$0x1] %v413_v54  ;;  %v14846_v62 = vld [vmem:[#allocation2 + $0x38] sm:$0xf]  ;;  %v416_v0 = vsel %vm14610_vm4, 0, %v415_v38  ;;  %v14030_v4 = vld [vmem:[%s18949_s1 + $0x108] sm:$0xff]   ;;  %2374 = vmatprep.mubr.bf16.mxu0 %v11643_v58 }
  0x57   : > { %v507_v1 = vld [vmem:[%s14597_s19 + $0x2c] sm:$0xf]  ;;  %v1081_v5 = vld [vmem:[#allocation2 + $0x34] sm:$0x1]  ;;  %v1082_v6 = vld [vmem:[#allocation2 + $0x3c] sm:$0x1]  ;;  %v11692_v60 = vcombine.low %v14834_v48, %v14846_v62  ;;  %13112 = vmatpush3.bf16.msra.mxu0 %v14030_v4 }
  0x58   : > { %v1785_v42 = vrot.slane %v13974_v56, 7  ;;  %907 = vst [vmem:[#allocation2 + $0x60] sm:$0xf] %v906_v63  ;;  %417 = vst [vmem:[#allocation2 + $0x6c] sm:$0x1] %v416_v0  ;;  %v607_v7 = vrot.slane %v14823_v36, 4  ;;  %v11452_v9 = vcombine.low %v14834_v48, %v1081_v5  ;;  %v11453_v11 = vcombine.low %v14846_v62, %v1082_v6  ;;  %2375 = vmatmul.mubr.bf16.gmra.mxu0 %v11642_v61 }
  0x59   : > { %v13975_v8 = vld [vmem:[#allocation2 + $0x40] ss:$0 sps:$4 sm:$0xff]   ;;  %v609_v12 = vshrl.u32 %v506_v57, 16  ;;  %v612_v10 = vshll.u32 %v506_v57, 16  ;;  %v1562_v13 = vld [vmem:[#allocation2 + $0x38] sm:$0xe] }
  0x5a   : > { %v11528_v14 = vcombine.low %v1561_v47, %v1785_v42  ;;  %v11530_v15 = vsel %vm849_vm5, %v1081_v5, %v1785_v42  ;;  %v617_v16 = vshrl.u32 %v507_v1, 16  ;;  %v620_v17 = vshll.u32 %v507_v1, 16  ;;  %v1083_v50 = vld [vmem:[#allocation2 + $0x54] sm:$0x1]  ;;  %v299_v28 = vld [vmem:[#allocation2 + $0x78] sm:$0x1] }
  0x5b   : > { %v1786_v20 = vrot.slane %v13975_v8, 7  ;;  %v1968_v21 = vrot.slane %v11530_v15, 5  ;;  %v1310_v22 = vshrl.u32 %v11452_v9, 16  ;;  %v1312_v23 = vshll.u32 %v11452_v9, 16  ;;  %v1563_v25 = vld [vmem:[#allocation2 + $0x50] sm:$0xe] }
  0x5c   : > { %v11612_v24 = vrot.slane %v11528_v14, 9  ;;  %v1317_v19 = vshrl.u32 %v11453_v11, 16  ;;  %v1319_v26 = vshll.u32 %v11453_v11, 16  ;;  %v611_v27 = vrot.slane %v609_v12, 7  ;;  %v1084_v2 = vld [vmem:[#allocation2 + $0x5c] sm:$0x1] }
  0x5d   : > { %v11531_v29 = vcombine.low %v1562_v13, %v1786_v20  ;;  %v11533_v30 = vsel %vm849_vm5, %v1082_v6, %v1786_v20  ;;  %v1314_v31 = vrot.slane %v1312_v23, 1  ;;  %v14863_v32 = vrot.slane %v617_v16, 7  ;;  %v13979_v37 = vld [vmem:[#allocation2 + $0x58] ss:$0 sps:$4 sm:$0xff]   ;;  %v14867_v38 = vld [vmem:[#allocation2 + $0x50] sm:$0xf] }
  0x5e   : > { %v1969_v33 = vsel %vm14694_vm9, %v11612_v24, %v1968_v21  ;;  %v1972_v18 = vrot.slane %v11533_v30, 5  ;;  %v1321_v34 = vrot.slane %v1319_v26, 1  ;;  %v614_v39 = vor.u32 %v612_v10, %v611_v27  ;;  %v1564_v49 = vld [vmem:[#allocation2 + $0x58] sm:$0xe]  ;;  %v908_v5 = vld [vmem:[#allocation2 + $0x64] sm:$0x1] }
  0x5f   : > { %v11613_v41 = vrot.slane %v11531_v29, 9  ;;  %v1315_v43 = vor.u32 %v1314_v31, %v1310_v22  ;;  %v13980_v44 = vld [vmem:[#allocation2 + $0x60] ss:$0 sps:$4 sm:$0xff]   ;;  %v11454_v45 = vcombine.low %v14867_v38, %v1083_v50  ;;  %v615_v46 = vrot.slane %v611_v27, 4  ;;  %v14870_v53 = vld [vmem:[#allocation2 + $0x58] sm:$0xf] }
  0x60   : > { %v1322_v47 = vor.u32 %v1321_v34, %v1317_v19  ;;  %v1787_v51 = vrot.slane %v13979_v37, 7  ;;  %v622_v54 = vor.u32 %v620_v17, %v14863_v32  ;;  %v300_v55 = vsel %vm14600_vm2, 0, %v299_v28  ;;  %v911_v6 = vld [vmem:[#allocation2 + $0x68] sm:$0xf]  ;;  %v914_v42 = vld [vmem:[#allocation2 + $0x6c] sm:$0x1] }
  0x61   : > { %v1973_v56 = vsel %vm14694_vm9, %v11613_v41, %v1972_v18  ;;  %v1788_v57 = vrot.slane %v13980_v44, 7  ;;  %v11455_v58 = vcombine.low %v14870_v53, %v1084_v2  ;;  %v1324_v61 = vshrl.u32 %v11454_v45, 16  ;;  %301 = vst [vmem:[#allocation2 + $0x78] sm:$0x1] %v300_v55  ;;  %v917_v10 = vld [vmem:[#allocation2 + $0x70] sm:$0xf] }
  0x62   : > { %v11645_v63 = vcombine.high %v1969_v33, %v1973_v56  ;;  %v11693_v0 = vcombine.low %v1315_v43, %v1322_v47  ;;  %v11644_v1 = vcombine.low %v1969_v33, %v1973_v56  ;;  %v11534_v4 = vcombine.low %v1563_v25, %v1787_v51  ;;  %v302_v13 = vld [vmem:[#allocation2 + $0x80] sm:$0x1]  ;;  %v418_v14 = vld [vmem:[#allocation2 + $0x74] sm:$0x1]  ;;  %v14031_v15 = vld [vmem:[%s18949_s1 + $0x1f8] sm:$0xff]  }
  0x63   : > { %v11536_v8 = vsel %vm849_vm5, %v1083_v50, %v1787_v51  ;;  %v11537_v9 = vcombine.low %v1564_v49, %v1788_v57  ;;  %v11539_v11 = vsel %vm849_vm5, %v1084_v2, %v1788_v57  ;;  %v1326_v12 = vshll.u32 %v11454_v45, 16  ;;  %v14032_v24 = vld [vmem:[%s18949_s1 + $0x1b8] sm:$0xff]   ;;  %v508_v27 = vld [vmem:[%s14597_s19 + $0x30] sm:$0xf]  ;;  %13211 = vmatprep.subr.bf16.mxu1 %v14031_v15  ;;  %v305_v31 = vld [vmem:[#allocation2 + $0x88] sm:$0x1] }
  0x64   : > { %2382 = vmatprep.mubr.bf16.mxu0 %v11645_v63  ;;  %2703 = vmatprep.mubr.bf16.mxu1 %v11693_v0  ;;  %v11614_v16 = vrot.slane %v11534_v4, 9  ;;  %v1976_v17 = vrot.slane %v11536_v8, 5  ;;  %v1980_v20 = vrot.slane %v11539_v11, 5  ;;  %v1331_v21 = vshrl.u32 %v11455_v58, 16  ;;  %v14033_v2 = vld [vmem:[%s18949_s1 + $0x1f0] sm:$0xff]   ;;  %v14040_v63 = vld [vmem:[%s18949_s1 + $0x1e8] sm:$0xff]  }
  0x65   : > { %2383 = vmatmul.mubr.bf16.gmra.mxu0 %v11644_v1  ;;  %2704 = vmatmul.mubr.bf16.gmra.mxu1 %v11692_v60  ;;  %v11615_v22 = vrot.slane %v11537_v9, 9  ;;  %v1328_v23 = vrot.slane %v1326_v12, 1  ;;  %v1333_v50 = vshll.u32 %v11455_v58, 16  ;;  %v909_v26 = vsel %vm14600_vm2, %v607_v7, %v908_v5  ;;  %v421_v60 = vld [vmem:[#allocation2 + $0x7c] sm:$0x1]  ;;  %v14041_v11 = vld [vmem:[%s18949_s1 + $0x1a8] sm:$0xff]  }
  0x66   : > { %v1977_v19 = vsel %vm14694_vm9, %v11614_v16, %v1976_v17  ;;  %v912_v48 = vsel %vm14630_vm6, %v614_v39, %v911_v6  ;;  %v915_v62 = vsel %vm14600_vm2, %v615_v46, %v914_v42  ;;  %910 = vst [vmem:[#allocation2 + $0x64] sm:$0x1] %v909_v26  ;;  %v918_v36 = vsel %vm14630_vm6, %v622_v54, %v917_v10  ;;  %v14905_v7 = vld [vmem:[%s14597_s19 + $0x34] sm:$0xf]  ;;  %v308_v34 = vld [vmem:[#allocation2 + $0x90] sm:$0x1] }
  0x67   : > { %v1981_v28 = vsel %vm14694_vm9, %v11615_v22, %v1980_v20  ;;  %v1329_v29 = vor.u32 %v1328_v23, %v1324_v61  ;;  %v1335_v30 = vrot.slane %v1333_v50, 1  ;;  %913 = vst [vmem:[#allocation2 + $0x68] sm:$0xf] %v912_v48  ;;  %916 = vst [vmem:[#allocation2 + $0x6c] sm:$0x1] %v915_v62  ;;  %13212 = vmatpush3.bf16.msra.mxu1 %v14032_v24  ;;  %v303_v33 = vsel %vm14600_vm2, 0, %v302_v13 }
  0x68   : > { %v11647_v25 = vcombine.high %v1977_v19, %v1981_v28  ;;  %919 = vst [vmem:[#allocation2 + $0x70] sm:$0xf] %v918_v36  ;;  %v419_v18 = vsel %vm14610_vm4, 0, %v418_v14  ;;  %v424_v37 = vld [vmem:[#allocation2 + $0x84] sm:$0x1]  ;;  %v11646_v41 = vcombine.low %v1977_v19, %v1981_v28  ;;  %v422_v43 = vsel %vm14610_vm4, 0, %v421_v60  ;;  %13213 = vmatprep.subr.bf16.mxu1 %v14033_v2 }
  0x69   : > { %v1336_v39 = vor.u32 %v1335_v30, %v1331_v21  ;;  %304 = vst [vmem:[#allocation2 + $0x80] sm:$0x1] %v303_v33  ;;  %420 = vst [vmem:[#allocation2 + $0x74] sm:$0x1] %v419_v18  ;;  %v625_v44 = vshrl.u32 %v508_v27, 16  ;;  %v14038_v46 = vld [vmem:[%s18949_s1 + $0x1b0] sm:$0xff]   ;;  %v11694_v47 = vcombine.low %v14867_v38, %v14870_v53 }
  0x6a   : > { %v427_v45 = vld [vmem:[#allocation2 + $0x8c] sm:$0x1]  ;;  %2390 = vmatprep.mubr.bf16.mxu0 %v11647_v25  ;;  %v14921_v49 = vld [vmem:[#allocation2 + $0x60] sm:$0xf]  ;;  %423 = vst [vmem:[#allocation2 + $0x7c] sm:$0x1] %v422_v43 }
  0x6b   : > { %v628_v51 = vshll.u32 %v508_v27, 16  ;;  %v633_v54 = vshrl.u32 %v14905_v7, 16  ;;  %v306_v55 = vsel %vm14600_vm2, 0, %v305_v31  ;;  %v14927_v56 = vld [vmem:[%s14597_s19 + $0x38] sm:$0xf]  ;;  %v11695_v57 = vcombine.low %v1329_v29, %v1336_v39  ;;  %13214 = vmatpush3.bf16.msra.mxu1 %v14038_v46  ;;  %v14042_v60 = vld [vmem:[%s18949_s1 + $0x1e0] sm:$0xff]  }
  0x6c   : > { %v627_v58 = vrot.slane %v625_v44, 7  ;;  %307 = vst [vmem:[#allocation2 + $0x88] sm:$0x1] %v306_v55  ;;  %v309_v61 = vsel %vm14600_vm2, 0, %v308_v34  ;;  %v425_v38 = vsel %vm14610_vm4, 0, %v424_v37  ;;  %v636_v1 = vshll.u32 %v14905_v7, 16  ;;  %13215 = vmatprep.subr.bf16.mxu1 %v14040_v63 }
  0x6d   : > { %v14934_v53 = vld [vmem:[%s14597_s19 + $0x3c] sm:$0xf]  ;;  %v14939_v0 = vrot.slane %v633_v54, 7  ;;  %v923_v4 = vld [vmem:[#allocation2 + $0x78] sm:$0xf]  ;;  %v428_v5 = vsel %vm14610_vm4, 0, %v427_v45  ;;  %2711 = vmatprep.mubr.bf16.mxu1 %v11695_v57  ;;  %2391 = vmatmul.mubr.bf16.gmra.mxu0 %v11646_v41 }
  0x6e   : > { %310 = vst [vmem:[#allocation2 + $0x90] sm:$0x1] %v309_v61  ;;  %426 = vst [vmem:[#allocation2 + $0x84] sm:$0x1] %v425_v38  ;;  %v623_v6 = vrot.slane %v14863_v32, 4  ;;  %v630_v42 = vor.u32 %v628_v51, %v627_v58  ;;  %v641_v8 = vshrl.u32 %v14927_v56, 16  ;;  %2712 = vmatmul.mubr.bf16.gmra.mxu1 %v11694_v47 }
  0x6f   : > { %429 = vst [vmem:[#allocation2 + $0x8c] sm:$0x1] %v428_v5  ;;  %v644_v9 = vshll.u32 %v14927_v56, 16  ;;  %v1085_v12 = vld [vmem:[#allocation2 + $0x64] sm:$0x1]  ;;  %v631_v14 = vrot.slane %v627_v58, 4  ;;  %13216 = vmatpush3.bf16.msra.mxu1 %v14041_v11  ;;  %v638_v23 = vor.u32 %v636_v1, %v14939_v0 }
  0x70   : > { %v1086_v10 = vld [vmem:[#allocation2 + $0x6c] sm:$0x1]  ;;  %v1565_v13 = vld [vmem:[#allocation2 + $0x60] sm:$0xe]  ;;  %v649_v15 = vshrl.u32 %v14934_v53, 16  ;;  %v11456_v17 = vcombine.low %v14921_v49, %v1085_v12  ;;  %v924_v20 = vsel %vm14630_vm6, %v630_v42, %v923_v4  ;;  %v652_v36 = vshll.u32 %v14934_v53, 16  ;;  %13217 = vmatprep.subr.bf16.mxu1 %v14042_v60 }
  0x71   : > { %v1566_v16 = vld [vmem:[#allocation2 + $0x68] sm:$0xe]  ;;  %v13985_v32 = vld [vmem:[#allocation2 + $0x68] ss:$0 sps:$4 sm:$0xff]   ;;  %v13986_v21 = vld [vmem:[#allocation2 + $0x70] ss:$0 sps:$4 sm:$0xff]  }
  0x72   : > { %v14954_v22 = vld [vmem:[#allocation2 + $0x68] sm:$0xf]  ;;  %v920_v50 = vld [vmem:[#allocation2 + $0x74] sm:$0x1]  ;;  %925 = vst [vmem:[#allocation2 + $0x78] sm:$0xf] %v924_v20 }
  0x73   : > { %v1789_v24 = vrot.slane %v13985_v32, 7  ;;  %v11457_v19 = vcombine.low %v14954_v22, %v1086_v10  ;;  %v1338_v26 = vshrl.u32 %v11456_v17, 16  ;;  %v1340_v48 = vshll.u32 %v11456_v17, 16  ;;  %v926_v62 = vld [vmem:[#allocation2 + $0x7c] sm:$0x1]  ;;  %v14047_v7 = vld [vmem:[%s18949_s1 + $0x1a0] sm:$0xff]  }
  0x74   : > { %v1790_v27 = vrot.slane %v13986_v21, 7  ;;  %v921_v28 = vsel %vm14600_vm2, %v623_v6, %v920_v50  ;;  %v927_v29 = vsel %vm14600_vm2, %v631_v14, %v926_v62  ;;  %v929_v30 = vld [vmem:[#allocation2 + $0x80] sm:$0xf]  ;;  %13218 = vmatpush3.bf16.msra.mxu1 %v14047_v7  ;;  %v1567_v51 = vld [vmem:[#allocation2 + $0x70] sm:$0xe]  ;;  %v639_v55 = vrot.slane %v14939_v0, 4 }
  0x75   : > { %v11540_v31 = vcombine.low %v1565_v13, %v1789_v24  ;;  %v11542_v2 = vsel %vm849_vm5, %v1085_v12, %v1789_v24  ;;  %v1342_v25 = vrot.slane %v1340_v48, 1  ;;  %v1345_v33 = vshrl.u32 %v11457_v19, 16  ;;  %922 = vst [vmem:[#allocation2 + $0x74] sm:$0x1] %v921_v28  ;;  %928 = vst [vmem:[#allocation2 + $0x7c] sm:$0x1] %v927_v29 }
  0x76   : > { %v11543_v18 = vcombine.low %v1566_v16, %v1790_v27  ;;  %v11545_v34 = vsel %vm849_vm5, %v1086_v10, %v1790_v27  ;;  %v1984_v37 = vrot.slane %v11542_v2, 5  ;;  %v1347_v39 = vshll.u32 %v11457_v19, 16  ;;  %v14973_v54 = vld [vmem:[#allocation2 + $0x70] sm:$0xf]  ;;  %v932_v57 = vld [vmem:[#allocation2 + $0x84] sm:$0x1] }
  0x77   : > { %v11616_v41 = vrot.slane %v11540_v31, 9  ;;  %v1988_v43 = vrot.slane %v11545_v34, 5  ;;  %v1343_v44 = vor.u32 %v1342_v25, %v1338_v26  ;;  %v930_v45 = vsel %vm14630_vm6, %v638_v23, %v929_v30  ;;  %v935_v38 = vld [vmem:[#allocation2 + $0x88] sm:$0xf]  ;;  %v938_v11 = vld [vmem:[#allocation2 + $0x8c] sm:$0x1] }
  0x78   : > { %v11617_v46 = vrot.slane %v11543_v18, 9  ;;  %v1349_v47 = vrot.slane %v1347_v39, 1  ;;  %931 = vst [vmem:[#allocation2 + $0x80] sm:$0xf] %v930_v45  ;;  %v643_v56 = vrot.slane %v641_v8, 7  ;;  %v14049_v0 = vld [vmem:[%s18949_s1 + $0x140] sm:$0xff]   ;;  %v11696_v10 = vcombine.low %v14921_v49, %v14954_v22 }
  0x79   : > { %v1985_v58 = vsel %vm14694_vm9, %v11616_v41, %v1984_v37  ;;  %v13990_v61 = vld [vmem:[#allocation2 + $0x78] ss:$0 sps:$4 sm:$0xff]   ;;  %v317_v63 = vld [vmem:[#allocation2 + $0xa8] sm:$0x1]  ;;  %v941_v14 = vld [vmem:[#allocation2 + $0x90] sm:$0xf]  ;;  %v933_v21 = vsel %vm14600_vm2, %v639_v55, %v932_v57  ;;  %13113 = vmatprep.subr.bf16.mxu0 %v14049_v0 }
  0x7a   : > { %v1989_v1 = vsel %vm14694_vm9, %v11617_v46, %v1988_v43  ;;  %v1350_v4 = vor.u32 %v1349_v47, %v1345_v33  ;;  %v14980_v5 = vld [vmem:[#allocation2 + $0x78] sm:$0xf]  ;;  %v646_v6 = vor.u32 %v644_v9, %v643_v56  ;;  %v647_v42 = vrot.slane %v643_v56, 4  ;;  %v14050_v16 = vld [vmem:[%s18949_s1 + $0x100] sm:$0xff]   ;;  %v320_v49 = vld [vmem:[#allocation2 + $0xb0] sm:$0x1] }
  0x7b   : > { %v11649_v8 = vcombine.high %v1985_v58, %v1989_v1  ;;  %v11648_v12 = vcombine.low %v1985_v58, %v1989_v1  ;;  %v1791_v13 = vrot.slane %v13990_v61, 7  ;;  %v14992_v20 = vrot.slane %v649_v15, 7  ;;  %v436_v22 = vld [vmem:[#allocation2 + $0xa4] sm:$0x1]  ;;  %v14051_v50 = vld [vmem:[%s18949_s1 + $0x1d8] sm:$0xff]   ;;  %13114 = vmatpush3.bf16.msra.mxu0 %v14050_v16 }
  0x7c   : > { %v11697_v32 = vcombine.low %v1343_v44, %v1350_v4  ;;  %v1087_v17 = vld [vmem:[#allocation2 + $0x74] sm:$0x1]  ;;  %v1088_v9 = vld [vmem:[#allocation2 + $0x7c] sm:$0x1]  ;;  %v936_v23 = vsel %vm14630_vm6, %v646_v6, %v935_v38  ;;  %934 = vst [vmem:[#allocation2 + $0x84] sm:$0x1] %v933_v21  ;;  %v939_v60 = vsel %vm14600_vm2, %v647_v42, %v938_v11  ;;  %v11698_v2 = vcombine.low %v14973_v54, %v14980_v5 }
  0x7d   : > { %2398 = vmatprep.mubr.bf16.mxu0 %v11649_v8  ;;  %v11546_v24 = vcombine.low %v1567_v51, %v1791_v13  ;;  %v11548_v15 = vsel %vm849_vm5, %v1087_v17, %v1791_v13  ;;  %v11458_v19 = vcombine.low %v14973_v54, %v1087_v17  ;;  %v11459_v26 = vcombine.low %v14980_v5, %v1088_v9  ;;  %v439_v48 = vld [vmem:[#allocation2 + $0xac] sm:$0x1]  ;;  %v512_v28 = vld [vmem:[%s14597_s19 + $0x40] sm:$0xf]  ;;  %v15013_v29 = vld [vmem:[%s14597_s19 + $0x44] sm:$0xf] }
  0x7e   : > { %937 = vst [vmem:[#allocation2 + $0x88] sm:$0xf] %v936_v23  ;;  %2719 = vmatprep.mubr.bf16.mxu1 %v11697_v32  ;;  %2399 = vmatmul.mubr.bf16.gmra.mxu0 %v11648_v12  ;;  %v654_v62 = vor.u32 %v652_v36, %v14992_v20  ;;  %v318_v27 = vsel %vm14600_vm2, 0, %v317_v63  ;;  %v1992_v7 = vrot.slane %v11548_v15, 5  ;;  %940 = vst [vmem:[#allocation2 + $0x8c] sm:$0x1] %v939_v60 }
  0x7f   : > { %2720 = vmatmul.mubr.bf16.gmra.mxu1 %v11696_v10  ;;  %v13991_v30 = vld [vmem:[#allocation2 + $0x80] ss:$0 sps:$4 sm:$0xff]   ;;  %v1352_v31 = vshrl.u32 %v11458_v19, 16  ;;  %319 = vst [vmem:[#allocation2 + $0xa8] sm:$0x1] %v318_v27  ;;  %v1354_v36 = vshll.u32 %v11458_v19, 16  ;;  %13219 = vmatprep.subr.bf16.mxu1 %v14051_v50 }
  0x80   : > { %v1568_v53 = vld [vmem:[#allocation2 + $0x78] sm:$0xe]  ;;  %v1359_v25 = vshrl.u32 %v11459_v26, 16  ;;  %v1361_v33 = vshll.u32 %v11459_v26, 16  ;;  %v942_v18 = vsel %vm14630_vm6, %v654_v62, %v941_v14  ;;  %v1792_v37 = vrot.slane %v13991_v30, 7  ;;  %v14053_v44 = vld [vmem:[%s18949_s1 + $0x1d0] sm:$0xff]  }
  0x81   : > { %v14052_v34 = vld [vmem:[%s18949_s1 + $0x198] sm:$0xff]   ;;  %v11618_v39 = vrot.slane %v11546_v24, 9  ;;  %943 = vst [vmem:[#allocation2 + $0x90] sm:$0xf] %v942_v18  ;;  %v321_v41 = vsel %vm14600_vm2, 0, %v320_v49  ;;  %v437_v43 = vsel %vm14610_vm4, 0, %v436_v22 }
  0x82   : > { %v1356_v45 = vrot.slane %v1354_v36, 1  ;;  %v1363_v46 = vrot.slane %v1361_v33, 1  ;;  %v15029_v47 = vld [vmem:[#allocation2 + $0x80] sm:$0xf]  ;;  %322 = vst [vmem:[#allocation2 + $0xb0] sm:$0x1] %v321_v41  ;;  %13220 = vmatpush3.bf16.msra.mxu1 %v14052_v34  ;;  %v11549_v55 = vcombine.low %v1568_v53, %v1792_v37  ;;  %v11551_v56 = vsel %vm849_vm5, %v1088_v9, %v1792_v37 }
  0x83   : > { %438 = vst [vmem:[#allocation2 + $0xa4] sm:$0x1] %v437_v43  ;;  %v440_v51 = vsel %vm14610_vm4, 0, %v439_v48  ;;  %v657_v54 = vshrl.u32 %v512_v28, 16  ;;  %v660_v57 = vshll.u32 %v512_v28, 16  ;;  %v665_v58 = vshrl.u32 %v15013_v29, 16  ;;  %13221 = vmatprep.subr.bf16.mxu1 %v14053_v44 }
  0x84   : > { %441 = vst [vmem:[#allocation2 + $0xac] sm:$0x1] %v440_v51  ;;  %v1996_v61 = vrot.slane %v11551_v56, 5  ;;  %v1357_v38 = vor.u32 %v1356_v45, %v1352_v31  ;;  %v1364_v63 = vor.u32 %v1363_v46, %v1359_v25  ;;  %v1089_v1 = vld [vmem:[#allocation2 + $0x84] sm:$0x1]  ;;  %v1993_v6 = vsel %vm14694_vm9, %v11618_v39, %v1992_v7  ;;  %v14058_v48 = vld [vmem:[%s18949_s1 + $0x190] sm:$0xff]  }
  0x85   : > { %v1569_v4 = vld [vmem:[#allocation2 + $0x80] sm:$0xe]  ;;  %v659_v5 = vrot.slane %v657_v54, 7  ;;  %v11619_v42 = vrot.slane %v11549_v55, 9  ;;  %v13997_v11 = vld [vmem:[#allocation2 + $0x88] ss:$0 sps:$4 sm:$0xff]   ;;  %v11460_v0 = vcombine.low %v15029_v47, %v1089_v1 }
  0x86   : > { %v15038_v8 = vrot.slane %v665_v58, 7  ;;  %v11699_v12 = vcombine.low %v1357_v38, %v1364_v63  ;;  %v1090_v10 = vld [vmem:[#allocation2 + $0x8c] sm:$0x1]  ;;  %v15040_v13 = vld [vmem:[#allocation2 + $0x88] sm:$0xf]  ;;  %v668_v32 = vshll.u32 %v15013_v29, 16  ;;  %13222 = vmatpush3.bf16.msra.mxu1 %v14058_v48 }
  0x87   : > { %v662_v14 = vor.u32 %v660_v57, %v659_v5  ;;  %v663_v16 = vrot.slane %v659_v5, 4  ;;  %v1997_v17 = vsel %vm14694_vm9, %v11619_v42, %v1996_v61  ;;  %v1793_v9 = vrot.slane %v13997_v11, 7  ;;  %v947_v49 = vld [vmem:[#allocation2 + $0xa8] sm:$0xf]  ;;  %v314_v26 = vld [vmem:[#allocation2 + $0xa0] sm:$0x1] }
  0x88   : > { %v11461_v21 = vcombine.low %v15040_v13, %v1090_v10  ;;  %v1366_v23 = vshrl.u32 %v11460_v0, 16  ;;  %v11651_v22 = vcombine.high %v1993_v6, %v1997_v17  ;;  %2727 = vmatprep.mubr.bf16.mxu1 %v11699_v12  ;;  %v11650_v50 = vcombine.low %v1993_v6, %v1997_v17  ;;  %v13998_v24 = vld [vmem:[#allocation2 + $0x90] ss:$0 sps:$4 sm:$0xff]   ;;  %v1570_v62 = vld [vmem:[#allocation2 + $0x88] sm:$0xe] }
  0x89   : > { %v1368_v15 = vshll.u32 %v11460_v0, 16  ;;  %v11700_v19 = vcombine.low %v15029_v47, %v15040_v13  ;;  %2728 = vmatmul.mubr.bf16.gmra.mxu1 %v11698_v2  ;;  %v11552_v60 = vcombine.low %v1569_v4, %v1793_v9  ;;  %v11554_v27 = vsel %vm849_vm5, %v1089_v1, %v1793_v9  ;;  %v953_v30 = vld [vmem:[#allocation2 + $0xb0] sm:$0xf]  ;;  %v323_v7 = vld [vmem:[#allocation2 + $0xb8] sm:$0x1]  ;;  %v14060_v2 = vld [vmem:[%s18949_s1 + $0x1c8] sm:$0xff]  }
  0x8a   : > { %v1373_v28 = vshrl.u32 %v11461_v21, 16  ;;  %v1375_v29 = vshll.u32 %v11461_v21, 16  ;;  %v326_v31 = vld [vmem:[#allocation2 + $0xc0] sm:$0x1]  ;;  %2406 = vmatprep.mubr.bf16.mxu0 %v11651_v22  ;;  %v1794_v53 = vrot.slane %v13998_v24, 7  ;;  %v2000_v36 = vrot.slane %v11554_v27, 5  ;;  %13223 = vmatprep.subr.bf16.mxu1 %v14060_v2 }
  0x8b   : > { %v1370_v25 = vrot.slane %v1368_v15, 1  ;;  %v670_v33 = vor.u32 %v668_v32, %v15038_v8  ;;  %v950_v18 = vld [vmem:[#allocation2 + $0xac] sm:$0x1]  ;;  %2407 = vmatmul.mubr.bf16.gmra.mxu0 %v11650_v50  ;;  %v11620_v34 = vrot.slane %v11552_v60, 9  ;;  %v948_v39 = vsel %vm14630_vm6, %v662_v14, %v947_v49  ;;  %v442_v43 = vld [vmem:[#allocation2 + $0xb4] sm:$0x1] }
  0x8c   : > { %v1377_v37 = vrot.slane %v1375_v29, 1  ;;  %v951_v41 = vsel %vm14600_vm2, %v663_v16, %v950_v18  ;;  %v445_v44 = vld [vmem:[#allocation2 + $0xbc] sm:$0x1]  ;;  %v11555_v45 = vcombine.low %v1570_v62, %v1794_v53  ;;  %v11557_v46 = vsel %vm849_vm5, %v1090_v10, %v1794_v53  ;;  %949 = vst [vmem:[#allocation2 + $0xa8] sm:$0xf] %v948_v39  ;;  %v14061_v16 = vld [vmem:[%s18949_s1 + $0x188] sm:$0xff]  }
  0x8d   : > { %v1371_v51 = vor.u32 %v1370_v25, %v1366_v23  ;;  %952 = vst [vmem:[#allocation2 + $0xac] sm:$0x1] %v951_v41  ;;  %v954_v54 = vsel %vm14630_vm6, %v670_v33, %v953_v30  ;;  %v514_v55 = vld [vmem:[%s14597_s19 + $0x48] sm:$0xf]  ;;  %v515_v56 = vld [vmem:[%s14597_s19 + $0x4c] sm:$0xf]  ;;  %v2001_v58 = vsel %vm14694_vm9, %v11620_v34, %v2000_v36  ;;  %13224 = vmatpush3.bf16.msra.mxu1 %v14061_v16 }
  0x8e   : > { %v329_v57 = vld [vmem:[#allocation2 + $0xc8] sm:$0x1]  ;;  %v2004_v61 = vrot.slane %v11557_v46, 5  ;;  %v1378_v38 = vor.u32 %v1377_v37, %v1373_v28  ;;  %955 = vst [vmem:[#allocation2 + $0xb0] sm:$0xf] %v954_v54  ;;  %v315_v63 = vsel %vm14600_vm2, 0, %v314_v26 }
  0x8f   : > { %v332_v1 = vld [vmem:[#allocation2 + $0xd0] sm:$0x1]  ;;  %v448_v4 = vld [vmem:[#allocation2 + $0xc4] sm:$0x1]  ;;  %v451_v5 = vld [vmem:[#allocation2 + $0xcc] sm:$0x1] }
  0x90   : > { %v11621_v6 = vrot.slane %v11555_v45, 9  ;;  %316 = vst [vmem:[#allocation2 + $0xa0] sm:$0x1] %v315_v63  ;;  %v324_v42 = vsel %vm14600_vm2, 0, %v323_v7  ;;  %v327_v11 = vsel %vm14600_vm2, 0, %v326_v31  ;;  %v443_v0 = vsel %vm14610_vm4, 0, %v442_v43 }
  0x91   : > { %v11701_v12 = vcombine.low %v1371_v51, %v1378_v38  ;;  %325 = vst [vmem:[#allocation2 + $0xb8] sm:$0x1] %v324_v42  ;;  %328 = vst [vmem:[#allocation2 + $0xc0] sm:$0x1] %v327_v11  ;;  %v446_v10 = vsel %vm14610_vm4, 0, %v445_v44  ;;  %v673_v14 = vshrl.u32 %v514_v55, 16 }
  0x92   : > { %444 = vst [vmem:[#allocation2 + $0xb4] sm:$0x1] %v443_v0  ;;  %v2005_v32 = vsel %vm14694_vm9, %v11621_v6, %v2004_v61  ;;  %447 = vst [vmem:[#allocation2 + $0xbc] sm:$0x1] %v446_v10  ;;  %v676_v17 = vshll.u32 %v514_v55, 16  ;;  %v681_v9 = vshrl.u32 %v515_v56, 16 }
  0x93   : > { %v684_v21 = vshll.u32 %v515_v56, 16  ;;  %v14062_v23 = vld [vmem:[%s18949_s1 + $0x1c0] sm:$0xff]   ;;  %v11653_v49 = vcombine.high %v2001_v58, %v2005_v32  ;;  %2735 = vmatprep.mubr.bf16.mxu1 %v11701_v12  ;;  %v11652_v22 = vcombine.low %v2001_v58, %v2005_v32  ;;  %v675_v50 = vrot.slane %v673_v14, 7  ;;  %v1572_v30 = vld [vmem:[#allocation2 + $0xa8] sm:$0xe] }
  0x94   : > { %v330_v24 = vsel %vm14600_vm2, 0, %v329_v57  ;;  %2736 = vmatmul.mubr.bf16.gmra.mxu1 %v11700_v19  ;;  %v1091_v15 = vld [vmem:[#allocation2 + $0xa4] sm:$0x1]  ;;  %v15090_v26 = vrot.slane %v681_v9, 7  ;;  %v333_v48 = vsel %vm14600_vm2, 0, %v332_v1  ;;  %v449_v62 = vsel %vm14610_vm4, 0, %v448_v4  ;;  %13225 = vmatprep.subr.bf16.mxu1 %v14062_v23 }
  0x95   : > { %331 = vst [vmem:[#allocation2 + $0xc8] sm:$0x1] %v330_v24  ;;  %v452_v60 = vsel %vm14610_vm4, 0, %v451_v5  ;;  %2414 = vmatprep.mubr.bf16.mxu0 %v11653_v49  ;;  %v1092_v27 = vld [vmem:[#allocation2 + $0xac] sm:$0x1]  ;;  %v671_v47 = vrot.slane %v15038_v8, 4  ;;  %v678_v13 = vor.u32 %v676_v17, %v675_v50 }
  0x96   : > { %v1571_v28 = vld [vmem:[#allocation2 + $0xa0] sm:$0xe]  ;;  %334 = vst [vmem:[#allocation2 + $0xd0] sm:$0x1] %v333_v48  ;;  %450 = vst [vmem:[#allocation2 + $0xc4] sm:$0x1] %v449_v62  ;;  %2415 = vmatmul.mubr.bf16.gmra.mxu0 %v11652_v22  ;;  %v686_v53 = vor.u32 %v684_v21, %v15090_v26 }
  0x97   : > { %453 = vst [vmem:[#allocation2 + $0xcc] sm:$0x1] %v452_v60  ;;  %v14002_v19 = vld [vmem:[#allocation2 + $0xa8] ss:$0 sps:$4 sm:$0xff]   ;;  %v14003_v29 = vld [vmem:[#allocation2 + $0xb0] ss:$0 sps:$4 sm:$0xff]  }
  0x98   : > { %v15099_v7 = vld [vmem:[#allocation2 + $0xa0] sm:$0xf]  ;;  %v15101_v31 = vld [vmem:[#allocation2 + $0xa8] sm:$0xf]  ;;  %v1795_v36 = vrot.slane %v14002_v19, 7  ;;  %v1796_v25 = vrot.slane %v14003_v29, 7 }
  0x99   : > { %v11462_v33 = vcombine.low %v15099_v7, %v1091_v15  ;;  %v11463_v8 = vcombine.low %v15101_v31, %v1092_v27  ;;  %v956_v18 = vld [vmem:[#allocation2 + $0xb4] sm:$0x1]  ;;  %v959_v2 = vld [vmem:[#allocation2 + $0xb8] sm:$0xf]  ;;  %v679_v34 = vrot.slane %v675_v50, 4  ;;  %v687_v41 = vrot.slane %v15090_v26, 4 }
  0x9a   : > { %v957_v37 = vsel %vm14600_vm2, %v671_v47, %v956_v18  ;;  %v960_v39 = vsel %vm14630_vm6, %v678_v13, %v959_v2  ;;  %v11558_v43 = vcombine.low %v1571_v28, %v1795_v36  ;;  %v11560_v44 = vsel %vm849_vm5, %v1091_v15, %v1795_v36  ;;  %v962_v51 = vld [vmem:[#allocation2 + $0xbc] sm:$0x1]  ;;  %v965_v54 = vld [vmem:[#allocation2 + $0xc0] sm:$0xf]  ;;  %v516_v55 = vld [vmem:[%s14597_s19 + $0x50] sm:$0xf] }
  0x9b   : > { %v11561_v45 = vcombine.low %v1572_v30, %v1796_v25  ;;  %v11563_v46 = vsel %vm849_vm5, %v1092_v27, %v1796_v25  ;;  %958 = vst [vmem:[#allocation2 + $0xb4] sm:$0x1] %v957_v37  ;;  %961 = vst [vmem:[#allocation2 + $0xb8] sm:$0xf] %v960_v39  ;;  %v2008_v56 = vrot.slane %v11560_v44, 5  ;;  %v1380_v58 = vshrl.u32 %v11462_v33, 16 }
  0x9c   : > { %v2012_v57 = vrot.slane %v11563_v46, 5  ;;  %v1382_v61 = vshll.u32 %v11462_v33, 16  ;;  %v11622_v38 = vrot.slane %v11558_v43, 9  ;;  %v1387_v1 = vshrl.u32 %v11463_v8, 16  ;;  %v517_v11 = vld [vmem:[%s14597_s19 + $0x54] sm:$0xf] }
  0x9d   : > { %v11623_v63 = vrot.slane %v11561_v45, 9  ;;  %v1389_v4 = vshll.u32 %v11463_v8, 16  ;;  %v963_v6 = vsel %vm14600_vm2, %v679_v34, %v962_v51  ;;  %v966_v42 = vsel %vm14630_vm6, %v686_v53, %v965_v54  ;;  %v968_v12 = vld [vmem:[#allocation2 + $0xc4] sm:$0x1]  ;;  %v15123_v23 = vld [vmem:[#allocation2 + $0xb0] sm:$0xf] }
  0x9e   : > { %v1384_v5 = vrot.slane %v1382_v61, 1  ;;  %v689_v0 = vshrl.u32 %v516_v55, 16  ;;  %v2009_v10 = vsel %vm14694_vm9, %v11622_v38, %v2008_v56  ;;  %964 = vst [vmem:[#allocation2 + $0xbc] sm:$0x1] %v963_v6  ;;  %967 = vst [vmem:[#allocation2 + $0xc0] sm:$0xf] %v966_v42  ;;  %v969_v48 = vsel %vm14600_vm2, %v687_v41, %v968_v12 }
  0x9f   : > { %v2013_v14 = vsel %vm14694_vm9, %v11623_v63, %v2012_v57  ;;  %v1391_v16 = vrot.slane %v1389_v4, 1  ;;  %v692_v32 = vshll.u32 %v516_v55, 16  ;;  %v335_v22 = vld [vmem:[#allocation2 + $0xd8] sm:$0x1]  ;;  %v14065_v50 = vld [vmem:[%s18949_s1 + $0x180] sm:$0xff]   ;;  %v697_v15 = vshrl.u32 %v517_v11, 16 }
  0xa0   : > { %v11655_v17 = vcombine.high %v2009_v10, %v2013_v14  ;;  %v1385_v9 = vor.u32 %v1384_v5, %v1380_v58  ;;  %v11654_v21 = vcombine.low %v2009_v10, %v2013_v14  ;;  %v691_v49 = vrot.slane %v689_v0, 7  ;;  %v971_v62 = vld [vmem:[#allocation2 + $0xc8] sm:$0xf]  ;;  %v338_v60 = vld [vmem:[#allocation2 + $0xe0] sm:$0x1]  ;;  %13226 = vmatpush3.bf16.msra.mxu1 %v14065_v50  ;;  %v14066_v44 = vld [vmem:[%s18949_s1 + $0x238] sm:$0xff]  }
  0xa1   : > { %v1392_v24 = vor.u32 %v1391_v16, %v1387_v1  ;;  %v700_v26 = vshll.u32 %v517_v11, 16  ;;  %v11702_v27 = vcombine.low %v15099_v7, %v15101_v31  ;;  %970 = vst [vmem:[#allocation2 + $0xc4] sm:$0x1] %v969_v48  ;;  %v15133_v53 = vrot.slane %v697_v15, 7  ;;  %v974_v36 = vld [vmem:[#allocation2 + $0xcc] sm:$0x1]  ;;  %13819 = vmatprep.subr.bf16.mxu0 %v14066_v44 }
  0xa2   : > { %2422 = vmatprep.mubr.bf16.mxu0 %v11655_v17  ;;  %v1093_v28 = vld [vmem:[#allocation2 + $0xb4] sm:$0x1]  ;;  %v694_v47 = vor.u32 %v692_v32, %v691_v49  ;;  %v14008_v19 = vld [vmem:[#allocation2 + $0xb8] ss:$0 sps:$4 sm:$0xff]   ;;  %v695_v30 = vrot.slane %v691_v49, 4  ;;  %v336_v31 = vsel %vm14600_vm2, 0, %v335_v22 }
  0xa3   : > { %v11703_v13 = vcombine.low %v1385_v9, %v1392_v24  ;;  %2423 = vmatmul.mubr.bf16.gmra.mxu0 %v11654_v21  ;;  %v11464_v29 = vcombine.low %v15123_v23, %v1093_v28  ;;  %v454_v25 = vld [vmem:[#allocation2 + $0xd4] sm:$0x1]  ;;  %v1573_v33 = vld [vmem:[#allocation2 + $0xb0] sm:$0xe]  ;;  %v15135_v8 = vld [vmem:[#allocation2 + $0xb8] sm:$0xf]  ;;  %v702_v39 = vor.u32 %v700_v26, %v15133_v53 }
  0xa4   : > { %v972_v7 = vsel %vm14630_vm6, %v694_v47, %v971_v62  ;;  %v339_v18 = vsel %vm14600_vm2, 0, %v338_v60  ;;  %v1797_v2 = vrot.slane %v14008_v19, 7  ;;  %v977_v41 = vld [vmem:[#allocation2 + $0xd0] sm:$0xf]  ;;  %337 = vst [vmem:[#allocation2 + $0xd8] sm:$0x1] %v336_v31  ;;  %v975_v51 = vsel %vm14600_vm2, %v695_v30, %v974_v36 }
  0xa5   : > { %2743 = vmatprep.mubr.bf16.mxu1 %v11703_v13  ;;  %v1394_v34 = vshrl.u32 %v11464_v29, 16  ;;  %v1396_v37 = vshll.u32 %v11464_v29, 16  ;;  %973 = vst [vmem:[#allocation2 + $0xc8] sm:$0xf] %v972_v7  ;;  %340 = vst [vmem:[#allocation2 + $0xe0] sm:$0x1] %v339_v18  ;;  %v978_v1 = vsel %vm14630_vm6, %v702_v39, %v977_v41  ;;  %v11704_v26 = vcombine.low %v15123_v23, %v15135_v8 }
  0xa6   : > { %v457_v43 = vld [vmem:[#allocation2 + $0xdc] sm:$0x1]  ;;  %2744 = vmatmul.mubr.bf16.gmra.mxu1 %v11702_v27  ;;  %v14009_v46 = vld [vmem:[#allocation2 + $0xc0] ss:$0 sps:$4 sm:$0xff]   ;;  %v1574_v54 = vld [vmem:[#allocation2 + $0xb8] sm:$0xe]  ;;  %v11564_v55 = vcombine.low %v1573_v33, %v1797_v2  ;;  %v11566_v56 = vsel %vm849_vm5, %v1093_v28, %v1797_v2 }
  0xa7   : > { %v1094_v45 = vld [vmem:[#allocation2 + $0xbc] sm:$0x1]  ;;  %v1398_v58 = vrot.slane %v1396_v37, 1  ;;  %976 = vst [vmem:[#allocation2 + $0xcc] sm:$0x1] %v975_v51  ;;  %v1798_v38 = vrot.slane %v14009_v46, 7 }
  0xa8   : > { %v11465_v57 = vcombine.low %v15135_v8, %v1094_v45  ;;  %v15151_v61 = vld [vmem:[#allocation2 + $0xc0] sm:$0xf]  ;;  %v2016_v63 = vrot.slane %v11566_v56, 5  ;;  %v455_v4 = vsel %vm14610_vm4, 0, %v454_v25  ;;  %v15158_v5 = vld [vmem:[%s14597_s19 + $0x58] sm:$0xf] }
  0xa9   : > { %v11624_v6 = vrot.slane %v11564_v55, 9  ;;  %979 = vst [vmem:[#allocation2 + $0xd0] sm:$0xf] %v978_v1  ;;  %v1095_v0 = vld [vmem:[#allocation2 + $0xc4] sm:$0x1]  ;;  %v11567_v12 = vcombine.low %v1574_v54, %v1798_v38  ;;  %v11569_v10 = vsel %vm849_vm5, %v1094_v45, %v1798_v38  ;;  %v458_v16 = vsel %vm14610_vm4, 0, %v457_v43 }
  0xaa   : > { %v1401_v42 = vshrl.u32 %v11465_v57, 16  ;;  %v1403_v11 = vshll.u32 %v11465_v57, 16  ;;  %456 = vst [vmem:[#allocation2 + $0xd4] sm:$0x1] %v455_v4  ;;  %v11466_v14 = vcombine.low %v15151_v61, %v1095_v0  ;;  %v2020_v32 = vrot.slane %v11569_v10, 5 }
  0xab   : > { %v1399_v17 = vor.u32 %v1398_v58, %v1394_v34  ;;  %459 = vst [vmem:[#allocation2 + $0xdc] sm:$0x1] %v458_v16  ;;  %v519_v21 = vld [vmem:[%s14597_s19 + $0x5c] sm:$0xf]  ;;  %v2017_v49 = vsel %vm14694_vm9, %v11624_v6, %v2016_v63  ;;  %v11625_v22 = vrot.slane %v11567_v12, 9  ;;  %v703_v24 = vrot.slane %v15133_v53, 4 }
  0xac   : > { %v1405_v9 = vrot.slane %v1403_v11, 1  ;;  %v1575_v50 = vld [vmem:[#allocation2 + $0xc0] sm:$0xe]  ;;  %v14013_v48 = vld [vmem:[#allocation2 + $0xc8] ss:$0 sps:$4 sm:$0xff]   ;;  %v1410_v60 = vshll.u32 %v11466_v14, 16 }
  0xad   : > { %v15170_v62 = vld [vmem:[#allocation2 + $0xc8] sm:$0xf]  ;;  %v705_v27 = vshrl.u32 %v15158_v5, 16  ;;  %v2021_v28 = vsel %vm14694_vm9, %v11625_v22, %v2020_v32  ;;  %v1408_v13 = vshrl.u32 %v11466_v14, 16  ;;  %v708_v19 = vshll.u32 %v15158_v5, 16 }
  0xae   : > { %v1406_v15 = vor.u32 %v1405_v9, %v1401_v42  ;;  %v1096_v47 = vld [vmem:[#allocation2 + $0xcc] sm:$0x1]  ;;  %v713_v29 = vshrl.u32 %v519_v21, 16  ;;  %v11657_v30 = vcombine.high %v2017_v49, %v2021_v28  ;;  %v11656_v36 = vcombine.low %v2017_v49, %v2021_v28  ;;  %v1576_v25 = vld [vmem:[#allocation2 + $0xc8] sm:$0xe] }
  0xaf   : > { %v1799_v33 = vrot.slane %v14013_v48, 7  ;;  %v11467_v8 = vcombine.low %v15170_v62, %v1096_v47  ;;  %v1412_v7 = vrot.slane %v1410_v60, 1  ;;  %v11706_v31 = vcombine.low %v15151_v61, %v15170_v62  ;;  %v983_v43 = vld [vmem:[#allocation2 + $0xd8] sm:$0xf]  ;;  %v989_v55 = vld [vmem:[#allocation2 + $0xe0] sm:$0xf] }
  0xb0   : > { %v11705_v53 = vcombine.low %v1399_v17, %v1406_v15  ;;  %v14014_v23 = vld [vmem:[#allocation2 + $0xd0] ss:$0 sps:$4 sm:$0xff]   ;;  %v707_v18 = vrot.slane %v705_v27, 7  ;;  %2430 = vmatprep.mubr.bf16.mxu0 %v11657_v30  ;;  %v15180_v37 = vrot.slane %v713_v29, 7  ;;  %v716_v39 = vshll.u32 %v519_v21, 16 }
  0xb1   : > { %v11570_v2 = vcombine.low %v1575_v50, %v1799_v33  ;;  %v11572_v34 = vsel %vm849_vm5, %v1095_v0, %v1799_v33  ;;  %v980_v41 = vld [vmem:[#allocation2 + $0xd4] sm:$0x1]  ;;  %v347_v44 = vld [vmem:[#allocation2 + $0xf8] sm:$0x1]  ;;  %2431 = vmatmul.mubr.bf16.gmra.mxu0 %v11656_v36  ;;  %v1800_v45 = vrot.slane %v14014_v23, 7  ;;  %v1413_v51 = vor.u32 %v1412_v7, %v1408_v13 }
  0xb2   : > { %2751 = vmatprep.mubr.bf16.mxu1 %v11705_v53  ;;  %v2024_v46 = vrot.slane %v11572_v34, 5  ;;  %v1415_v54 = vshrl.u32 %v11467_v8, 16  ;;  %v350_v56 = vld [vmem:[#allocation2 + $0x100] sm:$0x1]  ;;  %v466_v57 = vld [vmem:[#allocation2 + $0xf4] sm:$0x1]  ;;  %v710_v1 = vor.u32 %v708_v19, %v707_v18  ;;  %v718_v12 = vor.u32 %v716_v39, %v15180_v37 }
  0xb3   : > { %2752 = vmatmul.mubr.bf16.gmra.mxu1 %v11704_v26  ;;  %v469_v58 = vld [vmem:[#allocation2 + $0xfc] sm:$0x1]  ;;  %v11626_v38 = vrot.slane %v11570_v2, 9  ;;  %v1417_v63 = vshll.u32 %v11467_v8, 16  ;;  %v711_v4 = vrot.slane %v707_v18, 4  ;;  %v11573_v11 = vcombine.low %v1576_v25, %v1800_v45 }
  0xb4   : > { %v986_v5 = vld [vmem:[#allocation2 + $0xdc] sm:$0x1]  ;;  %v15183_v6 = vld [vmem:[%s14597_s19 + $0x60] sm:$0xf]  ;;  %v15186_v42 = vld [vmem:[%s14597_s19 + $0x64] sm:$0xf]  ;;  %v11575_v0 = vsel %vm849_vm5, %v1096_v47, %v1800_v45  ;;  %v981_v10 = vsel %vm14600_vm2, %v703_v24, %v980_v41  ;;  %v984_v17 = vsel %vm14630_vm6, %v710_v1, %v983_v43  ;;  %v990_v22 = vsel %vm14630_vm6, %v718_v12, %v989_v55 }
  0xb5   : > { %v2025_v14 = vsel %vm14694_vm9, %v11626_v38, %v2024_v46  ;;  %v2028_v16 = vrot.slane %v11575_v0, 5  ;;  %v1419_v32 = vrot.slane %v1417_v63, 1  ;;  %982 = vst [vmem:[#allocation2 + $0xd4] sm:$0x1] %v981_v10  ;;  %v344_v9 = vld [vmem:[#allocation2 + $0xf0] sm:$0x1]  ;;  %v987_v49 = vsel %vm14600_vm2, %v711_v4, %v986_v5 }
  0xb6   : > { %v11627_v21 = vrot.slane %v11573_v11, 9  ;;  %985 = vst [vmem:[#allocation2 + $0xd8] sm:$0xf] %v984_v17  ;;  %v348_v50 = vsel %vm14600_vm2, 0, %v347_v44  ;;  %v353_v24 = vld [vmem:[#allocation2 + $0x108] sm:$0x1] }
  0xb7   : > { %v356_v15 = vld [vmem:[#allocation2 + $0x110] sm:$0x1]  ;;  %v1420_v26 = vor.u32 %v1419_v32, %v1415_v54  ;;  %988 = vst [vmem:[#allocation2 + $0xdc] sm:$0x1] %v987_v49  ;;  %991 = vst [vmem:[#allocation2 + $0xe0] sm:$0xf] %v990_v22 }
  0xb8   : > { %349 = vst [vmem:[#allocation2 + $0xf8] sm:$0x1] %v348_v50  ;;  %v351_v48 = vsel %vm14600_vm2, 0, %v350_v56  ;;  %v467_v60 = vsel %vm14610_vm4, 0, %v466_v57  ;;  %v470_v27 = vsel %vm14610_vm4, 0, %v469_v58  ;;  %v2029_v47 = vsel %vm14694_vm9, %v11627_v21, %v2028_v16 }
  0xb9   : > { %v472_v28 = vld [vmem:[#allocation2 + $0x104] sm:$0x1]  ;;  %352 = vst [vmem:[#allocation2 + $0x100] sm:$0x1] %v351_v48  ;;  %468 = vst [vmem:[#allocation2 + $0xf4] sm:$0x1] %v467_v60  ;;  %v11659_v53 = vcombine.high %v2025_v14, %v2029_v47  ;;  %v11707_v36 = vcombine.low %v1413_v51, %v1420_v26  ;;  %v11658_v25 = vcombine.low %v2025_v14, %v2029_v47 }
  0xba   : > { %471 = vst [vmem:[#allocation2 + $0xfc] sm:$0x1] %v470_v27  ;;  %v721_v13 = vshrl.u32 %v15183_v6, 16  ;;  %v724_v19 = vshll.u32 %v15183_v6, 16  ;;  %v729_v29 = vshrl.u32 %v15186_v42, 16  ;;  %v732_v23 = vshll.u32 %v15186_v42, 16 }
  0xbb   : > { %v475_v30 = vld [vmem:[#allocation2 + $0x10c] sm:$0x1]  ;;  %v15213_v33 = vld [vmem:[#allocation2 + $0xd0] sm:$0xf]  ;;  %v15217_v8 = vld [vmem:[%s14597_s19 + $0x68] sm:$0xf]  ;;  %2438 = vmatprep.mubr.bf16.mxu0 %v11659_v53  ;;  %2759 = vmatprep.mubr.bf16.mxu1 %v11707_v36 }
  0xbc   : > { %v723_v7 = vrot.slane %v721_v13, 7  ;;  %v15219_v18 = vrot.slane %v729_v29, 7  ;;  %v345_v2 = vsel %vm14600_vm2, 0, %v344_v9  ;;  %v354_v34 = vsel %vm14600_vm2, 0, %v353_v24  ;;  %2439 = vmatmul.mubr.bf16.gmra.mxu0 %v11658_v25  ;;  %2760 = vmatmul.mubr.bf16.gmra.mxu1 %v11706_v31  ;;  %v1097_v45 = vld [vmem:[#allocation2 + $0xd4] sm:$0x1] }
  0xbd   : > { %346 = vst [vmem:[#allocation2 + $0xf0] sm:$0x1] %v345_v2  ;;  %355 = vst [vmem:[#allocation2 + $0x108] sm:$0x1] %v354_v34  ;;  %v357_v39 = vsel %vm14600_vm2, 0, %v356_v15  ;;  %v473_v41 = vsel %vm14610_vm4, 0, %v472_v28  ;;  %v11468_v57 = vcombine.low %v15213_v33, %v1097_v45 }
  0xbe   : > { %v476_v43 = vsel %vm14610_vm4, 0, %v475_v30  ;;  %v737_v44 = vshrl.u32 %v15217_v8, 16  ;;  %v1577_v46 = vld [vmem:[#allocation2 + $0xd0] sm:$0xe]  ;;  %v727_v51 = vrot.slane %v723_v7, 4  ;;  %v735_v54 = vrot.slane %v15219_v18, 4 }
  0xbf   : > { %358 = vst [vmem:[#allocation2 + $0x110] sm:$0x1] %v357_v39  ;;  %474 = vst [vmem:[#allocation2 + $0x104] sm:$0x1] %v473_v41  ;;  %v1578_v55 = vld [vmem:[#allocation2 + $0xd8] sm:$0xe]  ;;  %v726_v58 = vor.u32 %v724_v19, %v723_v7  ;;  %v734_v42 = vor.u32 %v732_v23, %v15219_v18 }
  0xc0   : > { %477 = vst [vmem:[#allocation2 + $0x10c] sm:$0x1] %v476_v43  ;;  %v14020_v56 = vld [vmem:[#allocation2 + $0xd8] ss:$0 sps:$4 sm:$0xff]   ;;  %v1098_v38 = vld [vmem:[#allocation2 + $0xdc] sm:$0x1] }
  0xc1   : > { %v14021_v63 = vld [vmem:[#allocation2 + $0xe0] ss:$0 sps:$4 sm:$0xff]   ;;  %v1801_v1 = vrot.slane %v14020_v56, 7  ;;  %v15237_v4 = vld [vmem:[#allocation2 + $0xd8] sm:$0xf]  ;;  %v1422_v61 = vshrl.u32 %v11468_v57, 16 }
  0xc2   : > { %v1424_v62 = vshll.u32 %v11468_v57, 16  ;;  %v739_v31 = vrot.slane %v737_v44, 7  ;;  %v1802_v5 = vrot.slane %v14021_v63, 7  ;;  %v11469_v6 = vcombine.low %v15237_v4, %v1098_v38  ;;  %v995_v11 = vld [vmem:[#allocation2 + $0xf8] sm:$0xf] }
  0xc3   : > { %v998_v0 = vld [vmem:[#allocation2 + $0xfc] sm:$0x1]  ;;  %v740_v12 = vshll.u32 %v15217_v8, 16  ;;  %v11576_v10 = vcombine.low %v1577_v46, %v1801_v1  ;;  %v11578_v14 = vsel %vm849_vm5, %v1097_v45, %v1801_v1  ;;  %v996_v32 = vsel %vm14630_vm6, %v726_v58, %v995_v11  ;;  %v1001_v17 = vld [vmem:[#allocation2 + $0x100] sm:$0xf] }
  0xc4   : > { %v1426_v16 = vrot.slane %v1424_v62, 1  ;;  %v15245_v9 = vld [vmem:[#allocation2 + $0xf4] sm:$0x1]  ;;  %v11579_v21 = vcombine.low %v1578_v55, %v1802_v5  ;;  %v11581_v49 = vsel %vm849_vm5, %v1098_v38, %v1802_v5  ;;  %v2032_v22 = vrot.slane %v11578_v14, 5  ;;  %997 = vst [vmem:[#allocation2 + $0xf8] sm:$0xf] %v996_v32 }
  0xc5   : > { %v1429_v50 = vshrl.u32 %v11469_v6, 16  ;;  %v15248_v24 = vld [vmem:[#allocation2 + $0xf0] sm:$0xf]  ;;  %v11628_v15 = vrot.slane %v11576_v10, 9  ;;  %v2036_v26 = vrot.slane %v11581_v49, 5  ;;  %v1431_v60 = vshll.u32 %v11469_v6, 16 }
  0xc6   : > { %v1427_v48 = vor.u32 %v1426_v16, %v1422_v61  ;;  %v523_v27 = vld [vmem:[%s14597_s19 + $0x6c] sm:$0xf]  ;;  %v11629_v28 = vrot.slane %v11579_v21, 9  ;;  %v999_v47 = vsel %vm14600_vm2, %v727_v51, %v998_v0  ;;  %v1002_v13 = vsel %vm14630_vm6, %v734_v42, %v1001_v17  ;;  %v1004_v29 = vld [vmem:[#allocation2 + $0x104] sm:$0x1] }
  0xc7   : > { %v15257_v19 = vcombine.low %v15248_v24, %v15245_v9  ;;  %v1007_v30 = vld [vmem:[#allocation2 + $0x108] sm:$0xf]  ;;  %v2033_v53 = vsel %vm14694_vm9, %v11628_v15, %v2032_v22  ;;  %v1433_v36 = vrot.slane %v1431_v60, 1  ;;  %1000 = vst [vmem:[#allocation2 + $0xfc] sm:$0x1] %v999_v47  ;;  %v742_v25 = vor.u32 %v740_v12, %v739_v31 }
  0xc8   : > { %1003 = vst [vmem:[#allocation2 + $0x100] sm:$0xf] %v1002_v13  ;;  %v743_v23 = vrot.slane %v739_v31, 4  ;;  %v2037_v8 = vsel %vm14694_vm9, %v11629_v28, %v2036_v26  ;;  %v745_v18 = vshrl.u32 %v523_v27, 16  ;;  %v1010_v2 = vld [vmem:[#allocation2 + $0x10c] sm:$0x1]  ;;  %v11708_v45 = vcombine.low %v15213_v33, %v15237_v4 }
  0xc9   : > { %v1438_v7 = vshll.u32 %v15257_v19, 16  ;;  %v11661_v34 = vcombine.high %v2033_v53, %v2037_v8  ;;  %v1434_v39 = vor.u32 %v1433_v36, %v1429_v50  ;;  %v11660_v41 = vcombine.low %v2033_v53, %v2037_v8  ;;  %v1013_v44 = vld [vmem:[#allocation2 + $0x110] sm:$0xf]  ;;  %v359_v57 = vld [vmem:[#allocation2 + $0x118] sm:$0x1] }
  0xca   : > { %v748_v43 = vshll.u32 %v523_v27, 16  ;;  %v1579_v46 = vld [vmem:[#allocation2 + $0xf0] sm:$0xe]  ;;  %v15266_v51 = vrot.slane %v745_v18, 7  ;;  %v1005_v55 = vsel %vm14600_vm2, %v735_v54, %v1004_v29  ;;  %v1008_v56 = vsel %vm14630_vm6, %v742_v25, %v1007_v30  ;;  %v362_v58 = vld [vmem:[#allocation2 + $0x120] sm:$0x1] }
  0xcb   : > { %2446 = vmatprep.mubr.bf16.mxu0 %v11661_v34  ;;  %v11709_v38 = vcombine.low %v1427_v48, %v1434_v39  ;;  %v14025_v63 = vld [vmem:[#allocation2 + $0xf8] ss:$0 sps:$4 sm:$0xff]   ;;  %v1436_v1 = vshrl.u32 %v15257_v19, 16  ;;  %v1440_v61 = vrot.slane %v1438_v7, 1  ;;  %1006 = vst [vmem:[#allocation2 + $0x104] sm:$0x1] %v1005_v55  ;;  %v1011_v33 = vsel %vm14600_vm2, %v743_v23, %v1010_v2 }
  0xcc   : > { %1009 = vst [vmem:[#allocation2 + $0x108] sm:$0xf] %v1008_v56  ;;  %2447 = vmatmul.mubr.bf16.gmra.mxu0 %v11660_v41  ;;  %v15275_v4 = vld [vmem:[#allocation2 + $0xf8] sm:$0xf]  ;;  %v750_v54 = vor.u32 %v748_v43, %v15266_v51  ;;  %1012 = vst [vmem:[#allocation2 + $0x10c] sm:$0x1] %v1011_v33 }
  0xcd   : > { %v360_v62 = vsel %vm14600_vm2, 0, %v359_v57  ;;  %v363_v31 = vsel %vm14600_vm2, 0, %v362_v58  ;;  %v478_v5 = vld [vmem:[#allocation2 + $0x114] sm:$0x1]  ;;  %2767 = vmatprep.mubr.bf16.mxu1 %v11709_v38  ;;  %v1803_v6 = vrot.slane %v14025_v63, 7  ;;  %v1441_v27 = vor.u32 %v1440_v61, %v1436_v1 }
  0xce   : > { %361 = vst [vmem:[#allocation2 + $0x118] sm:$0x1] %v360_v62  ;;  %364 = vst [vmem:[#allocation2 + $0x120] sm:$0x1] %v363_v31  ;;  %v479_v42 = vsel %vm14610_vm4, 0, %v478_v5  ;;  %2768 = vmatmul.mubr.bf16.gmra.mxu1 %v11708_v45  ;;  %v1014_v14 = vsel %vm14630_vm6, %v750_v54, %v1013_v44  ;;  %v751_v30 = vrot.slane %v15266_v51, 4  ;;  %v11710_v23 = vcombine.low %v15248_v24, %v15275_v4 }
  0xcf   : > { %v481_v11 = vld [vmem:[#allocation2 + $0x11c] sm:$0x1]  ;;  %v524_v0 = vld [vmem:[%s14597_s19 + $0x70] sm:$0xf]  ;;  %v14026_v10 = vld [vmem:[#allocation2 + $0x100] ss:$0 sps:$4 sm:$0xff]   ;;  %v11582_v32 = vcombine.low %v1579_v46, %v1803_v6  ;;  %v11584_v17 = vsel %vm849_vm5, %v15245_v9, %v1803_v6 }
  0xd0   : > { %v1100_v12 = vld [vmem:[#allocation2 + $0xfc] sm:$0x1]  ;;  %480 = vst [vmem:[#allocation2 + $0x114] sm:$0x1] %v479_v42  ;;  %v1580_v16 = vld [vmem:[#allocation2 + $0xf8] sm:$0xe] }
  0xd1   : > { %v11471_v21 = vcombine.low %v15275_v4, %v1100_v12  ;;  %1015 = vst [vmem:[#allocation2 + $0x110] sm:$0xf] %v1014_v14  ;;  %v15290_v49 = vld [vmem:[#allocation2 + $0x100] sm:$0xf]  ;;  %v482_v22 = vsel %vm14610_vm4, 0, %v481_v11  ;;  %v1804_v50 = vrot.slane %v14026_v10, 7 }
  0xd2   : > { %v2040_v15 = vrot.slane %v11584_v17, 5  ;;  %483 = vst [vmem:[#allocation2 + $0x11c] sm:$0x1] %v482_v22  ;;  %v15295_v26 = vld [vmem:[%s14597_s19 + $0x74] sm:$0xf]  ;;  %v753_v48 = vshrl.u32 %v524_v0, 16 }
  0xd3   : > { %v11630_v60 = vrot.slane %v11582_v32, 9  ;;  %v1443_v28 = vshrl.u32 %v11471_v21, 16  ;;  %v1445_v47 = vshll.u32 %v11471_v21, 16  ;;  %v11585_v13 = vcombine.low %v1580_v16, %v1804_v50  ;;  %v1101_v19 = vld [vmem:[#allocation2 + $0x104] sm:$0x1] }
  0xd4   : > { %v11587_v9 = vsel %vm849_vm5, %v1100_v12, %v1804_v50  ;;  %v1581_v29 = vld [vmem:[#allocation2 + $0x100] sm:$0xe]  ;;  %v756_v53 = vshll.u32 %v524_v0, 16  ;;  %v1102_v8 = vld [vmem:[#allocation2 + $0x10c] sm:$0x1]  ;;  %v11472_v18 = vcombine.low %v15290_v49, %v1101_v19  ;;  %v755_v41 = vrot.slane %v753_v48, 7 }
  0xd5   : > { %v2044_v36 = vrot.slane %v11587_v9, 5  ;;  %v1447_v25 = vrot.slane %v1445_v47, 1  ;;  %v14034_v7 = vld [vmem:[#allocation2 + $0x108] ss:$0 sps:$4 sm:$0xff]   ;;  %v2041_v2 = vsel %vm14694_vm9, %v11630_v60, %v2040_v15  ;;  %v11631_v34 = vrot.slane %v11585_v13, 9 }
  0xd6   : > { %v15304_v39 = vld [vmem:[#allocation2 + $0x108] sm:$0xf]  ;;  %v761_v43 = vshrl.u32 %v15295_v26, 16  ;;  %v1805_v45 = vrot.slane %v14034_v7, 7  ;;  %v764_v51 = vshll.u32 %v15295_v26, 16  ;;  %v1450_v56 = vshrl.u32 %v11472_v18, 16 }
  0xd7   : > { %v1448_v44 = vor.u32 %v1447_v25, %v1443_v28  ;;  %v11473_v46 = vcombine.low %v15304_v39, %v1102_v8  ;;  %v2045_v24 = vsel %vm14694_vm9, %v11631_v34, %v2044_v36  ;;  %v1452_v57 = vshll.u32 %v11472_v18, 16  ;;  %v1582_v61 = vld [vmem:[#allocation2 + $0x108] sm:$0xe]  ;;  %v1016_v4 = vld [vmem:[#allocation2 + $0x114] sm:$0x1] }
  0xd8   : > { %v14035_v55 = vld [vmem:[#allocation2 + $0x110] ss:$0 sps:$4 sm:$0xff]   ;;  %v758_v58 = vor.u32 %v756_v53, %v755_v41  ;;  %v11663_v38 = vcombine.high %v2041_v2, %v2045_v24  ;;  %v11662_v1 = vcombine.low %v2041_v2, %v2045_v24  ;;  %v11588_v33 = vcombine.low %v1581_v29, %v1805_v45  ;;  %v1019_v54 = vld [vmem:[#allocation2 + $0x118] sm:$0xf]  ;;  %v1025_v14 = vld [vmem:[#allocation2 + $0x120] sm:$0xf] }
  0xd9   : > { %v11711_v63 = vcombine.low %v1441_v27, %v1448_v44  ;;  %v1806_v62 = vrot.slane %v14035_v55, 7  ;;  %v11590_v31 = vsel %vm849_vm5, %v1101_v19, %v1805_v45  ;;  %v1454_v5 = vrot.slane %v1452_v57, 1  ;;  %v1022_v42 = vld [vmem:[#allocation2 + $0x11c] sm:$0x1]  ;;  %v365_v29 = vld [vmem:[#allocation2 + $0x128] sm:$0x1] }
  0xda   : > { %v1457_v6 = vshrl.u32 %v11473_v46, 16  ;;  %2454 = vmatprep.mubr.bf16.mxu0 %v11663_v38  ;;  %v11632_v11 = vrot.slane %v11588_v33, 9  ;;  %v2048_v0 = vrot.slane %v11590_v31, 5  ;;  %v1459_v12 = vshll.u32 %v11473_v46, 16  ;;  %v484_v7 = vld [vmem:[#allocation2 + $0x124] sm:$0x1] }
  0xdb   : > { %2775 = vmatprep.mubr.bf16.mxu1 %v11711_v63  ;;  %v759_v10 = vrot.slane %v755_v41, 4  ;;  %2455 = vmatmul.mubr.bf16.gmra.mxu0 %v11662_v1  ;;  %v11591_v16 = vcombine.low %v1582_v61, %v1806_v62  ;;  %v11593_v32 = vsel %vm849_vm5, %v1102_v8, %v1806_v62  ;;  %v1455_v17 = vor.u32 %v1454_v5, %v1450_v56  ;;  %v487_v18 = vld [vmem:[#allocation2 + $0x12c] sm:$0x1]  ;;  %v527_v41 = vld [vmem:[%s14597_s19 + $0x7c] sm:$0xf] }
  0xdc   : > { %2776 = vmatmul.mubr.bf16.gmra.mxu1 %v11710_v23  ;;  %v15313_v21 = vrot.slane %v761_v43, 7  ;;  %v2049_v22 = vsel %vm14694_vm9, %v11632_v11, %v2048_v0  ;;  %v2052_v50 = vrot.slane %v11593_v32, 5  ;;  %v1461_v15 = vrot.slane %v1459_v12, 1  ;;  %v15330_v23 = vld [vmem:[#allocation2 + $0x110] sm:$0xf] }
  0xdd   : > { %v1017_v26 = vsel %vm14600_vm2, %v751_v30, %v1016_v4  ;;  %v11633_v48 = vrot.slane %v11591_v16, 9  ;;  %v1020_v27 = vsel %vm14630_vm6, %v758_v58, %v1019_v54  ;;  %v1023_v28 = vsel %vm14600_vm2, %v759_v10, %v1022_v42  ;;  %v368_v30 = vld [vmem:[#allocation2 + $0x130] sm:$0x1]  ;;  %v1583_v56 = vld [vmem:[#allocation2 + $0x110] sm:$0xe] }
  0xde   : > { %v766_v60 = vor.u32 %v764_v51, %v15313_v21  ;;  %1018 = vst [vmem:[#allocation2 + $0x114] sm:$0x1] %v1017_v26  ;;  %v1462_v47 = vor.u32 %v1461_v15, %v1457_v6  ;;  %1021 = vst [vmem:[#allocation2 + $0x118] sm:$0xf] %v1020_v27  ;;  %v11712_v9 = vcombine.low %v15290_v49, %v15304_v39  ;;  %v366_v8 = vsel %vm14600_vm2, 0, %v365_v29 }
  0xdf   : > { %1024 = vst [vmem:[#allocation2 + $0x11c] sm:$0x1] %v1023_v28  ;;  %v2053_v13 = vsel %vm14694_vm9, %v11633_v48, %v2052_v50  ;;  %367 = vst [vmem:[#allocation2 + $0x128] sm:$0x1] %v366_v8  ;;  %v369_v49 = vsel %vm14600_vm2, 0, %v368_v30  ;;  %v485_v2 = vsel %vm14610_vm4, 0, %v484_v7 }
  0xe0   : > { %v1026_v19 = vsel %vm14630_vm6, %v766_v60, %v1025_v14  ;;  %v11665_v53 = vcombine.high %v2049_v22, %v2053_v13  ;;  %v11713_v36 = vcombine.low %v1455_v17, %v1462_v47  ;;  %v11664_v25 = vcombine.low %v2049_v22, %v2053_v13  ;;  %v526_v39 = vld [vmem:[%s14597_s19 + $0x78] sm:$0xf]  ;;  %370 = vst [vmem:[#allocation2 + $0x130] sm:$0x1] %v369_v49  ;;  %v2872_v49 = vld [vmem:[#allocation2 + $0x8] sm:$0xe] }
  0xe1   : > { %1027 = vst [vmem:[#allocation2 + $0x120] sm:$0xf] %v1026_v19  ;;  %v488_v34 = vsel %vm14610_vm4, 0, %v487_v18  ;;  %486 = vst [vmem:[#allocation2 + $0x124] sm:$0x1] %v485_v2  ;;  %v769_v43 = vshrl.u32 %v526_v39, 16 }
  0xe2   : > { %2462 = vmatprep.mubr.bf16.mxu0 %v11665_v53  ;;  %2783 = vmatprep.mubr.bf16.mxu1 %v11713_v36  ;;  %489 = vst [vmem:[#allocation2 + $0x12c] sm:$0x1] %v488_v34  ;;  %v772_v44 = vshll.u32 %v526_v39, 16  ;;  %v777_v45 = vshrl.u32 %v527_v41, 16  ;;  %v780_v24 = vshll.u32 %v527_v41, 16  ;;  %v767_v63 = vrot.slane %v15313_v21, 4 }
  0xe3   : > { %2463 = vmatmul.mubr.bf16.gmra.mxu0 %v11664_v25  ;;  %v771_v51 = vrot.slane %v769_v43, 7  ;;  %v2809_v36 = vld [vmem:[#allocation2 + $0xc] sm:$0x1]  ;;  %v15359_v25 = vld [vmem:[#allocation2 + $0x14] sm:$0x1] }
  0xe4   : > { %2784 = vmatmul.mubr.bf16.gmra.mxu1 %v11712_v9  ;;  %v15344_v61 = vrot.slane %v777_v45, 7  ;;  %v2873_v2 = vld [vmem:[#allocation2 + $0x10] sm:$0xe]  ;;  %v11734_v43 = vcombine.low %v2872_v49, %v2809_v36  ;;  %vm3481_vm11 = vsmask.f32 7440 }
  0xe5   : > { %v1103_v46 = vld [vmem:[#allocation2 + $0x114] sm:$0x1]  ;;  %v14043_v58 = vld [vmem:[#allocation2 + $0x118] ss:$0 sps:$4 sm:$0xff]   ;;  %v774_v1 = vor.u32 %v772_v44, %v771_v51  ;;  %v1584_v31 = vld [vmem:[#allocation2 + $0x118] sm:$0xe]  ;;  %v11735_v44 = vcombine.low %v2873_v2, %v15359_v25 }
  0xe6   : > { %v1104_v55 = vld [vmem:[#allocation2 + $0x11c] sm:$0x1]  ;;  %v11474_v57 = vcombine.low %v15330_v23, %v1103_v46  ;;  %v1072_v38 = vld [vmem:[#allocation2 + $0x118] sm:$0xf]  ;;  %v1807_v5 = vrot.slane %v14043_v58, 7  ;;  %v775_v6 = vrot.slane %v771_v51, 4  ;;  %v782_v42 = vor.u32 %v780_v24, %v15344_v61  ;;  %vm15399_vm12 = vmor %vm3480_vm10, %vm3481_vm11 }
  0xe7   : > { %v11475_v4 = vcombine.low %v1072_v38, %v1104_v55  ;;  %v1031_v11 = vld [vmem:[#allocation2 + $0x128] sm:$0xf]  ;;  %v1037_v15 = vld [vmem:[#allocation2 + $0x130] sm:$0xf]  ;;  %v11714_v7 = vcombine.low %v15330_v23, %v1072_v38  ;;  %v3131_v24 = vshll.u32 %v11734_v43, 16  ;;  %v3129_v58 = vshrl.u32 %v11734_v43, 16 }
  0xe8   : > { %v14044_v33 = vld [vmem:[#allocation2 + $0x120] ss:$0 sps:$4 sm:$0xff]   ;;  %v1464_v54 = vshrl.u32 %v11474_v57, 16  ;;  %v1466_v62 = vshll.u32 %v11474_v57, 16  ;;  %v1028_v16 = vld [vmem:[#allocation2 + $0x124] sm:$0x1]  ;;  %v11594_v32 = vcombine.low %v1583_v56, %v1807_v5  ;;  %v11596_v17 = vsel %vm849_vm5, %v1103_v46, %v1807_v5 }
  0xe9   : > { %v1808_v0 = vrot.slane %v14044_v33, 7  ;;  %v1471_v10 = vshrl.u32 %v11475_v4, 16  ;;  %v1473_v14 = vshll.u32 %v11475_v4, 16  ;;  %v1029_v21 = vsel %vm14600_vm2, %v767_v63, %v1028_v16  ;;  %v1034_v50 = vld [vmem:[#allocation2 + $0x12c] sm:$0x1] }
  0xea   : > { %v1468_v12 = vrot.slane %v1466_v62, 1  ;;  %v1032_v22 = vsel %vm14630_vm6, %v774_v1, %v1031_v11  ;;  %v2056_v60 = vrot.slane %v11596_v17, 5  ;;  %1030 = vst [vmem:[#allocation2 + $0x124] sm:$0x1] %v1029_v21  ;;  %v11634_v28 = vrot.slane %v11594_v32, 9 }
  0xeb   : > { %v11597_v26 = vcombine.low %v1584_v31, %v1808_v0  ;;  %v11599_v48 = vsel %vm849_vm5, %v1104_v55, %v1808_v0  ;;  %1033 = vst [vmem:[#allocation2 + $0x128] sm:$0xf] %v1032_v22  ;;  %v1475_v13 = vrot.slane %v1473_v14, 1  ;;  %v1035_v9 = vsel %vm14600_vm2, %v775_v6, %v1034_v50  ;;  %v15364_v18 = vld [vmem:[#allocation2 + $0x120] sm:$0xf] }
  0xec   : > { %v1469_v27 = vor.u32 %v1468_v12, %v1464_v54  ;;  %v2060_v47 = vrot.slane %v11599_v48, 5  ;;  %1036 = vst [vmem:[#allocation2 + $0x12c] sm:$0x1] %v1035_v9  ;;  %v1038_v29 = vsel %vm14630_vm6, %v782_v42, %v1037_v15  ;;  %v2057_v30 = vsel %vm14694_vm9, %v11634_v28, %v2056_v60  ;;  %v1585_v57 = vld [vmem:[#allocation2 + $0x120] sm:$0xe] }
  0xed   : > { %v11635_v19 = vrot.slane %v11597_v26, 9  ;;  %v1476_v53 = vor.u32 %v1475_v13, %v1471_v10  ;;  %1039 = vst [vmem:[#allocation2 + $0x130] sm:$0xf] %v1038_v29  ;;  %v591_v55 = vrot.slane %v14787_v52, 4  ;;  %v3138_v38 = vshll.u32 %v11735_v44, 16 }
  0xee   : > { %v3136_v54 = vshrl.u32 %v11735_v44, 16  ;;  %v3133_v6 = vrot.slane %v3131_v24, 1  ;;  %v2808_v14 = vld [vmem:[#allocation2 + $0x8] sm:$0xf]  ;;  %v2810_v21 = vld [vmem:[#allocation2 + $0x10] sm:$0xf] }
  0xef   : > { %v2061_v8 = vsel %vm14694_vm9, %v11635_v19, %v2060_v47  ;;  %v11715_v39 = vcombine.low %v1469_v27, %v1476_v53  ;;  %v3140_v42 = vrot.slane %v3138_v38, 1  ;;  %v15381_v53 = vld [vmem:[#allocation2 + $0x18] sm:$0xf]  ;;  %v15513_v52 = vld [vmem:[#allocation2 + $0x40] sm:$0xf]  ;;  %v783_v40 = vrot.slane %v15344_v61, 4 }
  0xf0   : > { %v11667_v34 = vcombine.high %v2057_v30, %v2061_v8  ;;  %v11666_v41 = vcombine.low %v2057_v30, %v2061_v8  ;;  %v3134_v22 = vor.u32 %v3133_v6, %v3129_v58  ;;  %v15379_v30 = vld [vmem:[#allocation2 + $0x10] sm:$0xf]  ;;  %v4413_v8 = vld [vmem:[#allocation2 + $0x14] sm:$0x1] }
  0xf1   : > { %2791 = vmatprep.mubr.bf16.mxu1 %v11715_v39  ;;  %v1105_v45 = vld [vmem:[#allocation2 + $0x124] sm:$0x1]  ;;  %v3141_v48 = vor.u32 %v3140_v42, %v3136_v54  ;;  %v15385_v39 = vld [vmem:[#allocation2 + $0x1c] sm:$0x1] }
  0xf2   : > { %2470 = vmatprep.mubr.bf16.mxu0 %v11667_v34  ;;  %2792 = vmatmul.mubr.bf16.gmra.mxu1 %v11714_v7  ;;  %v14054_v46 = vld [vmem:[#allocation2 + $0x128] ss:$0 sps:$4 sm:$0xff]   ;;  %v11476_v23 = vcombine.low %v15364_v18, %v1105_v45  ;;  %v1586_v62 = vld [vmem:[#allocation2 + $0x128] sm:$0xe]  ;;  %v11766_v47 = vcombine.low %v2808_v14, %v3134_v22  ;;  %v11768_v19 = vsel %vm849_vm5, %v2809_v36, %v3134_v22  ;;  %v4414_v34 = vld [vmem:[#allocation2 + $0x1c] sm:$0x1] }
  0xf3   : > { %2471 = vmatmul.mubr.bf16.gmra.mxu0 %v11666_v41  ;;  %v15367_v51 = vld [vmem:[#allocation2 + $0x128] sm:$0xf]  ;;  %v1106_v56 = vld [vmem:[#allocation2 + $0x12c] sm:$0x1]  ;;  %v1809_v1 = vrot.slane %v14054_v46, 7  ;;  %v11769_v29 = vcombine.low %v2810_v21, %v3141_v48  ;;  %v3493_v43 = vshll.u32 %v11768_v19, 16 }
  0xf4   : > { %v14055_v63 = vld [vmem:[#allocation2 + $0x130] ss:$0 sps:$4 sm:$0xff]   ;;  %v11477_v33 = vcombine.low %v15367_v51, %v1106_v56  ;;  %v11716_v4 = vcombine.low %v15364_v18, %v15367_v51  ;;  %v1478_v31 = vshrl.u32 %v11476_v23, 16  ;;  %v1480_v5 = vshll.u32 %v11476_v23, 16  ;;  %v15403_v22 = vld [vmem:[#allocation2 + $0x28] sm:$0xf] }
  0xf5   : > { %v1810_v11 = vrot.slane %v14055_v63, 7  ;;  %v11600_v0 = vcombine.low %v1585_v57, %v1809_v1  ;;  %v11602_v12 = vsel %vm849_vm5, %v1105_v45, %v1809_v1  ;;  %v11771_v18 = vsel %vm849_vm5, %v15359_v25, %v3141_v48  ;;  %v2874_v45 = vld [vmem:[#allocation2 + $0x18] sm:$0xe]  ;;  %v2875_v57 = vld [vmem:[#allocation2 + $0x20] sm:$0xe] }
  0xf6   : > { %v1485_v10 = vshrl.u32 %v11477_v33, 16  ;;  %v2064_v16 = vrot.slane %v11602_v12, 5  ;;  %v1482_v32 = vrot.slane %v1480_v5, 1  ;;  %v1487_v17 = vshll.u32 %v11477_v33, 16 }
  0xf7   : > { %v11603_v50 = vcombine.low %v1586_v62, %v1810_v11  ;;  %v11605_v15 = vsel %vm849_vm5, %v1106_v56, %v1810_v11  ;;  %v11636_v26 = vrot.slane %v11600_v0, 9  ;;  %v3484_v49 = vshrl.u32 %v11766_v47, 16  ;;  %v15389_v56 = vld [vmem:[#allocation2 + $0x24] sm:$0x1]  ;;  %v15394_v62 = vld [vmem:[#allocation2 + $0x20] sm:$0xf] }
  0xf8   : > { %v2068_v60 = vrot.slane %v11605_v15, 5  ;;  %v1483_v27 = vor.u32 %v1482_v32, %v1478_v31  ;;  %v1489_v28 = vrot.slane %v1487_v17, 1  ;;  %v3487_v2 = vshll.u32 %v11766_v47, 16 }
  0xf9   : > { %v2065_v13 = vsel %vm14694_vm9, %v11636_v26, %v2064_v16  ;;  %v11637_v9 = vrot.slane %v11603_v50, 9  ;;  %v3498_v36 = vshrl.u32 %v11769_v29, 16  ;;  %v3501_v44 = vshll.u32 %v11769_v29, 16  ;;  %v4415_v16 = vld [vmem:[#allocation2 + $0x24] sm:$0x1] }
  0xfa   : > { %v1490_v7 = vor.u32 %v1489_v28, %v1485_v10  ;;  %v3486_v24 = vrot.slane %v3484_v49, 4  ;;  %v3489_v25 = vrot.slane %v3487_v2, 5  ;;  %v3507_v63 = vshll.u32 %v11771_v18, 16  ;;  %v2812_v18 = vld [vmem:[#allocation2 + $0x18] sm:$0xf] }
  0xfb   : > { %v2069_v41 = vsel %vm14694_vm9, %v11637_v9, %v2068_v60  ;;  %v3500_v58 = vrot.slane %v3498_v36, 4  ;;  %v3503_v38 = vrot.slane %v3501_v44, 5  ;;  %v11910_v1 = vcombine.low %v15379_v30, %v4413_v8  ;;  %v4416_v60 = vld [vmem:[#allocation2 + $0x2c] sm:$0x1]  ;;  %v2814_v36 = vld [vmem:[#allocation2 + $0x20] sm:$0xf] }
  0xfc   : > { %v11669_v46 = vcombine.high %v2065_v13, %v2069_v41  ;;  %v11717_v51 = vcombine.low %v1483_v27, %v1490_v7  ;;  %v11668_v23 = vcombine.low %v2065_v13, %v2069_v41  ;;  %v11911_v33 = vcombine.low %v15381_v53, %v4414_v34  ;;  %v14077_v34 = vld [vmem:[%s18949_s1 + $0x230] sm:$0xff]  }
  0xfd   : > { %v11736_v54 = vcombine.low %v2874_v45, %v15385_v39  ;;  %v3490_v31 = vor.u32 %v3489_v25, %v3486_v24  ;;  %v3495_v5 = vrot.slane %v3493_v43, 5  ;;  %v3504_v6 = vor.u32 %v3503_v38, %v3500_v58  ;;  %v15419_v58 = vld [vmem:[#allocation2 + $0x2c] sm:$0x1]  ;;  %v2876_v38 = vld [vmem:[#allocation2 + $0x28] sm:$0xe] }
  0xfe   : > { %2478 = vmatprep.mubr.bf16.mxu0 %v11669_v46  ;;  %2799 = vmatprep.mubr.bf16.mxu1 %v11717_v51  ;;  %v11737_v42 = vcombine.low %v2875_v57, %v15389_v56  ;;  %v18986_v11 = vmov 0  ;;  %v3509_v0 = vrot.slane %v3507_v63, 5  ;;  %v4606_v12 = vshrl.u32 %v11910_v1, 16  ;;  %v15417_v51 = vpop.f32.mrf.mxu0  ;;  %v14384_v63 = vld [vmem:[%s18949_s1 + $0x238] sm:$0xff]  }
  0xff   : > { %2479 = vmatmul.mubr.bf16.gmra.mxu0 %v11668_v23  ;;  %2800 = vmatmul.mubr.bf16.gmra.mxu1 %v11716_v4  ;;  %v18987_v11 = vsel %vm15399_vm12, 4294967295, %v18986_v11  ;;  %v4608_v10 = vshll.u32 %v11910_v1, 16  ;;  %v4613_v14 = vshrl.u32 %v11911_v33, 16  ;;  %v3491_v32 = vrot.slane %v3490_v31, 4  ;;  %18989 = vst [vmem:[#allocation7_spill] sm:$0xff] %v15417_v51  ;;  %v15431_v31 = vpop.f32.mrf.mxu1 }
 0x100   : > { %18988 = vst [vmem:[#allocation6_spill] sm:$0xff] %v18987_v11  ;;  %v3505_v17 = vrot.slane %v3504_v6, 4  ;;  %v4615_v21 = vshll.u32 %v11911_v33, 16  ;;  %v3143_v4 = vshrl.u32 %v11736_v54, 16  ;;  %v3145_v15 = vshll.u32 %v11736_v54, 16  ;;  %v14088_v54 = vld [vmem:[%s18949_s1 + $0x228] sm:$0xff]  }
 0x101   : > { %v4610_v50 = vrot.slane %v4608_v10, 1  ;;  %v3150_v26 = vshrl.u32 %v11737_v42, 16  ;;  %v3152_v48 = vshll.u32 %v11737_v42, 16  ;;  %v3496_v27 = vsel %vm15399_vm12, %v3491_v32, %v3495_v5  ;;  %18990 = vst [vmem:[#allocation8_spill] sm:$0xff] %v15431_v31  ;;  %v15433_v5 = vpop.f32.mrf.mxu0  ;;  %v2877_v10 = vld [vmem:[#allocation2 + $0x30] sm:$0xe] }
 0x102   : > { %v3510_v28 = vsel %vm15399_vm12, %v3505_v17, %v3509_v0  ;;  %v4617_v47 = vrot.slane %v4615_v21, 1  ;;  %v11912_v13 = vcombine.low %v15394_v62, %v4415_v16  ;;  %v3147_v8 = vrot.slane %v3145_v15, 1  ;;  %18991 = vst [vmem:[#allocation9_spill] sm:$0xff] %v15433_v5  ;;  %v15440_v21 = vld [vmem:[#allocation2 + $0x30] sm:$0xf] }
 0x103   : > { %v11862_v9 = vcombine.low %v3496_v27, %v3510_v28  ;;  %v11863_v19 = vcombine.high %v3496_v27, %v3510_v28  ;;  %v4611_v29 = vor.u32 %v4610_v50, %v4606_v12  ;;  %v3154_v49 = vrot.slane %v3152_v48, 1  ;;  %v4417_v50 = vld [vmem:[#allocation2 + $0x34] sm:$0x1]  ;;  %v4418_v15 = vld [vmem:[#allocation2 + $0x3c] sm:$0x1] }
 0x104   : > { %v4618_v7 = vor.u32 %v4617_v47, %v4613_v14  ;;  %v11913_v2 = vcombine.low %v15403_v22, %v4416_v60  ;;  %v11942_v43 = vcombine.low %v15379_v30, %v15381_v53  ;;  %v3148_v44 = vor.u32 %v3147_v8, %v3143_v4  ;;  %v15442_v4 = vld [vmem:[#allocation2 + $0x38] sm:$0xf]  ;;  %v400_v47 = vld [vmem:[#allocation2 + $0x44] sm:$0x1] }
 0x105   : > { %4219 = vmatprep.mubr.bf16.mxu0 %v11863_v19  ;;  %v4620_v45 = vshrl.u32 %v11912_v13, 16  ;;  %v4622_v46 = vshll.u32 %v11912_v13, 16  ;;  %v3155_v24 = vor.u32 %v3154_v49, %v3150_v26  ;;  %v11944_v33 = vcombine.low %v15394_v62, %v15403_v22  ;;  %v15444_v26 = vpop.f32.mrf.mxu1 }
 0x106   : > { %v11943_v23 = vcombine.low %v4611_v29, %v4618_v7  ;;  %v4627_v57 = vshrl.u32 %v11913_v2, 16  ;;  %v4629_v25 = vshll.u32 %v11913_v2, 16  ;;  %v11772_v30 = vcombine.low %v2812_v18, %v3148_v44  ;;  %18992 = vst [vmem:[#allocation10_spill] sm:$0xff] %v15444_v26 }
 0x107   : > { %4220 = vmatmul.mubr.bf16.vlgmr.msra.gmra.mxu0 %v11862_v9  ;;  %v11774_v53 = vsel %vm849_vm5, %v15385_v39, %v3148_v44  ;;  %v4624_v1 = vrot.slane %v4622_v46, 1  ;;  %v11775_v6 = vcombine.low %v2814_v36, %v3155_v24  ;;  %v11777_v42 = vsel %vm849_vm5, %v15389_v56, %v3155_v24  ;;  %v15437_v39 = vld [vmem:[#allocation2 + $0x34] sm:$0x1]  ;;  %v15446_v56 = vpop.f32.mrf.mxu0  ;;  %v15449_v8 = vpop.f32.mrf.mxu1  ;;  %v14099_v36 = vld [vmem:[%s18949_s1 + $0x220] sm:$0xff]  }
 0x108   : > { %13820 = vmatpush3.bf16.msra.mxu0 %v14384_v63  ;;  %5085 = vmatprep.mubr.bf16.mxu1 %v11943_v23  ;;  %v3521_v0 = vshll.u32 %v11774_v53, 16  ;;  %v4631_v12 = vrot.slane %v4629_v25, 1  ;;  %v3512_v14 = vshrl.u32 %v11772_v30, 16  ;;  %v3515_v16 = vshll.u32 %v11772_v30, 16  ;;  %18993 = vst [vmem:[#allocation11_spill] sm:$0xff] %v15446_v56  ;;  %18994 = vst [vmem:[#allocation12_spill] sm:$0xff] %v15449_v8 }
 0x109   : > { %13821 = vmatprep.subr.bf16.mxu0 %v14077_v34  ;;  %5086 = vmatmul.mubr.bf16.vlgmr.msra.gmra.mxu1 %v11942_v43  ;;  %v4625_v32 = vor.u32 %v4624_v1, %v4620_v45  ;;  %v11738_v17 = vcombine.low %v2876_v38, %v15419_v58  ;;  %v3526_v48 = vshrl.u32 %v11775_v6, 16  ;;  %v3529_v60 = vshll.u32 %v11775_v6, 16  ;;  %v15451_v7 = vpop.f32.mrf.mxu0  ;;  %v15456_v24 = vpop.f32.mrf.mxu1  ;;  %v2816_v25 = vld [vmem:[#allocation2 + $0x28] sm:$0xf] }
 0x10a   : > { %v3535_v27 = vshll.u32 %v11777_v42, 16  ;;  %v4632_v28 = vor.u32 %v4631_v12, %v4627_v57  ;;  %v3514_v13 = vrot.slane %v3512_v14, 4  ;;  %v3517_v9 = vrot.slane %v3515_v16, 5  ;;  %18995 = vst [vmem:[#allocation13_spill] sm:$0xff] %v15451_v7  ;;  %18996 = vst [vmem:[#allocation14_spill] sm:$0xff] %v15456_v24 }
 0x10b   : > { %v3523_v19 = vrot.slane %v3521_v0, 5  ;;  %v11739_v29 = vcombine.low %v2877_v10, %v15437_v39  ;;  %v3528_v18 = vrot.slane %v3526_v48, 4  ;;  %v3531_v49 = vrot.slane %v3529_v60, 5  ;;  %v281_v42 = vld [vmem:[#allocation2 + $0x48] sm:$0x1]  ;;  %v15462_v0 = vpop.f32.mrf.mxu0  ;;  %v15464_v12 = vpop.f32.mrf.mxu1 }
 0x10c   : > { %13822 = vmatpush3.bf16.msra.mxu0 %v14077_v34  ;;  %v11945_v2 = vcombine.low %v4625_v32, %v4632_v28  ;;  %v3157_v43 = vshrl.u32 %v11738_v17, 16  ;;  %v3518_v44 = vor.u32 %v3517_v9, %v3514_v13  ;;  %v3159_v45 = vshll.u32 %v11738_v17, 16  ;;  %18997 = vst [vmem:[#allocation15_spill] sm:$0xff] %v15462_v0  ;;  %18998 = vst [vmem:[#allocation16_spill] sm:$0xff] %v15464_v12  ;;  %v2818_v14 = vld [vmem:[#allocation2 + $0x30] sm:$0xf] }
 0x10d   : > { %13823 = vmatprep.subr.bf16.mxu0 %v14088_v54  ;;  %v3164_v46 = vshrl.u32 %v11739_v29, 16  ;;  %v3166_v23 = vshll.u32 %v11739_v29, 16  ;;  %v3532_v34 = vor.u32 %v3531_v49, %v3528_v18  ;;  %v3537_v57 = vrot.slane %v3535_v27, 5  ;;  %v15476_v27 = vld [vmem:[#allocation2 + $0x3c] sm:$0x1] }
 0x10e   : > { %5093 = vmatprep.mubr.bf16.mxu1 %v11945_v2  ;;  %v11914_v38 = vcombine.low %v15440_v21, %v4417_v50  ;;  %v11915_v63 = vcombine.low %v15442_v4, %v4418_v15  ;;  %v3519_v30 = vrot.slane %v3518_v44, 4  ;;  %v3161_v53 = vrot.slane %v3159_v45, 1  ;;  %v14110_v50 = vld [vmem:[%s18949_s1 + $0x218] sm:$0xff]  }
 0x10f   : > { %v3168_v1 = vrot.slane %v3166_v23, 1  ;;  %v401_v6 = vsel %vm14610_vm4, 0, %v400_v47  ;;  %v3533_v10 = vrot.slane %v3532_v34, 4  ;;  %v11946_v17 = vcombine.low %v15440_v21, %v15442_v4  ;;  %v2878_v28 = vld [vmem:[#allocation2 + $0x38] sm:$0xe]  ;;  %v15478_v47 = vpop.f32.mrf.mxu1 }
 0x110   : > { %13824 = vmatpush3.bf16.msra.mxu0 %v14088_v54  ;;  %v4634_v16 = vshrl.u32 %v11914_v38, 16  ;;  %v4636_v32 = vshll.u32 %v11914_v38, 16  ;;  %402 = vst [vmem:[#allocation2 + $0x44] sm:$0x1] %v401_v6  ;;  %v3524_v54 = vsel %vm15399_vm12, %v3519_v30, %v3523_v19  ;;  %v3162_v15 = vor.u32 %v3161_v53, %v3157_v43  ;;  %18999 = vst [vmem:[#allocation17_spill] sm:$0xff] %v15478_v47 }
 0x111   : > { %13825 = vmatprep.subr.bf16.mxu0 %v14099_v36  ;;  %5094 = vmatmul.mubr.bf16.gmra.mxu1 %v11944_v33  ;;  %v3169_v48 = vor.u32 %v3168_v1, %v3164_v46  ;;  %v4643_v60 = vshll.u32 %v11915_v63, 16  ;;  %v3538_v13 = vsel %vm15399_vm12, %v3533_v10, %v3537_v57  ;;  %v4641_v29 = vshrl.u32 %v11915_v63, 16  ;;  %v15486_v33 = vpop.f32.mrf.mxu0  ;;  %v15488_v2 = vpop.f32.mrf.mxu1  ;;  %v403_v23 = vld [vmem:[#allocation2 + $0x4c] sm:$0x1]  ;;  %v15493_v34 = vld [vmem:[#allocation2 + $0x5c] sm:$0x1] }
 0x112   : > { %v4638_v9 = vrot.slane %v4636_v32, 1  ;;  %v282_v19 = vsel %vm14600_vm2, 0, %v281_v42  ;;  %v11865_v18 = vcombine.high %v3524_v54, %v3538_v13  ;;  %v11864_v49 = vcombine.low %v3524_v54, %v3538_v13  ;;  %19000 = vst [vmem:[#allocation18_spill] sm:$0xff] %v15486_v33  ;;  %19001 = vst [vmem:[#allocation19_spill] sm:$0xff] %v15488_v2  ;;  %v2880_v57 = vld [vmem:[#allocation2 + $0x58] sm:$0xe] }
 0x113   : > { %v11778_v62 = vcombine.low %v2816_v25, %v3162_v15  ;;  %v11780_v22 = vsel %vm849_vm5, %v15419_v58, %v3162_v15  ;;  %283 = vst [vmem:[#allocation2 + $0x48] sm:$0x1] %v282_v19  ;;  %v11781_v43 = vcombine.low %v2818_v14, %v3169_v48  ;;  %v11783_v44 = vsel %vm849_vm5, %v15437_v39, %v3169_v48  ;;  %v14121_v58 = vld [vmem:[%s18949_s1 + $0x210] sm:$0xff]   ;;  %v15498_v30 = vld [vmem:[#allocation2 + $0x64] sm:$0x1] }
 0x114   : > { %13826 = vmatpush3.bf16.msra.mxu0 %v14099_v36  ;;  %v3549_v45 = vshll.u32 %v11780_v22, 16  ;;  %v11740_v46 = vcombine.low %v2878_v28, %v15476_v27  ;;  %4227 = vmatprep.mubr.bf16.mxu0 %v11865_v18  ;;  %v4639_v38 = vor.u32 %v4638_v9, %v4634_v16  ;;  %v4645_v63 = vrot.slane %v4643_v60, 1  ;;  %v2881_v39 = vld [vmem:[#allocation2 + $0x60] sm:$0xe]  ;;  %v15502_v28 = vpop.f32.mrf.mxu0  ;;  %v15504_v16 = vpop.f32.mrf.mxu1  ;;  %v4421_v18 = vld [vmem:[#allocation2 + $0x64] sm:$0x1] }
 0x115   : > { %13827 = vmatprep.subr.bf16.mxu0 %v14110_v50  ;;  %v3540_v36 = vshrl.u32 %v11778_v62, 16  ;;  %v3543_v25 = vshll.u32 %v11778_v62, 16  ;;  %4228 = vmatmul.mubr.bf16.gmra.mxu0 %v11864_v49  ;;  %v3554_v1 = vshrl.u32 %v11781_v43, 16  ;;  %v3557_v6 = vshll.u32 %v11781_v43, 16  ;;  %v15500_v10 = vld [vmem:[#allocation2 + $0x60] sm:$0xf] }
 0x116   : > { %v3551_v53 = vrot.slane %v3549_v45, 5  ;;  %v3563_v42 = vshll.u32 %v11783_v44, 16  ;;  %v4646_v54 = vor.u32 %v4645_v63, %v4641_v29  ;;  %v3171_v48 = vshrl.u32 %v11740_v46, 16  ;;  %19002 = vst [vmem:[#allocation20_spill] sm:$0xff] %v15502_v28  ;;  %19003 = vst [vmem:[#allocation21_spill] sm:$0xff] %v15504_v16  ;;  %v15519_v63 = vpop.f32.mrf.mxu0 }
 0x117   : > { %v3542_v14 = vrot.slane %v3540_v36, 4  ;;  %v3545_v32 = vrot.slane %v3543_v25, 5  ;;  %v896_v15 = vld [vmem:[#allocation2 + $0x44] sm:$0x1]  ;;  %v3556_v60 = vrot.slane %v3554_v1, 4  ;;  %v3559_v13 = vrot.slane %v3557_v6, 5 }
 0x118   : > { %13828 = vmatpush3.bf16.msra.mxu0 %v14110_v50  ;;  %v897_v9 = vsel %vm14600_vm2, %v591_v55, %v896_v15  ;;  %v3173_v19 = vshll.u32 %v11740_v46, 16  ;;  %v11947_v62 = vcombine.low %v4639_v38, %v4646_v54  ;;  %v2820_v29 = vld [vmem:[#allocation2 + $0x38] sm:$0xf]  ;;  %v404_v50 = vsel %vm14610_vm4, 0, %v403_v23  ;;  %19004 = vst [vmem:[#allocation22_spill] sm:$0xff] %v15519_v63  ;;  %v15521_v23 = vpop.f32.mrf.mxu1 }
 0x119   : > { %13829 = vmatprep.subr.bf16.mxu0 %v14121_v58  ;;  %v3546_v49 = vor.u32 %v3545_v32, %v3542_v14  ;;  %898 = vst [vmem:[#allocation2 + $0x44] sm:$0x1] %v897_v9  ;;  %v11742_v22 = vcombine.low %v2880_v57, %v15493_v34  ;;  %v3560_v43 = vor.u32 %v3559_v13, %v3556_v60  ;;  %v3565_v44 = vrot.slane %v3563_v42, 5  ;;  %v15532_v15 = vld [vmem:[#allocation2 + $0x68] sm:$0xf] }
 0x11a   : > { %v3175_v45 = vrot.slane %v3173_v19, 1  ;;  %405 = vst [vmem:[#allocation2 + $0x4c] sm:$0x1] %v404_v50  ;;  %v11743_v55 = vcombine.low %v2881_v39, %v15498_v30  ;;  %5101 = vmatprep.mubr.bf16.mxu1 %v11947_v62  ;;  %v15517_v38 = vcombine.low %v15500_v10, %v4421_v18  ;;  %19005 = vst [vmem:[#allocation23_spill] sm:$0xff] %v15521_v23  ;;  %v15526_v6 = vld [vmem:[#allocation2 + $0x48] sm:$0xf]  ;;  %v15539_v9 = vpop.f32.mrf.mxu1  ;;  %v15541_v50 = vpop.f32.mrf.mxu0 }
 0x11b   : > { %v3547_v46 = vrot.slane %v3546_v49, 4  ;;  %v3185_v36 = vshrl.u32 %v11742_v22, 16  ;;  %v3187_v25 = vshll.u32 %v11742_v22, 16  ;;  %v3561_v57 = vrot.slane %v3560_v43, 4  ;;  %5102 = vmatmul.mubr.bf16.gmra.mxu1 %v11946_v17  ;;  %v2879_v4 = vld [vmem:[#allocation2 + $0x40] sm:$0xe] }
 0x11c   : > { %13830 = vmatpush3.bf16.msra.mxu0 %v14121_v58  ;;  %v3176_v1 = vor.u32 %v3175_v45, %v3171_v48  ;;  %v3192_v39 = vshrl.u32 %v11743_v55, 16  ;;  %v3194_v42 = vshll.u32 %v11743_v55, 16  ;;  %v4422_v58 = vld [vmem:[#allocation2 + $0x6c] sm:$0x1]  ;;  %19006 = vst [vmem:[#allocation24_spill] sm:$0xff] %v15539_v9  ;;  %19007 = vst [vmem:[#allocation25_spill] sm:$0xff] %v15541_v50 }
 0x11d   : > { %v3552_v14 = vsel %vm15399_vm12, %v3547_v46, %v3551_v53  ;;  %v3189_v54 = vrot.slane %v3187_v25, 1  ;;  %v3566_v21 = vsel %vm15399_vm12, %v3561_v57, %v3565_v44  ;;  %v2824_v49 = vld [vmem:[#allocation2 + $0x58] sm:$0xf]  ;;  %v2854_v9 = vld [vmem:[#allocation2 + $0xe0] sm:$0xf] }
 0x11e   : > { %v11784_v17 = vcombine.low %v2820_v29, %v3176_v1  ;;  %v11786_v48 = vsel %vm849_vm5, %v15476_v27, %v3176_v1  ;;  %v3196_v13 = vrot.slane %v3194_v42, 1  ;;  %v11867_v53 = vcombine.high %v3552_v14, %v3566_v21 }
 0x11f   : > { %v11866_v19 = vcombine.low %v3552_v14, %v3566_v21  ;;  %v3577_v18 = vshll.u32 %v11786_v48, 16  ;;  %v3190_v62 = vor.u32 %v3189_v54, %v3185_v36  ;;  %v15544_v29 = vcombine.low %v15532_v15, %v4422_v58  ;;  %v15549_v36 = vpop.f32.mrf.mxu0  ;;  %v15552_v58 = vpop.f32.mrf.mxu1 }
 0x120   : > { %v2823_v22 = vld [vmem:[#allocation2 + $0x44] sm:$0x1]  ;;  %v3568_v43 = vshrl.u32 %v11784_v17, 16  ;;  %v3571_v45 = vshll.u32 %v11784_v17, 16  ;;  %v3197_v44 = vor.u32 %v3196_v13, %v3192_v39  ;;  %4235 = vmatprep.mubr.bf16.mxu0 %v11867_v53  ;;  %19008 = vst [vmem:[#allocation26_spill] sm:$0xff] %v15549_v36  ;;  %19009 = vst [vmem:[#allocation27_spill] sm:$0xff] %v15552_v58 }
 0x121   : > { %v4419_v55 = vld [vmem:[#allocation2 + $0x44] sm:$0x1]  ;;  %v11741_v27 = vcombine.low %v2879_v4, %v2823_v22  ;;  %v3579_v46 = vrot.slane %v3577_v18, 5  ;;  %v4420_v25 = vld [vmem:[#allocation2 + $0x4c] sm:$0x1]  ;;  %4236 = vmatmul.mubr.bf16.gmra.mxu0 %v11866_v19  ;;  %v11790_v21 = vcombine.low %v2824_v49, %v3190_v62  ;;  %v15554_v53 = vpop.f32.mrf.mxu0  ;;  %v11792_v19 = vsel %vm849_vm5, %v15493_v34, %v3190_v62  ;;  %v15562_v58 = vpop.f32.mrf.mxu1 }
 0x122   : > { %v11916_v57 = vcombine.low %v15513_v52, %v4419_v55  ;;  %v3570_v42 = vrot.slane %v3568_v43, 4  ;;  %v3573_v14 = vrot.slane %v3571_v45, 5  ;;  %v11917_v54 = vcombine.low %v15526_v6, %v4420_v25  ;;  %v2826_v39 = vld [vmem:[#allocation2 + $0x60] sm:$0xf]  ;;  %19010 = vst [vmem:[#allocation28_spill] sm:$0xff] %v15554_v53  ;;  %19012 = vst [vmem:[#allocation30_spill] sm:$0xff] %v15562_v58 }
 0x123   : > { %v3178_v17 = vshrl.u32 %v11741_v27, 16  ;;  %v3180_v4 = vshll.u32 %v11741_v27, 16  ;;  %v11793_v1 = vcombine.low %v2826_v39, %v3197_v44  ;;  %v11795_v49 = vsel %vm849_vm5, %v15498_v30, %v3197_v44  ;;  %v2822_v25 = vld [vmem:[#allocation2 + $0x40] sm:$0xf] }
 0x124   : > { %v4648_v48 = vshrl.u32 %v11916_v57, 16  ;;  %v4650_v13 = vshll.u32 %v11916_v57, 16  ;;  %v3574_v18 = vor.u32 %v3573_v14, %v3570_v42  ;;  %v4655_v55 = vshrl.u32 %v11917_v54, 16  ;;  %v15560_v57 = vpop.f32.mrf.mxu0 }
 0x125   : > { %v4657_v41 = vshll.u32 %v11917_v54, 16  ;;  %v3182_v43 = vrot.slane %v3180_v4, 1  ;;  %v3596_v27 = vshrl.u32 %v11790_v21, 16  ;;  %v3599_v59 = vshll.u32 %v11790_v21, 16  ;;  %19011 = vst [vmem:[#allocation29_spill] sm:$0xff] %v15560_v57 }
 0x126   : > { %v4652_v45 = vrot.slane %v4650_v13, 1  ;;  %v3575_v60 = vrot.slane %v3574_v18, 4  ;;  %v3605_v54 = vshll.u32 %v11792_v19, 16  ;;  %v3610_v53 = vshrl.u32 %v11793_v1, 16  ;;  %v15569_v13 = vld [vmem:[#allocation2 + $0x6c] sm:$0x1] }
 0x127   : > { %v4659_v32 = vrot.slane %v4657_v41, 1  ;;  %v3183_v42 = vor.u32 %v3182_v43, %v3178_v17  ;;  %v3598_v39 = vrot.slane %v3596_v27, 4  ;;  %v3601_v30 = vrot.slane %v3599_v59, 5  ;;  %v15571_v19 = vld [vmem:[#allocation2 + $0x74] sm:$0x1] }
 0x128   : > { %v4653_v14 = vor.u32 %v4652_v45, %v4648_v48  ;;  %v15566_v34 = vsel %vm15399_vm12, %v3575_v60, %v3579_v46  ;;  %v3607_v4 = vrot.slane %v3605_v54, 5  ;;  %v3612_v21 = vrot.slane %v3610_v53, 4  ;;  %v2882_v43 = vld [vmem:[#allocation2 + $0x68] sm:$0xe]  ;;  %v2883_v45 = vld [vmem:[#allocation2 + $0x70] sm:$0xe]  ;;  %v15573_v60 = vpop.f32.mrf.mxu0 }
 0x129   : > { %v4660_v62 = vor.u32 %v4659_v32, %v4655_v55  ;;  %v11787_v44 = vcombine.low %v2822_v25, %v3183_v42  ;;  %v11789_v41 = vsel %vm849_vm5, %v2823_v22, %v3183_v42  ;;  %v3602_v17 = vor.u32 %v3601_v30, %v3598_v39  ;;  %19013 = vst [vmem:[#allocation31_spill] sm:$0xff] %v15573_v60  ;;  %v15575_v32 = vpop.f32.mrf.mxu1  ;;  %v15578_v53 = vld [vmem:[#allocation2 + $0x70] sm:$0xf] }
 0x12a   : > { %v3591_v18 = vshll.u32 %v11789_v41, 16  ;;  %v3613_v48 = vshll.u32 %v11793_v1, 16  ;;  %19014 = vst [vmem:[#allocation32_spill] sm:$0xff] %v15575_v32  ;;  %v3619_v55 = vshll.u32 %v11795_v49, 16  ;;  %v4664_v22 = vshll.u32 %v15517_v38, 16  ;;  %v15581_v54 = vpop.f32.mrf.mxu0 }
 0x12b   : > { %v11949_v58 = vcombine.low %v4653_v14, %v4660_v62  ;;  %v3582_v59 = vshrl.u32 %v11787_v44, 16  ;;  %v3585_v46 = vshll.u32 %v11787_v44, 16  ;;  %v3603_v27 = vrot.slane %v3602_v17, 4  ;;  %v4423_v14 = vld [vmem:[#allocation2 + $0x74] sm:$0x1]  ;;  %19015 = vst [vmem:[#allocation33_spill] sm:$0xff] %v15581_v54  ;;  %v15583_v62 = vpop.f32.mrf.mxu1 }
 0x12c   : > { %v3593_v25 = vrot.slane %v3591_v18, 5  ;;  %v3615_v42 = vrot.slane %v3613_v48, 5  ;;  %v4669_v1 = vshrl.u32 %v15544_v29, 16  ;;  %19016 = vst [vmem:[#allocation34_spill] sm:$0xff] %v15583_v62  ;;  %v19017_v49 = vcombine.low %v15513_v52, %v15526_v6  ;;  %v15594_v32 = vld [vmem:[#allocation2 + $0x78] sm:$0xf] }
 0x12d   : > { %5109 = vmatprep.mubr.bf16.mxu1 %v11949_v58  ;;  %v3584_v39 = vrot.slane %v3582_v59, 4  ;;  %v3587_v30 = vrot.slane %v3585_v46, 5  ;;  %v3621_v44 = vrot.slane %v3619_v55, 5  ;;  %v4666_v41 = vrot.slane %v4664_v22, 1  ;;  %v4424_v62 = vld [vmem:[#allocation2 + $0x7c] sm:$0x1]  ;;  %v15596_v59 = vpop.f32.mrf.mxu0  ;;  %v15598_v46 = vpop.f32.mrf.mxu1 }
 0x12e   : > { %5110 = vmatmul.mubr.bf16.gmra.mxu1 %v19017_v49  ;;  %v15590_v58 = vsel %vm15399_vm12, %v3603_v27, %v3607_v4  ;;  %v3616_v18 = vor.u32 %v3615_v42, %v3612_v21  ;;  %v4671_v17 = vshll.u32 %v15544_v29, 16  ;;  %v11744_v48 = vcombine.low %v2882_v43, %v15569_v13  ;;  %19018 = vst [vmem:[#allocation35_spill] sm:$0xff] %v15596_v59  ;;  %v14132_v52 = vld [vmem:[%s18949_s1 + $0x208] sm:$0xff]   ;;  %v2899_v57 = vld [vmem:[#allocation2 + $0x110] sm:$0xe] }
 0x12f   : > { %19019 = vst [vmem:[#allocation36_spill] sm:$0xff] %v15598_v46  ;;  %v3588_v6 = vor.u32 %v3587_v30, %v3584_v39  ;;  %v19020_v4 = vshrl.u32 %v15517_v38, 16  ;;  %v11745_v21 = vcombine.low %v2883_v45, %v15571_v19  ;;  %v15607_v29 = vcombine.low %v15578_v53, %v4423_v14  ;;  %v15609_v49 = vpop.f32.mrf.mxu0  ;;  %v15611_v46 = vpop.f32.mrf.mxu1  ;;  %13831 = vmatprep.subr.bf16.mxu0 %v14132_v52 }
 0x130   : > { %v3617_v43 = vrot.slane %v3616_v18, 4  ;;  %v4673_v22 = vrot.slane %v4671_v17, 1  ;;  %v3199_v27 = vshrl.u32 %v11744_v48, 16  ;;  %v3201_v42 = vshll.u32 %v11744_v48, 16  ;;  %19021 = vst [vmem:[#allocation37_spill] sm:$0xff] %v15609_v49  ;;  %19022 = vst [vmem:[#allocation38_spill] sm:$0xff] %v15611_v46  ;;  %13832 = vmatpush3.bf16.msra.mxu0 %v14132_v52 }
 0x131   : > { %v4667_v55 = vor.u32 %v4666_v41, %v19020_v4  ;;  %v3589_v59 = vrot.slane %v3588_v6, 4  ;;  %v3206_v54 = vshrl.u32 %v11745_v21, 16  ;;  %v3208_v39 = vshll.u32 %v11745_v21, 16  ;;  %v15619_v18 = vpop.f32.mrf.mxu0  ;;  %v2828_v52 = vld [vmem:[#allocation2 + $0x68] sm:$0xf] }
 0x132   : > { %v11921_v38 = vcombine.low %v15594_v32, %v4424_v62  ;;  %v15616_v45 = vsel %vm15399_vm12, %v3617_v43, %v3621_v44  ;;  %v4674_v14 = vor.u32 %v4673_v22, %v4669_v1  ;;  %v3203_v30 = vrot.slane %v3201_v42, 1  ;;  %19023 = vst [vmem:[#allocation39_spill] sm:$0xff] %v15619_v18  ;;  %v430_v4 = vld [vmem:[#allocation2 + $0x94] sm:$0x1]  ;;  %v15627_v44 = vpop.f32.mrf.mxu1  ;;  %v2830_v22 = vld [vmem:[#allocation2 + $0x70] sm:$0xf] }
 0x133   : > { %v4676_v41 = vshrl.u32 %v15607_v29, 16  ;;  %v3594_v17 = vsel %vm15399_vm12, %v3589_v59, %v3593_v25  ;;  %v11871_v48 = vcombine.high %v15590_v58, %v15616_v45  ;;  %v3210_v6 = vrot.slane %v3208_v39, 1  ;;  %19024 = vst [vmem:[#allocation40_spill] sm:$0xff] %v15627_v44  ;;  %v15632_v49 = vpop.f32.mrf.mxu0 }
 0x134   : > { %v11869_v1 = vcombine.high %v15566_v34, %v3594_v17  ;;  %v11868_v21 = vcombine.low %v15566_v34, %v3594_v17  ;;  %v11951_v43 = vcombine.low %v4667_v55, %v4674_v14  ;;  %v3204_v42 = vor.u32 %v3203_v30, %v3199_v27  ;;  %19025 = vst [vmem:[#allocation41_spill] sm:$0xff] %v15632_v49  ;;  %v15638_v34 = vld [vmem:[#allocation2 + $0x7c] sm:$0x1]  ;;  %v15640_v55 = vld [vmem:[#allocation2 + $0x84] sm:$0x1] }
 0x135   : > { %v3211_v18 = vor.u32 %v3210_v6, %v3206_v54  ;;  %v4678_v25 = vshll.u32 %v15607_v29, 16  ;;  %v4683_v59 = vshrl.u32 %v11921_v38, 16  ;;  %v4685_v46 = vshll.u32 %v11921_v38, 16  ;;  %v2884_v54 = vld [vmem:[#allocation2 + $0x78] sm:$0xe]  ;;  %v15644_v38 = vpop.f32.mrf.mxu1 }
 0x136   : > { %4243 = vmatprep.mubr.bf16.mxu0 %v11869_v1  ;;  %5117 = vmatprep.mubr.bf16.mxu1 %v11951_v43  ;;  %v11796_v39 = vcombine.low %v2828_v52, %v3204_v42  ;;  %v11798_v62 = vsel %vm849_vm5, %v15569_v13, %v3204_v42  ;;  %v11952_v44 = vcombine.low %v15578_v53, %v15594_v32  ;;  %v2885_v27 = vld [vmem:[#allocation2 + $0x80] sm:$0xe]  ;;  %v431_v29 = vsel %vm14610_vm4, 0, %v430_v4  ;;  %v15653_v52 = vld [vmem:[#allocation2 + $0x88] sm:$0xf] }
 0x137   : > { %19026 = vst [vmem:[#allocation42_spill] sm:$0xff] %v15644_v38  ;;  %4244 = vmatmul.mubr.bf16.gmra.mxu0 %v11868_v21  ;;  %v19027_v14 = vcombine.low %v15500_v10, %v15532_v15  ;;  %v11799_v13 = vcombine.low %v2830_v22, %v3211_v18  ;;  %v11801_v32 = vsel %vm849_vm5, %v15571_v19, %v3211_v18  ;;  %v3633_v53 = vshll.u32 %v11798_v62, 16  ;;  %v15651_v17 = vld [vmem:[#allocation2 + $0x80] sm:$0xf]  ;;  %v4425_v43 = vld [vmem:[#allocation2 + $0x84] sm:$0x1]  ;;  %v15655_v38 = vpop.f32.mrf.mxu0  ;;  %v15657_v49 = vpop.f32.mrf.mxu1 }
 0x138   : > { %v4680_v30 = vrot.slane %v4678_v25, 1  ;;  %432 = vst [vmem:[#allocation2 + $0x94] sm:$0x1] %v431_v29  ;;  %4251 = vmatprep.mubr.bf16.mxu0 %v11871_v48  ;;  %v3624_v6 = vshrl.u32 %v11796_v39, 16  ;;  %v3627_v4 = vshll.u32 %v11796_v39, 16  ;;  %v3647_v1 = vshll.u32 %v11801_v32, 16 }
 0x139   : > { %5118 = vmatmul.mubr.bf16.gmra.mxu1 %v19027_v14  ;;  %v4687_v21 = vrot.slane %v4685_v46, 1  ;;  %v3635_v42 = vrot.slane %v3633_v53, 5  ;;  %v3638_v10 = vshrl.u32 %v11799_v13, 16  ;;  %v3641_v15 = vshll.u32 %v11799_v13, 16  ;;  %v4426_v14 = vld [vmem:[#allocation2 + $0x8c] sm:$0x1] }
 0x13a   : > { %v4681_v22 = vor.u32 %v4680_v30, %v4676_v41  ;;  %19028 = vst [vmem:[#allocation43_spill] sm:$0xff] %v15655_v38  ;;  %v3626_v19 = vrot.slane %v3624_v6, 4  ;;  %v3629_v18 = vrot.slane %v3627_v4, 5  ;;  %v3649_v62 = vrot.slane %v3647_v1, 5  ;;  %19029 = vst [vmem:[#allocation44_spill] sm:$0xff] %v15657_v49  ;;  %v14143_v48 = vld [vmem:[%s18949_s1 + $0x200] sm:$0xff]  }
 0x13b   : > { %v4688_v25 = vor.u32 %v4687_v21, %v4683_v59  ;;  %v3640_v39 = vrot.slane %v3638_v10, 4  ;;  %v3643_v46 = vrot.slane %v3641_v15, 5  ;;  %v11746_v29 = vcombine.low %v2884_v54, %v15638_v34  ;;  %13833 = vmatprep.subr.bf16.mxu0 %v14143_v48  ;;  %v15666_v21 = vpop.f32.mrf.mxu0 }
 0x13c   : > { %v11747_v13 = vcombine.low %v2885_v27, %v15640_v55  ;;  %v3630_v41 = vor.u32 %v3629_v18, %v3626_v19  ;;  %v11922_v53 = vcombine.low %v15651_v17, %v4425_v43  ;;  %v11923_v30 = vcombine.low %v15653_v52, %v4426_v14  ;;  %19030 = vst [vmem:[#allocation45_spill] sm:$0xff] %v15666_v21  ;;  %v15668_v19 = vpop.f32.mrf.mxu1  ;;  %v2832_v14 = vld [vmem:[#allocation2 + $0x78] sm:$0xf] }
 0x13d   : > { %v11953_v32 = vcombine.low %v4681_v22, %v4688_v25  ;;  %v3644_v59 = vor.u32 %v3643_v46, %v3640_v39  ;;  %v3213_v6 = vshrl.u32 %v11746_v29, 16  ;;  %v3215_v4 = vshll.u32 %v11746_v29, 16  ;;  %13834 = vmatpush3.bf16.msra.mxu0 %v14143_v48  ;;  %19031 = vst [vmem:[#allocation46_spill] sm:$0xff] %v15668_v19 }
 0x13e   : > { %v3220_v1 = vshrl.u32 %v11747_v13, 16  ;;  %v3631_v10 = vrot.slane %v3630_v41, 4  ;;  %v3222_v15 = vshll.u32 %v11747_v13, 16  ;;  %v4690_v54 = vshrl.u32 %v11922_v53, 16  ;;  %v15677_v41 = vld [vmem:[#allocation2 + $0x8c] sm:$0x1] }
 0x13f   : > { %5125 = vmatprep.mubr.bf16.mxu1 %v11953_v32  ;;  %v4692_v49 = vshll.u32 %v11922_v53, 16  ;;  %v944_v27 = vld [vmem:[#allocation2 + $0x94] sm:$0x1]  ;;  %v19032_v43 = vcombine.low %v15590_v58, %v15616_v45  ;;  %v3645_v22 = vrot.slane %v3644_v59, 4  ;;  %v3217_v18 = vrot.slane %v3215_v4, 1  ;;  %v15685_v4 = vpop.f32.mrf.mxu0 }
 0x140   : > { %v4697_v25 = vshrl.u32 %v11923_v30, 16  ;;  %v4699_v39 = vshll.u32 %v11923_v30, 16  ;;  %v3636_v48 = vsel %vm15399_vm12, %v3631_v10, %v3635_v42  ;;  %v3224_v46 = vrot.slane %v3222_v15, 1  ;;  %v2886_v32 = vld [vmem:[#allocation2 + $0x88] sm:$0xe]  ;;  %19034 = vst [vmem:[#allocation47_spill] sm:$0xff] %v15685_v4  ;;  %v15687_v15 = vpop.f32.mrf.mxu1 }
 0x141   : > { %4252 = vmatmul.mubr.bf16.gmra.mxu0 %v19032_v43  ;;  %5126 = vmatmul.mubr.bf16.gmra.mxu1 %v11952_v44  ;;  %v4694_v29 = vrot.slane %v4692_v49, 1  ;;  %v11954_v13 = vcombine.low %v15651_v17, %v15653_v52  ;;  %v3650_v58 = vsel %vm15399_vm12, %v3645_v22, %v3649_v62  ;;  %v2834_v45 = vld [vmem:[#allocation2 + $0x80] sm:$0xf]  ;;  %v3218_v44 = vor.u32 %v3217_v18, %v3213_v6  ;;  %v311_v42 = vld [vmem:[#allocation2 + $0x98] sm:$0x1]  ;;  %v15692_v22 = vpop.f32.mrf.mxu0 }
 0x142   : > { %v4701_v53 = vrot.slane %v4699_v39, 1  ;;  %v19033_v59 = vrot.slane %v14992_v20, 4  ;;  %v11873_v49 = vcombine.high %v3636_v48, %v3650_v58  ;;  %v11872_v10 = vcombine.low %v3636_v48, %v3650_v58  ;;  %19035 = vst [vmem:[#allocation48_spill] sm:$0xff] %v15687_v15  ;;  %19036 = vst [vmem:[#allocation49_spill] sm:$0xff] %v15692_v22  ;;  %v15698_v48 = vld [vmem:[#allocation2 + $0xac] sm:$0x1] }
 0x143   : > { %v3225_v17 = vor.u32 %v3224_v46, %v3220_v1  ;;  %v4695_v52 = vor.u32 %v4694_v29, %v4690_v54  ;;  %v11802_v43 = vcombine.low %v2832_v14, %v3218_v44  ;;  %v11804_v62 = vsel %vm849_vm5, %v15638_v34, %v3218_v44  ;;  %v433_v54 = vld [vmem:[#allocation2 + $0x9c] sm:$0x1]  ;;  %v15700_v14 = vpop.f32.mrf.mxu1  ;;  %v15702_v58 = vld [vmem:[#allocation2 + $0x90] sm:$0xf]  ;;  %v2836_v15 = vld [vmem:[#allocation2 + $0x88] sm:$0xf] }
 0x144   : > { %v945_v30 = vsel %vm14600_vm2, %v19033_v59, %v944_v27  ;;  %v4702_v6 = vor.u32 %v4701_v53, %v4697_v25  ;;  %v11748_v20 = vcombine.low %v2886_v32, %v15677_v41  ;;  %4259 = vmatprep.mubr.bf16.mxu0 %v11873_v49  ;;  %v3661_v39 = vshll.u32 %v11804_v62, 16  ;;  %19037 = vst [vmem:[#allocation50_spill] sm:$0xff] %v15700_v14  ;;  %v2887_v32 = vld [vmem:[#allocation2 + $0x90] sm:$0xe]  ;;  %v4429_v14 = vld [vmem:[#allocation2 + $0xb4] sm:$0x1] }
 0x145   : > { %946 = vst [vmem:[#allocation2 + $0x94] sm:$0x1] %v945_v30  ;;  %v11805_v27 = vcombine.low %v2834_v45, %v3225_v17  ;;  %v11807_v18 = vsel %vm849_vm5, %v15640_v55, %v3225_v17  ;;  %v312_v1 = vsel %vm14600_vm2, 0, %v311_v42  ;;  %v3652_v34 = vshrl.u32 %v11802_v43, 16  ;;  %v15704_v45 = vld [vmem:[#allocation2 + $0xb4] sm:$0x1]  ;;  %v15706_v42 = vpop.f32.mrf.mxu0  ;;  %v15708_v49 = vpop.f32.mrf.mxu1 }
 0x146   : > { %v3655_v25 = vshll.u32 %v11802_v43, 16  ;;  %v3675_v46 = vshll.u32 %v11807_v18, 16  ;;  %v11955_v29 = vcombine.low %v4695_v52, %v4702_v6  ;;  %313 = vst [vmem:[#allocation2 + $0x98] sm:$0x1] %v312_v1  ;;  %v2888_v55 = vld [vmem:[#allocation2 + $0xa8] sm:$0xe] }
 0x147   : > { %v3663_v44 = vrot.slane %v3661_v39, 5  ;;  %v3666_v53 = vshrl.u32 %v11805_v27, 16  ;;  %v3669_v59 = vshll.u32 %v11805_v27, 16  ;;  %v2889_v30 = vld [vmem:[#allocation2 + $0xb0] sm:$0xe]  ;;  %19038 = vst [vmem:[#allocation51_spill] sm:$0xff] %v15706_v42  ;;  %v11750_v27 = vcombine.low %v2888_v55, %v15698_v48  ;;  %v15715_v42 = vpop.f32.mrf.mxu1 }
 0x148   : > { %19039 = vst [vmem:[#allocation52_spill] sm:$0xff] %v15708_v49  ;;  %v3654_v17 = vrot.slane %v3652_v34, 4  ;;  %v3657_v43 = vrot.slane %v3655_v25, 5  ;;  %5133 = vmatprep.mubr.bf16.mxu1 %v11955_v29  ;;  %v3227_v52 = vshrl.u32 %v11748_v20, 16  ;;  %v3229_v62 = vshll.u32 %v11748_v20, 16  ;;  %19040 = vst [vmem:[#allocation53_spill] sm:$0xff] %v15715_v42 }
 0x149   : > { %4260 = vmatmul.mubr.bf16.gmra.mxu0 %v11872_v10  ;;  %v15710_v6 = vld [vmem:[#allocation2 + $0xb0] sm:$0xf]  ;;  %v3668_v18 = vrot.slane %v3666_v53, 4  ;;  %v3671_v1 = vrot.slane %v3669_v59, 5  ;;  %5134 = vmatmul.mubr.bf16.gmra.mxu1 %v11954_v13  ;;  %v434_v39 = vsel %vm14610_vm4, 0, %v433_v54  ;;  %v3677_v10 = vrot.slane %v3675_v46, 5  ;;  %v15721_v54 = vpop.f32.mrf.mxu0 }
 0x14a   : > { %v3658_v49 = vor.u32 %v3657_v43, %v3654_v17  ;;  %v3231_v25 = vrot.slane %v3229_v62, 1  ;;  %435 = vst [vmem:[#allocation2 + $0x9c] sm:$0x1] %v434_v39  ;;  %v15719_v13 = vcombine.low %v2889_v30, %v15704_v45  ;;  %19041 = vst [vmem:[#allocation54_spill] sm:$0xff] %v15721_v54  ;;  %v3241_v4 = vshrl.u32 %v11750_v27, 16 }
 0x14b   : > { %v3672_v20 = vor.u32 %v3671_v1, %v3668_v18  ;;  %v15724_v17 = vcombine.low %v15710_v6, %v4429_v14  ;;  %v3243_v39 = vshll.u32 %v11750_v27, 16  ;;  %v15726_v18 = vpop.f32.mrf.mxu1  ;;  %v15737_v27 = vpop.f32.mrf.mxu0 }
 0x14c   : > { %v2839_v34 = vld [vmem:[#allocation2 + $0x94] sm:$0x1]  ;;  %v3659_v55 = vrot.slane %v3658_v49, 4  ;;  %v3232_v59 = vor.u32 %v3231_v25, %v3227_v52  ;;  %19042 = vst [vmem:[#allocation55_spill] sm:$0xff] %v15726_v18  ;;  %19043 = vst [vmem:[#allocation56_spill] sm:$0xff] %v15737_v27 }
 0x14d   : > { %v4427_v29 = vld [vmem:[#allocation2 + $0x94] sm:$0x1]  ;;  %v11749_v22 = vcombine.low %v2887_v32, %v2839_v34  ;;  %v3673_v46 = vrot.slane %v3672_v20, 4  ;;  %v15734_v25 = vld [vmem:[#allocation2 + $0x98] sm:$0xf]  ;;  %v15739_v20 = vpop.f32.mrf.mxu1 }
 0x14e   : > { %v11924_v53 = vcombine.low %v15702_v58, %v4427_v29  ;;  %v3664_v32 = vsel %vm15399_vm12, %v3659_v55, %v3663_v44  ;;  %v11808_v1 = vcombine.low %v2836_v15, %v3232_v59  ;;  %v11810_v30 = vsel %vm849_vm5, %v15677_v41, %v3232_v59  ;;  %19044 = vst [vmem:[#allocation57_spill] sm:$0xff] %v15739_v20  ;;  %v2838_v15 = vld [vmem:[#allocation2 + $0x90] sm:$0xf] }
 0x14f   : > { %v3234_v43 = vshrl.u32 %v11749_v22, 16  ;;  %v3236_v62 = vshll.u32 %v11749_v22, 16  ;;  %v3678_v49 = vsel %vm15399_vm12, %v3673_v46, %v3677_v10  ;;  %v3689_v14 = vshll.u32 %v11810_v30, 16  ;;  %v15745_v30 = vpop.f32.mrf.mxu1 }
 0x150   : > { %v4706_v29 = vshll.u32 %v11924_v53, 16  ;;  %v3248_v22 = vshrl.u32 %v15719_v13, 16  ;;  %v11875_v18 = vcombine.high %v3664_v32, %v3678_v49  ;;  %v11874_v44 = vcombine.low %v3664_v32, %v3678_v49  ;;  %19046 = vst [vmem:[#allocation59_spill] sm:$0xff] %v15745_v30  ;;  %v2840_v49 = vld [vmem:[#allocation2 + $0xa8] sm:$0xf] }
 0x151   : > { %v3238_v52 = vrot.slane %v3236_v62, 1  ;;  %v3680_v55 = vshrl.u32 %v11808_v1, 16  ;;  %v3683_v42 = vshll.u32 %v11808_v1, 16  ;;  %v4428_v59 = vld [vmem:[#allocation2 + $0x9c] sm:$0x1]  ;;  %v4704_v54 = vshrl.u32 %v11924_v53, 16  ;;  %v15743_v62 = vpop.f32.mrf.mxu0  ;;  %v15751_v30 = vpop.f32.mrf.mxu1 }
 0x152   : > { %v3245_v46 = vrot.slane %v3243_v39, 1  ;;  %19045 = vst [vmem:[#allocation58_spill] sm:$0xff] %v15743_v62  ;;  %4267 = vmatprep.mubr.bf16.mxu0 %v11875_v18  ;;  %v11925_v20 = vcombine.low %v15734_v25, %v4428_v59  ;;  %v4708_v32 = vrot.slane %v4706_v29, 1  ;;  %v3691_v53 = vrot.slane %v3689_v14, 5  ;;  %19048 = vst [vmem:[#allocation61_spill] sm:$0xff] %v15751_v30 }
 0x153   : > { %v3239_v41 = vor.u32 %v3238_v52, %v3234_v43  ;;  %v3682_v27 = vrot.slane %v3680_v55, 4  ;;  %v3685_v19 = vrot.slane %v3683_v42, 5  ;;  %4268 = vmatmul.mubr.bf16.gmra.mxu0 %v11874_v44  ;;  %v15749_v21 = vpop.f32.mrf.mxu0  ;;  %v3250_v55 = vshll.u32 %v15719_v13, 16  ;;  %v15758_v14 = vld [vmem:[#allocation2 + $0xb8] sm:$0xf] }
 0x154   : > { %v3246_v52 = vor.u32 %v3245_v46, %v3241_v4  ;;  %19047 = vst [vmem:[#allocation60_spill] sm:$0xff] %v15749_v21  ;;  %v4711_v62 = vshrl.u32 %v11925_v20, 16  ;;  %v4713_v38 = vshll.u32 %v11925_v20, 16 }
 0x155   : > { %v11811_v1 = vcombine.low %v2838_v15, %v3239_v41  ;;  %v11813_v43 = vsel %vm849_vm5, %v2839_v34, %v3239_v41  ;;  %v3686_v39 = vor.u32 %v3685_v19, %v3682_v27  ;;  %v15754_v59 = vpop.f32.mrf.mxu0  ;;  %v4709_v15 = vor.u32 %v4708_v32, %v4704_v54  ;;  %v4430_v19 = vld [vmem:[#allocation2 + $0xbc] sm:$0x1] }
 0x156   : > { %v3703_v10 = vshll.u32 %v11813_v43, 16  ;;  %v11814_v29 = vcombine.low %v2840_v49, %v3246_v52  ;;  %19049 = vst [vmem:[#allocation62_spill] sm:$0xff] %v15754_v59  ;;  %v4715_v34 = vrot.slane %v4713_v38, 1  ;;  %v11816_v4 = vsel %vm849_vm5, %v15698_v48, %v3246_v52  ;;  %v2842_v43 = vld [vmem:[#allocation2 + $0xb0] sm:$0xf]  ;;  %v15764_v38 = vpop.f32.mrf.mxu1 }
 0x157   : > { %v3694_v18 = vshrl.u32 %v11811_v1, 16  ;;  %v3697_v42 = vshll.u32 %v11811_v1, 16  ;;  %v3687_v44 = vrot.slane %v3686_v39, 4  ;;  %v3252_v41 = vrot.slane %v3250_v55, 1  ;;  %v15762_v39 = vpop.f32.mrf.mxu0  ;;  %19051 = vst [vmem:[#allocation64_spill] sm:$0xff] %v15764_v38 }
 0x158   : > { %v3708_v46 = vshrl.u32 %v11814_v29, 16  ;;  %v3705_v13 = vrot.slane %v3703_v10, 5  ;;  %v4716_v49 = vor.u32 %v4715_v34, %v4711_v62  ;;  %v3711_v30 = vshll.u32 %v11814_v29, 16  ;;  %19050 = vst [vmem:[#allocation63_spill] sm:$0xff] %v15762_v39 }
 0x159   : > { %v3696_v27 = vrot.slane %v3694_v18, 4  ;;  %v3699_v20 = vrot.slane %v3697_v42, 5  ;;  %v3692_v1 = vsel %vm15399_vm12, %v3687_v44, %v3691_v53  ;;  %v3253_v48 = vor.u32 %v3252_v41, %v3248_v22  ;;  %v15768_v21 = vpop.f32.mrf.mxu0  ;;  %v15773_v44 = vpop.f32.mrf.mxu1 }
 0x15a   : > { %v3710_v32 = vrot.slane %v3708_v46, 4  ;;  %v11927_v52 = vcombine.low %v15758_v14, %v4430_v19  ;;  %v11957_v18 = vcombine.low %v4709_v15, %v4716_v49  ;;  %v3713_v42 = vrot.slane %v3711_v30, 5  ;;  %19052 = vst [vmem:[#allocation65_spill] sm:$0xff] %v15768_v21  ;;  %19053 = vst [vmem:[#allocation66_spill] sm:$0xff] %v15773_v44  ;;  %v15784_v46 = vld [vmem:[#allocation2 + $0xc4] sm:$0x1] }
 0x15b   : > { %v3700_v54 = vor.u32 %v3699_v20, %v3696_v27  ;;  %v3717_v55 = vshll.u32 %v11816_v4, 16  ;;  %v4718_v59 = vshrl.u32 %v15724_v17, 16  ;;  %v11817_v62 = vcombine.low %v2842_v43, %v3253_v48  ;;  %v15775_v30 = vpop.f32.mrf.mxu0  ;;  %v2890_v49 = vld [vmem:[#allocation2 + $0xb8] sm:$0xe] }
 0x15c   : > { %v11819_v53 = vsel %vm849_vm5, %v15704_v45, %v3253_v48  ;;  %v4720_v29 = vshll.u32 %v15724_v17, 16  ;;  %5141 = vmatprep.mubr.bf16.mxu1 %v11957_v18  ;;  %v3714_v22 = vor.u32 %v3713_v42, %v3710_v32  ;;  %v4725_v19 = vshrl.u32 %v11927_v52, 16  ;;  %19054 = vst [vmem:[#allocation67_spill] sm:$0xff] %v15775_v30  ;;  %v15782_v17 = vld [vmem:[#allocation2 + $0xbc] sm:$0x1] }
 0x15d   : > { %v3701_v10 = vrot.slane %v3700_v54, 4  ;;  %v3731_v34 = vshll.u32 %v11819_v53, 16  ;;  %v4727_v15 = vshll.u32 %v11927_v52, 16  ;;  %v19055_v27 = vcombine.low %v15702_v58, %v15734_v25  ;;  %v2891_v52 = vld [vmem:[#allocation2 + $0xc0] sm:$0xe]  ;;  %v15788_v53 = vpop.f32.mrf.mxu1 }
 0x15e   : > { %v3722_v20 = vshrl.u32 %v11817_v62, 16  ;;  %v3725_v45 = vshll.u32 %v11817_v62, 16  ;;  %v4722_v41 = vrot.slane %v4720_v29, 1  ;;  %v3715_v48 = vrot.slane %v3714_v22, 4  ;;  %v15786_v18 = vld [vmem:[#allocation2 + $0xc0] sm:$0xf] }
 0x15f   : > { %v3706_v4 = vsel %vm15399_vm12, %v3701_v10, %v3705_v13  ;;  %5142 = vmatmul.mubr.bf16.gmra.mxu1 %v19055_v27  ;;  %v3719_v32 = vrot.slane %v3717_v55, 5  ;;  %v4729_v58 = vrot.slane %v4727_v15, 1  ;;  %v4431_v25 = vld [vmem:[#allocation2 + $0xc4] sm:$0x1]  ;;  %19056 = vst [vmem:[#allocation68_spill] sm:$0xff] %v15788_v53  ;;  %v15792_v27 = vpop.f32.mrf.mxu0  ;;  %v3733_v22 = vrot.slane %v3731_v34, 5 }
 0x160   : > { %v11877_v43 = vcombine.high %v3692_v1, %v3706_v4  ;;  %v11876_v54 = vcombine.low %v3692_v1, %v3706_v4  ;;  %v3724_v13 = vrot.slane %v3722_v20, 4  ;;  %v3727_v42 = vrot.slane %v3725_v45, 5  ;;  %v15790_v62 = vld [vmem:[#allocation2 + $0xc8] sm:$0xf]  ;;  %v4432_v29 = vld [vmem:[#allocation2 + $0xcc] sm:$0x1] }
 0x161   : > { %v4723_v10 = vor.u32 %v4722_v41, %v4718_v59  ;;  %19057 = vst [vmem:[#allocation69_spill] sm:$0xff] %v15792_v27  ;;  %v4730_v55 = vor.u32 %v4729_v58, %v4725_v19  ;;  %v11958_v4 = vcombine.low %v15710_v6, %v15758_v14  ;;  %v11752_v20 = vcombine.low %v2890_v49, %v15782_v17  ;;  %v2844_v49 = vld [vmem:[#allocation2 + $0xb8] sm:$0xf]  ;;  %v15812_v27 = vld [vmem:[#allocation2 + $0xcc] sm:$0x1] }
 0x162   : > { %4275 = vmatprep.mubr.bf16.mxu0 %v11877_v43  ;;  %v3728_v1 = vor.u32 %v3727_v42, %v3724_v13  ;;  %v11753_v59 = vcombine.low %v2891_v52, %v15784_v46  ;;  %v11928_v15 = vcombine.low %v15786_v18, %v4431_v25  ;;  %v3720_v45 = vsel %vm15399_vm12, %v3715_v48, %v3719_v32  ;;  %v2846_v52 = vld [vmem:[#allocation2 + $0xc0] sm:$0xf] }
 0x163   : > { %4276 = vmatmul.mubr.bf16.gmra.mxu0 %v11876_v54  ;;  %v11959_v43 = vcombine.low %v4723_v10, %v4730_v55  ;;  %v11929_v53 = vcombine.low %v15790_v62, %v4432_v29  ;;  %v15802_v54 = vpop.f32.mrf.mxu1  ;;  %v3255_v34 = vshrl.u32 %v11752_v20, 16  ;;  %v3257_v19 = vshll.u32 %v11752_v20, 16  ;;  %v15804_v6 = vpop.f32.mrf.mxu0 }
 0x164   : > { %v3729_v41 = vrot.slane %v3728_v1, 4  ;;  %19058 = vst [vmem:[#allocation70_spill] sm:$0xff] %v15802_v54  ;;  %v3262_v13 = vshrl.u32 %v11753_v59, 16  ;;  %v3264_v42 = vshll.u32 %v11753_v59, 16  ;;  %19059 = vst [vmem:[#allocation71_spill] sm:$0xff] %v15804_v6  ;;  %v4732_v58 = vshrl.u32 %v11928_v15, 16 }
 0x165   : > { %5149 = vmatprep.mubr.bf16.mxu1 %v11959_v43  ;;  %v4734_v48 = vshll.u32 %v11928_v15, 16  ;;  %v4739_v32 = vshrl.u32 %v11929_v53, 16  ;;  %v3259_v29 = vrot.slane %v3257_v19, 1  ;;  %v4741_v20 = vshll.u32 %v11929_v53, 16  ;;  %v15810_v59 = vpop.f32.mrf.mxu0  ;;  %v2892_v15 = vld [vmem:[#allocation2 + $0xc8] sm:$0xe] }
 0x166   : > { %v3734_v14 = vsel %vm15399_vm12, %v3729_v41, %v3733_v22  ;;  %v3266_v1 = vrot.slane %v3264_v42, 1  ;;  %v15808_v54 = vpop.f32.mrf.mxu1  ;;  %19061 = vst [vmem:[#allocation73_spill] sm:$0xff] %v15810_v59  ;;  %v15820_v42 = vld [vmem:[#allocation2 + $0xd4] sm:$0x1] }
 0x167   : > { %v11879_v10 = vcombine.high %v3720_v45, %v3734_v14  ;;  %v11878_v25 = vcombine.low %v3720_v45, %v3734_v14  ;;  %5150 = vmatmul.mubr.bf16.gmra.mxu1 %v11958_v4  ;;  %v4736_v55 = vrot.slane %v4734_v48, 1  ;;  %19060 = vst [vmem:[#allocation72_spill] sm:$0xff] %v15808_v54  ;;  %v3260_v6 = vor.u32 %v3259_v29, %v3255_v34  ;;  %v2893_v34 = vld [vmem:[#allocation2 + $0xd0] sm:$0xe]  ;;  %v4433_v14 = vld [vmem:[#allocation2 + $0xd4] sm:$0x1] }
 0x168   : > { %v3267_v22 = vor.u32 %v3266_v1, %v3262_v13  ;;  %v4743_v43 = vrot.slane %v4741_v20, 1  ;;  %v15814_v30 = vpop.f32.mrf.mxu1  ;;  %v15822_v13 = vld [vmem:[#allocation2 + $0xd0] sm:$0xf]  ;;  %v4434_v29 = vld [vmem:[#allocation2 + $0xdc] sm:$0x1] }
 0x169   : > { %4283 = vmatprep.mubr.bf16.mxu0 %v11879_v10  ;;  %v4737_v41 = vor.u32 %v4736_v55, %v4732_v58  ;;  %19062 = vst [vmem:[#allocation74_spill] sm:$0xff] %v15814_v30  ;;  %v11820_v4 = vcombine.low %v2844_v49, %v3260_v6  ;;  %v11822_v45 = vsel %vm849_vm5, %v15782_v17, %v3260_v6  ;;  %v15826_v49 = vld [vmem:[#allocation2 + $0xd8] sm:$0xf]  ;;  %v15828_v17 = vpop.f32.mrf.mxu0 }
 0x16a   : > { %v11823_v53 = vcombine.low %v2846_v52, %v3267_v22  ;;  %v11825_v19 = vsel %vm849_vm5, %v15784_v46, %v3267_v22  ;;  %v3745_v58 = vshll.u32 %v11822_v45, 16  ;;  %v4744_v10 = vor.u32 %v4743_v43, %v4739_v32  ;;  %19063 = vst [vmem:[#allocation75_spill] sm:$0xff] %v15828_v17  ;;  %v15830_v6 = vpop.f32.mrf.mxu1 }
 0x16b   : > { %4284 = vmatmul.mubr.bf16.gmra.mxu0 %v11878_v25  ;;  %v3759_v48 = vshll.u32 %v11825_v19, 16  ;;  %v11960_v25 = vcombine.low %v15786_v18, %v15790_v62  ;;  %19064 = vst [vmem:[#allocation76_spill] sm:$0xff] %v15830_v6  ;;  %v3736_v46 = vshrl.u32 %v11820_v4, 16  ;;  %v3739_v52 = vshll.u32 %v11820_v4, 16  ;;  %v15835_v59 = vpop.f32.mrf.mxu0 }
 0x16c   : > { %v3750_v1 = vshrl.u32 %v11823_v53, 16  ;;  %v3753_v55 = vshll.u32 %v11823_v53, 16  ;;  %v3747_v20 = vrot.slane %v3745_v58, 5  ;;  %v11961_v30 = vcombine.low %v4737_v41, %v4744_v10  ;;  %19065 = vst [vmem:[#allocation77_spill] sm:$0xff] %v15835_v59  ;;  %v15837_v4 = vpop.f32.mrf.mxu1 }
 0x16d   : > { %v3761_v22 = vrot.slane %v3759_v48, 5  ;;  %v11754_v45 = vcombine.low %v2892_v15, %v15812_v27  ;;  %v3738_v32 = vrot.slane %v3736_v46, 4  ;;  %v3741_v43 = vrot.slane %v3739_v52, 5  ;;  %19066 = vst [vmem:[#allocation78_spill] sm:$0xff] %v15837_v4  ;;  %v2848_v52 = vld [vmem:[#allocation2 + $0xc8] sm:$0xf] }
 0x16e   : > { %v3752_v19 = vrot.slane %v3750_v1, 4  ;;  %v3755_v18 = vrot.slane %v3753_v55, 5  ;;  %5157 = vmatprep.mubr.bf16.mxu1 %v11961_v30  ;;  %v11755_v62 = vcombine.low %v2893_v34, %v15820_v42  ;;  %v11930_v6 = vcombine.low %v15822_v13, %v4433_v14  ;;  %v2850_v55 = vld [vmem:[#allocation2 + $0xd0] sm:$0xf] }
 0x16f   : > { %v3269_v54 = vshrl.u32 %v11754_v45, 16  ;;  %v3271_v17 = vshll.u32 %v11754_v45, 16  ;;  %v3742_v53 = vor.u32 %v3741_v43, %v3738_v32  ;;  %5158 = vmatmul.mubr.bf16.gmra.mxu1 %v11960_v25  ;;  %v11931_v41 = vcombine.low %v15826_v49, %v4434_v29 }
 0x170   : > { %v3756_v58 = vor.u32 %v3755_v18, %v3752_v19  ;;  %v3276_v48 = vshrl.u32 %v11755_v62, 16  ;;  %v3278_v10 = vshll.u32 %v11755_v62, 16  ;;  %v4746_v34 = vshrl.u32 %v11930_v6, 16 }
 0x171   : > { %v3273_v15 = vrot.slane %v3271_v17, 1  ;;  %v3743_v46 = vrot.slane %v3742_v53, 4  ;;  %v4748_v1 = vshll.u32 %v11930_v6, 16  ;;  %v4755_v44 = vshll.u32 %v11931_v41, 16  ;;  %v15840_v59 = vpop.f32.mrf.mxu0 }
 0x172   : > { %v3757_v30 = vrot.slane %v3756_v58, 4  ;;  %v3280_v14 = vrot.slane %v3278_v10, 1  ;;  %19067 = vst [vmem:[#allocation79_spill] sm:$0xff] %v15840_v59  ;;  %v4753_v32 = vshrl.u32 %v11931_v41, 16  ;;  %v460_v10 = vld [vmem:[#allocation2 + $0xe4] sm:$0x1] }
 0x173   : > { %v3274_v45 = vor.u32 %v3273_v15, %v3269_v54  ;;  %v15842_v4 = vpop.f32.mrf.mxu1  ;;  %v3748_v25 = vsel %vm15399_vm12, %v3743_v46, %v3747_v20  ;;  %v4750_v17 = vrot.slane %v4748_v1, 1  ;;  %v15848_v62 = vpop.f32.mrf.mxu0  ;;  %v4757_v15 = vrot.slane %v4755_v44, 1 }
 0x174   : > { %19068 = vst [vmem:[#allocation80_spill] sm:$0xff] %v15842_v4  ;;  %v3762_v29 = vsel %vm15399_vm12, %v3757_v30, %v3761_v22  ;;  %v3281_v18 = vor.u32 %v3280_v14, %v3276_v48  ;;  %19069 = vst [vmem:[#allocation81_spill] sm:$0xff] %v15848_v62  ;;  %v15856_v30 = vld [vmem:[#allocation2 + $0xdc] sm:$0x1]  ;;  %v2894_v48 = vld [vmem:[#allocation2 + $0xd8] sm:$0xe] }
 0x175   : > { %v11881_v43 = vcombine.high %v3748_v25, %v3762_v29  ;;  %v11880_v19 = vcombine.low %v3748_v25, %v3762_v29  ;;  %v11826_v6 = vcombine.low %v2848_v52, %v3274_v45  ;;  %v15850_v54 = vpop.f32.mrf.mxu1  ;;  %v11828_v53 = vsel %vm849_vm5, %v15812_v27, %v3274_v45  ;;  %v341_v52 = vld [vmem:[#allocation2 + $0xe8] sm:$0x1]  ;;  %v15858_v1 = vpop.f32.mrf.mxu0 }
 0x176   : > { %19070 = vst [vmem:[#allocation82_spill] sm:$0xff] %v15850_v54  ;;  %v4751_v58 = vor.u32 %v4750_v17, %v4746_v34  ;;  %v11829_v20 = vcombine.low %v2850_v55, %v3281_v18  ;;  %v11831_v22 = vsel %vm849_vm5, %v15820_v42, %v3281_v18  ;;  %19071 = vst [vmem:[#allocation83_spill] sm:$0xff] %v15858_v1  ;;  %v3773_v27 = vshll.u32 %v11828_v53, 16  ;;  %v463_v17 = vld [vmem:[#allocation2 + $0xec] sm:$0x1] }
 0x177   : > { %4291 = vmatprep.mubr.bf16.mxu0 %v11881_v43  ;;  %v3764_v41 = vshrl.u32 %v11826_v6, 16  ;;  %v3767_v46 = vshll.u32 %v11826_v6, 16  ;;  %v15860_v14 = vpop.f32.mrf.mxu1  ;;  %v3787_v34 = vshll.u32 %v11831_v22, 16  ;;  %v4758_v44 = vor.u32 %v4757_v15, %v4753_v32  ;;  %v15864_v43 = vpop.f32.mrf.mxu0  ;;  %v15868_v54 = vld [vmem:[#allocation2 + $0xfc] sm:$0x1] }
 0x178   : > { %19072 = vst [vmem:[#allocation84_spill] sm:$0xff] %v15860_v14  ;;  %4292 = vmatmul.mubr.bf16.gmra.mxu0 %v11880_v19  ;;  %v11962_v55 = vcombine.low %v15822_v13, %v15826_v49  ;;  %v3778_v42 = vshrl.u32 %v11829_v20, 16  ;;  %v3781_v29 = vshll.u32 %v11829_v20, 16  ;;  %19073 = vst [vmem:[#allocation85_spill] sm:$0xff] %v15864_v43  ;;  %v3775_v6 = vrot.slane %v3773_v27, 5 }
 0x179   : > { %v3766_v45 = vrot.slane %v3764_v41, 4  ;;  %v3769_v25 = vrot.slane %v3767_v46, 5  ;;  %v15866_v18 = vpop.f32.mrf.mxu1  ;;  %v11963_v1 = vcombine.low %v4751_v58, %v4758_v44  ;;  %v2896_v19 = vld [vmem:[#allocation2 + $0xf8] sm:$0xe]  ;;  %v461_v13 = vsel %vm14610_vm4, 0, %v460_v10 }
 0x17a   : > { %19074 = vst [vmem:[#allocation86_spill] sm:$0xff] %v15866_v18  ;;  %v3780_v22 = vrot.slane %v3778_v42, 4  ;;  %v3783_v32 = vrot.slane %v3781_v29, 5  ;;  %v15872_v49 = vld [vmem:[#allocation2 + $0x104] sm:$0x1]  ;;  %v3789_v20 = vrot.slane %v3787_v34, 5  ;;  %v11756_v41 = vcombine.low %v2894_v48, %v15856_v30 }
 0x17b   : > { %v3770_v53 = vor.u32 %v3769_v25, %v3766_v45  ;;  %v2897_v15 = vld [vmem:[#allocation2 + $0x100] sm:$0xe]  ;;  %5165 = vmatprep.mubr.bf16.mxu1 %v11963_v1  ;;  %462 = vst [vmem:[#allocation2 + $0xe4] sm:$0x1] %v461_v13  ;;  %v342_v58 = vsel %vm14600_vm2, 0, %v341_v52  ;;  %v464_v44 = vsel %vm14610_vm4, 0, %v463_v17  ;;  %v11758_v52 = vcombine.low %v2896_v19, %v15868_v54 }
 0x17c   : > { %v3784_v27 = vor.u32 %v3783_v32, %v3780_v22  ;;  %5166 = vmatmul.mubr.bf16.gmra.mxu1 %v11962_v55  ;;  %343 = vst [vmem:[#allocation2 + $0xe8] sm:$0x1] %v342_v58  ;;  %v15879_v45 = vpop.f32.mrf.mxu0  ;;  %v15881_v10 = vpop.f32.mrf.mxu1  ;;  %v3283_v25 = vshrl.u32 %v11756_v41, 16  ;;  %v3285_v34 = vshll.u32 %v11756_v41, 16  ;;  %465 = vst [vmem:[#allocation2 + $0xec] sm:$0x1] %v464_v44  ;;  %v11759_v17 = vcombine.low %v2897_v15, %v15872_v49 }
 0x17d   : > { %v3771_v46 = vrot.slane %v3770_v53, 4  ;;  %19075 = vst [vmem:[#allocation87_spill] sm:$0xff] %v15879_v45  ;;  %19076 = vst [vmem:[#allocation88_spill] sm:$0xff] %v15881_v10  ;;  %v719_v55 = vrot.slane %v15180_v37, 4  ;;  %v2852_v22 = vld [vmem:[#allocation2 + $0xd8] sm:$0xf] }
 0x17e   : > { %v3785_v1 = vrot.slane %v3784_v27, 4  ;;  %v15886_v42 = vpop.f32.mrf.mxu0  ;;  %v3287_v29 = vrot.slane %v3285_v34, 1  ;;  %v3297_v32 = vshrl.u32 %v11758_v52, 16  ;;  %v3299_v13 = vshll.u32 %v11758_v52, 16  ;;  %v15892_v41 = vpop.f32.mrf.mxu1  ;;  %v2856_v27 = vld [vmem:[#allocation2 + $0xf8] sm:$0xf] }
 0x17f   : > { %v3776_v48 = vsel %vm15399_vm12, %v3771_v46, %v3775_v6  ;;  %19077 = vst [vmem:[#allocation89_spill] sm:$0xff] %v15886_v42  ;;  %19078 = vst [vmem:[#allocation90_spill] sm:$0xff] %v15892_v41  ;;  %v15894_v19 = vld [vmem:[#allocation2 + $0x100] sm:$0xf]  ;;  %v3304_v37 = vshrl.u32 %v11759_v17, 16  ;;  %v3306_v34 = vshll.u32 %v11759_v17, 16 }
 0x180   : > { %v3790_v53 = vsel %vm15399_vm12, %v3785_v1, %v3789_v20  ;;  %v3288_v46 = vor.u32 %v3287_v29, %v3283_v25  ;;  %v3301_v10 = vrot.slane %v3299_v13, 1  ;;  %v15896_v42 = vpop.f32.mrf.mxu0  ;;  %v4437_v25 = vld [vmem:[#allocation2 + $0x104] sm:$0x1]  ;;  %v15904_v13 = vpop.f32.mrf.mxu1  ;;  %v2858_v41 = vld [vmem:[#allocation2 + $0x100] sm:$0xf] }
 0x181   : > { %v11883_v58 = vcombine.high %v3776_v48, %v3790_v53  ;;  %v11882_v6 = vcombine.low %v3776_v48, %v3790_v53  ;;  %19079 = vst [vmem:[#allocation91_spill] sm:$0xff] %v15896_v42  ;;  %v3308_v53 = vrot.slane %v3306_v34, 1  ;;  %19080 = vst [vmem:[#allocation92_spill] sm:$0xff] %v15904_v13  ;;  %v15912_v34 = vld [vmem:[#allocation2 + $0x108] sm:$0xf] }
 0x182   : > { %v992_v44 = vld [vmem:[#allocation2 + $0xe4] sm:$0x1]  ;;  %v11832_v20 = vcombine.low %v2852_v22, %v3288_v46  ;;  %v11834_v1 = vsel %vm849_vm5, %v15856_v30, %v3288_v46  ;;  %v3302_v29 = vor.u32 %v3301_v10, %v3297_v32  ;;  %v15908_v30 = vcombine.low %v15894_v19, %v4437_v25  ;;  %v15910_v46 = vpop.f32.mrf.mxu0  ;;  %v4438_v13 = vld [vmem:[#allocation2 + $0x10c] sm:$0x1] }
 0x183   : > { %4299 = vmatprep.mubr.bf16.mxu0 %v11883_v58  ;;  %v993_v15 = vsel %vm14600_vm2, %v719_v55, %v992_v44  ;;  %v15902_v52 = vld [vmem:[#allocation2 + $0xe8] sm:$0xf]  ;;  %v4436_v48 = vld [vmem:[#allocation2 + $0xec] sm:$0x1]  ;;  %v3801_v55 = vshll.u32 %v11834_v1, 16  ;;  %v3309_v22 = vor.u32 %v3308_v53, %v3304_v37  ;;  %19081 = vst [vmem:[#allocation93_spill] sm:$0xff] %v15910_v46 }
 0x184   : > { %4300 = vmatmul.mubr.bf16.gmra.mxu0 %v11882_v6  ;;  %994 = vst [vmem:[#allocation2 + $0xe4] sm:$0x1] %v993_v15  ;;  %v3792_v17 = vshrl.u32 %v11832_v20, 16  ;;  %v3795_v42 = vshll.u32 %v11832_v20, 16  ;;  %v11933_v58 = vcombine.low %v15902_v52, %v4436_v48  ;;  %v11838_v44 = vcombine.low %v2856_v27, %v3302_v29  ;;  %v2895_v6 = vld [vmem:[#allocation2 + $0xe0] sm:$0xe]  ;;  %v15914_v20 = vpop.f32.mrf.mxu1 }
 0x185   : > { %v11841_v32 = vcombine.low %v2858_v41, %v3309_v22  ;;  %19082 = vst [vmem:[#allocation94_spill] sm:$0xff] %v15914_v20  ;;  %v15916_v48 = vld [vmem:[#allocation2 + $0xe0] sm:$0xf]  ;;  %v11840_v27 = vsel %vm849_vm5, %v15868_v54, %v3302_v29  ;;  %v4774_v25 = vshrl.u32 %v15908_v30, 16  ;;  %v3803_v53 = vrot.slane %v3801_v55, 5 }
 0x186   : > { %v3794_v15 = vrot.slane %v3792_v17, 4  ;;  %v3797_v45 = vrot.slane %v3795_v42, 5  ;;  %v4769_v10 = vshll.u32 %v11933_v58, 16  ;;  %v3820_v37 = vshrl.u32 %v11838_v44, 16 }
 0x187   : > { %v3823_v1 = vshll.u32 %v11838_v44, 16  ;;  %v11843_v42 = vsel %vm849_vm5, %v15872_v49, %v3309_v22  ;;  %v3834_v17 = vshrl.u32 %v11841_v32, 16  ;;  %v4776_v41 = vshll.u32 %v15908_v30, 16 }
 0x188   : > { %v3798_v20 = vor.u32 %v3797_v45, %v3794_v15  ;;  %v4767_v43 = vshrl.u32 %v11933_v58, 16  ;;  %v3837_v4 = vshll.u32 %v11841_v32, 16  ;;  %v11935_v54 = vcombine.low %v15912_v34, %v4438_v13  ;;  %v15932_v32 = vld [vmem:[#allocation2 + $0x10c] sm:$0x1]  ;;  %v15934_v13 = vld [vmem:[#allocation2 + $0x114] sm:$0x1] }
 0x189   : > { %v4771_v62 = vrot.slane %v4769_v10, 1  ;;  %v3829_v55 = vshll.u32 %v11840_v27, 16  ;;  %v3822_v22 = vrot.slane %v3820_v37, 4  ;;  %v3825_v30 = vrot.slane %v3823_v1, 5 }
 0x18a   : > { %v3836_v38 = vrot.slane %v3834_v17, 4  ;;  %v3843_v21 = vshll.u32 %v11843_v42, 16  ;;  %v11964_v10 = vcombine.low %v15916_v48, %v15902_v52  ;;  %v3839_v27 = vrot.slane %v3837_v4, 5 }
 0x18b   : > { %v2855_v18 = vld [vmem:[#allocation2 + $0xe4] sm:$0x1]  ;;  %v4778_v60 = vrot.slane %v4776_v41, 1  ;;  %v4772_v17 = vor.u32 %v4771_v62, %v4767_v43  ;;  %v4783_v42 = vshll.u32 %v11935_v54, 16  ;;  %v3799_v23 = vrot.slane %v3798_v20, 4 }
 0x18c   : > { %v15924_v46 = vpop.f32.mrf.mxu0  ;;  %v4435_v14 = vld [vmem:[#allocation2 + $0xe4] sm:$0x1]  ;;  %v11757_v29 = vcombine.low %v2895_v6, %v2855_v18  ;;  %v2898_v6 = vld [vmem:[#allocation2 + $0x108] sm:$0xe]  ;;  %v3826_v36 = vor.u32 %v3825_v30, %v3822_v22  ;;  %v3831_v50 = vrot.slane %v3829_v55, 5  ;;  %v4781_v16 = vshrl.u32 %v11935_v54, 16 }
 0x18d   : > { %19083 = vst [vmem:[#allocation95_spill] sm:$0xff] %v15924_v46  ;;  %v11932_v44 = vcombine.low %v15916_v48, %v4435_v14  ;;  %v3845_v28 = vrot.slane %v3843_v21, 5  ;;  %v4785_v52 = vrot.slane %v4783_v42, 1  ;;  %v3840_v4 = vor.u32 %v3839_v27, %v3836_v38  ;;  %v15946_v43 = vld [vmem:[#allocation2 + $0x110] sm:$0xf] }
 0x18e   : > { %v15928_v59 = vpop.f32.mrf.mxu1  ;;  %v15930_v49 = vpop.f32.mrf.mxu0  ;;  %v3290_v39 = vshrl.u32 %v11757_v29, 16  ;;  %v3292_v45 = vshll.u32 %v11757_v29, 16  ;;  %v4779_v48 = vor.u32 %v4778_v60, %v4774_v25  ;;  %v11760_v41 = vcombine.low %v2898_v6, %v15932_v32  ;;  %v15949_v22 = vld [vmem:[#allocation2 + $0x118] sm:$0xf]  ;;  %v4440_v54 = vld [vmem:[#allocation2 + $0x11c] sm:$0x1] }
 0x18f   : > { %19084 = vst [vmem:[#allocation96_spill] sm:$0xff] %v15928_v59  ;;  %19085 = vst [vmem:[#allocation97_spill] sm:$0xff] %v15930_v49  ;;  %v4760_v15 = vshrl.u32 %v11932_v44, 16  ;;  %v4762_v58 = vshll.u32 %v11932_v44, 16  ;;  %v11761_v62 = vcombine.low %v2899_v57, %v15934_v13  ;;  %v15957_v60 = vsel %vm15399_vm12, %v3799_v23, %v3803_v53  ;;  %v14153_v53 = vld [vmem:[%s18951_s3 + $0xb8] sm:$0xff]  }
 0x190   : > { %v15936_v14 = vpop.f32.mrf.mxu1  ;;  %v3294_v37 = vrot.slane %v3292_v45, 1  ;;  %v15940_v29 = vpop.f32.mrf.mxu0  ;;  %v4439_v45 = vld [vmem:[#allocation2 + $0x114] sm:$0x1]  ;;  %v3827_v57 = vrot.slane %v3826_v36, 4  ;;  %v4786_v25 = vor.u32 %v4785_v52, %v4781_v16  ;;  %v14152_v36 = vld [vmem:[%s18951_s3 + $0xf8] sm:$0xff]   ;;  %v11966_v52 = vcombine.low %v15894_v19, %v15912_v34 }
 0x191   : > { %19086 = vst [vmem:[#allocation98_spill] sm:$0xff] %v15936_v14  ;;  %v4764_v1 = vrot.slane %v4762_v58, 1  ;;  %19087 = vst [vmem:[#allocation99_spill] sm:$0xff] %v15940_v29  ;;  %v3318_v6 = vshrl.u32 %v11761_v62, 16  ;;  %v3320_v27 = vshll.u32 %v11761_v62, 16  ;;  %v11936_v23 = vcombine.low %v15946_v43, %v4439_v45  ;;  %13347 = vmatprep.subr.bf16.mxu1 %v14152_v36 }
 0x192   : > { %v15942_v44 = vpop.f32.mrf.mxu1  ;;  %v3295_v2 = vor.u32 %v3294_v37, %v3290_v39  ;;  %v15951_v39 = vpop.f32.mrf.mxu0  ;;  %13348 = vmatpush3.bf16.msra.mxu1 %v14153_v53  ;;  %v2901_v36 = vld [vmem:[#allocation2 + $0x120] sm:$0xe]  ;;  %v2870_v29 = vld [vmem:[#allocation2 + $0x130] sm:$0xf] }
 0x193   : > { %19088 = vst [vmem:[#allocation100_spill] sm:$0xff] %v15942_v44  ;;  %v4765_v63 = vor.u32 %v4764_v1, %v4760_v15  ;;  %19089 = vst [vmem:[#allocation101_spill] sm:$0xff] %v15951_v39  ;;  %v2860_v15 = vld [vmem:[#allocation2 + $0x108] sm:$0xf]  ;;  %v15999_v53 = vld [vmem:[#allocation2 + $0x120] sm:$0xf] }
 0x194   : > { %v11835_v58 = vcombine.low %v2854_v9, %v3295_v2  ;;  %v11837_v47 = vsel %vm849_vm5, %v2855_v18, %v3295_v2  ;;  %v15953_v21 = vpop.f32.mrf.mxu1  ;;  %v3311_v9 = vshrl.u32 %v11760_v41, 16  ;;  %v3313_v2 = vshll.u32 %v11760_v41, 16 }
 0x195   : > { %v11965_v20 = vcombine.low %v4765_v63, %v4772_v17  ;;  %19090 = vst [vmem:[#allocation102_spill] sm:$0xff] %v15953_v21  ;;  %v3815_v38 = vshll.u32 %v11837_v47, 16  ;;  %v3841_v63 = vrot.slane %v3840_v4, 4  ;;  %v11967_v18 = vcombine.low %v4779_v48, %v4786_v25  ;;  %v2862_v17 = vld [vmem:[#allocation2 + $0x110] sm:$0xf] }
 0x196   : > { %v3806_v55 = vshrl.u32 %v11835_v58, 16  ;;  %v3809_v30 = vshll.u32 %v11835_v58, 16  ;;  %v3315_v42 = vrot.slane %v3313_v2, 1  ;;  %v3322_v4 = vrot.slane %v3320_v27, 1 }
 0x197   : > { %5173 = vmatprep.mubr.bf16.mxu1 %v11965_v20  ;;  %v11937_v48 = vcombine.low %v15949_v22, %v4440_v54  ;;  %v3817_v62 = vrot.slane %v3815_v38, 5  ;;  %v4790_v58 = vshll.u32 %v11936_v23, 16 }
 0x198   : > { %5174 = vmatmul.mubr.bf16.gmra.mxu1 %v11964_v10  ;;  %v3808_v37 = vrot.slane %v3806_v55, 4  ;;  %v3811_v1 = vrot.slane %v3809_v30, 5  ;;  %v15972_v10 = vsel %vm15399_vm12, %v3827_v57, %v3831_v50  ;;  %v3316_v45 = vor.u32 %v3315_v42, %v3311_v9  ;;  %v15995_v42 = vld [vmem:[#allocation2 + $0x11c] sm:$0x1] }
 0x199   : > { %5181 = vmatprep.mubr.bf16.mxu1 %v11967_v18  ;;  %v15983_v50 = vsel %vm15399_vm12, %v3841_v63, %v3845_v28  ;;  %v3323_v57 = vor.u32 %v3322_v4, %v3318_v6  ;;  %v4788_v55 = vshrl.u32 %v11936_v23, 16  ;;  %v4797_v30 = vshll.u32 %v11937_v48, 16  ;;  %v2900_v23 = vld [vmem:[#allocation2 + $0x118] sm:$0xe] }
 0x19a   : > { %v3812_v41 = vor.u32 %v3811_v1, %v3808_v37  ;;  %v11844_v34 = vcombine.low %v2860_v15, %v3316_v45  ;;  %v11846_v54 = vsel %vm849_vm5, %v15932_v32, %v3316_v45  ;;  %v4795_v38 = vshrl.u32 %v11937_v48, 16  ;;  %v15997_v32 = vld [vmem:[#allocation2 + $0x124] sm:$0x1] }
 0x19b   : > { %v15960_v47 = vpop.f32.mrf.mxu0  ;;  %v11847_v18 = vcombine.low %v2862_v17, %v3323_v57  ;;  %v11849_v27 = vsel %vm849_vm5, %v15934_v13, %v3323_v57  ;;  %v4792_v28 = vrot.slane %v4790_v58, 1  ;;  %v4799_v63 = vrot.slane %v4797_v30, 1  ;;  %v16001_v17 = vld [vmem:[#allocation2 + $0x124] sm:$0x1]  ;;  %v16011_v58 = vld [vmem:[#allocation2 + $0x128] sm:$0xf] }
 0x19c   : > { %v15962_v16 = vpop.f32.mrf.mxu1  ;;  %v3813_v19 = vrot.slane %v3812_v41, 4  ;;  %v3848_v37 = vshrl.u32 %v11844_v34, 16  ;;  %v3851_v1 = vshll.u32 %v11844_v34, 16  ;;  %v3857_v15 = vshll.u32 %v11846_v54, 16  ;;  %v16013_v57 = vld [vmem:[#allocation2 + $0x12c] sm:$0x1] }
 0x19d   : > { %v15977_v20 = vpop.f32.mrf.mxu0  ;;  %v3862_v45 = vshrl.u32 %v11847_v18, 16  ;;  %19091 = vst [vmem:[#allocation103_spill] sm:$0xff] %v16013_v57  ;;  %v3865_v34 = vshll.u32 %v11847_v18, 16  ;;  %v3871_v54 = vshll.u32 %v11849_v27, 16  ;;  %v4793_v0 = vor.u32 %v4792_v28, %v4788_v55 }
 0x19e   : > { %v15979_v25 = vpop.f32.mrf.mxu1  ;;  %v3818_v6 = vsel %vm15399_vm12, %v3813_v19, %v3817_v62  ;;  %v11887_v62 = vcombine.high %v15972_v10, %v15983_v50  ;;  %v3850_v30 = vrot.slane %v3848_v37, 4  ;;  %v3853_v19 = vrot.slane %v3851_v1, 5 }
 0x19f   : > { %v15987_v9 = vpop.f32.mrf.mxu0  ;;  %v11885_v48 = vcombine.high %v15957_v60, %v3818_v6  ;;  %v11884_v41 = vcombine.low %v15957_v60, %v3818_v6  ;;  %v11886_v60 = vcombine.low %v15972_v10, %v15983_v50  ;;  %v3864_v6 = vrot.slane %v3862_v45, 4 }
 0x1a0   : > { %v15989_v2 = vpop.f32.mrf.mxu1  ;;  %5182 = vmatmul.mubr.bf16.gmra.mxu1 %v11966_v52  ;;  %v4800_v52 = vor.u32 %v4799_v63, %v4795_v38  ;;  %v3854_v24 = vor.u32 %v3853_v19, %v3850_v30  ;;  %v3859_v8 = vrot.slane %v3857_v15, 5  ;;  %v3867_v7 = vrot.slane %v3865_v34, 5 }
 0x1a1   : > { %v16003_v4 = vpop.f32.mrf.mxu0  ;;  %4307 = vmatprep.mubr.bf16.mxu0 %v11885_v48  ;;  %v11968_v37 = vcombine.low %v15946_v43, %v15949_v22  ;;  %v11762_v27 = vcombine.low %v2900_v23, %v15995_v42  ;;  %v11763_v1 = vcombine.low %v2901_v36, %v15997_v32  ;;  %v11938_v48 = vcombine.low %v15999_v53, %v16001_v17  ;;  %v14154_v23 = vld [vmem:[%s18951_s3 + $0xf0] sm:$0xff]  }
 0x1a2   : > { %v16005_v13 = vpop.f32.mrf.mxu1  ;;  %4308 = vmatmul.mubr.bf16.gmra.mxu0 %v11884_v41  ;;  %v11969_v18 = vcombine.low %v4793_v0, %v4800_v52  ;;  %v3855_v10 = vrot.slane %v3854_v24, 4  ;;  %v3868_v50 = vor.u32 %v3867_v7, %v3864_v6  ;;  %v3873_v55 = vrot.slane %v3871_v54, 5  ;;  %v14155_v7 = vld [vmem:[%s18951_s3 + $0xb0] sm:$0xff]   ;;  %v2864_v41 = vld [vmem:[#allocation2 + $0x118] sm:$0xf]  ;;  %13349 = vmatprep.subr.bf16.mxu1 %v14154_v23 }
 0x1a3   : > { %v16015_v12 = vpop.f32.mrf.mxu0  ;;  %4315 = vmatprep.mubr.bf16.mxu0 %v11887_v62  ;;  %v11939_v38 = vcombine.low %v16011_v58, %v16013_v57  ;;  %v3325_v43 = vshrl.u32 %v11762_v27, 16  ;;  %v3327_v0 = vshll.u32 %v11762_v27, 16  ;;  %v3332_v22 = vshrl.u32 %v11763_v1, 16  ;;  %v2866_v62 = vld [vmem:[#allocation2 + $0x120] sm:$0xf]  ;;  %13350 = vmatpush3.bf16.msra.mxu1 %v14155_v7 }
 0x1a4   : > { %v16017_v33 = vpop.f32.mrf.mxu1  ;;  %5189 = vmatprep.mubr.bf16.mxu1 %v11969_v18  ;;  %v3334_v15 = vshll.u32 %v11763_v1, 16  ;;  %v3860_v24 = vsel %vm15399_vm12, %v3855_v10, %v3859_v8  ;;  %v3869_v36 = vrot.slane %v3868_v50, 4  ;;  %v4802_v45 = vshrl.u32 %v11938_v48, 16 }
 0x1a5   : > { %v16029_v28 = vpop.f32.mrf.mxu0  ;;  %v4804_v30 = vshll.u32 %v11938_v48, 16  ;;  %v3329_v19 = vrot.slane %v3327_v0, 1  ;;  %v4811_v54 = vshll.u32 %v11939_v38, 16  ;;  %v4809_v18 = vshrl.u32 %v11939_v38, 16  ;;  %v490_v38 = vld [vmem:[#allocation2 + $0x134] sm:$0x1] }
 0x1a6   : > { %v16031_v63 = vpop.f32.mrf.mxu1  ;;  %v3336_v34 = vrot.slane %v3334_v15, 1  ;;  %v3874_v6 = vsel %vm15399_vm12, %v3869_v36, %v3873_v55  ;;  %v16051_v36 = vld [vmem:[#allocation2 + $0x12c] sm:$0x1] }
 0x1a7   : > { %v4806_v52 = vrot.slane %v4804_v30, 1  ;;  %v16043_v27 = vpop.f32.mrf.mxu0  ;;  %v11889_v8 = vcombine.high %v3860_v24, %v3874_v6  ;;  %v3330_v10 = vor.u32 %v3329_v19, %v3325_v43  ;;  %v2902_v30 = vld [vmem:[#allocation2 + $0x128] sm:$0xe] }
 0x1a8   : > { %5190 = vmatmul.mubr.bf16.gmra.mxu1 %v11968_v37  ;;  %v16045_v1 = vpop.f32.mrf.mxu1  ;;  %v3337_v50 = vor.u32 %v3336_v34, %v3332_v22  ;;  %v4813_v37 = vrot.slane %v4811_v54, 1  ;;  %v371_v22 = vld [vmem:[#allocation2 + $0x138] sm:$0x1]  ;;  %v11888_v54 = vcombine.low %v3860_v24, %v3874_v6 }
 0x1a9   : > { %v4807_v48 = vor.u32 %v4806_v52, %v4802_v45  ;;  %v11850_v0 = vcombine.low %v2864_v41, %v3330_v10  ;;  %v11852_v15 = vsel %vm849_vm5, %v15995_v42, %v3330_v10  ;;  %v493_v45 = vld [vmem:[#allocation2 + $0x13c] sm:$0x1]  ;;  %v16055_v41 = vpop.f32.mrf.mxu0  ;;  %v372_v24 = vsel %vm14600_vm2, 0, %v371_v22 }
 0x1aa   : > { %4316 = vmatmul.mubr.bf16.gmra.mxu0 %v11886_v60  ;;  %v11853_v23 = vcombine.low %v2866_v62, %v3337_v50  ;;  %v11855_v55 = vsel %vm849_vm5, %v15997_v32, %v3337_v50  ;;  %v3885_v7 = vshll.u32 %v11852_v15, 16  ;;  %v4814_v43 = vor.u32 %v4813_v37, %v4809_v18  ;;  %v16057_v19 = vpop.f32.mrf.mxu1  ;;  %373 = vst [vmem:[#allocation2 + $0x138] sm:$0x1] %v372_v24  ;;  %v2903_v24 = vld [vmem:[#allocation2 + $0x130] sm:$0xe] }
 0x1ab   : > { %4323 = vmatprep.mubr.bf16.mxu0 %v11889_v8  ;;  %v3899_v56 = vshll.u32 %v11855_v55, 16  ;;  %v11970_v60 = vcombine.low %v15999_v53, %v16011_v58  ;;  %v3876_v42 = vshrl.u32 %v11850_v0, 16  ;;  %v3879_v62 = vshll.u32 %v11850_v0, 16 }
 0x1ac   : > { %v3890_v34 = vshrl.u32 %v11853_v23, 16  ;;  %v3893_v32 = vshll.u32 %v11853_v23, 16  ;;  %v3887_v52 = vrot.slane %v3885_v7, 5  ;;  %v11971_v8 = vcombine.low %v4807_v48, %v4814_v43 }
 0x1ad   : > { %v3878_v10 = vrot.slane %v3876_v42, 4  ;;  %v3881_v50 = vrot.slane %v3879_v62, 5  ;;  %v3901_v37 = vrot.slane %v3899_v56, 5  ;;  %v491_v53 = vsel %vm14610_vm4, 0, %v490_v38 }
 0x1ae   : > { %v3892_v15 = vrot.slane %v3890_v34, 4  ;;  %v3895_v18 = vrot.slane %v3893_v32, 5  ;;  %5197 = vmatprep.mubr.bf16.mxu1 %v11971_v8  ;;  %v11764_v58 = vcombine.low %v2902_v30, %v16051_v36  ;;  %492 = vst [vmem:[#allocation2 + $0x134] sm:$0x1] %v491_v53  ;;  %v494_v56 = vsel %vm14610_vm4, 0, %v493_v45 }
 0x1af   : > { %v3882_v0 = vor.u32 %v3881_v50, %v3878_v10  ;;  %495 = vst [vmem:[#allocation2 + $0x13c] sm:$0x1] %v494_v56 }
 0x1b0   : > { %v3896_v23 = vor.u32 %v3895_v18, %v3892_v15  ;;  %5198 = vmatmul.mubr.bf16.gmra.mxu1 %v11970_v60  ;;  %v3339_v6 = vshrl.u32 %v11764_v58, 16  ;;  %v3341_v48 = vshll.u32 %v11764_v58, 16 }
 0x1b1   : > { %v3883_v7 = vrot.slane %v3882_v0, 4  ;;  %v4412_v15 = vld [vmem:[#allocation2 + $0x138] sm:$0xf]  ;;  %v14156_v0 = vld [vmem:[%s18951_s3 + $0xe8] sm:$0xff]  }
 0x1b2   : > { %v16064_v26 = vpop.f32.mrf.mxu1  ;;  %4324 = vmatmul.mubr.bf16.gmra.mxu0 %v11888_v54  ;;  %v3897_v43 = vrot.slane %v3896_v23, 4  ;;  %v3343_v42 = vrot.slane %v3341_v48, 1  ;;  %v2868_v54 = vld [vmem:[#allocation2 + $0x128] sm:$0xf]  ;;  %13351 = vmatprep.subr.bf16.mxu1 %v14156_v0 }
 0x1b3   : > { %v16062_v55 = vpop.f32.mrf.mxu0  ;;  %v3888_v60 = vsel %vm15399_vm12, %v3883_v7, %v3887_v52  ;;  %v14157_v23 = vld [vmem:[%s18951_s3 + $0xa8] sm:$0xff]  }
 0x1b4   : > { %v16072_v30 = vpop.f32.mrf.mxu1  ;;  %v3902_v22 = vsel %vm15399_vm12, %v3897_v43, %v3901_v37  ;;  %v3344_v8 = vor.u32 %v3343_v42, %v3339_v6  ;;  %v4411_v43 = vld [vmem:[#allocation2 + $0x130] sm:$0xf]  ;;  %13352 = vmatpush3.bf16.msra.mxu1 %v14157_v23 }
 0x1b5   : > { %v16070_v38 = vpop.f32.mrf.mxu0  ;;  %v11890_v45 = vcombine.low %v3888_v60, %v3902_v22  ;;  %v11891_v62 = vcombine.high %v3888_v60, %v3902_v22  ;;  %v1040_v10 = vld [vmem:[#allocation2 + $0x134] sm:$0x1]  ;;  %v11972_v46 = vcombine.low %v4411_v43, %v4412_v15 }
 0x1b6   : > { %v16081_v32 = vpop.f32.mrf.mxu1  ;;  %v1041_v50 = vsel %vm14600_vm2, %v783_v40, %v1040_v10  ;;  %v16085_v52 = vld [vmem:[#allocation2 + $0x13c] sm:$0x1]  ;;  %v11856_v53 = vcombine.low %v2868_v54, %v3344_v8 }
 0x1b7   : > { %v16079_v34 = vpop.f32.mrf.mxu0  ;;  %4331 = vmatprep.mubr.bf16.mxu0 %v11891_v62  ;;  %19092 = vst [vmem:[#allocation104_spill] sm:$0xff] %v16085_v52  ;;  %1042 = vst [vmem:[#allocation2 + $0x134] sm:$0x1] %v1041_v50  ;;  %v11941_v61 = vcombine.low %v4412_v15, %v16085_v52 }
 0x1b8   : > { %v16090_v37 = vpop.f32.mrf.mxu1  ;;  %v3904_v48 = vshrl.u32 %v11856_v53, 16  ;;  %v3907_v7 = vshll.u32 %v11856_v53, 16 }
 0x1b9   : > { %v16088_v18 = vpop.f32.mrf.mxu0  ;;  %v4825_v58 = vshll.u32 %v11941_v61, 16  ;;  %v4823_v42 = vshrl.u32 %v11941_v61, 16 }
 0x1ba   : > { %4332 = vmatmul.mubr.bf16.gmra.mxu0 %v11890_v45  ;;  %v3906_v5 = vrot.slane %v3904_v48, 4  ;;  %v3909_v21 = vrot.slane %v3907_v7, 5  ;;  %v5246_v48 = vld [vmem:[#allocation2 + $0x10] sm:$0xe]  ;;  %v5247_v7 = vld [vmem:[#allocation2 + $0x18] sm:$0xe] }
 0x1bb   : > { %v4827_v60 = vrot.slane %v4825_v58, 1  ;;  %v11858_v58 = vsel %vm849_vm5, %v16051_v36, %v3344_v8  ;;  %v11991_v15 = vrot.slane %v5247_v7, 9  ;;  %v5250_v7 = vld [vmem:[#allocation2 + $0x30] sm:$0xe] }
 0x1bc   : > { %v3910_v36 = vor.u32 %v3909_v21, %v3906_v5 }
 0x1be   : > { %v2871_v45 = vld [vmem:[#allocation2 + $0x134] sm:$0x1]  ;;  %v3911_v5 = vrot.slane %v3910_v36, 4 }
 0x1bf   : > { %v16098_v56 = vpop.f32.mrf.mxu0  ;;  %v16100_v6 = vpop.f32.mrf.mxu1  ;;  %v16106_v62 = vld [vmem:[#allocation2 + $0x134] sm:$0x1]  ;;  %v11765_v54 = vcombine.low %v2903_v24, %v2871_v45  ;;  %v4828_v24 = vor.u32 %v4827_v60, %v4823_v42 }
 0x1c0   : > { %19093 = vst [vmem:[#allocation105_spill] sm:$0xff] %v16106_v62  ;;  %v11940_v10 = vcombine.low %v4411_v43, %v16106_v62 }
 0x1c1   : > { %v16102_v22 = vpop.f32.mrf.mxu0  ;;  %v16104_v40 = vpop.f32.mrf.mxu1  ;;  %v3346_v0 = vshrl.u32 %v11765_v54, 16  ;;  %v3348_v53 = vshll.u32 %v11765_v54, 16  ;;  %v3913_v54 = vshll.u32 %v11858_v58, 16 }
 0x1c2   : > { %v4816_v31 = vshrl.u32 %v11940_v10, 16  ;;  %v4818_v23 = vshll.u32 %v11940_v10, 16 }
 0x1c3   : > { %v16109_v50 = vpop.f32.mrf.mxu0  ;;  %v16111_v35 = vpop.f32.mrf.mxu1  ;;  %v3350_v51 = vrot.slane %v3348_v53, 1 }
 0x1c4   : > { %v4820_v44 = vrot.slane %v4818_v23, 1 }
 0x1c5   : > { %v16113_v61 = vpop.f32.mrf.mxu0  ;;  %v16119_v14 = vpop.f32.mrf.mxu1  ;;  %v3351_v59 = vor.u32 %v3350_v51, %v3346_v0  ;;  %v11990_v51 = vrot.slane %v5246_v48, 9 }
 0x1c6   : > { %v4821_v49 = vor.u32 %v4820_v44, %v4816_v31  ;;  %v14385_v31 = vld [vmem:[#allocation2 + $0x14] sm:$0x1] }
 0x1c7   : > { %v16117_v39 = vpop.f32.mrf.mxu0  ;;  %v11859_v62 = vcombine.low %v2870_v29, %v3351_v59  ;;  %v11861_v52 = vsel %vm849_vm5, %v2871_v45, %v3351_v59  ;;  %v5312_v44 = vrot.slane %v14385_v31, 5  ;;  %v14386_v29 = vld [vmem:[#allocation2 + $0x1c] sm:$0x1] }
 0x1c8   : > { %v11973_v8 = vcombine.low %v4821_v49, %v4828_v24  ;;  %v3927_v57 = vshll.u32 %v11861_v52, 16  ;;  %v5316_v43 = vrot.slane %v14386_v29, 5  ;;  %v3915_v49 = vrot.slane %v3913_v54, 5  ;;  %v5248_v24 = vld [vmem:[#allocation2 + $0x20] sm:$0xe] }
 0x1c9   : > { %v16121_v10 = vpop.f32.mrf.mxu1  ;;  %v16124_v53 = vpop.f32.mrf.mxu0  ;;  %v3918_v60 = vshrl.u32 %v11859_v62, 16  ;;  %v3921_v23 = vshll.u32 %v11859_v62, 16  ;;  %v14387_v29 = vld [vmem:[#allocation2 + $0x24] sm:$0x1] }
 0x1ca   : > { %19094 = vst [vmem:[#allocation106_spill] sm:$0xff] %v16121_v10  ;;  %5205 = vmatprep.mubr.bf16.mxu1 %v11973_v8  ;;  %v3929_v52 = vrot.slane %v3927_v57, 5  ;;  %v5313_v8 = vsel %vm14694_vm9, %v11990_v51, %v5312_v44  ;;  %v5317_v48 = vsel %vm14694_vm9, %v11991_v15, %v5316_v43  ;;  %v3916_v54 = vsel %vm15399_vm12, %v3911_v5, %v3915_v49  ;;  %v14390_v10 = vld [vmem:[#allocation2 + $0x3c] sm:$0x1] }
 0x1cb   : > { %v16126_v42 = vpop.f32.mrf.mxu1  ;;  %5206 = vmatmul.mubr.bf16.gmra.mxu1 %v11972_v46  ;;  %v3920_v21 = vrot.slane %v3918_v60, 4  ;;  %v3923_v45 = vrot.slane %v3921_v23, 5  ;;  %v16130_v0 = vpop.f32.mrf.mxu0  ;;  %v5249_v46 = vld [vmem:[#allocation2 + $0x28] sm:$0xe]  ;;  %v5251_v60 = vld [vmem:[#allocation2 + $0x38] sm:$0xe]  ;;  %v12022_v15 = vcombine.low %v5313_v8, %v5317_v48  ;;  %v12968_v8 = vadd.f32 %v16003_v4, %v15987_v9 }
 0x1cc   : > { %19095 = vst [vmem:[#allocation107_spill] sm:$0xff] %v16126_v42  ;;  %19097 = vst [vmem:[#allocation109_spill] sm:$0xff] %v16130_v0  ;;  %v5320_v57 = vrot.slane %v14387_v29, 5  ;;  %v11994_v43 = vrot.slane %v5250_v7, 9  ;;  %v5252_v29 = vld [vmem:[#allocation2 + $0x40] sm:$0xe]  ;;  %v13080_v48 = vadd.f32 %v16005_v13, %v15989_v2 }
 0x1cd   : > { %v16128_v59 = vpop.f32.mrf.mxu1  ;;  %v3924_v62 = vor.u32 %v3923_v45, %v3920_v21  ;;  %v16142_v23 = vpop.f32.mrf.mxu0  ;;  %v14388_v21 = vld [vmem:[#allocation2 + $0x2c] sm:$0x1]  ;;  %v5254_v9 = vld [vmem:[#allocation2 + $0x60] sm:$0xe] }
 0x1ce   : > { %19096 = vst [vmem:[#allocation108_spill] sm:$0xff] %v16128_v59  ;;  %19100 = vst [vmem:[#allocation112_spill] sm:$0xff] %v16142_v23  ;;  %v5324_v45 = vrot.slane %v14388_v21, 5  ;;  %v11993_v59 = vrot.slane %v5249_v46, 9  ;;  %v5332_v23 = vrot.slane %v14390_v10, 5  ;;  %v16172_v2 = vadd.f32 %v13080_v48, %v12968_v8 }
 0x1cf   : > { %v16132_v58 = vpop.f32.mrf.mxu1  ;;  %v3925_v36 = vrot.slane %v3924_v62, 4  ;;  %v11995_v62 = vrot.slane %v5251_v60, 9  ;;  %v5255_v60 = vld [vmem:[#allocation2 + $0x68] sm:$0xe]  ;;  %v13089_v48 = vadd.f32 %v16072_v30, %v16064_v26 }
 0x1d0   : > { %19098 = vst [vmem:[#allocation110_spill] sm:$0xff] %v16132_v58  ;;  %v11992_v58 = vrot.slane %v5248_v24, 9  ;;  %v12965_v24 = vadd.f32 %v15977_v20, %v15960_v47  ;;  %v5325_v47 = vsel %vm14694_vm9, %v11993_v59, %v5324_v45  ;;  %v5253_v20 = vld [vmem:[#allocation2 + $0x48] sm:$0xe]  ;;  %v11996_v59 = vrot.slane %v5252_v29, 9 }
 0x1d1   : > { %v16138_v31 = vpop.f32.mrf.mxu1  ;;  %v3930_v44 = vsel %vm15399_vm12, %v3925_v36, %v3929_v52  ;;  %v13077_v52 = vadd.f32 %v15979_v25, %v15962_v16  ;;  %v5333_v25 = vsel %vm14694_vm9, %v11995_v62, %v5332_v23  ;;  %v11997_v21 = vrot.slane %v5253_v20, 9  ;;  %v14394_v29 = vld [vmem:[#allocation2 + $0x6c] sm:$0x1] }
 0x1d2   : > { %19099 = vst [vmem:[#allocation111_spill] sm:$0xff] %v16138_v31  ;;  %v14389_v31 = vld [vmem:[#allocation2 + $0x34] sm:$0x1]  ;;  %v11892_v5 = vcombine.low %v3916_v54, %v3930_v44  ;;  %v11893_v49 = vcombine.high %v3916_v54, %v3930_v44  ;;  %v5321_v10 = vsel %vm14694_vm9, %v11992_v58, %v5320_v57  ;;  %v14391_v58 = vld [vmem:[#allocation2 + $0x4c] sm:$0x1]  ;;  %v13083_v23 = vadd.f32 %v16031_v63, %v16017_v33 }
 0x1d3   : > { %v16144_v51 = vpop.f32.mrf.mxu1  ;;  %v5328_v42 = vrot.slane %v14389_v31, 5  ;;  %v16170_v4 = vadd.f32 %v13077_v52, %v12965_v24  ;;  %v5340_v31 = vrot.slane %v14391_v58, 5  ;;  %v14392_v54 = vld [vmem:[#allocation2 + $0x44] sm:$0x1]  ;;  %v12974_v45 = vadd.f32 %v16055_v41, %v16043_v27  ;;  %v5256_v41 = vld [vmem:[#allocation2 + $0x70] sm:$0xe] }
 0x1d4   : > { %4339 = vmatprep.mubr.bf16.mxu0 %v11893_v49  ;;  %v5336_v36 = vrot.slane %v14392_v54, 5  ;;  %v12023_v44 = vcombine.low %v5321_v10, %v5325_v47  ;;  %v14393_v49 = vld [vmem:[#allocation2 + $0x64] sm:$0x1]  ;;  %v11999_v24 = vrot.slane %v5255_v60, 9  ;;  %v5348_v52 = vrot.slane %v14394_v29, 5 }
 0x1d5   : > { %v16148_v0 = vpop.f32.mrf.mxu1  ;;  %v16152_v46 = vpop.f32.mrf.mxu0  ;;  %4340 = vmatmul.mubr.bf16.gmra.mxu0 %v11892_v5  ;;  %v5329_v16 = vsel %vm14694_vm9, %v11994_v43, %v5328_v42  ;;  %v12971_v42 = vadd.f32 %v16029_v28, %v16015_v12  ;;  %v11998_v43 = vrot.slane %v5254_v9, 9  ;;  %v13086_v5 = vadd.f32 %v16057_v19, %v16045_v1  ;;  %v5257_v19 = vld [vmem:[#allocation2 + $0x78] sm:$0xe]  ;;  %v14395_v58 = vld [vmem:[#allocation2 + $0x74] sm:$0x1] }
 0x1d6   : > { %13835 = vmatprep.mubr.bf16.mxu0 %v12022_v15  ;;  %v12024_v15 = vcombine.low %v5329_v16, %v5333_v25  ;;  %v5344_v62 = vrot.slane %v14393_v49, 5  ;;  %v5337_v63 = vsel %vm14694_vm9, %v11996_v59, %v5336_v36  ;;  %v5341_v27 = vsel %vm14694_vm9, %v11997_v21, %v5340_v31  ;;  %v5258_v25 = vld [vmem:[#allocation2 + $0x80] sm:$0xe]  ;;  %v5259_v31 = vld [vmem:[#allocation2 + $0x88] sm:$0xe] }
 0x1d7   : > { %v16164_v7 = vpop.f32.mrf.mxu0  ;;  %v16174_v13 = vpop.f32.mrf.mxu1  ;;  %v16186_v8 = vadd.f32 %v13083_v23, %v12971_v42  ;;  %v16190_v28 = vadd.f32 %v13086_v5, %v12974_v45  ;;  %v12977_v1 = vadd.f32 %v16070_v38, %v16062_v55  ;;  %v12980_v10 = vadd.f32 %v16088_v18, %v16079_v34  ;;  %v14396_v36 = vld [vmem:[#allocation2 + $0x7c] sm:$0x1]  ;;  %v14397_v42 = vld [vmem:[#allocation2 + $0x84] sm:$0x1]  ;;  %v14398_v5 = vld [vmem:[#allocation2 + $0x8c] sm:$0x1] }
 0x1d8   : > { %v5345_v47 = vsel %vm14694_vm9, %v11998_v43, %v5344_v62  ;;  %v5349_v20 = vsel %vm14694_vm9, %v11999_v24, %v5348_v52  ;;  %v13092_v16 = vadd.f32 %v16090_v37, %v16081_v32  ;;  %v12025_v38 = vcombine.low %v5337_v63, %v5341_v27  ;;  %v5260_v52 = vld [vmem:[#allocation2 + $0x90] sm:$0xe]  ;;  %v5263_v63 = vld [vmem:[#allocation2 + $0xb8] sm:$0xe]  ;;  %v14399_v27 = vld [vmem:[#allocation2 + $0x9c] sm:$0x1] }
 0x1d9   : > { %v16176_v57 = vpop.f32.mrf.mxu0  ;;  %v16212_v9 = vadd.f32 %v13089_v48, %v12977_v1  ;;  %v12000_v30 = vrot.slane %v5256_v41, 9  ;;  %v5352_v34 = vrot.slane %v14395_v58, 5  ;;  %v12001_v18 = vrot.slane %v5257_v19, 9  ;;  %v14402_v58 = vld [vmem:[#allocation2 + $0xbc] sm:$0x1] }
 0x1da   : > { %v16214_v59 = vadd.f32 %v13092_v16, %v12980_v10  ;;  %v12026_v54 = vcombine.low %v5345_v47, %v5349_v20  ;;  %v5356_v60 = vrot.slane %v14396_v36, 5  ;;  %v12983_v32 = vadd.f32 %v16102_v22, %v16098_v56  ;;  %v14400_v10 = vld [vmem:[#allocation2 + $0x94] sm:$0x1] }
 0x1db   : > { %v16188_v12 = vpop.f32.mrf.mxu1  ;;  %v16192_v33 = vpop.f32.mrf.mxu0  ;;  %v13095_v37 = vadd.f32 %v16104_v40, %v16100_v6  ;;  %v12002_v21 = vrot.slane %v5258_v25, 9  ;;  %v5360_v23 = vrot.slane %v14397_v42, 5  ;;  %v12986_v45 = vadd.f32 %v16113_v61, %v16109_v50  ;;  %v14158_v40 = vld [vmem:[%s18951_s3 + $0xe0] sm:$0xff]   ;;  %v14401_v25 = vld [vmem:[#allocation2 + $0xb4] sm:$0x1] }
 0x1dc   : > { %v12003_v43 = vrot.slane %v5259_v31, 9  ;;  %v5364_v49 = vrot.slane %v14398_v5, 5  ;;  %v16230_v56 = vadd.f32 %v16124_v53, %v16117_v39  ;;  %v5353_v39 = vsel %vm14694_vm9, %v12000_v30, %v5352_v34  ;;  %13353 = vmatprep.subr.bf16.mxu1 %v14158_v40  ;;  %v5265_v42 = vld [vmem:[#allocation2 + $0xc8] sm:$0xe]  ;;  %v14403_v40 = vld [vmem:[#allocation2 + $0xc4] sm:$0x1] }
 0x1dd   : > { %13836 = vmatmul.mubr.bf16.vlgmr.msra.gmra.mxu0 %v12023_v44  ;;  %v16210_v55 = vpop.f32.mrf.mxu1  ;;  %v13098_v44 = vadd.f32 %v16119_v14, %v16111_v35  ;;  %v16226_v62 = vadd.f32 %v13095_v37, %v12983_v32  ;;  %v14159_v35 = vld [vmem:[%s18951_s3 + $0xa0] sm:$0xff]   ;;  %v16242_v14 = vadd.f32 %v16164_v7, %v16152_v46  ;;  %v5357_v50 = vsel %vm14694_vm9, %v12001_v18, %v5356_v60  ;;  %v5261_v46 = vld [vmem:[#allocation2 + $0x98] sm:$0xe]  ;;  %v5262_v7 = vld [vmem:[#allocation2 + $0xb0] sm:$0xe] }
 0x1de   : > { %13839 = vmatprep.mubr.bf16.mxu0 %v12024_v15  ;;  %v5361_v24 = vsel %vm14694_vm9, %v12002_v21, %v5360_v23  ;;  %v5365_v29 = vsel %vm14694_vm9, %v12003_v43, %v5364_v49  ;;  %13354 = vmatpush3.bf16.msra.mxu1 %v14159_v35  ;;  %v5372_v1 = vrot.slane %v14399_v27, 5  ;;  %v12027_v41 = vcombine.low %v5353_v39, %v5357_v50  ;;  %v5264_v60 = vld [vmem:[#allocation2 + $0xc0] sm:$0xe]  ;;  %v5266_v23 = vld [vmem:[#allocation2 + $0xd0] sm:$0xe] }
 0x1df   : > { %v16224_v15 = vpop.f32.mrf.mxu1  ;;  %19101 = vst [vmem:[#allocation113_spill] sm:$0xff] %v16226_v62  ;;  %v16232_v22 = vadd.f32 %v13098_v44, %v12986_v45  ;;  %v12028_v19 = vcombine.low %v5361_v24, %v5365_v29  ;;  %v12004_v48 = vrot.slane %v5260_v52, 9  ;;  %v5368_v47 = vrot.slane %v14400_v10, 5  ;;  %v5267_v45 = vld [vmem:[#allocation2 + $0xd8] sm:$0xe] }
 0x1e0   : > { %v12005_v20 = vrot.slane %v5261_v46, 9  ;;  %v12007_v30 = vrot.slane %v5263_v63, 9  ;;  %v5380_v34 = vrot.slane %v14402_v58, 5  ;;  %v12008_v49 = vrot.slane %v5264_v60, 9  ;;  %v14404_v50 = vld [vmem:[#allocation2 + $0xcc] sm:$0x1] }
 0x1e1   : > { %v13127_v26 = vpop.f32.mrf.mxu0  ;;  %19102 = vst [vmem:[#allocation114_spill] sm:$0xff] %v16232_v22  ;;  %v16250_v53 = vpop.f32.mrf.mxu1  ;;  %v5384_v35 = vrot.slane %v14403_v40, 5  ;;  %v12009_v39 = vrot.slane %v5265_v42, 9  ;;  %v5388_v24 = vrot.slane %v14404_v50, 5  ;;  %v12010_v29 = vrot.slane %v5266_v23, 9 }
 0x1e2   : > { %v5373_v36 = vsel %vm14694_vm9, %v12005_v20, %v5372_v1  ;;  %v5381_v21 = vsel %vm14694_vm9, %v12007_v30, %v5380_v34  ;;  %v14405_v52 = vld [vmem:[#allocation2 + $0xd4] sm:$0x1]  ;;  %v14406_v63 = vld [vmem:[#allocation2 + $0xdc] sm:$0x1]  ;;  %v5268_v30 = vld [vmem:[#allocation2 + $0xe0] sm:$0xe] }
 0x1e3   : > { %v13128_v6 = vpop.f32.mrf.mxu0  ;;  %v5392_v46 = vrot.slane %v14405_v52, 5  ;;  %v5396_v27 = vrot.slane %v14406_v63, 5  ;;  %v5385_v10 = vsel %vm14694_vm9, %v12008_v49, %v5384_v35  ;;  %v5269_v58 = vld [vmem:[#allocation2 + $0xe8] sm:$0xe]  ;;  %v14408_v49 = vld [vmem:[#allocation2 + $0xe4] sm:$0x1] }
 0x1e4   : > { %v16248_v61 = vadd.f32 %v13128_v6, %v13127_v26  ;;  %v5376_v26 = vrot.slane %v14401_v25, 5  ;;  %v12013_v40 = vrot.slane %v5269_v58, 9  ;;  %v5274_v58 = vld [vmem:[#allocation2 + $0x120] sm:$0xe] }
 0x1e5   : > { %13840 = vmatmul.mubr.bf16.gmra.mxu0 %v12025_v38  ;;  %v12006_v38 = vrot.slane %v5262_v7, 9  ;;  %v16258_v18 = vpop.f32.mrf.mxu0  ;;  %v12011_v7 = vrot.slane %v5267_v45, 9  ;;  %v5393_v25 = vsel %vm14694_vm9, %v12010_v29, %v5392_v46  ;;  %v14410_v46 = vld [vmem:[#allocation2 + $0x10c] sm:$0x1] }
 0x1e6   : > { %13843 = vmatprep.mubr.bf16.mxu0 %v12026_v54  ;;  %v5369_v54 = vsel %vm14694_vm9, %v12004_v48, %v5368_v47  ;;  %v14161_v48 = vld [vmem:[%s18951_s3 + $0x98] sm:$0xff]   ;;  %v5389_v47 = vsel %vm14694_vm9, %v12009_v39, %v5388_v24  ;;  %v14409_v24 = vld [vmem:[#allocation2 + $0x104] sm:$0x1] }
 0x1e7   : > { %v5377_v37 = vsel %vm14694_vm9, %v12006_v38, %v5376_v26  ;;  %v16272_v44 = vpop.f32.mrf.mxu0  ;;  %v12029_v5 = vcombine.low %v5369_v54, %v5373_v36  ;;  %v5397_v26 = vsel %vm14694_vm9, %v12011_v7, %v5396_v27  ;;  %v5270_v54 = vld [vmem:[#allocation2 + $0x100] sm:$0xe]  ;;  %v5271_v36 = vld [vmem:[#allocation2 + $0x108] sm:$0xe]  ;;  %v12031_v23 = vcombine.low %v5385_v10, %v5389_v47 }
 0x1e8   : > { %v12030_v6 = vcombine.low %v5377_v37, %v5381_v21  ;;  %v14407_v21 = vld [vmem:[#allocation2 + $0xec] sm:$0x1]  ;;  %v12032_v45 = vcombine.low %v5393_v25, %v5397_v26  ;;  %v12014_v50 = vrot.slane %v5270_v54, 9  ;;  %v5408_v29 = vrot.slane %v14409_v24, 5  ;;  %v5273_v26 = vld [vmem:[#allocation2 + $0x118] sm:$0xe] }
 0x1e9   : > { %v5404_v42 = vrot.slane %v14407_v21, 5  ;;  %v12015_v52 = vrot.slane %v5271_v36, 9  ;;  %v5412_v7 = vrot.slane %v14410_v46, 5  ;;  %v5275_v54 = vld [vmem:[#allocation2 + $0x128] sm:$0xe] }
 0x1ea   : > { %v12019_v46 = vrot.slane %v5275_v54, 9 }
 0x1eb   : > { %v5413_v25 = vsel %vm14694_vm9, %v12015_v52, %v5412_v7  ;;  %v5424_v52 = vrot.slane %v16001_v17, 5  ;;  %v19119_v7 = vld [vmem:[#allocation103_spill] sm:$0xff] }
 0x1ed   : > { %13844 = vmatmul.mubr.bf16.gmra.mxu0 %v12027_v41 }
 0x1ee   : > { %v16256_v16 = vpop.f32.mrf.mxu1  ;;  %13847 = vmatprep.mubr.bf16.mxu0 %v12028_v19  ;;  %v14160_v19 = vld [vmem:[%s18951_s3 + $0xd8] sm:$0xff]  }
 0x1ef   : > { %19103 = vst [vmem:[#allocation115_spill] sm:$0xff] %v16256_v16  ;;  %13355 = vmatprep.subr.bf16.mxu1 %v14160_v19  ;;  %v5405_v19 = vsel %vm14694_vm9, %v12013_v40, %v5404_v42  ;;  %v14412_v40 = vld [vmem:[#allocation2 + $0x11c] sm:$0x1] }
 0x1f0   : > { %v16260_v31 = vpop.f32.mrf.mxu1  ;;  %13356 = vmatpush3.bf16.msra.mxu1 %v14161_v48  ;;  %v5272_v48 = vld [vmem:[#allocation2 + $0x110] sm:$0xe] }
 0x1f1   : > { %19104 = vst [vmem:[#allocation116_spill] sm:$0xff] %v16260_v31  ;;  %v19244_v31 = vld [vmem:[#allocation65_spill] sm:$0xff] }
 0x1f2   : > { %v16266_v32 = vpop.f32.mrf.mxu1 }
 0x1f3   : > { %19105 = vst [vmem:[#allocation117_spill] sm:$0xff] %v16266_v32 }
 0x1f4   : > { %v16274_v43 = vpop.f32.mrf.mxu1 }
 0x1f5   : > { %19106 = vst [vmem:[#allocation118_spill] sm:$0xff] %v16274_v43  ;;  %13848 = vmatmul.mubr.bf16.gmra.mxu0 %v12029_v5  ;;  %v12012_v5 = vrot.slane %v5268_v30, 9  ;;  %v19234_v43 = vld [vmem:[#allocation53_spill] sm:$0xff] }
 0x1f6   : > { %13851 = vmatprep.mubr.bf16.mxu0 %v12030_v6  ;;  %v5400_v6 = vrot.slane %v14408_v49, 5 }
 0x1f7   : > { %v13133_v1 = vpop.f32.mrf.mxu0 }
 0x1f9   : > { %v16276_v41 = vpop.f32.mrf.mxu1  ;;  %v13134_v20 = vpop.f32.mrf.mxu0 }
 0x1fa   : > { %19107 = vst [vmem:[#allocation119_spill] sm:$0xff] %v16276_v41  ;;  %v16294_v34 = vadd.f32 %v13134_v20, %v13133_v1  ;;  %v5401_v1 = vsel %vm14694_vm9, %v12012_v5, %v5400_v6  ;;  %v5409_v20 = vsel %vm14694_vm9, %v12014_v50, %v5408_v29  ;;  %v14411_v5 = vld [vmem:[#allocation2 + $0x114] sm:$0x1]  ;;  %v12017_v6 = vrot.slane %v5273_v26, 9  ;;  %v5276_v26 = vld [vmem:[#allocation2 + $0x130] sm:$0xe] }
 0x1fb   : > { %v16288_v38 = vpop.f32.mrf.mxu1  ;;  %v16296_v60 = vpop.f32.mrf.mxu0  ;;  %v12033_v21 = vcombine.low %v5401_v1, %v5405_v19  ;;  %v5416_v49 = vrot.slane %v14411_v5, 5  ;;  %v5420_v50 = vrot.slane %v14412_v40, 5  ;;  %v12018_v29 = vrot.slane %v5274_v58, 9  ;;  %v5277_v58 = vld [vmem:[#allocation2 + $0x138] sm:$0xe]  ;;  %v19231_v41 = vld [vmem:[#allocation51_spill] sm:$0xff] }
 0x1fc   : > { %19108 = vst [vmem:[#allocation120_spill] sm:$0xff] %v16288_v38  ;;  %19109 = vst [vmem:[#allocation121_spill] sm:$0xff] %v16294_v34  ;;  %v12021_v11 = vrot.slane %v5277_v58, 9  ;;  %v19230_v38 = vld [vmem:[#allocation50_spill] sm:$0xff]  ;;  %v19238_v34 = vld [vmem:[#allocation57_spill] sm:$0xff] }
 0x1fd   : > { %v16298_v37 = vpop.f32.mrf.mxu1  ;;  %v16300_v35 = vpop.f32.mrf.mxu0  ;;  %13852 = vmatmul.mubr.bf16.gmra.mxu0 %v12031_v23  ;;  %v12016_v23 = vrot.slane %v5272_v48, 9  ;;  %v5421_v48 = vsel %vm14694_vm9, %v12017_v6, %v5420_v50  ;;  %v12020_v6 = vrot.slane %v5276_v26, 9  ;;  %v19125_v50 = vld [vmem:[#allocation105_spill] sm:$0xff] }
 0x1fe   : > { %19110 = vst [vmem:[#allocation122_spill] sm:$0xff] %v16298_v37  ;;  %19111 = vst [vmem:[#allocation123_spill] sm:$0xff] %v16300_v35  ;;  %13855 = vmatprep.mubr.bf16.mxu0 %v12032_v45  ;;  %v12034_v45 = vcombine.low %v5409_v20, %v5413_v25  ;;  %v5425_v25 = vsel %vm14694_vm9, %v12018_v29, %v5424_v52  ;;  %v19228_v37 = vld [vmem:[#allocation49_spill] sm:$0xff] }
 0x1ff   : > { %v16302_v39 = vpop.f32.mrf.mxu1  ;;  %v5417_v19 = vsel %vm14694_vm9, %v12016_v23, %v5416_v49 }
 0x200   : > { %19112 = vst [vmem:[#allocation124_spill] sm:$0xff] %v16302_v39  ;;  %v12035_v40 = vcombine.low %v5417_v19, %v5421_v48  ;;  %v19227_v39 = vld [vmem:[#allocation47_spill] sm:$0xff] }
 0x201   : > { %v13139_v63 = vpop.f32.mrf.mxu0  ;;  %v16304_v27 = vpop.f32.mrf.mxu1 }
 0x202   : > { %19113 = vst [vmem:[#allocation125_spill] sm:$0xff] %v16304_v27  ;;  %v19216_v27 = vld [vmem:[#allocation38_spill] sm:$0xff] }
 0x203   : > { %v13140_v10 = vpop.f32.mrf.mxu0  ;;  %v16310_v47 = vpop.f32.mrf.mxu1 }
 0x204   : > { %19114 = vst [vmem:[#allocation126_spill] sm:$0xff] %v16310_v47  ;;  %v16316_v30 = vadd.f32 %v13140_v10, %v13139_v63  ;;  %v5428_v63 = vrot.slane %v19119_v7, 5  ;;  %v5432_v7 = vrot.slane %v19125_v50, 5 }
 0x205   : > { %v16318_v36 = vpop.f32.mrf.mxu0  ;;  %v16320_v42 = vpop.f32.mrf.mxu1  ;;  %13856 = vmatmul.mubr.bf16.gmra.mxu0 %v12033_v21 }
 0x206   : > { %19115 = vst [vmem:[#allocation127_spill] sm:$0xff] %v16316_v30  ;;  %19116 = vst [vmem:[#allocation128_spill] sm:$0xff] %v16318_v36  ;;  %13859 = vmatprep.mubr.bf16.mxu0 %v12034_v45  ;;  %v5429_v17 = vsel %vm14694_vm9, %v12019_v46, %v5428_v63  ;;  %v19123_v45 = vld [vmem:[#allocation104_spill] sm:$0xff]  ;;  %v5433_v46 = vsel %vm14694_vm9, %v12020_v6, %v5432_v7  ;;  %v19218_v30 = vld [vmem:[#allocation41_spill] sm:$0xff] }
 0x207   : > { %19117 = vst [vmem:[#allocation129_spill] sm:$0xff] %v16320_v42  ;;  %v16322_v24 = vpop.f32.mrf.mxu0  ;;  %v16326_v1 = vpop.f32.mrf.mxu1  ;;  %v5436_v5 = vrot.slane %v19123_v45, 5  ;;  %v12036_v49 = vcombine.low %v5425_v25, %v5429_v17  ;;  %v19214_v42 = vld [vmem:[#allocation37_spill] sm:$0xff] }
 0x208   : > { %19118 = vst [vmem:[#allocation130_spill] sm:$0xff] %v16322_v24  ;;  %19120 = vst [vmem:[#allocation103_spill] sm:$0xff] %v16326_v1  ;;  %v19212_v1 = vld [vmem:[#allocation34_spill] sm:$0xff] }
 0x209   : > { %v13145_v10 = vpop.f32.mrf.mxu0  ;;  %v16341_v23 = vpop.f32.mrf.mxu1  ;;  %v5437_v63 = vsel %vm14694_vm9, %v12021_v11, %v5436_v5  ;;  %v14162_v11 = vld [vmem:[%s18951_s3 + $0xd0] sm:$0xff]  }
 0x20a   : > { %19124 = vst [vmem:[#allocation104_spill] sm:$0xff] %v16341_v23  ;;  %v12037_v19 = vcombine.low %v5433_v46, %v5437_v63  ;;  %v14163_v5 = vld [vmem:[%s18951_s3 + $0x90] sm:$0xff]   ;;  %13357 = vmatprep.subr.bf16.mxu1 %v14162_v11 }
 0x20b   : > { %v13146_v20 = vpop.f32.mrf.mxu0  ;;  %v16346_v52 = vpop.f32.mrf.mxu1  ;;  %13358 = vmatpush3.bf16.msra.mxu1 %v14163_v5 }
 0x20c   : > { %v16336_v54 = vadd.f32 %v13146_v20, %v13145_v10  ;;  %19127 = vst [vmem:[#allocation133_spill] sm:$0xff] %v16346_v52 }
 0x20d   : > { %v16338_v21 = vpop.f32.mrf.mxu0  ;;  %13860 = vmatmul.mubr.bf16.gmra.mxu0 %v12035_v40  ;;  %v16352_v20 = vpop.f32.mrf.mxu1 }
 0x20e   : > { %19121 = vst [vmem:[#allocation131_spill] sm:$0xff] %v16336_v54  ;;  %19122 = vst [vmem:[#allocation132_spill] sm:$0xff] %v16338_v21  ;;  %13863 = vmatprep.mubr.bf16.mxu0 %v12036_v49  ;;  %v19210_v54 = vld [vmem:[#allocation33_spill] sm:$0xff] }
 0x20f   : > { %v16344_v29 = vpop.f32.mrf.mxu0  ;;  %19128 = vst [vmem:[#allocation134_spill] sm:$0xff] %v16352_v20  ;;  %v16358_v26 = vpop.f32.mrf.mxu1 }
 0x210   : > { %19126 = vst [vmem:[#allocation105_spill] sm:$0xff] %v16344_v29  ;;  %19131 = vst [vmem:[#allocation137_spill] sm:$0xff] %v16358_v26  ;;  %v19171_v26 = vld [vmem:[#allocation100_spill] sm:$0xff] }
 0x213   : > { %v13151_v10 = vpop.f32.mrf.mxu0 }
 0x215   : > { %v13152_v48 = vpop.f32.mrf.mxu0  ;;  %13864 = vmatmul.mubr.bf16.gmra.mxu0 %v12037_v19  ;;  %v14165_v19 = vld [vmem:[%s18951_s3 + $0x38] sm:$0xff]  }
 0x216   : > { %v16354_v25 = vadd.f32 %v13152_v48, %v13151_v10  ;;  %v14164_v10 = vld [vmem:[%s18951_s3 + $0x78] sm:$0xff]  }
 0x217   : > { %v16356_v17 = vpop.f32.mrf.mxu0  ;;  %13459 = vmatprep.subr.bf16.mxu0 %v14164_v10 }
 0x218   : > { %19129 = vst [vmem:[#allocation135_spill] sm:$0xff] %v16354_v25  ;;  %19130 = vst [vmem:[#allocation136_spill] sm:$0xff] %v16356_v17  ;;  %13460 = vmatpush3.bf16.msra.mxu0 %v14165_v19  ;;  %v14170_v19 = vld [vmem:[%s18951_s3 + $0x68] sm:$0xff]   ;;  %v19242_v17 = vld [vmem:[#allocation61_spill] sm:$0xff] }
 0x219   : > { %v16360_v58 = vpop.f32.mrf.mxu0 }
 0x21a   : > { %19132 = vst [vmem:[#allocation138_spill] sm:$0xff] %v16360_v58  ;;  %v19240_v58 = vld [vmem:[#allocation62_spill] sm:$0xff] }
 0x21f   : > { %v16362_v45 = vpop.f32.mrf.mxu1 }
 0x220   : > { %19133 = vst [vmem:[#allocation139_spill] sm:$0xff] %v16362_v45  ;;  %v19166_v45 = vld [vmem:[#allocation96_spill] sm:$0xff] }
 0x221   : > { %v16370_v40 = vpop.f32.mrf.mxu1 }
 0x222   : > { %19134 = vst [vmem:[#allocation140_spill] sm:$0xff] %v16370_v40 }
 0x223   : > { %v13157_v49 = vpop.f32.mrf.mxu0  ;;  %v16372_v6 = vpop.f32.mrf.mxu1 }
 0x224   : > { %19135 = vst [vmem:[#allocation141_spill] sm:$0xff] %v16372_v6 }
 0x225   : > { %v13158_v50 = vpop.f32.mrf.mxu0  ;;  %v16376_v46 = vpop.f32.mrf.mxu1 }
 0x226   : > { %v16374_v7 = vadd.f32 %v13158_v50, %v13157_v49  ;;  %19137 = vst [vmem:[#allocation143_spill] sm:$0xff] %v16376_v46  ;;  %v14166_v49 = vld [vmem:[%s18951_s3 + $0x70] sm:$0xff]   ;;  %v14171_v46 = vld [vmem:[%s18951_s3 + $0x28] sm:$0xff]  }
 0x227   : > { %v16378_v63 = vpop.f32.mrf.mxu0  ;;  %v16388_v11 = vpop.f32.mrf.mxu1  ;;  %13461 = vmatprep.subr.bf16.mxu0 %v14166_v49  ;;  %v14173_v49 = vld [vmem:[%s18951_s3 + $0x20] sm:$0xff]  }
 0x228   : > { %19136 = vst [vmem:[#allocation142_spill] sm:$0xff] %v16374_v7  ;;  %19138 = vst [vmem:[#allocation144_spill] sm:$0xff] %v16378_v63  ;;  %13462 = vmatpush3.bf16.msra.mxu0 %v14168_v3  ;;  %v14172_v3 = vld [vmem:[%s18951_s3 + $0x60] sm:$0xff]   ;;  %v19167_v7 = vld [vmem:[#allocation98_spill] sm:$0xff] }
 0x229   : > { %v16386_v48 = vpop.f32.mrf.mxu0  ;;  %19140 = vst [vmem:[#allocation146_spill] sm:$0xff] %v16388_v11  ;;  %v16398_v62 = vpop.f32.mrf.mxu1  ;;  %13463 = vmatprep.subr.bf16.mxu0 %v14170_v19  ;;  %v14174_v19 = vld [vmem:[%s18951_s3 + $0x58] sm:$0xff]   ;;  %v19170_v63 = vld [vmem:[#allocation101_spill] sm:$0xff] }
 0x22a   : > { %19139 = vst [vmem:[#allocation145_spill] sm:$0xff] %v16386_v48  ;;  %19142 = vst [vmem:[#allocation148_spill] sm:$0xff] %v16398_v62  ;;  %v14175_v62 = vld [vmem:[%s18951_s3 + $0x18] sm:$0xff]  }
 0x22b   : > { %v13163_v5 = vpop.f32.mrf.mxu0  ;;  %v16402_v11 = vpop.f32.mrf.mxu1 }
 0x22c   : > { %19144 = vst [vmem:[#allocation150_spill] sm:$0xff] %v16402_v11  ;;  %13464 = vmatpush3.bf16.msra.mxu0 %v14171_v46 }
 0x22d   : > { %v13164_v50 = vpop.f32.mrf.mxu0  ;;  %13465 = vmatprep.subr.bf16.mxu0 %v14172_v3  ;;  %v14167_v3 = vld [vmem:[%s18951_s3 + $0xc8] sm:$0xff]  }
 0x22e   : > { %v16396_v22 = vadd.f32 %v13164_v50, %v13163_v5  ;;  %v16412_v5 = vpop.f32.mrf.mxu1  ;;  %13359 = vmatprep.subr.bf16.mxu1 %v14167_v3 }
 0x22f   : > { %v16400_v10 = vpop.f32.mrf.mxu0  ;;  %19146 = vst [vmem:[#allocation152_spill] sm:$0xff] %v16412_v5 }
 0x230   : > { %19141 = vst [vmem:[#allocation147_spill] sm:$0xff] %v16396_v22  ;;  %19143 = vst [vmem:[#allocation149_spill] sm:$0xff] %v16400_v10  ;;  %v16420_v11 = vpop.f32.mrf.mxu1  ;;  %13466 = vmatpush3.bf16.msra.mxu0 %v14173_v49  ;;  %v14169_v49 = vld [vmem:[%s18951_s3 + $0x88] sm:$0xff]   ;;  %v19165_v10 = vld [vmem:[#allocation97_spill] sm:$0xff] }
 0x231   : > { %v16410_v6 = vpop.f32.mrf.mxu0  ;;  %19147 = vst [vmem:[#allocation153_spill] sm:$0xff] %v16420_v11  ;;  %13467 = vmatprep.subr.bf16.mxu0 %v14174_v19  ;;  %13360 = vmatpush3.bf16.msra.mxu1 %v14169_v49  ;;  %v14176_v19 = vld [vmem:[%s18951_s3 + $0x50] sm:$0xff]  }
 0x232   : > { %19145 = vst [vmem:[#allocation151_spill] sm:$0xff] %v16410_v6  ;;  %v16427_v46 = vpop.f32.mrf.mxu1 }
 0x233   : > { %19149 = vst [vmem:[#allocation155_spill] sm:$0xff] %v16427_v46  ;;  %v14178_v46 = vld [vmem:[%s18951_s3 + $0x10] sm:$0xff]  }
 0x234   : > { %13468 = vmatpush3.bf16.msra.mxu0 %v14175_v62  ;;  %v14180_v62 = vld [vmem:[%s18951_s3 + $0x48] sm:$0xff]  }
 0x235   : > { %13469 = vmatprep.subr.bf16.mxu0 %v14176_v19  ;;  %v14182_v19 = vld [vmem:[%s18951_s3 + $0x40] sm:$0xff]  }
 0x238   : > { %v13169_v50 = vpop.f32.mrf.mxu0  ;;  %13470 = vmatpush3.bf16.msra.mxu0 %v14178_v46 }
 0x239   : > { %13471 = vmatprep.subr.bf16.mxu0 %v14180_v62 }
 0x23a   : > { %v13170_v22 = vpop.f32.mrf.mxu0 }
 0x23b   : > { %v16425_v5 = vadd.f32 %v13170_v22, %v13169_v50  ;;  %v16440_v22 = vpop.f32.mrf.mxu1 }
 0x23c   : > { %v16432_v6 = vpop.f32.mrf.mxu0  ;;  %19151 = vst [vmem:[#allocation157_spill] sm:$0xff] %v16440_v22 }
 0x23d   : > { %19148 = vst [vmem:[#allocation154_spill] sm:$0xff] %v16425_v5  ;;  %19150 = vst [vmem:[#allocation156_spill] sm:$0xff] %v16432_v6  ;;  %v16450_v11 = vpop.f32.mrf.mxu1 }
 0x23e   : > { %v16442_v50 = vpop.f32.mrf.mxu0  ;;  %19153 = vst [vmem:[#allocation159_spill] sm:$0xff] %v16450_v11  ;;  %v14183_v11 = vld [vmem:[%s18951_s3] sm:$0xff]  }
 0x23f   : > { %19152 = vst [vmem:[#allocation158_spill] sm:$0xff] %v16442_v50  ;;  %v16457_v22 = vpop.f32.mrf.mxu1  ;;  %v14181_v50 = vld [vmem:[%s18951_s3 + $0x8] sm:$0xff]  }
 0x240   : > { %19155 = vst [vmem:[#allocation161_spill] sm:$0xff] %v16457_v22  ;;  %13472 = vmatpush3.bf16.msra.mxu0 %v14181_v50  ;;  %v14179_v50 = vld [vmem:[%s18951_s3 + $0x80] sm:$0xff]  }
 0x241   : > { %v16465_v46 = vpop.f32.mrf.mxu1  ;;  %13473 = vmatprep.subr.bf16.mxu0 %v14182_v19 }
 0x242   : > { %19156 = vst [vmem:[#allocation162_spill] sm:$0xff] %v16465_v46 }
 0x243   : > { %v16476_v62 = vpop.f32.mrf.mxu1 }
 0x244   : > { %v13175_v5 = vpop.f32.mrf.mxu0  ;;  %13474 = vmatpush3.bf16.msra.mxu0 %v14183_v11  ;;  %19157 = vst [vmem:[#allocation163_spill] sm:$0xff] %v16476_v62  ;;  %v19164_v11 = vld [vmem:[#allocation95_spill] sm:$0xff]  ;;  %v13071_v62 = vadd.f32 %v19167_v7, %v19166_v45 }
 0x245   : > { %v12959_v40 = vadd.f32 %v19165_v10, %v19164_v11 }
 0x246   : > { %v13176_v3 = vpop.f32.mrf.mxu0 }
 0x247   : > { %v16455_v49 = vadd.f32 %v13176_v3, %v13175_v5  ;;  %v14177_v5 = vld [vmem:[%s18951_s3 + $0xc0] sm:$0xff]   ;;  %v16478_v3 = vpop.f32.mrf.mxu1  ;;  %v2770_v48 = vadd.f32 %v13071_v62, %v12959_v40 }
 0x248   : > { %13361 = vmatprep.subr.bf16.mxu1 %v14177_v5  ;;  %19158 = vst [vmem:[#allocation164_spill] sm:$0xff] %v16478_v3  ;;  %v16482_v22 = vpop.f32.mrf.mxu0 }
 0x249   : > { %19154 = vst [vmem:[#allocation160_spill] sm:$0xff] %v16455_v49  ;;  %13362 = vmatpush3.bf16.msra.mxu1 %v14179_v50  ;;  %19160 = vst [vmem:[#allocation166_spill] sm:$0xff] %v16482_v22 }
 0x24a   : > { %v16486_v49 = vpop.f32.mrf.mxu0 }
 0x24b   : > { %19162 = vst [vmem:[#allocation168_spill] sm:$0xff] %v16486_v49 }
 0x258   : > { %v16480_v46 = vpop.f32.mrf.mxu1 }
 0x259   : > { %19159 = vst [vmem:[#allocation165_spill] sm:$0xff] %v16480_v46  ;;  %v19169_v46 = vld [vmem:[#allocation99_spill] sm:$0xff] }
 0x25a   : > { %v16484_v19 = vpop.f32.mrf.mxu1  ;;  %v12962_v22 = vadd.f32 %v19170_v63, %v19169_v46 }
 0x25b   : > { %19161 = vst [vmem:[#allocation167_spill] sm:$0xff] %v16484_v19  ;;  %v19172_v19 = vld [vmem:[#allocation102_spill] sm:$0xff] }
 0x25c   : > { %v16488_v6 = vpop.f32.mrf.mxu1  ;;  %v13074_v20 = vadd.f32 %v19172_v19, %v19171_v26 }
 0x25d   : > { %19163 = vst [vmem:[#allocation169_spill] sm:$0xff] %v16488_v6 }
 0x25e   : > { %v16494_v50 = vpop.f32.mrf.mxu1  ;;  %v2773_v11 = vadd.f32 %v13074_v20, %v12962_v22 }
 0x25f   : > { %19168 = vst [vmem:[#allocation95_spill] sm:$0xff] %v16494_v50 }
 0x260   : > { %v16502_v52 = vpop.f32.mrf.mxu1 }
 0x261   : > { %19174 = vst [vmem:[#allocation96_spill] sm:$0xff] %v16502_v52  ;;  %v19205_v52 = vld [vmem:[#allocation28_spill] sm:$0xff] }
 0x262   : > { %v13181_v5 = vpop.f32.mrf.mxu0  ;;  %v16506_v50 = vpop.f32.mrf.mxu1 }
 0x263   : > { %19176 = vst [vmem:[#allocation99_spill] sm:$0xff] %v16506_v50  ;;  %v19194_v50 = vld [vmem:[#allocation17_spill] sm:$0xff] }
 0x264   : > { %v13182_v3 = vpop.f32.mrf.mxu0  ;;  %v16511_v26 = vpop.f32.mrf.mxu1 }
 0x265   : > { %v13183_v49 = vadd.f32 %v13182_v3, %v13181_v5  ;;  %19178 = vst [vmem:[#allocation100_spill] sm:$0xff] %v16511_v26  ;;  %v19193_v26 = vld [vmem:[#allocation16_spill] sm:$0xff] }
 0x266   : > { %v13184_v25 = vpop.f32.mrf.mxu0  ;;  %v16516_v20 = vpop.f32.mrf.mxu1 }
 0x267   : > { %v16500_v6 = vadd.f32 %v13183_v49, %v2770_v48  ;;  %19180 = vst [vmem:[#allocation170_spill] sm:$0xff] %v16516_v20 }
 0x268   : > { %v13185_v10 = vpop.f32.mrf.mxu0 }
 0x269   : > { %19173 = vst [vmem:[#allocation97_spill] sm:$0xff] %v16500_v6  ;;  %v13186_v45 = vadd.f32 %v13185_v10, %v13184_v25  ;;  %v14191_v10 = vld [vmem:[%s18951_s3 + $0x178] sm:$0xff]  }
 0x26a   : > { %v13187_v7 = vpop.f32.mrf.mxu0  ;;  %v19192_v6 = vld [vmem:[#allocation18_spill] sm:$0xff]  ;;  %13571 = vmatprep.subr.bf16.mxu1 %v14191_v10 }
 0x26b   : > { %v16504_v23 = vadd.f32 %v13186_v45, %v2773_v11  ;;  %v19181_v11 = vld [vmem:[#allocation7_spill] sm:$0xff] }
 0x26c   : > { %v13188_v40 = vpop.f32.mrf.mxu0 }
 0x26d   : > { %19175 = vst [vmem:[#allocation98_spill] sm:$0xff] %v16504_v23  ;;  %v13189_v62 = vadd.f32 %v13188_v40, %v13187_v7  ;;  %v19183_v7 = vld [vmem:[#allocation8_spill] sm:$0xff]  ;;  %v19184_v40 = vld [vmem:[#allocation10_spill] sm:$0xff]  ;;  %v19191_v23 = vld [vmem:[#allocation15_spill] sm:$0xff] }
 0x26e   : > { %v13190_v63 = vpop.f32.mrf.mxu0  ;;  %v12899_v20 = vadd.f32 %v19192_v6, %v19191_v23  ;;  %v19198_v23 = vld [vmem:[#allocation22_spill] sm:$0xff] }
 0x26f   : > { %v16509_v46 = vadd.f32 %v13189_v62, %v16170_v4  ;;  %v19182_v4 = vld [vmem:[#allocation9_spill] sm:$0xff]  ;;  %v13005_v62 = vadd.f32 %v19184_v40, %v19183_v7 }
 0x270   : > { %v13191_v48 = vpop.f32.mrf.mxu0  ;;  %v12893_v45 = vadd.f32 %v19182_v4, %v19181_v11  ;;  %v13011_v11 = vadd.f32 %v19194_v50, %v19193_v26  ;;  %v19200_v50 = vld [vmem:[#allocation21_spill] sm:$0xff] }
 0x271   : > { %19177 = vst [vmem:[#allocation101_spill] sm:$0xff] %v16509_v46  ;;  %v13192_v49 = vadd.f32 %v13191_v48, %v13190_v63  ;;  %v19187_v48 = vld [vmem:[#allocation11_spill] sm:$0xff] }
 0x272   : > { %v13193_v3 = vpop.f32.mrf.mxu0 }
 0x273   : > { %v16514_v19 = vadd.f32 %v13192_v49, %v16172_v2  ;;  %v16528_v2 = vpop.f32.mrf.mxu1  ;;  %v19188_v49 = vld [vmem:[#allocation13_spill] sm:$0xff] }
 0x274   : > { %v13194_v25 = vpop.f32.mrf.mxu0  ;;  %19186 = vst [vmem:[#allocation9_spill] sm:$0xff] %v16528_v2  ;;  %v19204_v2 = vld [vmem:[#allocation24_spill] sm:$0xff] }
 0x275   : > { %19179 = vst [vmem:[#allocation102_spill] sm:$0xff] %v16514_v19  ;;  %v13195_v22 = vadd.f32 %v13194_v25, %v13193_v3  ;;  %v12896_v19 = vadd.f32 %v19188_v49, %v19187_v48  ;;  %v19189_v3 = vld [vmem:[#allocation12_spill] sm:$0xff]  ;;  %v19190_v25 = vld [vmem:[#allocation14_spill] sm:$0xff]  ;;  %v16547_v49 = vadd.f32 %v13011_v11, %v12899_v20 }
 0x276   : > { %v13196_v5 = vpop.f32.mrf.mxu0  ;;  %v13008_v46 = vadd.f32 %v19190_v25, %v19189_v3  ;;  %v19197_v3 = vld [vmem:[#allocation20_spill] sm:$0xff]  ;;  %v19199_v25 = vld [vmem:[#allocation19_spill] sm:$0xff]  ;;  %v19208_v20 = vld [vmem:[#allocation30_spill] sm:$0xff] }
 0x277   : > { %v16526_v63 = vadd.f32 %v13195_v22, %v16186_v8  ;;  %v16538_v8 = vadd.f32 %v13005_v62, %v12893_v45  ;;  %v16540_v22 = vpop.f32.mrf.mxu1  ;;  %v12902_v6 = vadd.f32 %v19198_v23, %v19197_v3  ;;  %v13014_v26 = vadd.f32 %v19200_v50, %v19199_v25  ;;  %v19203_v62 = vld [vmem:[#allocation23_spill] sm:$0xff]  ;;  %v19211_v23 = vld [vmem:[#allocation32_spill] sm:$0xff] }
 0x278   : > { %v13197_v4 = vpop.f32.mrf.mxu0  ;;  %19195 = vst [vmem:[#allocation8_spill] sm:$0xff] %v16540_v22  ;;  %v16545_v48 = vadd.f32 %v13008_v46, %v12896_v19  ;;  %v13017_v22 = vadd.f32 %v19204_v2, %v19203_v62  ;;  %v19207_v19 = vld [vmem:[#allocation27_spill] sm:$0xff]  ;;  %v13023_v25 = vadd.f32 %v19212_v1, %v19211_v23  ;;  %v19224_v1 = vld [vmem:[#allocation45_spill] sm:$0xff]  ;;  %v19225_v23 = vld [vmem:[#allocation44_spill] sm:$0xff] }
 0x279   : > { %19185 = vst [vmem:[#allocation7_spill] sm:$0xff] %v16526_v63  ;;  %v13198_v7 = vadd.f32 %v13197_v4, %v13196_v5  ;;  %v19201_v5 = vld [vmem:[#allocation25_spill] sm:$0xff]  ;;  %v19202_v4 = vld [vmem:[#allocation26_spill] sm:$0xff]  ;;  %v13020_v11 = vadd.f32 %v19208_v20, %v19207_v19  ;;  %v19213_v50 = vld [vmem:[#allocation35_spill] sm:$0xff]  ;;  %v16573_v19 = vpop.f32.mrf.mxu1 }
 0x27a   : > { %v13199_v40 = vpop.f32.mrf.mxu0  ;;  %v12905_v45 = vadd.f32 %v19202_v4, %v19201_v5  ;;  %v12914_v47 = vadd.f32 %v19214_v42, %v19213_v50  ;;  %v19215_v4 = vld [vmem:[#allocation36_spill] sm:$0xff]  ;;  %v19217_v62 = vld [vmem:[#allocation39_spill] sm:$0xff]  ;;  %19221 = vst [vmem:[#allocation11_spill] sm:$0xff] %v16573_v19  ;;  %v19226_v42 = vld [vmem:[#allocation46_spill] sm:$0xff] }
 0x27b   : > { %v16543_v63 = vadd.f32 %v13198_v7, %v16190_v28  ;;  %v19206_v28 = vld [vmem:[#allocation29_spill] sm:$0xff]  ;;  %v13026_v2 = vadd.f32 %v19216_v27, %v19215_v4  ;;  %v13032_v50 = vadd.f32 %v19226_v42, %v19225_v23  ;;  %v12923_v27 = vadd.f32 %v19228_v37, %v19227_v39  ;;  %v19229_v4 = vld [vmem:[#allocation48_spill] sm:$0xff]  ;;  %v19241_v39 = vld [vmem:[#allocation59_spill] sm:$0xff] }
 0x27c   : > { %v13200_v10 = vpop.f32.mrf.mxu0  ;;  %v12908_v7 = vadd.f32 %v19206_v28, %v19205_v52  ;;  %v12917_v52 = vadd.f32 %v19218_v30, %v19217_v62  ;;  %v13035_v30 = vadd.f32 %v19230_v38, %v19229_v4  ;;  %v19233_v19 = vld [vmem:[#allocation52_spill] sm:$0xff]  ;;  %v13044_v38 = vadd.f32 %v19242_v17, %v19241_v39  ;;  %v19243_v4 = vld [vmem:[#allocation63_spill] sm:$0xff] }
 0x27d   : > { %19196 = vst [vmem:[#allocation10_spill] sm:$0xff] %v16543_v63  ;;  %v13201_v46 = vadd.f32 %v13200_v10, %v13199_v40  ;;  %v19209_v63 = vld [vmem:[#allocation31_spill] sm:$0xff]  ;;  %v19219_v40 = vld [vmem:[#allocation40_spill] sm:$0xff]  ;;  %v19220_v10 = vld [vmem:[#allocation42_spill] sm:$0xff]  ;;  %v12935_v16 = vadd.f32 %v19244_v31, %v19243_v4  ;;  %v2709_v36 = vadd.f32 %v13026_v2, %v12914_v47 }
 0x27e   : > { %v12911_v3 = vadd.f32 %v19210_v54, %v19209_v63  ;;  %v13202_v5 = vpop.f32.mrf.mxu0  ;;  %v13029_v28 = vadd.f32 %v19220_v10, %v19219_v40  ;;  %v19223_v63 = vld [vmem:[#allocation43_spill] sm:$0xff]  ;;  %v19232_v40 = vld [vmem:[#allocation54_spill] sm:$0xff]  ;;  %v19239_v42 = vld [vmem:[#allocation60_spill] sm:$0xff]  ;;  %v2722_v35 = vadd.f32 %v13035_v30, %v12923_v27 }
 0x27f   : > { %v16576_v54 = vadd.f32 %v13201_v46, %v16212_v9  ;;  %v12920_v20 = vadd.f32 %v19224_v1, %v19223_v63  ;;  %v12926_v10 = vadd.f32 %v19232_v40, %v19231_v41  ;;  %v13038_v9 = vadd.f32 %v19234_v43, %v19233_v19  ;;  %v19235_v46 = vld [vmem:[#allocation56_spill] sm:$0xff]  ;;  %v19237_v1 = vld [vmem:[#allocation55_spill] sm:$0xff]  ;;  %v19246_v40 = vld [vmem:[#allocation66_spill] sm:$0xff] }
 0x280   : > { %v13203_v62 = vpop.f32.mrf.mxu0  ;;  %v13041_v23 = vadd.f32 %v19238_v34, %v19237_v1  ;;  %v12932_v37 = vadd.f32 %v19240_v58, %v19239_v42  ;;  %v19245_v41 = vld [vmem:[#allocation64_spill] sm:$0xff]  ;;  %v19247_v43 = vld [vmem:[#allocation67_spill] sm:$0xff]  ;;  %v19248_v19 = vld [vmem:[#allocation69_spill] sm:$0xff]  ;;  %v2693_v58 = vadd.f32 %v13014_v26, %v12902_v6  ;;  %v2698_v1 = vadd.f32 %v13017_v22, %v12905_v45 }
 0x281   : > { %19222 = vst [vmem:[#allocation13_spill] sm:$0xff] %v16576_v54  ;;  %v19236_v54 = vld [vmem:[#allocation58_spill] sm:$0xff]  ;;  %v13204_v63 = vadd.f32 %v13203_v62, %v13202_v5  ;;  %v13047_v29 = vadd.f32 %v19246_v40, %v19245_v41  ;;  %v12938_v21 = vadd.f32 %v19248_v19, %v19247_v43  ;;  %v19252_v17 = vld [vmem:[#allocation71_spill] sm:$0xff]  ;;  %v19253_v42 = vld [vmem:[#allocation73_spill] sm:$0xff]  ;;  %v2701_v41 = vadd.f32 %v13020_v11, %v12908_v7 }
 0x282   : > { %v12929_v32 = vadd.f32 %v19236_v54, %v19235_v46  ;;  %v19249_v54 = vld [vmem:[#allocation68_spill] sm:$0xff]  ;;  %v19250_v5 = vld [vmem:[#allocation70_spill] sm:$0xff]  ;;  %v16606_v46 = vpop.f32.mrf.mxu1  ;;  %v12941_v39 = vadd.f32 %v19253_v42, %v19252_v17  ;;  %v2706_v40 = vadd.f32 %v13023_v25, %v12911_v3  ;;  %v2714_v43 = vadd.f32 %v13029_v28, %v12917_v52  ;;  %v19256_v6 = vld [vmem:[#allocation109_spill] sm:$0xff] }
 0x283   : > { %v13050_v62 = vadd.f32 %v19250_v5, %v19249_v54  ;;  %19251 = vst [vmem:[#allocation12_spill] sm:$0xff] %v16606_v46  ;;  %v16609_v34 = vadd.f32 %v13204_v63, %v16214_v59  ;;  %v19254_v31 = vld [vmem:[#allocation72_spill] sm:$0xff]  ;;  %v19255_v4 = vld [vmem:[#allocation74_spill] sm:$0xff]  ;;  %v2717_v19 = vadd.f32 %v13032_v50, %v12920_v20  ;;  %v2725_v54 = vadd.f32 %v13038_v9, %v12926_v10  ;;  %v19258_v47 = vld [vmem:[#allocation75_spill] sm:$0xff] }
 0x284   : > { %v13053_v24 = vadd.f32 %v19255_v4, %v19254_v31  ;;  %v16615_v5 = vadd.f32 %v13041_v23, %v12929_v32  ;;  %v16617_v46 = vadd.f32 %v13044_v38, %v12932_v37  ;;  %v16619_v59 = vadd.f32 %v13047_v29, %v12935_v16  ;;  %v19257_v26 = vld [vmem:[#allocation112_spill] sm:$0xff]  ;;  %v16625_v63 = vpop.f32.mrf.mxu1  ;;  %v19259_v11 = vld [vmem:[#allocation77_spill] sm:$0xff]  ;;  %v19261_v2 = vld [vmem:[#allocation78_spill] sm:$0xff] }
 0x285   : > { %v16621_v22 = vadd.f32 %v13050_v62, %v12938_v21  ;;  %v13120_v45 = vadd.f32 %v19257_v26, %v19256_v6  ;;  %v12944_v3 = vadd.f32 %v19259_v11, %v19258_v47  ;;  %v19260_v25 = vld [vmem:[#allocation76_spill] sm:$0xff]  ;;  %v19262_v52 = vld [vmem:[#allocation79_spill] sm:$0xff]  ;;  %v19263_v28 = vld [vmem:[#allocation81_spill] sm:$0xff] }
 0x286   : > { %v16627_v7 = vadd.f32 %v13053_v24, %v12941_v39  ;;  %v13056_v32 = vadd.f32 %v19261_v2, %v19260_v25  ;;  %v12947_v20 = vadd.f32 %v19263_v28, %v19262_v52  ;;  %v19264_v16 = vld [vmem:[#allocation80_spill] sm:$0xff]  ;;  %v19265_v29 = vld [vmem:[#allocation82_spill] sm:$0xff]  ;;  %v19266_v50 = vld [vmem:[#allocation83_spill] sm:$0xff]  ;;  %v13126_v24 = vadd.f32 %v16192_v33, %v16176_v57 }
 0x287   : > { %v13059_v21 = vadd.f32 %v19265_v29, %v19264_v16  ;;  %v19267_v27 = vld [vmem:[#allocation85_spill] sm:$0xff]  ;;  %v19268_v10 = vld [vmem:[#allocation84_spill] sm:$0xff]  ;;  %v19269_v9 = vld [vmem:[#allocation86_spill] sm:$0xff]  ;;  %v4348_v25 = vadd.f32 %v16230_v56, %v16538_v8  ;;  %v4349_v57 = vadd.f32 %v13120_v45, %v16545_v48  ;;  %v13132_v56 = vadd.f32 %v16272_v44, %v16258_v18 }
 0x288   : > { %v12950_v30 = vadd.f32 %v19267_v27, %v19266_v50  ;;  %v13062_v23 = vadd.f32 %v19269_v9, %v19268_v10  ;;  %v19270_v37 = vld [vmem:[#allocation87_spill] sm:$0xff]  ;;  %v19271_v38 = vld [vmem:[#allocation89_spill] sm:$0xff]  ;;  %v19272_v17 = vld [vmem:[#allocation88_spill] sm:$0xff]  ;;  %v16658_v50 = vpop.f32.mrf.mxu1  ;;  %v16660_v27 = vadd.f32 %v13056_v32, %v12944_v3  ;;  %v4350_v10 = vadd.f32 %v16242_v14, %v16547_v49 }
 0x289   : > { %v12953_v62 = vadd.f32 %v19271_v38, %v19270_v37  ;;  %v19273_v42 = vld [vmem:[#allocation90_spill] sm:$0xff]  ;;  %v19274_v31 = vld [vmem:[#allocation91_spill] sm:$0xff]  ;;  %v19275_v4 = vld [vmem:[#allocation93_spill] sm:$0xff]  ;;  %v4351_v8 = vadd.f32 %v13126_v24, %v2693_v58  ;;  %v13238_v48 = vadd.f32 %v16174_v13, %v16148_v0  ;;  %v4352_v45 = vadd.f32 %v16248_v61, %v2698_v1 }
 0x28a   : > { %v13065_v39 = vadd.f32 %v19273_v42, %v19272_v17  ;;  %v12956_v6 = vadd.f32 %v19275_v4, %v19274_v31  ;;  %v19276_v26 = vld [vmem:[#allocation92_spill] sm:$0xff]  ;;  %v19277_v47 = vld [vmem:[#allocation94_spill] sm:$0xff]  ;;  %v19279_v52 = vld [vmem:[#allocation107_spill] sm:$0xff]  ;;  %v13241_v38 = vadd.f32 %v16210_v55, %v16188_v12  ;;  %v16673_v3 = vadd.f32 %v13059_v21, %v12947_v20  ;;  %v16685_v0 = vpop.f32.mrf.mxu1 }
 0x28b   : > { %v13068_v11 = vadd.f32 %v19277_v47, %v19276_v26  ;;  %v19278_v2 = vld [vmem:[#allocation106_spill] sm:$0xff]  ;;  %v19280_v33 = vld [vmem:[#allocation108_spill] sm:$0xff]  ;;  %v19282_v9 = vld [vmem:[#allocation111_spill] sm:$0xff]  ;;  %v16675_v32 = vadd.f32 %v13062_v23, %v12950_v30  ;;  %v4353_v12 = vadd.f32 %v13132_v56, %v2701_v41  ;;  %v16701_v42 = vadd.f32 %v13238_v48, %v4351_v8 }
 0x28c   : > { %v13229_v28 = vadd.f32 %v19279_v52, %v19278_v2  ;;  %v19281_v16 = vld [vmem:[#allocation110_spill] sm:$0xff]  ;;  %v13235_v37 = vadd.f32 %v16144_v51, %v19282_v9  ;;  %v16677_v14 = vadd.f32 %v13065_v39, %v12953_v62  ;;  %v13244_v51 = vadd.f32 %v16250_v53, %v16224_v15  ;;  %v19283_v18 = vld [vmem:[#allocation123_spill] sm:$0xff]  ;;  %v19284_v55 = vld [vmem:[#allocation128_spill] sm:$0xff]  ;;  %v16717_v48 = vpop.f32.mrf.mxu1 }
 0x28d   : > { %v13232_v29 = vadd.f32 %v19281_v16, %v19280_v33  ;;  %v16679_v49 = vadd.f32 %v13068_v11, %v12956_v6  ;;  %v13138_v44 = vadd.f32 %v19283_v18, %v16296_v60  ;;  %v19285_v58 = vld [vmem:[#allocation130_spill] sm:$0xff]  ;;  %v19286_v20 = vld [vmem:[#allocation132_spill] sm:$0xff]  ;;  %v19287_v21 = vld [vmem:[#allocation105_spill] sm:$0xff]  ;;  %v16703_v39 = vadd.f32 %v13241_v38, %v4352_v45 }
 0x28e   : > { %v16687_v13 = vadd.f32 %v13229_v28, %v4348_v25  ;;  %v13144_v1 = vadd.f32 %v19285_v58, %v19284_v55  ;;  %v13150_v30 = vadd.f32 %v19287_v21, %v19286_v20  ;;  %v16695_v23 = vadd.f32 %v13235_v37, %v4350_v10  ;;  %v19288_v24 = vld [vmem:[#allocation115_spill] sm:$0xff]  ;;  %v19289_v15 = vld [vmem:[#allocation116_spill] sm:$0xff]  ;;  %v19291_v60 = vld [vmem:[#allocation138_spill] sm:$0xff] }
 0x28f   : > { %v16689_v61 = vadd.f32 %v13232_v29, %v4349_v57  ;;  %v13247_v53 = vadd.f32 %v19289_v15, %v19288_v24  ;;  %v19290_v62 = vld [vmem:[#allocation136_spill] sm:$0xff]  ;;  %v19292_v31 = vld [vmem:[#allocation121_spill] sm:$0xff]  ;;  %v19294_v6 = vld [vmem:[#allocation118_spill] sm:$0xff]  ;;  %v4355_v57 = vadd.f32 %v13138_v44, %v2709_v36 }
 0x290   : > { %v13156_v17 = vadd.f32 %v19291_v60, %v19290_v62  ;;  %v4354_v41 = vadd.f32 %v19292_v31, %v2706_v40  ;;  %v19293_v4 = vld [vmem:[#allocation117_spill] sm:$0xff]  ;;  %v19295_v47 = vld [vmem:[#allocation119_spill] sm:$0xff]  ;;  %v19296_v11 = vld [vmem:[#allocation120_spill] sm:$0xff]  ;;  %v4357_v38 = vadd.f32 %v13144_v1, %v2717_v19  ;;  %v4359_v58 = vadd.f32 %v13150_v30, %v2725_v54 }
 0x291   : > { %v13250_v26 = vadd.f32 %v19294_v6, %v19293_v4  ;;  %v13253_v25 = vadd.f32 %v19296_v11, %v19295_v47  ;;  %v19297_v2 = vld [vmem:[#allocation122_spill] sm:$0xff]  ;;  %v19298_v52 = vld [vmem:[#allocation124_spill] sm:$0xff]  ;;  %v19299_v33 = vld [vmem:[#allocation127_spill] sm:$0xff]  ;;  %v16737_v30 = vadd.f32 %v13244_v51, %v4353_v12 }
 0x292   : > { %v13256_v28 = vadd.f32 %v19298_v52, %v19297_v2  ;;  %v4356_v16 = vadd.f32 %v19299_v33, %v2714_v43  ;;  %v19300_v29 = vld [vmem:[#allocation125_spill] sm:$0xff]  ;;  %v19301_v10 = vld [vmem:[#allocation126_spill] sm:$0xff]  ;;  %v19303_v56 = vld [vmem:[#allocation103_spill] sm:$0xff]  ;;  %v4361_v24 = vadd.f32 %v13156_v17, %v16617_v46  ;;  %v16743_v17 = vpop.f32.mrf.mxu1  ;;  %v16745_v52 = vadd.f32 %v13247_v53, %v4354_v41 }
 0x293   : > { %v13259_v9 = vadd.f32 %v19301_v10, %v19300_v29  ;;  %v19302_v37 = vld [vmem:[#allocation129_spill] sm:$0xff]  ;;  %v16719_v40 = vld [vmem:[#allocation2] sm:$0xf]  ;;  %v16721_v45 = vld [vmem:[#allocation2 + $0x4] sm:$0x1]  ;;  %v16747_v33 = vadd.f32 %v13250_v26, %v4355_v57 }
 0x294   : > { %v13262_v8 = vadd.f32 %v19303_v56, %v19302_v37  ;;  %v19304_v18 = vld [vmem:[#allocation131_spill] sm:$0xff]  ;;  %v19305_v20 = vld [vmem:[#allocation104_spill] sm:$0xff]  ;;  %v19306_v36 = vld [vmem:[#allocation133_spill] sm:$0xff]  ;;  %v12079_v11 = vcombine.low %v16719_v40, %v16721_v45  ;;  %v16749_v29 = vadd.f32 %v13253_v25, %v4356_v16 }
 0x295   : > { %v4358_v55 = vadd.f32 %v19304_v18, %v2722_v35  ;;  %v13265_v44 = vadd.f32 %v19306_v36, %v19305_v20  ;;  %v19307_v43 = vld [vmem:[#allocation135_spill] sm:$0xff]  ;;  %v19308_v15 = vld [vmem:[#allocation134_spill] sm:$0xff]  ;;  %v19309_v62 = vld [vmem:[#allocation137_spill] sm:$0xff]  ;;  %v13205_v56 = vpop.f32.mrf.mxu0  ;;  %v16757_v18 = vadd.f32 %v13256_v28, %v4357_v38 }
 0x296   : > { %v4360_v21 = vadd.f32 %v19307_v43, %v16615_v5  ;;  %v13268_v60 = vadd.f32 %v19309_v62, %v19308_v15  ;;  %v19310_v31 = vld [vmem:[#allocation144_spill] sm:$0xff]  ;;  %v19311_v4 = vld [vmem:[#allocation145_spill] sm:$0xff]  ;;  %v19312_v47 = vld [vmem:[#allocation142_spill] sm:$0xff]  ;;  %v16755_v12 = vadd.f32 %v13262_v8, %v4359_v58  ;;  %v6664_v28 = vshll.u32 %v12079_v11, 16 }
 0x297   : > { %v13162_v6 = vadd.f32 %v19311_v4, %v19310_v31  ;;  %v4362_v19 = vadd.f32 %v19312_v47, %v16619_v59  ;;  %v19313_v1 = vld [vmem:[#allocation139_spill] sm:$0xff]  ;;  %v19314_v35 = vld [vmem:[#allocation140_spill] sm:$0xff]  ;;  %v19315_v5 = vld [vmem:[#allocation149_spill] sm:$0xff]  ;;  %v16753_v51 = vadd.f32 %v13259_v9, %v4358_v55  ;;  %v13206_v55 = vpop.f32.mrf.mxu0 }
 0x298   : > { %v13271_v54 = vadd.f32 %v19314_v35, %v19313_v1  ;;  %v19316_v2 = vld [vmem:[#allocation151_spill] sm:$0xff]  ;;  %v19317_v59 = vld [vmem:[#allocation156_spill] sm:$0xff]  ;;  %v19318_v10 = vld [vmem:[#allocation158_spill] sm:$0xff]  ;;  %v16762_v41 = vadd.f32 %v13265_v44, %v4360_v21  ;;  %v16764_v26 = vadd.f32 %v13268_v60, %v4361_v24  ;;  %v13207_v24 = vadd.f32 %v13206_v55, %v13205_v56  ;;  %v13318_v60 = vpop.f32.mrf.mxu1 }
 0x299   : > { %v13168_v46 = vadd.f32 %v19316_v2, %v19315_v5  ;;  %v13174_v37 = vadd.f32 %v19318_v10, %v19317_v59  ;;  %v4363_v20 = vadd.f32 %v13162_v6, %v16621_v22  ;;  %v19319_v36 = vld [vmem:[#allocation141_spill] sm:$0xff]  ;;  %v19320_v43 = vld [vmem:[#allocation143_spill] sm:$0xff]  ;;  %v19321_v25 = vld [vmem:[#allocation146_spill] sm:$0xff]  ;;  %v13208_v59 = vpop.f32.mrf.mxu0  ;;  %v6666_v55 = vrot.slane %v6664_v28, 1 }
 0x29a   : > { %v13274_v53 = vadd.f32 %v19320_v43, %v19319_v36  ;;  %v19322_v57 = vld [vmem:[#allocation148_spill] sm:$0xff]  ;;  %v19323_v15 = vld [vmem:[#allocation166_spill] sm:$0xff]  ;;  %v16770_v8 = vadd.f32 %v13271_v54, %v4362_v19  ;;  %v19325_v38 = vld [vmem:[#allocation147_spill] sm:$0xff] }
 0x29b   : > { %v13277_v16 = vadd.f32 %v19322_v57, %v19321_v25  ;;  %v19324_v62 = vld [vmem:[#allocation168_spill] sm:$0xff]  ;;  %v4364_v22 = vadd.f32 %v19325_v38, %v16627_v7  ;;  %v4365_v58 = vadd.f32 %v13168_v46, %v16660_v27  ;;  %v19326_v31 = vld [vmem:[#allocation150_spill] sm:$0xff]  ;;  %v19329_v47 = vld [vmem:[#allocation153_spill] sm:$0xff]  ;;  %v4367_v19 = vadd.f32 %v13174_v37, %v16675_v32  ;;  %v13209_v37 = vpop.f32.mrf.mxu0 }
 0x29c   : > { %v13180_v9 = vadd.f32 %v19324_v62, %v19323_v15  ;;  %v19327_v44 = vld [vmem:[#allocation152_spill] sm:$0xff]  ;;  %v19328_v4 = vld [vmem:[#allocation154_spill] sm:$0xff]  ;;  %v19330_v1 = vld [vmem:[#allocation155_spill] sm:$0xff]  ;;  %v16791_v25 = vadd.f32 %v13274_v53, %v4363_v20  ;;  %v6662_v62 = vshrl.u32 %v12079_v11, 16 }
 0x29d   : > { %v13280_v21 = vadd.f32 %v19327_v44, %v19326_v31  ;;  %v4366_v6 = vadd.f32 %v19328_v4, %v16673_v3  ;;  %v13283_v35 = vadd.f32 %v19330_v1, %v19329_v47  ;;  %v19331_v54 = vld [vmem:[#allocation157_spill] sm:$0xff]  ;;  %v19332_v5 = vld [vmem:[#allocation159_spill] sm:$0xff]  ;;  %v19333_v7 = vld [vmem:[#allocation160_spill] sm:$0xff]  ;;  %v16800_v20 = vadd.f32 %v13277_v16, %v4364_v22 }
 0x29e   : > { %v13286_v2 = vadd.f32 %v19332_v5, %v19331_v54  ;;  %v4368_v27 = vadd.f32 %v19333_v7, %v16677_v14  ;;  %v19334_v46 = vld [vmem:[#allocation161_spill] sm:$0xff]  ;;  %v19335_v10 = vld [vmem:[#allocation162_spill] sm:$0xff]  ;;  %v4369_v3 = vadd.f32 %v13180_v9, %v16679_v49  ;;  %v19337_v57 = vld [vmem:[#allocation163_spill] sm:$0xff]  ;;  %v13320_v5 = vpop.f32.mrf.mxu1  ;;  %v13837_v7 = vpop.f32.mrf.mxu0 }
 0x29f   : > { %v13289_v36 = vadd.f32 %v19335_v10, %v19334_v46  ;;  %v19336_v56 = vld [vmem:[#allocation113_spill] sm:$0xff]  ;;  %v19338_v15 = vld [vmem:[#allocation164_spill] sm:$0xff]  ;;  %v19340_v14 = vld [vmem:[#allocation167_spill] sm:$0xff]  ;;  %v16809_v28 = vadd.f32 %v13283_v35, %v4366_v6  ;;  %v16813_v10 = vadd.f32 %v13280_v21, %v4365_v58  ;;  %v5729_v16 = vadd.f32 %v13837_v7, %v16695_v23 }
 0x2a0   : > { %v16789_v43 = vadd.f32 %v13207_v24, %v19336_v56  ;;  %v13292_v32 = vadd.f32 %v19338_v15, %v19337_v57  ;;  %v6445_v38 = vld [vmem:[#allocation2 + $0x50] sm:$0xf]  ;;  %v6477_v31 = vld [vmem:[#allocation2 + $0x54] sm:$0x1]  ;;  %v19342_v1 = vld [vmem:[#allocation95_spill] sm:$0xff]  ;;  %v13210_v24 = vadd.f32 %v13209_v37, %v13208_v59  ;;  %v16811_v46 = vadd.f32 %v13286_v2, %v4367_v19  ;;  %v5600_v6 = vpop.f32.mrf.mxu0  ;;  %v13321_v58 = vpop.f32.mrf.mxu1 }
 0x2a1   : > { %v19339_v44 = vld [vmem:[#allocation165_spill] sm:$0xff]  ;;  %v19343_v53 = vld [vmem:[#allocation96_spill] sm:$0xff]  ;;  %v19344_v49 = vld [vmem:[#allocation99_spill] sm:$0xff]  ;;  %v16817_v22 = vadd.f32 %v13289_v36, %v4368_v27  ;;  %v16819_v57 = vcombine.low %v6445_v38, %v6477_v31  ;;  %v16825_v35 = vor.u32 %v6666_v55, %v6662_v62  ;;  %v5727_v23 = vadd.f32 %v5600_v6, %v16687_v13 }
 0x2a2   : > { %v13295_v4 = vadd.f32 %v19340_v14, %v19339_v44  ;;  %v19341_v47 = vld [vmem:[#allocation169_spill] sm:$0xff]  ;;  %v13301_v9 = vadd.f32 %v19344_v49, %v19343_v53  ;;  %v16807_v11 = vld [vmem:[%s18950_s2] ss:$0 sm:$0xff]  ;;  %v19345_v56 = vld [vmem:[#allocation114_spill] sm:$0xff]  ;;  %v16827_v19 = vadd.f32 %v13292_v32, %v4369_v3  ;;  %v13313_v62 = vadd.f32 %v16658_v50, %v16625_v63  ;;  %v13838_v32 = vpop.f32.mrf.mxu0 }
 0x2a3   : > { %v13298_v54 = vadd.f32 %v19342_v1, %v19341_v47  ;;  %v4379_v59 = vadd.f32 %v13210_v24, %v19345_v56  ;;  %v19346_v15 = vld [vmem:[#allocation100_spill] sm:$0xff]  ;;  %v19347_v37 = vld [vmem:[#allocation170_spill] sm:$0xff]  ;;  %v19348_v14 = vld [vmem:[#allocation9_spill] sm:$0xff]  ;;  %v5768_v21 = vadd.f32 %v16807_v11, %v5729_v16  ;;  %v13316_v3 = vadd.f32 %v16717_v48, %v16685_v0 }
 0x2a4   : > { %v13304_v44 = vadd.f32 %v19347_v37, %v19346_v15  ;;  %v19349_v47 = vld [vmem:[#allocation8_spill] sm:$0xff]  ;;  %v19350_v2 = vld [vmem:[#allocation97_spill] sm:$0xff]  ;;  %v19351_v36 = vld [vmem:[#allocation98_spill] sm:$0xff]  ;;  %v5730_v7 = vadd.f32 %v13838_v32, %v16701_v42  ;;  %v13319_v56 = vadd.f32 %v13318_v60, %v16743_v17  ;;  %v13322_v16 = vadd.f32 %v13321_v58, %v13320_v5  ;;  %v5603_v15 = vpop.f32.mrf.mxu0 }
 0x2a5   : > { %v13307_v1 = vadd.f32 %v19349_v47, %v19348_v14  ;;  %v16832_v27 = vadd.f32 %v13295_v4, %v19350_v2  ;;  %v16835_v38 = vadd.f32 %v13298_v54, %v19351_v36  ;;  %v19352_v31 = vld [vmem:[#allocation11_spill] sm:$0xff]  ;;  %v19353_v24 = vld [vmem:[#allocation12_spill] sm:$0xff]  ;;  %v19354_v55 = vld [vmem:[#allocation101_spill] sm:$0xff]  ;;  %v5800_v13 = vmax.f32 %v5768_v21, 0.0 }
 0x2a6   : > { %v13310_v53 = vadd.f32 %v19353_v24, %v19352_v31  ;;  %v16844_v49 = vadd.f32 %v13301_v9, %v19354_v55  ;;  %v5766_v4 = vadd.f32 %v16807_v11, %v5727_v23  ;;  %v6720_v54 = vshll.u32 %v16819_v57, 16  ;;  %v19355_v37 = vld [vmem:[#allocation7_spill] sm:$0xff]  ;;  %v19356_v50 = vld [vmem:[#allocation102_spill] sm:$0xff]  ;;  %v13841_v6 = vpop.f32.mrf.mxu0  ;;  %v19358_v23 = vld [vmem:[#allocation13_spill] sm:$0xff] }
 0x2a7   : > { %v16851_v63 = vadd.f32 %v13307_v1, %v19355_v37  ;;  %v16854_v0 = vadd.f32 %v13304_v44, %v19356_v50  ;;  %v12718_v48 = vpack.c.bf16 %v5800_v13, %v5800_v13  ;;  %v5769_v14 = vadd.f32 %v16807_v11, %v5730_v7  ;;  %v19357_v42 = vld [vmem:[#allocation10_spill] sm:$0xff] }
 0x2a8   : > { %v5798_v9 = vmax.f32 %v5766_v4, 0.0  ;;  %v5728_v47 = vadd.f32 %v5603_v15, %v16689_v61  ;;  %v16859_v21 = vadd.f32 %v13310_v53, %v19357_v42  ;;  %v16862_v17 = vadd.f32 %v13313_v62, %v19358_v23  ;;  %v5616_v31 = vpop.f32.mrf.mxu0  ;;  %v6257_v55 = vld [vmem:[#allocation2 + $0x18] sm:$0xf]  ;;  %v6260_v13 = vld [vmem:[#allocation2 + $0x1c] sm:$0x1] }
 0x2a9   : > { %v16865_v60 = vadd.f32 %v13316_v3, %v16609_v34  ;;  %v6718_v5 = vshrl.u32 %v16819_v57, 16  ;;  %v5943_v44 = vshrl.u32 %v12718_v48, 16  ;;  %v5801_v58 = vmax.f32 %v5769_v14, 0.0 }
 0x2aa   : > { %v12716_v1 = vpack.c.bf16 %v5798_v9, %v5798_v9  ;;  %v16868_v2 = vrot.slane %v6720_v54, 1  ;;  %v5767_v36 = vadd.f32 %v16807_v11, %v5728_v47  ;;  %v5733_v61 = vadd.f32 %v13841_v6, %v16745_v52  ;;  %v13842_v37 = vpop.f32.mrf.mxu0 }
 0x2ab   : > { %v16873_v24 = vadd.f32 %v13319_v56, %v16789_v43  ;;  %v16875_v53 = vadd.f32 %v13322_v16, %v4379_v59  ;;  %v5945_v62 = vrot.slane %v5943_v44, 7  ;;  %v5946_v34 = vshll.u32 %v12718_v48, 16  ;;  %v6248_v56 = vld [vmem:[#allocation2 + $0xc] sm:$0x1] }
 0x2ac   : > { %v5927_v3 = vshrl.u32 %v12716_v1, 16  ;;  %v12719_v32 = vpack.c.bf16 %v5801_v58, %v5801_v58  ;;  %v5930_v4 = vshll.u32 %v12716_v1, 16  ;;  %v5799_v7 = vmax.f32 %v5767_v36, 0.0  ;;  %v5619_v47 = vpop.f32.mrf.mxu0 }
 0x2ad   : > { %v5772_v54 = vadd.f32 %v16807_v11, %v5733_v61  ;;  %v5731_v15 = vadd.f32 %v5616_v31, %v16703_v39  ;;  %v5948_v52 = vor.u32 %v5946_v34, %v5945_v62  ;;  %v5949_v50 = vrot.slane %v5945_v62, 4  ;;  %v14413_v34 = vld [vmem:[#allocation2 + $0x8] sm:$0xf] }
 0x2ae   : > { %v5929_v9 = vrot.slane %v5927_v3, 7  ;;  %v5951_v43 = vshrl.u32 %v12719_v32, 16  ;;  %v5954_v59 = vshll.u32 %v12719_v32, 16  ;;  %v12717_v16 = vpack.c.bf16 %v5799_v7, %v5799_v7  ;;  %v13845_v62 = vpop.f32.mrf.mxu0  ;;  %v6266_v7 = vld [vmem:[#allocation2 + $0x24] sm:$0x1] }
 0x2af   : > { %v5804_v14 = vmax.f32 %v5772_v54, 0.0  ;;  %v5770_v48 = vadd.f32 %v16807_v11, %v5731_v15  ;;  %v6258_v42 = vsel %vm14630_vm6, %v5948_v52, %v6257_v55  ;;  %v6261_v44 = vsel %vm14600_vm2, %v5949_v50, %v6260_v13  ;;  %v6263_v55 = vld [vmem:[#allocation2 + $0x20] sm:$0xf] }
 0x2b0   : > { %v5932_v1 = vor.u32 %v5930_v4, %v5929_v9  ;;  %v5933_v39 = vrot.slane %v5929_v9, 4  ;;  %6262 = vst [vmem:[#allocation2 + $0x1c] sm:$0x1] %v6261_v44  ;;  %6259 = vst [vmem:[#allocation2 + $0x18] sm:$0xf] %v6258_v42  ;;  %v5953_v58 = vrot.slane %v5951_v43, 7  ;;  %v5734_v13 = vadd.f32 %v13842_v37, %v16747_v33  ;;  %v5632_v9 = vpop.f32.mrf.mxu0 }
 0x2b1   : > { %v5935_v36 = vshrl.u32 %v12717_v16, 16  ;;  %v5938_v61 = vshll.u32 %v12717_v16, 16  ;;  %v12722_v31 = vpack.c.bf16 %v5804_v14, %v5804_v14  ;;  %v5802_v54 = vmax.f32 %v5770_v48, 0.0  ;;  %v6251_v43 = vld [vmem:[#allocation2 + $0x10] sm:$0xf] }
 0x2b2   : > { %v6246_v3 = vsel %vm14630_vm6, %v5932_v1, %v14413_v34  ;;  %v6249_v32 = vsel %vm14600_vm2, %v5933_v39, %v6248_v56  ;;  %v5956_v4 = vor.u32 %v5954_v59, %v5953_v58  ;;  %v5957_v15 = vrot.slane %v5953_v58, 4  ;;  %v6254_v16 = vld [vmem:[#allocation2 + $0x14] sm:$0x1]  ;;  %v13846_v1 = vpop.f32.mrf.mxu0 }
 0x2b3   : > { %6247 = vst [vmem:[#allocation2 + $0x8] sm:$0xf] %v6246_v3  ;;  %6250 = vst [vmem:[#allocation2 + $0xc] sm:$0x1] %v6249_v32  ;;  %v5937_v52 = vrot.slane %v5935_v36, 7  ;;  %v5975_v50 = vshrl.u32 %v12722_v31, 16  ;;  %v12720_v42 = vpack.c.bf16 %v5802_v54, %v5802_v54  ;;  %v5773_v44 = vadd.f32 %v16807_v11, %v5734_v13 }
 0x2b4   : > { %v5978_v14 = vshll.u32 %v12722_v31, 16  ;;  %v5732_v56 = vadd.f32 %v5619_v47, %v16737_v30  ;;  %v6264_v48 = vsel %vm14630_vm6, %v5956_v4, %v6263_v55  ;;  %v6267_v33 = vsel %vm14600_vm2, %v5957_v15, %v6266_v7  ;;  %v6281_v47 = vld [vmem:[#allocation2 + $0x38] sm:$0xf]  ;;  %v6284_v3 = vld [vmem:[#allocation2 + $0x3c] sm:$0x1]  ;;  %v5635_v55 = vpop.f32.mrf.mxu0 }
 0x2b5   : > { %v5940_v37 = vor.u32 %v5938_v61, %v5937_v52  ;;  %v5941_v59 = vrot.slane %v5937_v52, 4  ;;  %6268 = vst [vmem:[#allocation2 + $0x24] sm:$0x1] %v6267_v33  ;;  %6265 = vst [vmem:[#allocation2 + $0x20] sm:$0xf] %v6264_v48  ;;  %v5977_v39 = vrot.slane %v5975_v50, 7  ;;  %v5737_v61 = vadd.f32 %v13845_v62, %v16753_v51 }
 0x2b6   : > { %v5959_v58 = vshrl.u32 %v12720_v42, 16  ;;  %v5962_v36 = vshll.u32 %v12720_v42, 16  ;;  %v5805_v31 = vmax.f32 %v5773_v44, 0.0  ;;  %v5771_v32 = vadd.f32 %v16807_v11, %v5732_v56  ;;  %v6269_v4 = vld [vmem:[#allocation2 + $0x28] sm:$0xf]  ;;  %v13849_v44 = vpop.f32.mrf.mxu0 }
 0x2b7   : > { %v6252_v34 = vsel %vm14630_vm6, %v5940_v37, %v6251_v43  ;;  %v6255_v30 = vsel %vm14600_vm2, %v5941_v59, %v6254_v16  ;;  %v5980_v7 = vor.u32 %v5978_v14, %v5977_v39  ;;  %v5981_v54 = vrot.slane %v5977_v39, 4  ;;  %v6272_v52 = vld [vmem:[#allocation2 + $0x2c] sm:$0x1] }
 0x2b8   : > { %6256 = vst [vmem:[#allocation2 + $0x14] sm:$0x1] %v6255_v30  ;;  %6253 = vst [vmem:[#allocation2 + $0x10] sm:$0xf] %v6252_v34  ;;  %v5961_v13 = vrot.slane %v5959_v58, 7  ;;  %v12723_v15 = vpack.c.bf16 %v5805_v31, %v5805_v31  ;;  %v5803_v50 = vmax.f32 %v5771_v32, 0.0  ;;  %v5776_v43 = vadd.f32 %v16807_v11, %v5737_v61  ;;  %v5648_v39 = vpop.f32.mrf.mxu0 }
 0x2b9   : > { %v5735_v16 = vadd.f32 %v5632_v9, %v16749_v29  ;;  %v5738_v42 = vadd.f32 %v13846_v1, %v16755_v12  ;;  %v6282_v51 = vsel %vm14630_vm6, %v5980_v7, %v6281_v47  ;;  %v6285_v62 = vsel %vm14600_vm2, %v5981_v54, %v6284_v3  ;;  %v6287_v47 = vld [vmem:[#allocation2 + $0x40] sm:$0xf]  ;;  %v6290_v3 = vld [vmem:[#allocation2 + $0x44] sm:$0x1] }
 0x2ba   : > { %v5964_v14 = vor.u32 %v5962_v36, %v5961_v13  ;;  %v5965_v56 = vrot.slane %v5961_v13, 4  ;;  %6286 = vst [vmem:[#allocation2 + $0x3c] sm:$0x1] %v6285_v62  ;;  %6283 = vst [vmem:[#allocation2 + $0x38] sm:$0xf] %v6282_v51  ;;  %v5983_v48 = vshrl.u32 %v12723_v15, 16  ;;  %v12721_v37 = vpack.c.bf16 %v5803_v50, %v5803_v50  ;;  %v13850_v30 = vpop.f32.mrf.mxu0 }
 0x2bb   : > { %v5986_v33 = vshll.u32 %v12723_v15, 16  ;;  %v5808_v59 = vmax.f32 %v5776_v43, 0.0  ;;  %v5774_v9 = vadd.f32 %v16807_v11, %v5735_v16  ;;  %v5777_v1 = vadd.f32 %v16807_v11, %v5738_v42  ;;  %v6278_v43 = vld [vmem:[#allocation2 + $0x34] sm:$0x1] }
 0x2bc   : > { %v6270_v29 = vsel %vm14630_vm6, %v5964_v14, %v6269_v4  ;;  %v6273_v12 = vsel %vm14600_vm2, %v5965_v56, %v6272_v52  ;;  %v5985_v58 = vrot.slane %v5983_v48, 7  ;;  %v5967_v36 = vshrl.u32 %v12721_v37, 16  ;;  %v6275_v52 = vld [vmem:[#allocation2 + $0x30] sm:$0xf]  ;;  %v5651_v14 = vpop.f32.mrf.mxu0 }
 0x2bd   : > { %6274 = vst [vmem:[#allocation2 + $0x2c] sm:$0x1] %v6273_v12  ;;  %6271 = vst [vmem:[#allocation2 + $0x28] sm:$0xf] %v6270_v29  ;;  %v5970_v31 = vshll.u32 %v12721_v37, 16  ;;  %v12726_v34 = vpack.c.bf16 %v5808_v59, %v5808_v59  ;;  %v5806_v32 = vmax.f32 %v5774_v9, 0.0  ;;  %v5736_v7 = vadd.f32 %v5635_v55, %v16757_v18 }
 0x2be   : > { %v5809_v61 = vmax.f32 %v5777_v1, 0.0  ;;  %v5741_v54 = vadd.f32 %v13849_v44, %v16770_v8  ;;  %v5988_v13 = vor.u32 %v5986_v33, %v5985_v58  ;;  %v5989_v4 = vrot.slane %v5985_v58, 4  ;;  %v6305_v12 = vld [vmem:[#allocation2 + $0x68] sm:$0xf]  ;;  %v6308_v9 = vld [vmem:[#allocation2 + $0x6c] sm:$0x1] }
 0x2bf   : > { %v5969_v15 = vrot.slane %v5967_v36, 7  ;;  %v6007_v50 = vshrl.u32 %v12726_v34, 16  ;;  %v6010_v16 = vshll.u32 %v12726_v34, 16  ;;  %v12724_v42 = vpack.c.bf16 %v5806_v32, %v5806_v32  ;;  %v14239_v32 = vld [vmem:[%s18951_s3 + $0x1f8] sm:$0xff]  }
 0x2c0   : > { %v12727_v51 = vpack.c.bf16 %v5809_v61, %v5809_v61  ;;  %v5775_v62 = vadd.f32 %v16807_v11, %v5736_v7  ;;  %v6288_v56 = vsel %vm14630_vm6, %v5988_v13, %v6287_v47  ;;  %v6291_v18 = vsel %vm14600_vm2, %v5989_v4, %v6290_v3  ;;  %v13853_v3 = vpop.f32.mrf.mxu0  ;;  %v6293_v61 = vld [vmem:[#allocation2 + $0x58] sm:$0xf]  ;;  %v6296_v7 = vld [vmem:[#allocation2 + $0x5c] sm:$0x1]  ;;  %13683 = vmatprep.subr.bf16.mxu0 %v14239_v32 }
 0x2c1   : > { %v5972_v55 = vor.u32 %v5970_v31, %v5969_v15  ;;  %v5973_v8 = vrot.slane %v5969_v15, 4  ;;  %6289 = vst [vmem:[#allocation2 + $0x40] sm:$0xf] %v6288_v56  ;;  %6292 = vst [vmem:[#allocation2 + $0x44] sm:$0x1] %v6291_v18  ;;  %v6009_v44 = vrot.slane %v6007_v50, 7  ;;  %v5780_v4 = vadd.f32 %v16807_v11, %v5741_v54 }
 0x2c2   : > { %v5991_v48 = vshrl.u32 %v12724_v42, 16  ;;  %v5994_v33 = vshll.u32 %v12724_v42, 16  ;;  %v6015_v37 = vshrl.u32 %v12727_v51, 16  ;;  %v6018_v1 = vshll.u32 %v12727_v51, 16  ;;  %v6311_v51 = vld [vmem:[#allocation2 + $0x70] sm:$0xf] }
 0x2c3   : > { %v6276_v59 = vsel %vm14630_vm6, %v5972_v55, %v6275_v52  ;;  %v6279_v29 = vsel %vm14600_vm2, %v5973_v8, %v6278_v43  ;;  %v5807_v58 = vmax.f32 %v5775_v62, 0.0  ;;  %v6012_v36 = vor.u32 %v6010_v16, %v6009_v44  ;;  %v6314_v62 = vld [vmem:[#allocation2 + $0x74] sm:$0x1]  ;;  %v5664_v8 = vpop.f32.mrf.mxu0 }
 0x2c4   : > { %6280 = vst [vmem:[#allocation2 + $0x34] sm:$0x1] %v6279_v29  ;;  %6277 = vst [vmem:[#allocation2 + $0x30] sm:$0xf] %v6276_v59  ;;  %v6013_v31 = vrot.slane %v6009_v44, 4  ;;  %v5993_v34 = vrot.slane %v5991_v48, 7  ;;  %v5739_v15 = vadd.f32 %v5648_v39, %v16762_v41  ;;  %v5742_v52 = vadd.f32 %v13850_v30, %v16791_v25 }
 0x2c5   : > { %v6017_v47 = vrot.slane %v6015_v37, 7  ;;  %v12725_v13 = vpack.c.bf16 %v5807_v58, %v5807_v58  ;;  %v6306_v50 = vsel %vm14630_vm6, %v6012_v36, %v6305_v12  ;;  %v5812_v39 = vmax.f32 %v5780_v4, 0.0  ;;  %v6299_v59 = vld [vmem:[#allocation2 + $0x60] sm:$0xf]  ;;  %v6302_v29 = vld [vmem:[#allocation2 + $0x64] sm:$0x1] }
 0x2c6   : > { %v6309_v43 = vsel %vm14600_vm2, %v6013_v31, %v6308_v9  ;;  %v5996_v16 = vor.u32 %v5994_v33, %v5993_v34  ;;  %v5997_v42 = vrot.slane %v5993_v34, 4  ;;  %6307 = vst [vmem:[#allocation2 + $0x68] sm:$0xf] %v6306_v50  ;;  %v5778_v30 = vadd.f32 %v16807_v11, %v5739_v15 }
 0x2c7   : > { %6310 = vst [vmem:[#allocation2 + $0x6c] sm:$0x1] %v6309_v43  ;;  %v6020_v56 = vor.u32 %v6018_v1, %v6017_v47  ;;  %v6021_v18 = vrot.slane %v6017_v47, 4  ;;  %v5999_v54 = vshrl.u32 %v12725_v13, 16  ;;  %v6002_v55 = vshll.u32 %v12725_v13, 16 }
 0x2c8   : > { %v6294_v41 = vsel %vm14630_vm6, %v5996_v16, %v6293_v61  ;;  %v6297_v25 = vsel %vm14600_vm2, %v5997_v42, %v6296_v7  ;;  %v5781_v37 = vadd.f32 %v16807_v11, %v5742_v52  ;;  %v12730_v12 = vpack.c.bf16 %v5812_v39, %v5812_v39  ;;  %v6329_v52 = vld [vmem:[#allocation2 + $0x88] sm:$0xf]  ;;  %v13854_v16 = vpop.f32.mrf.mxu0  ;;  %v6317_v42 = vld [vmem:[#allocation2 + $0x78] sm:$0xf]  ;;  %v6335_v39 = vld [vmem:[#allocation2 + $0x90] sm:$0xf] }
 0x2c9   : > { %6295 = vst [vmem:[#allocation2 + $0x58] sm:$0xf] %v6294_v41  ;;  %6298 = vst [vmem:[#allocation2 + $0x5c] sm:$0x1] %v6297_v25  ;;  %v6312_v44 = vsel %vm14630_vm6, %v6020_v56, %v6311_v51  ;;  %v6315_v48 = vsel %vm14600_vm2, %v6021_v18, %v6314_v62  ;;  %v6001_v33 = vrot.slane %v5999_v54, 7  ;;  %v5810_v9 = vmax.f32 %v5778_v30, 0.0 }
 0x2ca   : > { %6316 = vst [vmem:[#allocation2 + $0x74] sm:$0x1] %v6315_v48  ;;  %6313 = vst [vmem:[#allocation2 + $0x70] sm:$0xf] %v6312_v44  ;;  %v5740_v1 = vadd.f32 %v5651_v14, %v16764_v26  ;;  %v5745_v58 = vadd.f32 %v13853_v3, %v16809_v28  ;;  %v5813_v34 = vmax.f32 %v5781_v37, 0.0  ;;  %v5743_v47 = vadd.f32 %v5664_v8, %v16800_v20 }
 0x2cb   : > { %v6004_v36 = vor.u32 %v6002_v55, %v6001_v33  ;;  %v6005_v31 = vrot.slane %v6001_v33, 4  ;;  %v6039_v32 = vshrl.u32 %v12730_v12, 16  ;;  %v6042_v61 = vshll.u32 %v12730_v12, 16  ;;  %v6332_v3 = vld [vmem:[#allocation2 + $0x8c] sm:$0x1] }
 0x2cc   : > { %v12728_v7 = vpack.c.bf16 %v5810_v9, %v5810_v9  ;;  %v5779_v13 = vadd.f32 %v16807_v11, %v5740_v1  ;;  %v12731_v26 = vpack.c.bf16 %v5813_v34, %v5813_v34  ;;  %v5784_v28 = vadd.f32 %v16807_v11, %v5745_v58  ;;  %v6320_v25 = vld [vmem:[#allocation2 + $0x7c] sm:$0x1]  ;;  %v6338_v44 = vld [vmem:[#allocation2 + $0x94] sm:$0x1]  ;;  %v16960_v1 = vld [vmem:[#allocation2 + $0x8] sm:$0xf] }
 0x2cd   : > { %v6300_v4 = vsel %vm14630_vm6, %v6004_v36, %v6299_v59  ;;  %v6303_v15 = vsel %vm14600_vm2, %v6005_v31, %v6302_v29  ;;  %v6041_v14 = vrot.slane %v6039_v32, 7  ;;  %v5782_v18 = vadd.f32 %v16807_v11, %v5743_v47  ;;  %v16962_v58 = vld [vmem:[#allocation2 + $0xc] sm:$0x1] }
 0x2ce   : > { %6304 = vst [vmem:[#allocation2 + $0x64] sm:$0x1] %v6303_v15  ;;  %6301 = vst [vmem:[#allocation2 + $0x60] sm:$0xf] %v6300_v4  ;;  %v6023_v20 = vshrl.u32 %v12728_v7, 16  ;;  %v6026_v50 = vshll.u32 %v12728_v7, 16  ;;  %v5746_v37 = vadd.f32 %v13854_v16, %v16811_v46  ;;  %v12319_v16 = vcombine.low %v16719_v40, %v16960_v1 }
 0x2cf   : > { %v5811_v43 = vmax.f32 %v5779_v13, 0.0  ;;  %v6047_v51 = vshrl.u32 %v12731_v26, 16  ;;  %v6050_v62 = vshll.u32 %v12731_v26, 16  ;;  %v5816_v56 = vmax.f32 %v5784_v28, 0.0  ;;  %v5667_v13 = vpop.f32.mrf.mxu0  ;;  %v6323_v26 = vld [vmem:[#allocation2 + $0x80] sm:$0xf] }
 0x2d0   : > { %v6044_v54 = vor.u32 %v6042_v61, %v6041_v14  ;;  %v6045_v55 = vrot.slane %v6041_v14, 4  ;;  %v6025_v41 = vrot.slane %v6023_v20, 7  ;;  %v5814_v33 = vmax.f32 %v5782_v18, 0.0  ;;  %v6326_v14 = vld [vmem:[#allocation2 + $0x84] sm:$0x1] }
 0x2d1   : > { %v12729_v30 = vpack.c.bf16 %v5811_v43, %v5811_v43  ;;  %v6049_v8 = vrot.slane %v6047_v51, 7  ;;  %v12734_v48 = vpack.c.bf16 %v5816_v56, %v5816_v56  ;;  %v6353_v20 = vld [vmem:[#allocation2 + $0xb8] sm:$0xf]  ;;  %v12080_v43 = vcombine.low %v16960_v1, %v16962_v58 }
 0x2d2   : > { %v6330_v59 = vsel %vm14630_vm6, %v6044_v54, %v6329_v52  ;;  %v6333_v29 = vsel %vm14600_vm2, %v6045_v55, %v6332_v3  ;;  %v6028_v12 = vor.u32 %v6026_v50, %v6025_v41  ;;  %v6029_v9 = vrot.slane %v6025_v41, 4  ;;  %v6341_v41 = vld [vmem:[#allocation2 + $0xa8] sm:$0xf] }
 0x2d3   : > { %6334 = vst [vmem:[#allocation2 + $0x8c] sm:$0x1] %v6333_v29  ;;  %6331 = vst [vmem:[#allocation2 + $0x88] sm:$0xf] %v6330_v59  ;;  %v6052_v36 = vor.u32 %v6050_v62, %v6049_v8  ;;  %v6053_v31 = vrot.slane %v6049_v8, 4  ;;  %v6031_v34 = vshrl.u32 %v12729_v30, 16  ;;  %v12732_v28 = vpack.c.bf16 %v5814_v33, %v5814_v33 }
 0x2d4   : > { %v6034_v47 = vshll.u32 %v12729_v30, 16  ;;  %v6318_v46 = vsel %vm14630_vm6, %v6028_v12, %v6317_v42  ;;  %v6321_v32 = vsel %vm14600_vm2, %v6029_v9, %v6320_v25  ;;  %v6071_v61 = vshrl.u32 %v12734_v48, 16  ;;  %v6356_v62 = vld [vmem:[#allocation2 + $0xbc] sm:$0x1]  ;;  %v13857_v30 = vpop.f32.mrf.mxu0  ;;  %v16983_v59 = vld [vmem:[#allocation2 + $0x14] sm:$0x1] }
 0x2d5   : > { %v6074_v7 = vshll.u32 %v12734_v48, 16  ;;  %6322 = vst [vmem:[#allocation2 + $0x7c] sm:$0x1] %v6321_v32  ;;  %6319 = vst [vmem:[#allocation2 + $0x78] sm:$0xf] %v6318_v46  ;;  %v6336_v4 = vsel %vm14630_vm6, %v6052_v36, %v6335_v39  ;;  %v6339_v15 = vsel %vm14600_vm2, %v6053_v31, %v6338_v44  ;;  %v6033_v52 = vrot.slane %v6031_v34, 7 }
 0x2d6   : > { %6337 = vst [vmem:[#allocation2 + $0x90] sm:$0xf] %v6336_v4  ;;  %6340 = vst [vmem:[#allocation2 + $0x94] sm:$0x1] %v6339_v15  ;;  %v6073_v3 = vrot.slane %v6071_v61, 7  ;;  %v5785_v50 = vadd.f32 %v16807_v11, %v5746_v37  ;;  %v6055_v56 = vshrl.u32 %v12732_v28, 16  ;;  %v5744_v31 = vadd.f32 %v5667_v13, %v16813_v10 }
 0x2d7   : > { %v6036_v42 = vor.u32 %v6034_v47, %v6033_v52  ;;  %v6037_v51 = vrot.slane %v6033_v52, 4  ;;  %v6058_v18 = vshll.u32 %v12732_v28, 16  ;;  %v6669_v39 = vshrl.u32 %v12080_v43, 16  ;;  %v16981_v37 = vld [vmem:[#allocation2 + $0x10] sm:$0xf] }
 0x2d8   : > { %v6076_v54 = vor.u32 %v6074_v7, %v6073_v3  ;;  %v6077_v55 = vrot.slane %v6073_v3, 4  ;;  %v5817_v25 = vmax.f32 %v5785_v50, 0.0  ;;  %v6057_v48 = vrot.slane %v6055_v56, 7  ;;  %v6344_v9 = vld [vmem:[#allocation2 + $0xac] sm:$0x1] }
 0x2d9   : > { %v6324_v8 = vsel %vm14630_vm6, %v6036_v42, %v6323_v26  ;;  %v6327_v44 = vsel %vm14600_vm2, %v6037_v51, %v6326_v14  ;;  %v6671_v33 = vshll.u32 %v12080_v43, 16  ;;  %v16990_v34 = vld [vmem:[#allocation2 + $0x18] sm:$0xf]  ;;  %v16992_v47 = vld [vmem:[#allocation2 + $0x1c] sm:$0x1]  ;;  %v5749_v7 = vadd.f32 %v13857_v30, %v16832_v27 }
 0x2da   : > { %6328 = vst [vmem:[#allocation2 + $0x84] sm:$0x1] %v6327_v44  ;;  %6325 = vst [vmem:[#allocation2 + $0x80] sm:$0xf] %v6324_v8  ;;  %v6354_v29 = vsel %vm14630_vm6, %v6076_v54, %v6353_v20  ;;  %v6357_v12 = vsel %vm14600_vm2, %v6077_v55, %v6356_v62  ;;  %v12735_v36 = vpack.c.bf16 %v5817_v25, %v5817_v25  ;;  %v6061_v32 = vrot.slane %v6057_v48, 4 }
 0x2db   : > { %6358 = vst [vmem:[#allocation2 + $0xbc] sm:$0x1] %v6357_v12  ;;  %6355 = vst [vmem:[#allocation2 + $0xb8] sm:$0xf] %v6354_v29  ;;  %v6060_v46 = vor.u32 %v6058_v18, %v6057_v48  ;;  %v6673_v61 = vrot.slane %v6671_v33, 1  ;;  %v5783_v26 = vadd.f32 %v16807_v11, %v5744_v31  ;;  %v12081_v28 = vcombine.low %v16981_v37, %v16983_v59  ;;  %v5680_v48 = vpop.f32.mrf.mxu0  ;;  %v14253_v33 = vld [vmem:[%s18951_s3 + $0x1f0] sm:$0xff]  }
 0x2dc   : > { %v14189_v4 = vld [vmem:[#allocation2 + $0x8] ss:$0 sps:$4 sm:$0xff]   ;;  %v6079_v15 = vshrl.u32 %v12735_v36, 16  ;;  %v6082_v52 = vshll.u32 %v12735_v36, 16  ;;  %v6345_v13 = vsel %vm14600_vm2, %v6061_v32, %v6344_v9  ;;  %v6359_v14 = vld [vmem:[#allocation2 + $0xc0] sm:$0xf]  ;;  %v5788_v20 = vadd.f32 %v16807_v11, %v5749_v7 }
 0x2dd   : > { %v6342_v10 = vsel %vm14630_vm6, %v6060_v46, %v6341_v41  ;;  %v6674_v3 = vor.u32 %v6673_v61, %v6669_v39  ;;  %v14190_v50 = vld [vmem:[#allocation2 + $0x10] ss:$0 sps:$4 sm:$0xff]   ;;  %6346 = vst [vmem:[#allocation2 + $0xac] sm:$0x1] %v6345_v13  ;;  %v5815_v43 = vmax.f32 %v5783_v26, 0.0  ;;  %v12082_v42 = vcombine.low %v16990_v34, %v16992_v47  ;;  %v14240_v41 = vld [vmem:[%s18951_s3 + $0x1b8] sm:$0xff]  }
 0x2de   : > { %6343 = vst [vmem:[#allocation2 + $0xa8] sm:$0xf] %v6342_v10  ;;  %v6081_v27 = vrot.slane %v6079_v15, 7  ;;  %v6676_v51 = vshrl.u32 %v12081_v28, 16  ;;  %v6362_v62 = vld [vmem:[#allocation2 + $0xc4] sm:$0x1] }
 0x2df   : > { %v12320_v56 = vcombine.low %v16825_v35, %v6674_v3  ;;  %v5820_v18 = vmax.f32 %v5788_v20, 0.0  ;;  %v6678_v54 = vshll.u32 %v12081_v28, 16  ;;  %v7173_v55 = vrot.slane %v14189_v4, 7  ;;  %v6949_v44 = vld [vmem:[#allocation2] sm:$0xe]  ;;  %v14254_v28 = vld [vmem:[%s18951_s3 + $0x1b0] sm:$0xff]   ;;  %v13858_v3 = vpop.f32.mrf.mxu0 }
 0x2e0   : > { %v6084_v25 = vor.u32 %v6082_v52, %v6081_v27  ;;  %v6085_v39 = vrot.slane %v6081_v27, 4  ;;  %v12733_v30 = vpack.c.bf16 %v5815_v43, %v5815_v43  ;;  %v6683_v8 = vshrl.u32 %v12082_v42, 16  ;;  %v6347_v61 = vld [vmem:[#allocation2 + $0xb0] sm:$0xf]  ;;  %v6950_v26 = vld [vmem:[#allocation2 + $0x8] sm:$0xe] }
 0x2e1   : > { %8070 = vmatprep.mubr.bf16.mxu0 %v12320_v56  ;;  %v12738_v29 = vpack.c.bf16 %v5820_v18, %v5820_v18  ;;  %v6680_v35 = vrot.slane %v6678_v54, 1  ;;  %v6685_v12 = vshll.u32 %v12082_v42, 16  ;;  %v7174_v9 = vrot.slane %v14190_v50, 7  ;;  %v6350_v13 = vld [vmem:[#allocation2 + $0xb4] sm:$0x1]  ;;  %v14267_v20 = vld [vmem:[%s18951_s3 + $0x1e8] sm:$0xff]  }
 0x2e2   : > { %v6360_v36 = vsel %vm14630_vm6, %v6084_v25, %v6359_v14  ;;  %v6363_v31 = vsel %vm14600_vm2, %v6085_v39, %v6362_v62  ;;  %8071 = vmatmul.mubr.bf16.vlgmr.msra.gmra.mxu0 %v12319_v16  ;;  %v6063_v46 = vshrl.u32 %v12733_v30, 16  ;;  %v6066_v32 = vshll.u32 %v12733_v30, 16  ;;  %v6377_v14 = vld [vmem:[#allocation2 + $0xd8] sm:$0xf]  ;;  %v6380_v27 = vld [vmem:[#allocation2 + $0xdc] sm:$0x1] }
 0x2e3   : > { %6364 = vst [vmem:[#allocation2 + $0xc4] sm:$0x1] %v6363_v31  ;;  %6361 = vst [vmem:[#allocation2 + $0xc0] sm:$0xf] %v6360_v36  ;;  %v6103_v7 = vshrl.u32 %v12738_v29, 16  ;;  %v6106_v4 = vshll.u32 %v12738_v29, 16  ;;  %v6681_v15 = vor.u32 %v6680_v35, %v6676_v51  ;;  %13684 = vmatpush3.bf16.msra.mxu0 %v14240_v41  ;;  %v12143_v40 = vcombine.low %v6949_v44, %v7173_v55  ;;  %v5683_v36 = vpop.f32.mrf.mxu0 }
 0x2e4   : > { %v6687_v52 = vrot.slane %v6685_v12, 1  ;;  %v6065_v10 = vrot.slane %v6063_v46, 7  ;;  %v12145_v1 = vsel %vm849_vm5, %v16721_v45, %v7173_v55  ;;  %v12146_v16 = vcombine.low %v6950_v26, %v7174_v9  ;;  %13685 = vmatprep.subr.bf16.mxu0 %v14253_v33  ;;  %v14192_v62 = vld [vmem:[#allocation2 + $0x18] ss:$0 sps:$4 sm:$0xff]   ;;  %v14193_v45 = vld [vmem:[#allocation2 + $0x20] ss:$0 sps:$4 sm:$0xff]  }
 0x2e5   : > { %v6105_v50 = vrot.slane %v6103_v7, 7  ;;  %v12148_v42 = vsel %vm849_vm5, %v16962_v58, %v7174_v9  ;;  %v7335_v51 = vrot.slane %v12145_v1, 5  ;;  %v12239_v54 = vrot.slane %v12143_v40, 9  ;;  %v14268_v44 = vld [vmem:[%s18951_s3 + $0x1a8] sm:$0xff]   ;;  %v6951_v12 = vld [vmem:[#allocation2 + $0x10] sm:$0xe] }
 0x2e6   : > { %v6688_v43 = vor.u32 %v6687_v52, %v6683_v8  ;;  %v6068_v56 = vor.u32 %v6066_v32, %v6065_v10  ;;  %v6069_v18 = vrot.slane %v6065_v10, 4  ;;  %v12240_v41 = vrot.slane %v12146_v16, 9  ;;  %v14194_v9 = vld [vmem:[%s18951_s3 + $0x138] sm:$0xff]   ;;  %v14276_v7 = vld [vmem:[%s18951_s3 + $0x1e0] sm:$0xff]   ;;  %v14203_v10 = vld [vmem:[%s18951_s3 + $0x170] sm:$0xff]  }
 0x2e7   : > { %v6108_v55 = vor.u32 %v6106_v4, %v6105_v50  ;;  %v6109_v25 = vrot.slane %v6105_v50, 4  ;;  %v7339_v30 = vrot.slane %v12148_v42, 5  ;;  %13686 = vmatpush3.bf16.msra.mxu0 %v14254_v28  ;;  %v7336_v29 = vsel %vm14694_vm9, %v12239_v54, %v7335_v51  ;;  %v17054_v28 = vld [vmem:[#allocation2 + $0x24] sm:$0x1]  ;;  %v17064_v16 = vld [vmem:[#allocation2 + $0x28] sm:$0xf] }
 0x2e8   : > { %v12322_v39 = vcombine.low %v6681_v15, %v6688_v43  ;;  %v6348_v8 = vsel %vm14630_vm6, %v6068_v56, %v6347_v61  ;;  %v6351_v58 = vsel %vm14600_vm2, %v6069_v18, %v6350_v13  ;;  %v5747_v35 = vadd.f32 %v5680_v48, %v16817_v22  ;;  %13687 = vmatprep.subr.bf16.mxu0 %v14267_v20  ;;  %v6952_v22 = vld [vmem:[#allocation2 + $0x18] sm:$0xe]  ;;  %v17048_v61 = vld [vmem:[#allocation2 + $0x20] sm:$0xf]  ;;  %v17066_v20 = vld [vmem:[#allocation2 + $0x2c] sm:$0x1] }
 0x2e9   : > { %6352 = vst [vmem:[#allocation2 + $0xb4] sm:$0x1] %v6351_v58  ;;  %6349 = vst [vmem:[#allocation2 + $0xb0] sm:$0xf] %v6348_v8  ;;  %v6378_v31 = vsel %vm14630_vm6, %v6108_v55, %v6377_v14  ;;  %v6381_v46 = vsel %vm14600_vm2, %v6109_v25, %v6380_v27  ;;  %v7340_v32 = vsel %vm14694_vm9, %v12240_v41, %v7339_v30  ;;  %v7175_v48 = vrot.slane %v14192_v62, 7  ;;  %v14277_v50 = vld [vmem:[%s18951_s3 + $0x1a0] sm:$0xff]  }
 0x2ea   : > { %8078 = vmatprep.mubr.bf16.mxu0 %v12322_v39  ;;  %6382 = vst [vmem:[#allocation2 + $0xdc] sm:$0x1] %v6381_v46  ;;  %6379 = vst [vmem:[#allocation2 + $0xd8] sm:$0xf] %v6378_v31  ;;  %v12271_v4 = vcombine.low %v7336_v29, %v7340_v32  ;;  %v12272_v15 = vcombine.high %v7336_v29, %v7340_v32  ;;  %v5786_v52 = vadd.f32 %v16807_v11, %v5747_v35  ;;  %v14206_v54 = vld [vmem:[%s18951_s3 + $0x130] sm:$0xff]   ;;  %v14215_v25 = vld [vmem:[%s18951_s3 + $0x168] sm:$0xff]  }
 0x2eb   : > { %v7176_v26 = vrot.slane %v14193_v45, 7  ;;  %v12149_v13 = vcombine.low %v6951_v12, %v7175_v48  ;;  %v12151_v14 = vsel %vm849_vm5, %v16983_v59, %v7175_v48  ;;  %v5750_v40 = vadd.f32 %v13858_v3, %v16835_v38  ;;  %13688 = vmatpush3.bf16.msra.mxu0 %v14268_v44  ;;  %v13861_v38 = vpop.f32.mrf.mxu0  ;;  %v14281_v29 = vld [vmem:[%s18951_s3 + $0x1d8] sm:$0xff]   ;;  %v6368_v35 = vld [vmem:[#allocation2 + $0xcc] sm:$0x1] }
 0x2ec   : > { %v12321_v1 = vcombine.low %v16981_v37, %v16990_v34  ;;  %7749 = vmatprep.mubr.bf16.mxu1 %v12272_v15  ;;  %v5818_v27 = vmax.f32 %v5786_v52, 0.0  ;;  %v7343_v42 = vrot.slane %v12151_v14, 5  ;;  %13689 = vmatprep.subr.bf16.mxu0 %v14276_v7  ;;  %v5748_v51 = vadd.f32 %v5683_v36, %v16827_v19  ;;  %v14284_v31 = vld [vmem:[%s18951_s3 + $0x198] sm:$0xff]   ;;  %v14218_v7 = vld [vmem:[%s18951_s3 + $0x128] sm:$0xff]   ;;  %v14227_v14 = vld [vmem:[%s18951_s3 + $0x160] sm:$0xff]  }
 0x2ed   : > { %v12152_v43 = vcombine.low %v6952_v22, %v7176_v26  ;;  %v12154_v59 = vsel %vm849_vm5, %v16992_v47, %v7176_v26  ;;  %7750 = vmatmul.mubr.bf16.vlgmr.msra.gmra.mxu1 %v12271_v4  ;;  %v12241_v37 = vrot.slane %v12149_v13, 9  ;;  %v5789_v3 = vadd.f32 %v16807_v11, %v5750_v40  ;;  %v5696_v58 = vpop.f32.mrf.mxu0  ;;  %v17103_v26 = vld [vmem:[%s18950_s2] ss:$0 sm:$0xff]  ;;  %v17106_v13 = vld [vmem:[#allocation2 + $0x28] ss:$0 sps:$4 sm:$0xff]  }
 0x2ee   : > { %v7347_v34 = vrot.slane %v12154_v59, 5  ;;  %8079 = vmatmul.mubr.bf16.gmra.mxu0 %v12321_v1  ;;  %v12736_v62 = vpack.c.bf16 %v5818_v27, %v5818_v27  ;;  %13572 = vmatpush3.bf16.msra.mxu1 %v14194_v9  ;;  %v12083_v18 = vcombine.low %v17048_v61, %v17054_v28  ;;  %v12084_v47 = vcombine.low %v17064_v16, %v17066_v20 }
 0x2ef   : > { %v12242_v56 = vrot.slane %v12152_v43, 9  ;;  %v7344_v41 = vsel %vm14694_vm9, %v12241_v37, %v7343_v42  ;;  %v5821_v45 = vmax.f32 %v5789_v3, 0.0  ;;  %v5787_v55 = vadd.f32 %v16807_v11, %v5748_v51  ;;  %13573 = vmatprep.subr.bf16.mxu1 %v14203_v10  ;;  %13690 = vmatpush3.bf16.msra.mxu0 %v14277_v50  ;;  %v6365_v11 = vld [vmem:[#allocation2 + $0xc8] sm:$0xf]  ;;  %v17111_v43 = vld [vmem:[#allocation2 + $0x30] ss:$0 sps:$4 sm:$0xff]   ;;  %v17113_v59 = vpop.f32.mrf.mxu0 }
 0x2f0   : > { %v5753_v19 = vadd.f32 %v13861_v38, %v16851_v63  ;;  %v6087_v39 = vshrl.u32 %v12736_v62, 16  ;;  %v6090_v30 = vshll.u32 %v12736_v62, 16  ;;  %v6690_v8 = vshrl.u32 %v12083_v18, 16  ;;  %13691 = vmatprep.subr.bf16.mxu0 %v14281_v29  ;;  %v14285_v42 = vld [vmem:[%s18951_s3 + $0x1d0] sm:$0xff]   ;;  %v6383_v37 = vld [vmem:[#allocation2 + $0xe0] sm:$0xf] }
 0x2f1   : > { %v7348_v44 = vsel %vm14694_vm9, %v12242_v56, %v7347_v34  ;;  %v12739_v9 = vpack.c.bf16 %v5821_v45, %v5821_v45  ;;  %v5819_v36 = vmax.f32 %v5787_v55, 0.0  ;;  %v6692_v32 = vshll.u32 %v12083_v18, 16  ;;  %v6386_v18 = vld [vmem:[#allocation2 + $0xe4] sm:$0x1] }
 0x2f2   : > { %v12273_v63 = vcombine.low %v7344_v41, %v7348_v44  ;;  %v12274_v12 = vcombine.high %v7344_v41, %v7348_v44  ;;  %v6089_v46 = vrot.slane %v6087_v39, 7  ;;  %v6697_v22 = vshrl.u32 %v12084_v47, 16  ;;  %13574 = vmatpush3.bf16.msra.mxu1 %v14206_v54  ;;  %v14230_v41 = vld [vmem:[%s18951_s3 + $0x120] sm:$0xff]   ;;  %v14287_v44 = vld [vmem:[%s18951_s3 + $0x190] sm:$0xff]  }
 0x2f3   : > { %v6699_v48 = vshll.u32 %v12084_v47, 16  ;;  %v6111_v4 = vshrl.u32 %v12739_v9, 16  ;;  %v6114_v15 = vshll.u32 %v12739_v9, 16  ;;  %v12737_v52 = vpack.c.bf16 %v5819_v36, %v5819_v36  ;;  %13575 = vmatprep.subr.bf16.mxu1 %v14215_v25  ;;  %13692 = vmatpush3.bf16.msra.mxu0 %v14284_v31  ;;  %v6371_v25 = vld [vmem:[#allocation2 + $0xd0] sm:$0xf]  ;;  %v14292_v9 = vld [vmem:[%s18951_s3 + $0x1c8] sm:$0xff]  }
 0x2f4   : > { %7757 = vmatprep.mubr.bf16.mxu1 %v12274_v12  ;;  %v5792_v10 = vadd.f32 %v17103_v26, %v5753_v19  ;;  %v6092_v40 = vor.u32 %v6090_v30, %v6089_v46  ;;  %v6093_v1 = vrot.slane %v6089_v46, 4  ;;  %v6694_v50 = vrot.slane %v6692_v32, 1  ;;  %v14241_v30 = vld [vmem:[%s18951_s3 + $0x158] sm:$0xff]   ;;  %13693 = vmatprep.subr.bf16.mxu0 %v14285_v42  ;;  %v5699_v12 = vpop.f32.mrf.mxu0  ;;  %v6404_v42 = vld [vmem:[#allocation2 + $0x10c] sm:$0x1] }
 0x2f5   : > { %v6701_v27 = vrot.slane %v6699_v48, 1  ;;  %v6113_v38 = vrot.slane %v6111_v4, 7  ;;  %v6095_v34 = vshrl.u32 %v12737_v52, 16  ;;  %v6098_v3 = vshll.u32 %v12737_v52, 16  ;;  %7758 = vmatmul.mubr.bf16.gmra.mxu1 %v12273_v63  ;;  %v6954_v4 = vld [vmem:[#allocation2 + $0x28] sm:$0xe] }
 0x2f6   : > { %v5824_v51 = vmax.f32 %v5792_v10, 0.0  ;;  %v6366_v62 = vsel %vm14630_vm6, %v6092_v40, %v6365_v11  ;;  %v6369_v56 = vsel %vm14600_vm2, %v6093_v1, %v6368_v35  ;;  %v6695_v47 = vor.u32 %v6694_v50, %v6690_v8  ;;  %13576 = vmatpush3.bf16.msra.mxu1 %v14218_v7  ;;  %v6374_v8 = vld [vmem:[#allocation2 + $0xd4] sm:$0x1]  ;;  %v14244_v52 = vld [vmem:[%s18951_s3 + $0x118] sm:$0xff]   ;;  %v14297_v10 = vld [vmem:[%s18951_s3 + $0x1c0] sm:$0xff]  }
 0x2f7   : > { %v6702_v54 = vor.u32 %v6701_v27, %v6697_v22  ;;  %6370 = vst [vmem:[#allocation2 + $0xcc] sm:$0x1] %v6369_v56  ;;  %6367 = vst [vmem:[#allocation2 + $0xc8] sm:$0xf] %v6366_v62  ;;  %v6116_v45 = vor.u32 %v6114_v15, %v6113_v38  ;;  %v6117_v55 = vrot.slane %v6113_v38, 4  ;;  %v6097_v19 = vrot.slane %v6095_v34, 7  ;;  %13577 = vmatprep.subr.bf16.mxu1 %v14227_v14 }
 0x2f8   : > { %v12742_v39 = vpack.c.bf16 %v5824_v51, %v5824_v51  ;;  %v5751_v11 = vadd.f32 %v5696_v58, %v16844_v49  ;;  %v7177_v35 = vrot.slane %v17106_v13, 7  ;;  %v7178_v63 = vrot.slane %v17111_v43, 7  ;;  %v6953_v22 = vld [vmem:[#allocation2 + $0x20] sm:$0xe]  ;;  %13694 = vmatpush3.bf16.msra.mxu0 %v14287_v44  ;;  %v14293_v49 = vld [vmem:[%s18951_s3 + $0x188] sm:$0xff]   ;;  %v14255_v27 = vld [vmem:[%s18951_s3 + $0x150] sm:$0xff]  }
 0x2f9   : > { %v12324_v29 = vcombine.low %v6695_v47, %v6702_v54  ;;  %v6384_v36 = vsel %vm14630_vm6, %v6116_v45, %v6383_v37  ;;  %v6387_v31 = vsel %vm14600_vm2, %v6117_v55, %v6386_v18  ;;  %v6100_v46 = vor.u32 %v6098_v3, %v6097_v19  ;;  %v6401_v40 = vld [vmem:[#allocation2 + $0x108] sm:$0xf]  ;;  %v13865_v3 = vpop.f32.mrf.mxu0  ;;  %13695 = vmatprep.subr.bf16.mxu0 %v14292_v9  ;;  %v17164_v18 = vld [vmem:[#allocation2 + $0x38] sm:$0xf]  ;;  %v17166_v47 = vld [vmem:[#allocation2 + $0x3c] sm:$0x1] }
 0x2fa   : > { %v6101_v32 = vrot.slane %v6097_v19, 4  ;;  %6385 = vst [vmem:[#allocation2 + $0xe0] sm:$0xf] %v6384_v36  ;;  %6388 = vst [vmem:[#allocation2 + $0xe4] sm:$0x1] %v6387_v31  ;;  %v6135_v58 = vshrl.u32 %v12742_v39, 16  ;;  %v5790_v7 = vadd.f32 %v17103_v26, %v5751_v11  ;;  %v12155_v15 = vcombine.low %v6953_v22, %v7177_v35  ;;  %13578 = vmatpush3.bf16.msra.mxu1 %v14230_v41 }
 0x2fb   : > { %8086 = vmatprep.mubr.bf16.mxu0 %v12324_v29  ;;  %v6138_v48 = vshll.u32 %v12742_v39, 16  ;;  %v6372_v13 = vsel %vm14630_vm6, %v6100_v46, %v6371_v25  ;;  %v12157_v1 = vsel %vm849_vm5, %v17054_v28, %v7177_v35  ;;  %v12158_v50 = vcombine.low %v6954_v4, %v7178_v63  ;;  %13579 = vmatprep.subr.bf16.mxu1 %v14241_v30  ;;  %v14298_v54 = vld [vmem:[%s18951_s3 + $0x180] sm:$0xff]   ;;  %v17173_v19 = vld [vmem:[#allocation2 + $0x30] sm:$0xf]  ;;  %v17175_v25 = vld [vmem:[#allocation2 + $0x38] ss:$0 sps:$4 sm:$0xff]  }
 0x2fc   : > { %v6375_v14 = vsel %vm14600_vm2, %v6101_v32, %v6374_v8  ;;  %6373 = vst [vmem:[#allocation2 + $0xd0] sm:$0xf] %v6372_v13  ;;  %v6137_v43 = vrot.slane %v6135_v58, 7  ;;  %v5822_v38 = vmax.f32 %v5790_v7, 0.0  ;;  %v12160_v37 = vsel %vm849_vm5, %v17066_v20, %v7178_v63  ;;  %13696 = vmatpush3.bf16.msra.mxu0 %v14293_v49  ;;  %v14269_v44 = vld [vmem:[%s18951_s3 + $0x148] sm:$0xff]   ;;  %v5712_v63 = vpop.f32.mrf.mxu0 }
 0x2fd   : > { %6376 = vst [vmem:[#allocation2 + $0xd4] sm:$0x1] %v6375_v14  ;;  %v12243_v34 = vrot.slane %v12155_v15, 9  ;;  %v7351_v51 = vrot.slane %v12157_v1, 5  ;;  %v12244_v62 = vrot.slane %v12158_v50, 9  ;;  %v7355_v28 = vrot.slane %v12160_v37, 5  ;;  %13697 = vmatprep.subr.bf16.mxu0 %v14297_v10 }
 0x2fe   : > { %v5754_v56 = vadd.f32 %v17113_v59, %v16859_v21  ;;  %v6140_v41 = vor.u32 %v6138_v48, %v6137_v43  ;;  %v6141_v20 = vrot.slane %v6137_v43, 4  ;;  %v12740_v45 = vpack.c.bf16 %v5822_v38, %v5822_v38  ;;  %13580 = vmatpush3.bf16.msra.mxu1 %v14244_v52  ;;  %v14258_v21 = vld [vmem:[%s18951_s3 + $0x110] sm:$0xff]   ;;  %v6389_v46 = vld [vmem:[#allocation2 + $0xf8] sm:$0xf]  ;;  %v6392_v32 = vld [vmem:[#allocation2 + $0xfc] sm:$0x1] }
 0x2ff   : > { %v12323_v55 = vcombine.low %v17048_v61, %v17064_v16  ;;  %v7352_v59 = vsel %vm14694_vm9, %v12243_v34, %v7351_v51  ;;  %v7356_v39 = vsel %vm14694_vm9, %v12244_v62, %v7355_v28  ;;  %v5752_v61 = vadd.f32 %v5699_v12, %v16854_v0  ;;  %v17186_v16 = vld [vmem:[#allocation2 + $0x34] sm:$0x1]  ;;  %13581 = vmatprep.subr.bf16.mxu1 %v14255_v27  ;;  %v14272_v48 = vld [vmem:[%s18951_s3 + $0x108] sm:$0xff]   ;;  %v14286_v10 = vld [vmem:[%s18951_s3 + $0x140] sm:$0xff]  }
 0x300   : > { %v5793_v30 = vadd.f32 %v17103_v26, %v5754_v56  ;;  %v6402_v8 = vsel %vm14630_vm6, %v6140_v41, %v6401_v40  ;;  %v6405_v29 = vsel %vm14600_vm2, %v6141_v20, %v6404_v42  ;;  %v6119_v11 = vshrl.u32 %v12740_v45, 16  ;;  %13698 = vmatpush3.bf16.msra.mxu0 %v14298_v54  ;;  %v14205_v1 = vld [vmem:[#allocation2 + $0x40] ss:$0 sps:$4 sm:$0xff]   ;;  %v6955_v54 = vld [vmem:[#allocation2 + $0x30] sm:$0xe]  ;;  %v14303_v41 = vld [vmem:[%s18951_s3 + $0x238] sm:$0xff]  }
 0x301   : > { %v6122_v35 = vshll.u32 %v12740_v45, 16  ;;  %8087 = vmatmul.mubr.bf16.gmra.mxu0 %v12323_v55  ;;  %6406 = vst [vmem:[#allocation2 + $0x10c] sm:$0x1] %v6405_v29  ;;  %6403 = vst [vmem:[#allocation2 + $0x108] sm:$0xf] %v6402_v8  ;;  %v12275_v0 = vcombine.low %v7352_v59, %v7356_v39  ;;  %v12276_v12 = vcombine.high %v7352_v59, %v7356_v39  ;;  %v7179_v52 = vrot.slane %v17175_v25, 7  ;;  %v13866_v29 = vpop.f32.mrf.mxu0 }
 0x302   : > { %v5825_v9 = vmax.f32 %v5793_v30, 0.0  ;;  %v5791_v36 = vadd.f32 %v17103_v26, %v5752_v61  ;;  %v6121_v31 = vrot.slane %v6119_v11, 7  ;;  %v12085_v22 = vcombine.low %v17173_v19, %v17186_v16  ;;  %13582 = vmatpush3.bf16.msra.mxu1 %v14258_v21  ;;  %v6407_v20 = vld [vmem:[#allocation2 + $0x110] sm:$0xf]  ;;  %v6410_v45 = vld [vmem:[#allocation2 + $0x114] sm:$0x1] }
 0x303   : > { %v12086_v49 = vcombine.low %v17164_v18, %v17166_v47  ;;  %v5757_v58 = vadd.f32 %v13865_v3, %v16873_v24  ;;  %7765 = vmatprep.mubr.bf16.mxu1 %v12276_v12  ;;  %v5755_v15 = vadd.f32 %v5712_v63, %v16862_v17  ;;  %13583 = vmatprep.subr.bf16.mxu1 %v14269_v44  ;;  %v14290_v3 = vld [vmem:[%s18951_s3 + $0x100] sm:$0xff]   ;;  %v7180_v59 = vrot.slane %v14205_v1, 7  ;;  %v6478_v1 = vld [vmem:[#allocation2 + $0x5c] sm:$0x1] }
 0x304   : > { %v12743_v7 = vpack.c.bf16 %v5825_v9, %v5825_v9  ;;  %v5823_v4 = vmax.f32 %v5791_v36, 0.0  ;;  %v6124_v13 = vor.u32 %v6122_v35, %v6121_v31  ;;  %v6125_v14 = vrot.slane %v6121_v31, 4  ;;  %7766 = vmatmul.mubr.bf16.gmra.mxu1 %v12275_v0  ;;  %v6395_v44 = vld [vmem:[#allocation2 + $0x100] sm:$0xf]  ;;  %v6398_v11 = vld [vmem:[#allocation2 + $0x104] sm:$0x1] }
 0x305   : > { %v6704_v24 = vshrl.u32 %v12085_v22, 16  ;;  %v6706_v40 = vshll.u32 %v12085_v22, 16  ;;  %v6711_v42 = vshrl.u32 %v12086_v49, 16  ;;  %v6713_v34 = vshll.u32 %v12086_v49, 16 }
 0x306   : > { %v6143_v50 = vshrl.u32 %v12743_v7, 16  ;;  %v6146_v27 = vshll.u32 %v12743_v7, 16  ;;  %v12741_v43 = vpack.c.bf16 %v5823_v4, %v5823_v4  ;;  %v6390_v17 = vsel %vm14630_vm6, %v6124_v13, %v6389_v46  ;;  %13584 = vmatpush3.bf16.msra.mxu1 %v14272_v48 }
 0x307   : > { %v6393_v38 = vsel %vm14600_vm2, %v6125_v14, %v6392_v32  ;;  %v6708_v37 = vrot.slane %v6706_v40, 1  ;;  %6391 = vst [vmem:[#allocation2 + $0xf8] sm:$0xf] %v6390_v17  ;;  %v5796_v56 = vadd.f32 %v17103_v26, %v5757_v58  ;;  %13585 = vmatprep.subr.bf16.mxu1 %v14286_v10  ;;  %v6715_v25 = vrot.slane %v6713_v34, 1  ;;  %v6956_v32 = vld [vmem:[#allocation2 + $0x38] sm:$0xe] }
 0x308   : > { %6394 = vst [vmem:[#allocation2 + $0xfc] sm:$0x1] %v6393_v38  ;;  %v6145_v51 = vrot.slane %v6143_v50, 7  ;;  %v6127_v62 = vshrl.u32 %v12741_v43, 16  ;;  %v6130_v28 = vshll.u32 %v12741_v43, 16  ;;  %v5794_v21 = vadd.f32 %v17103_v26, %v5755_v15 }
 0x309   : > { %v6709_v55 = vor.u32 %v6708_v37, %v6704_v24  ;;  %v5828_v8 = vmax.f32 %v5796_v56, 0.0  ;;  %v6716_v35 = vor.u32 %v6715_v25, %v6711_v42  ;;  %v12161_v0 = vcombine.low %v6955_v54, %v7179_v52  ;;  %v17233_v10 = vld [vmem:[#allocation2 + $0x58] sm:$0xf]  ;;  %v6425_v50 = vld [vmem:[#allocation2 + $0x128] sm:$0xf] }
 0x30a   : > { %v6148_v39 = vor.u32 %v6146_v27, %v6145_v51  ;;  %v6149_v30 = vrot.slane %v6145_v51, 4  ;;  %v6129_v61 = vrot.slane %v6127_v62, 7  ;;  %v5826_v63 = vmax.f32 %v5794_v21, 0.0  ;;  %13586 = vmatpush3.bf16.msra.mxu1 %v14290_v3  ;;  %v6413_v51 = vld [vmem:[#allocation2 + $0x118] sm:$0xf] }
 0x30b   : > { %v12163_v12 = vsel %vm849_vm5, %v17186_v16, %v7179_v52  ;;  %13867 = vmatprep.subr.bf16.mxu1 %v14303_v41  ;;  %v12326_v22 = vcombine.low %v6709_v55, %v6716_v35  ;;  %v12746_v49 = vpack.c.bf16 %v5828_v8, %v5828_v8  ;;  %v12164_v48 = vcombine.low %v6956_v32, %v7180_v59  ;;  %v5715_v52 = vpop.f32.mrf.mxu0  ;;  %v6416_v62 = vld [vmem:[#allocation2 + $0x11c] sm:$0x1]  ;;  %v14210_v41 = vld [vmem:[#allocation2 + $0x58] ss:$0 sps:$4 sm:$0xff]  }
 0x30c   : > { %v6408_v9 = vsel %vm14630_vm6, %v6148_v39, %v6407_v20  ;;  %v6411_v36 = vsel %vm14600_vm2, %v6149_v30, %v6410_v45  ;;  %v6132_v31 = vor.u32 %v6130_v28, %v6129_v61  ;;  %v6133_v46 = vrot.slane %v6129_v61, 4  ;;  %v17248_v30 = vld [vmem:[#allocation2 + $0x64] sm:$0x1] }
 0x30d   : > { %6412 = vst [vmem:[#allocation2 + $0x114] sm:$0x1] %v6411_v36  ;;  %6409 = vst [vmem:[#allocation2 + $0x110] sm:$0xf] %v6408_v9  ;;  %v12744_v58 = vpack.c.bf16 %v5826_v63, %v5826_v63  ;;  %v12166_v4 = vsel %vm849_vm5, %v17166_v47, %v7180_v59  ;;  %v12245_v15 = vrot.slane %v12161_v0, 9  ;;  %8094 = vmatprep.mubr.bf16.mxu0 %v12326_v22  ;;  %v6167_v13 = vshrl.u32 %v12746_v49, 16 }
 0x30e   : > { %v6396_v16 = vsel %vm14630_vm6, %v6132_v31, %v6395_v44  ;;  %v6399_v7 = vsel %vm14600_vm2, %v6133_v46, %v6398_v11  ;;  %v6170_v14 = vshll.u32 %v12746_v49, 16  ;;  %v7359_v27 = vrot.slane %v12163_v12, 5  ;;  %v6428_v47 = vld [vmem:[#allocation2 + $0x12c] sm:$0x1]  ;;  %v6957_v0 = vld [vmem:[#allocation2 + $0x50] sm:$0xe] }
 0x30f   : > { %6400 = vst [vmem:[#allocation2 + $0x104] sm:$0x1] %v6399_v7  ;;  %6397 = vst [vmem:[#allocation2 + $0x100] sm:$0xf] %v6396_v16  ;;  %v6151_v24 = vshrl.u32 %v12744_v58, 16  ;;  %v6154_v40 = vshll.u32 %v12744_v58, 16  ;;  %v5758_v17 = vadd.f32 %v13866_v29, %v16875_v53  ;;  %v12325_v34 = vcombine.low %v17173_v19, %v17164_v18 }
 0x310   : > { %v12246_v43 = vrot.slane %v12164_v48, 9  ;;  %v7363_v42 = vrot.slane %v12166_v4, 5  ;;  %v6169_v38 = vrot.slane %v6167_v13, 7  ;;  %v5756_v3 = vadd.f32 %v5715_v52, %v16865_v60  ;;  %v14211_v18 = vld [vmem:[#allocation2 + $0x60] ss:$0 sps:$4 sm:$0xff]  }
 0x311   : > { %v6153_v37 = vrot.slane %v6151_v24, 7  ;;  %v7360_v28 = vsel %vm14694_vm9, %v12245_v15, %v7359_v27  ;;  %v5797_v54 = vadd.f32 %v17103_v26, %v5758_v17  ;;  %v12088_v53 = vcombine.low %v17233_v10, %v6478_v1  ;;  %8095 = vmatmul.mubr.bf16.gmra.mxu0 %v12325_v34  ;;  %v17245_v60 = vld [vmem:[#allocation2 + $0x60] sm:$0xf]  ;;  %v6958_v58 = vld [vmem:[#allocation2 + $0x58] sm:$0xe] }
 0x312   : > { %v7364_v56 = vsel %vm14694_vm9, %v12246_v43, %v7363_v42  ;;  %v6172_v20 = vor.u32 %v6170_v14, %v6169_v38  ;;  %v6173_v45 = vrot.slane %v6169_v38, 4  ;;  %v5795_v39 = vadd.f32 %v17103_v26, %v5756_v3  ;;  %v6431_v48 = vld [vmem:[#allocation2 + $0x130] sm:$0xf]  ;;  %v6434_v16 = vld [vmem:[#allocation2 + $0x134] sm:$0x1] }
 0x313   : > { %v6156_v55 = vor.u32 %v6154_v40, %v6153_v37  ;;  %v6157_v25 = vrot.slane %v6153_v37, 4  ;;  %v12277_v19 = vcombine.low %v7360_v28, %v7364_v56  ;;  %v12278_v21 = vcombine.high %v7360_v28, %v7364_v56  ;;  %v14415_v7 = vld [vmem:[#allocation2 + $0x54] sm:$0x1]  ;;  %v17267_v15 = vld [vmem:[#allocation2 + $0x68] sm:$0xf] }
 0x314   : > { %v5829_v59 = vmax.f32 %v5797_v54, 0.0  ;;  %v6426_v61 = vsel %vm14630_vm6, %v6172_v20, %v6425_v50  ;;  %v6429_v44 = vsel %vm14600_vm2, %v6173_v45, %v6428_v47  ;;  %v5827_v11 = vmax.f32 %v5795_v39, 0.0  ;;  %v6480_v40 = vld [vmem:[#allocation2 + $0x6c] sm:$0x1]  ;;  %v6419_v50 = vld [vmem:[#allocation2 + $0x120] sm:$0xf] }
 0x315   : > { %v6414_v8 = vsel %vm14630_vm6, %v6156_v55, %v6413_v51  ;;  %v6417_v29 = vsel %vm14600_vm2, %v6157_v25, %v6416_v62  ;;  %6430 = vst [vmem:[#allocation2 + $0x12c] sm:$0x1] %v6429_v44  ;;  %6427 = vst [vmem:[#allocation2 + $0x128] sm:$0xf] %v6426_v61  ;;  %7773 = vmatprep.mubr.bf16.mxu1 %v12278_v21  ;;  %v6723_v35 = vor.u32 %v16868_v2, %v6718_v5  ;;  %v6422_v34 = vld [vmem:[#allocation2 + $0x124] sm:$0x1] }
 0x316   : > { %6418 = vst [vmem:[#allocation2 + $0x11c] sm:$0x1] %v6417_v29  ;;  %6415 = vst [vmem:[#allocation2 + $0x118] sm:$0xf] %v6414_v8  ;;  %v12747_v26 = vpack.c.bf16 %v5829_v59, %v5829_v59  ;;  %v6727_v63 = vshll.u32 %v12088_v53, 16  ;;  %v6725_v12 = vshrl.u32 %v12088_v53, 16  ;;  %7774 = vmatmul.mubr.bf16.gmra.mxu1 %v12277_v19  ;;  %v17263_v31 = vcombine.low %v17245_v60, %v17248_v30 }
 0x317   : > { %v7181_v9 = vrot.slane %v14210_v41, 7  ;;  %v7182_v36 = vrot.slane %v14211_v18, 7  ;;  %v12745_v22 = vpack.c.bf16 %v5827_v11, %v5827_v11  ;;  %v14216_v51 = vld [vmem:[#allocation2 + $0x68] ss:$0 sps:$4 sm:$0xff]   ;;  %v14416_v28 = vld [vmem:[#allocation2 + $0x50] sm:$0xf]  ;;  %v12090_v54 = vcombine.low %v17267_v15, %v6480_v40 }
 0x318   : > { %v6175_v46 = vshrl.u32 %v12747_v26, 16  ;;  %v6178_v32 = vshll.u32 %v12747_v26, 16  ;;  %v6729_v49 = vrot.slane %v6727_v63, 1  ;;  %v12327_v56 = vcombine.low %v14416_v28, %v17233_v10  ;;  %v6959_v53 = vld [vmem:[#allocation2 + $0x60] sm:$0xe] }
 0x319   : > { %v12167_v57 = vcombine.low %v6957_v0, %v7181_v9  ;;  %v12169_v5 = vsel %vm849_vm5, %v14415_v7, %v7181_v9  ;;  %v12170_v2 = vcombine.low %v6958_v58, %v7182_v36  ;;  %v12172_v4 = vsel %vm849_vm5, %v6478_v1, %v7182_v36  ;;  %v14217_v41 = vld [vmem:[#allocation2 + $0x70] ss:$0 sps:$4 sm:$0xff]   ;;  %v6481_v19 = vld [vmem:[#allocation2 + $0x74] sm:$0x1]  ;;  %v17283_v61 = vld [vmem:[#allocation2 + $0x78] sm:$0xf] }
 0x31a   : > { %v6177_v52 = vrot.slane %v6175_v46, 7  ;;  %v6159_v13 = vshrl.u32 %v12745_v22, 16  ;;  %v6162_v14 = vshll.u32 %v12745_v22, 16  ;;  %v6730_v24 = vor.u32 %v6729_v49, %v6725_v12  ;;  %v17275_v20 = vld [vmem:[#allocation2 + $0x70] sm:$0xf] }
 0x31b   : > { %v12247_v27 = vrot.slane %v12167_v57, 9  ;;  %v7367_v43 = vrot.slane %v12169_v5, 5  ;;  %v12248_v42 = vrot.slane %v12170_v2, 9  ;;  %v7371_v17 = vrot.slane %v12172_v4, 5  ;;  %v6482_v44 = vld [vmem:[#allocation2 + $0x7c] sm:$0x1] }
 0x31c   : > { %v6180_v38 = vor.u32 %v6178_v32, %v6177_v52  ;;  %v6181_v47 = vrot.slane %v6177_v52, 4  ;;  %v6161_v37 = vrot.slane %v6159_v13, 7  ;;  %v12328_v3 = vcombine.low %v6723_v35, %v6730_v24  ;;  %v6960_v11 = vld [vmem:[#allocation2 + $0x68] sm:$0xe]  ;;  %v14222_v46 = vld [vmem:[#allocation2 + $0x78] ss:$0 sps:$4 sm:$0xff]  }
 0x31d   : > { %v7368_v1 = vsel %vm14694_vm9, %v12247_v27, %v7367_v43  ;;  %v7372_v62 = vsel %vm14694_vm9, %v12248_v42, %v7371_v17  ;;  %v6732_v59 = vshrl.u32 %v17263_v31, 16  ;;  %v6734_v39 = vshll.u32 %v17263_v31, 16  ;;  %v14223_v32 = vld [vmem:[#allocation2 + $0x80] ss:$0 sps:$4 sm:$0xff]   ;;  %v17300_v42 = vld [vmem:[#allocation2 + $0x88] sm:$0xf] }
 0x31e   : > { %v6432_v45 = vsel %vm14630_vm6, %v6180_v38, %v6431_v48  ;;  %v6435_v55 = vsel %vm14600_vm2, %v6181_v47, %v6434_v16  ;;  %v6164_v25 = vor.u32 %v6162_v14, %v6161_v37  ;;  %v6165_v18 = vrot.slane %v6161_v37, 4  ;;  %8102 = vmatprep.mubr.bf16.mxu0 %v12328_v3  ;;  %v14228_v14 = vld [vmem:[#allocation2 + $0x88] ss:$0 sps:$4 sm:$0xff]   ;;  %v6484_v17 = vld [vmem:[#allocation2 + $0x8c] sm:$0x1] }
 0x31f   : > { %6433 = vst [vmem:[#allocation2 + $0x130] sm:$0xf] %v6432_v45  ;;  %6436 = vst [vmem:[#allocation2 + $0x134] sm:$0x1] %v6435_v55  ;;  %v12279_v21 = vcombine.low %v7368_v1, %v7372_v62  ;;  %v12280_v10 = vcombine.high %v7368_v1, %v7372_v62  ;;  %8103 = vmatmul.mubr.bf16.gmra.mxu0 %v12327_v56  ;;  %v6741_v26 = vshll.u32 %v12090_v54, 16  ;;  %v7183_v35 = vrot.slane %v14216_v51, 7 }
 0x320   : > { %v6420_v8 = vsel %vm14630_vm6, %v6164_v25, %v6419_v50  ;;  %v6423_v29 = vsel %vm14600_vm2, %v6165_v18, %v6422_v34  ;;  %v6736_v63 = vrot.slane %v6734_v39, 1  ;;  %v6739_v0 = vshrl.u32 %v12090_v54, 16  ;;  %v6483_v37 = vld [vmem:[#allocation2 + $0x84] sm:$0x1]  ;;  %v6962_v51 = vld [vmem:[#allocation2 + $0x78] sm:$0xe] }
 0x321   : > { %6424 = vst [vmem:[#allocation2 + $0x124] sm:$0x1] %v6423_v29  ;;  %6421 = vst [vmem:[#allocation2 + $0x120] sm:$0xf] %v6420_v8  ;;  %7781 = vmatprep.mubr.bf16.mxu1 %v12280_v10  ;;  %v7184_v12 = vrot.slane %v14217_v41, 7  ;;  %v12091_v9 = vcombine.low %v17275_v20, %v6481_v19  ;;  %v6743_v36 = vrot.slane %v6741_v26, 1  ;;  %v12173_v31 = vcombine.low %v6959_v53, %v7183_v35 }
 0x322   : > { %7782 = vmatmul.mubr.bf16.gmra.mxu1 %v12279_v21  ;;  %v12175_v6 = vsel %vm849_vm5, %v17248_v30, %v7183_v35  ;;  %v12092_v23 = vcombine.low %v17283_v61, %v6482_v44  ;;  %v6737_v22 = vor.u32 %v6736_v63, %v6732_v59  ;;  %v12329_v5 = vcombine.low %v17245_v60, %v17267_v15  ;;  %v6961_v30 = vld [vmem:[#allocation2 + $0x70] sm:$0xe]  ;;  %v14229_v28 = vld [vmem:[#allocation2 + $0x90] ss:$0 sps:$4 sm:$0xff]   ;;  %v6963_v21 = vld [vmem:[#allocation2 + $0x80] sm:$0xe] }
 0x323   : > { %v12176_v49 = vcombine.low %v6960_v11, %v7184_v12  ;;  %v12178_v58 = vsel %vm849_vm5, %v6480_v40, %v7184_v12  ;;  %v7375_v48 = vrot.slane %v12175_v6, 5  ;;  %v6744_v16 = vor.u32 %v6743_v36, %v6739_v0  ;;  %v17298_v40 = vld [vmem:[#allocation2 + $0x80] sm:$0xf]  ;;  %v6964_v26 = vld [vmem:[#allocation2 + $0x88] sm:$0xe] }
 0x324   : > { %v12249_v57 = vrot.slane %v12173_v31, 9  ;;  %v7379_v7 = vrot.slane %v12178_v58, 5  ;;  %v6746_v4 = vshrl.u32 %v12091_v9, 16  ;;  %v6748_v52 = vshll.u32 %v12091_v9, 16  ;;  %v17312_v35 = vld [vmem:[#allocation2 + $0xa0] sm:$0xf] }
 0x325   : > { %v12250_v2 = vrot.slane %v12176_v49, 9  ;;  %v6755_v13 = vshll.u32 %v12092_v23, 16  ;;  %v12330_v24 = vcombine.low %v6737_v22, %v6744_v16  ;;  %v7185_v27 = vrot.slane %v14222_v46, 7  ;;  %v6485_v63 = vld [vmem:[#allocation2 + $0xa4] sm:$0x1] }
 0x326   : > { %v7376_v50 = vsel %vm14694_vm9, %v12249_v57, %v7375_v48  ;;  %v7186_v43 = vrot.slane %v14223_v32, 7  ;;  %v6750_v15 = vrot.slane %v6748_v52, 1  ;;  %v6753_v38 = vshrl.u32 %v12092_v23, 16  ;;  %v17316_v31 = vld [vmem:[#allocation2 + $0xa8] sm:$0xf] }
 0x327   : > { %v7380_v60 = vsel %vm14694_vm9, %v12250_v2, %v7379_v7  ;;  %v6757_v47 = vrot.slane %v6755_v13, 1  ;;  %8110 = vmatprep.mubr.bf16.mxu0 %v12330_v24  ;;  %v12179_v1 = vcombine.low %v6961_v30, %v7185_v27  ;;  %v12181_v62 = vsel %vm849_vm5, %v6481_v19, %v7185_v27  ;;  %v6486_v6 = vld [vmem:[#allocation2 + $0xac] sm:$0x1]  ;;  %v14235_v22 = vld [vmem:[#allocation2 + $0xb0] ss:$0 sps:$4 sm:$0xff]  }
 0x328   : > { %v12281_v34 = vcombine.low %v7376_v50, %v7380_v60  ;;  %v12282_v3 = vcombine.high %v7376_v50, %v7380_v60  ;;  %8111 = vmatmul.mubr.bf16.gmra.mxu0 %v12329_v5  ;;  %v6751_v56 = vor.u32 %v6750_v15, %v6746_v4  ;;  %v12182_v53 = vcombine.low %v6962_v51, %v7186_v43  ;;  %v6965_v24 = vld [vmem:[#allocation2 + $0xa0] sm:$0xe] }
 0x329   : > { %v6758_v54 = vor.u32 %v6757_v47, %v6753_v38  ;;  %v12184_v41 = vsel %vm849_vm5, %v6482_v44, %v7186_v43  ;;  %v12251_v45 = vrot.slane %v12179_v1, 9  ;;  %v7383_v55 = vrot.slane %v12181_v62, 5  ;;  %v17326_v38 = vld [vmem:[#allocation2 + $0xb0] sm:$0xf]  ;;  %v17328_v47 = vld [vmem:[#allocation2 + $0xb8] sm:$0xf] }
 0x32a   : > { %7789 = vmatprep.mubr.bf16.mxu1 %v12282_v3  ;;  %v7387_v25 = vrot.slane %v12184_v41, 5  ;;  %v12093_v18 = vcombine.low %v17298_v40, %v6483_v37  ;;  %v12252_v59 = vrot.slane %v12182_v53, 9  ;;  %v12094_v39 = vcombine.low %v17300_v42, %v6484_v17  ;;  %v6966_v62 = vld [vmem:[#allocation2 + $0xa8] sm:$0xe] }
 0x32b   : > { %v12332_v10 = vcombine.low %v6751_v56, %v6758_v54  ;;  %7790 = vmatmul.mubr.bf16.gmra.mxu1 %v12281_v34  ;;  %v7187_v19 = vrot.slane %v14228_v14, 7  ;;  %v7384_v8 = vsel %vm14694_vm9, %v12251_v45, %v7383_v55  ;;  %v12331_v29 = vcombine.low %v17275_v20, %v17283_v61  ;;  %v14234_v61 = vld [vmem:[#allocation2 + $0xa8] ss:$0 sps:$4 sm:$0xff]   ;;  %v14242_v45 = vld [vmem:[#allocation2 + $0xb8] ss:$0 sps:$4 sm:$0xff]  }
 0x32c   : > { %v6762_v44 = vshll.u32 %v12093_v18, 16  ;;  %v7188_v11 = vrot.slane %v14229_v28, 7  ;;  %v7388_v0 = vsel %vm14694_vm9, %v12252_v59, %v7387_v25  ;;  %v6760_v12 = vshrl.u32 %v12093_v18, 16  ;;  %v6488_v28 = vld [vmem:[#allocation2 + $0xbc] sm:$0x1] }
 0x32d   : > { %8118 = vmatprep.mubr.bf16.mxu0 %v12332_v10  ;;  %v6769_v9 = vshll.u32 %v12094_v39, 16  ;;  %v12185_v36 = vcombine.low %v6963_v21, %v7187_v19  ;;  %v12284_v23 = vcombine.high %v7384_v8, %v7388_v0  ;;  %v6767_v32 = vshrl.u32 %v12094_v39, 16  ;;  %v14243_v55 = vld [vmem:[#allocation2 + $0xc0] ss:$0 sps:$4 sm:$0xff]  }
 0x32e   : > { %v6764_v46 = vrot.slane %v6762_v44, 1  ;;  %v12187_v20 = vsel %vm849_vm5, %v6483_v37, %v7187_v19  ;;  %v12188_v58 = vcombine.low %v6964_v26, %v7188_v11  ;;  %v12190_v48 = vsel %vm849_vm5, %v6484_v17, %v7188_v11  ;;  %v6487_v37 = vld [vmem:[#allocation2 + $0xb4] sm:$0x1]  ;;  %v6967_v26 = vld [vmem:[#allocation2 + $0xb0] sm:$0xe] }
 0x32f   : > { %v6771_v49 = vrot.slane %v6769_v9, 1  ;;  %v12253_v16 = vrot.slane %v12185_v36, 9  ;;  %v12283_v57 = vcombine.low %v7384_v8, %v7388_v0  ;;  %7797 = vmatprep.mubr.bf16.mxu1 %v12284_v23  ;;  %v7391_v5 = vrot.slane %v12187_v20, 5  ;;  %v6968_v0 = vld [vmem:[#allocation2 + $0xb8] sm:$0xe] }
 0x330   : > { %v6765_v7 = vor.u32 %v6764_v46, %v6760_v12  ;;  %v7395_v2 = vrot.slane %v12190_v48, 5  ;;  %8119 = vmatmul.mubr.bf16.gmra.mxu0 %v12331_v29  ;;  %v12254_v52 = vrot.slane %v12188_v58, 9  ;;  %v12095_v13 = vcombine.low %v17312_v35, %v6485_v63  ;;  %v17340_v36 = vld [vmem:[#allocation2 + $0xc0] sm:$0xf]  ;;  %v17342_v20 = vld [vmem:[#allocation2 + $0xc8] sm:$0xf] }
 0x331   : > { %v6772_v4 = vor.u32 %v6771_v49, %v6767_v32  ;;  %v12096_v30 = vcombine.low %v17316_v31, %v6486_v6  ;;  %v7392_v14 = vsel %vm14694_vm9, %v12253_v16, %v7391_v5  ;;  %v7189_v50 = vrot.slane %v14234_v61, 7  ;;  %v14248_v61 = vld [vmem:[#allocation2 + $0xc8] ss:$0 sps:$4 sm:$0xff]   ;;  %v6490_v16 = vld [vmem:[#allocation2 + $0xcc] sm:$0x1] }
 0x332   : > { %v7190_v27 = vrot.slane %v14235_v22, 7  ;;  %v7396_v17 = vsel %vm14694_vm9, %v12254_v52, %v7395_v2  ;;  %v6774_v60 = vshrl.u32 %v12095_v13, 16  ;;  %v6776_v15 = vshll.u32 %v12095_v13, 16 }
 0x333   : > { %v12334_v43 = vcombine.low %v6765_v7, %v6772_v4  ;;  %7798 = vmatmul.mubr.bf16.gmra.mxu1 %v12283_v57  ;;  %v12286_v34 = vcombine.high %v7392_v14, %v7396_v17  ;;  %v12333_v3 = vcombine.low %v17298_v40, %v17300_v42  ;;  %v6781_v51 = vshrl.u32 %v12096_v30, 16  ;;  %v14249_v57 = vld [vmem:[#allocation2 + $0xd0] ss:$0 sps:$4 sm:$0xff]  }
 0x334   : > { %v6783_v1 = vshll.u32 %v12096_v30, 16  ;;  %v6778_v56 = vrot.slane %v6776_v15, 1  ;;  %v12191_v54 = vcombine.low %v6965_v24, %v7189_v50  ;;  %v12193_v53 = vsel %vm849_vm5, %v6485_v63, %v7189_v50 }
 0x335   : > { %8126 = vmatprep.mubr.bf16.mxu0 %v12334_v43  ;;  %v12194_v41 = vcombine.low %v6966_v62, %v7190_v27  ;;  %7805 = vmatprep.mubr.bf16.mxu1 %v12286_v34  ;;  %v12196_v18 = vsel %vm849_vm5, %v6486_v6, %v7190_v27  ;;  %v7399_v21 = vrot.slane %v12193_v53, 5  ;;  %v12097_v10 = vcombine.low %v17326_v38, %v6487_v37  ;;  %v6489_v6 = vld [vmem:[#allocation2 + $0xc4] sm:$0x1] }
 0x336   : > { %v6785_v25 = vrot.slane %v6783_v1, 1  ;;  %v6779_v40 = vor.u32 %v6778_v56, %v6774_v60  ;;  %v12255_v42 = vrot.slane %v12191_v54, 9  ;;  %v7403_v39 = vrot.slane %v12196_v18, 5  ;;  %v17360_v56 = vld [vmem:[#allocation2 + $0xd8] sm:$0xf] }
 0x337   : > { %v12256_v59 = vrot.slane %v12194_v41, 9  ;;  %v12285_v19 = vcombine.low %v7392_v14, %v7396_v17  ;;  %v12098_v29 = vcombine.low %v17328_v47, %v6488_v28  ;;  %v6790_v44 = vshll.u32 %v12097_v10, 16  ;;  %v6491_v54 = vld [vmem:[#allocation2 + $0xd4] sm:$0x1] }
 0x338   : > { %v6786_v8 = vor.u32 %v6785_v25, %v6781_v51  ;;  %8127 = vmatmul.mubr.bf16.gmra.mxu0 %v12333_v3  ;;  %v7400_v11 = vsel %vm14694_vm9, %v12255_v42, %v7399_v21  ;;  %v7191_v12 = vrot.slane %v14242_v45, 7  ;;  %v7192_v9 = vrot.slane %v14243_v55, 7  ;;  %v6970_v45 = vld [vmem:[#allocation2 + $0xc8] sm:$0xe]  ;;  %v6492_v55 = vld [vmem:[#allocation2 + $0xdc] sm:$0x1] }
 0x339   : > { %v7404_v63 = vsel %vm14694_vm9, %v12256_v59, %v7403_v39  ;;  %v6792_v32 = vrot.slane %v6790_v44, 1  ;;  %v6788_v22 = vshrl.u32 %v12097_v10, 16  ;;  %v6797_v49 = vshll.u32 %v12098_v29, 16  ;;  %v14257_v42 = vld [vmem:[#allocation2 + $0xe0] ss:$0 sps:$4 sm:$0xff]  }
 0x33a   : > { %v12336_v23 = vcombine.low %v6779_v40, %v6786_v8  ;;  %v12288_v46 = vcombine.high %v7400_v11, %v7404_v63  ;;  %v12197_v58 = vcombine.low %v6967_v26, %v7191_v12  ;;  %v12199_v48 = vsel %vm849_vm5, %v6487_v37, %v7191_v12  ;;  %v6969_v37 = vld [vmem:[#allocation2 + $0xc0] sm:$0xe]  ;;  %v14256_v40 = vld [vmem:[#allocation2 + $0xd8] ss:$0 sps:$4 sm:$0xff]  }
 0x33b   : > { %7806 = vmatmul.mubr.bf16.gmra.mxu1 %v12285_v19  ;;  %v6795_v7 = vshrl.u32 %v12098_v29, 16  ;;  %v12200_v5 = vcombine.low %v6968_v0, %v7192_v9  ;;  %v12202_v2 = vsel %vm849_vm5, %v6488_v28, %v7192_v9  ;;  %v7407_v4 = vrot.slane %v12199_v48, 5  ;;  %v17358_v28 = vld [vmem:[#allocation2 + $0xd0] sm:$0xf] }
 0x33c   : > { %8134 = vmatprep.mubr.bf16.mxu0 %v12336_v23  ;;  %7813 = vmatprep.mubr.bf16.mxu1 %v12288_v46  ;;  %v6793_v52 = vor.u32 %v6792_v32, %v6788_v22  ;;  %v6799_v13 = vrot.slane %v6797_v49, 1  ;;  %v12257_v30 = vrot.slane %v12197_v58, 9  ;;  %v7411_v14 = vrot.slane %v12202_v2, 5  ;;  %v6971_v9 = vld [vmem:[#allocation2 + $0xd0] sm:$0xe] }
 0x33d   : > { %v12258_v24 = vrot.slane %v12200_v5, 9  ;;  %v12099_v50 = vcombine.low %v17340_v36, %v6489_v6  ;;  %v12100_v27 = vcombine.low %v17342_v20, %v6490_v16  ;;  %v7193_v43 = vrot.slane %v14248_v61, 7  ;;  %v6972_v46 = vld [vmem:[#allocation2 + $0xd8] sm:$0xe]  ;;  %v17374_v22 = vld [vmem:[#allocation2 + $0xf0] sm:$0xf] }
 0x33e   : > { %v12335_v17 = vcombine.low %v17312_v35, %v17316_v31  ;;  %v6800_v60 = vor.u32 %v6799_v13, %v6795_v7  ;;  %v17352_v15 = vsel %vm14694_vm9, %v12257_v30, %v7407_v4  ;;  %v7194_v34 = vrot.slane %v14249_v57, 7  ;;  %v6493_v49 = vld [vmem:[#allocation2 + $0xf4] sm:$0x1]  ;;  %v17380_v7 = vld [vmem:[#allocation2 + $0xf8] sm:$0xf] }
 0x33f   : > { %v12287_v3 = vcombine.low %v7400_v11, %v7404_v63  ;;  %v17356_v51 = vsel %vm14694_vm9, %v12258_v24, %v7411_v14  ;;  %v6802_v1 = vshrl.u32 %v12099_v50, 16  ;;  %v6804_v62 = vshll.u32 %v12099_v50, 16  ;;  %v14263_v13 = vld [vmem:[#allocation2 + $0x100] ss:$0 sps:$4 sm:$0xff]  }
 0x340   : > { %8135 = vmatmul.mubr.bf16.gmra.mxu0 %v12335_v17  ;;  %v12338_v35 = vcombine.low %v6793_v52, %v6800_v60  ;;  %v12290_v31 = vcombine.high %v17352_v15, %v17356_v51  ;;  %v6809_v53 = vshrl.u32 %v12100_v27, 16  ;;  %v6811_v41 = vshll.u32 %v12100_v27, 16  ;;  %v6494_v52 = vld [vmem:[#allocation2 + $0xfc] sm:$0x1] }
 0x341   : > { %v6806_v25 = vrot.slane %v6804_v62, 1  ;;  %v12203_v18 = vcombine.low %v6969_v37, %v7193_v43  ;;  %v12205_v21 = vsel %vm849_vm5, %v6489_v6, %v7193_v43  ;;  %v12206_v10 = vcombine.low %v6970_v45, %v7194_v34 }
 0x342   : > { %8142 = vmatprep.mubr.bf16.mxu0 %v12338_v35  ;;  %v6813_v59 = vrot.slane %v6811_v41, 1  ;;  %v12208_v39 = vsel %vm849_vm5, %v6490_v16, %v7194_v34  ;;  %v7415_v19 = vrot.slane %v12205_v21, 5  ;;  %v12101_v8 = vcombine.low %v17358_v28, %v6491_v54  ;;  %v6495_v41 = vld [vmem:[#allocation2 + $0x104] sm:$0x1]  ;;  %v6974_v21 = vld [vmem:[#allocation2 + $0xf8] sm:$0xe] }
 0x343   : > { %7814 = vmatmul.mubr.bf16.gmra.mxu1 %v12287_v3  ;;  %v12259_v29 = vrot.slane %v12203_v18, 9  ;;  %v12260_v44 = vrot.slane %v12206_v10, 9  ;;  %v7419_v26 = vrot.slane %v12208_v39, 5  ;;  %v6807_v11 = vor.u32 %v6806_v25, %v6802_v1  ;;  %v6973_v1 = vld [vmem:[#allocation2 + $0xf0] sm:$0xe] }
 0x344   : > { %7821 = vmatprep.mubr.bf16.mxu1 %v12290_v31  ;;  %v6814_v63 = vor.u32 %v6813_v59, %v6809_v53  ;;  %v12102_v0 = vcombine.low %v17360_v56, %v6492_v55  ;;  %v6818_v12 = vshll.u32 %v12101_v8, 16  ;;  %v12337_v6 = vcombine.low %v17326_v38, %v17328_v47  ;;  %v14262_v38 = vld [vmem:[#allocation2 + $0xf8] ss:$0 sps:$4 sm:$0xff]   ;;  %v17389_v53 = vld [vmem:[#allocation2 + $0x100] sm:$0xf] }
 0x345   : > { %v17372_v23 = vsel %vm14694_vm9, %v12260_v44, %v7419_v26  ;;  %v7195_v32 = vrot.slane %v14256_v40, 7  ;;  %v7196_v61 = vrot.slane %v14257_v42, 7  ;;  %v12289_v58 = vcombine.low %v17352_v15, %v17356_v51  ;;  %v17399_v10 = vld [vmem:[#allocation2 + $0x108] sm:$0xf]  ;;  %v6496_v59 = vld [vmem:[#allocation2 + $0x10c] sm:$0x1] }
 0x346   : > { %v12340_v48 = vcombine.low %v6807_v11, %v6814_v63  ;;  %v7416_v16 = vsel %vm14694_vm9, %v12259_v29, %v7415_v19  ;;  %v6816_v57 = vshrl.u32 %v12101_v8, 16  ;;  %v6820_v47 = vrot.slane %v6818_v12, 1  ;;  %v14271_v39 = vld [vmem:[#allocation2 + $0x110] ss:$0 sps:$4 sm:$0xff]   ;;  %v14270_v26 = vld [vmem:[#allocation2 + $0x108] ss:$0 sps:$4 sm:$0xff]  }
 0x347   : > { %v6825_v5 = vshll.u32 %v12102_v0, 16  ;;  %v12209_v2 = vcombine.low %v6971_v9, %v7195_v32  ;;  %v12211_v4 = vsel %vm849_vm5, %v6491_v54, %v7195_v32  ;;  %v12292_v30 = vcombine.high %v7416_v16, %v17372_v23 }
 0x348   : > { %8143 = vmatmul.mubr.bf16.gmra.mxu0 %v12337_v6  ;;  %v6823_v14 = vshrl.u32 %v12102_v0, 16  ;;  %v12212_v24 = vcombine.low %v6972_v46, %v7196_v61  ;;  %v12214_v50 = vsel %vm849_vm5, %v6492_v55, %v7196_v61  ;;  %v7423_v17 = vrot.slane %v12211_v4, 5 }
 0x349   : > { %8150 = vmatprep.mubr.bf16.mxu0 %v12340_v48  ;;  %v6827_v27 = vrot.slane %v6825_v5, 1  ;;  %v12261_v43 = vrot.slane %v12209_v2, 9  ;;  %v7427_v60 = vrot.slane %v12214_v50, 5  ;;  %v12103_v37 = vcombine.low %v17374_v22, %v6493_v49  ;;  %v6975_v48 = vld [vmem:[#allocation2 + $0x100] sm:$0xe] }
 0x34a   : > { %v12262_v15 = vrot.slane %v12212_v24, 9  ;;  %v12104_v34 = vcombine.low %v17380_v7, %v6494_v52  ;;  %v7197_v3 = vrot.slane %v14262_v38, 7  ;;  %v6821_v51 = vor.u32 %v6820_v47, %v6816_v57  ;;  %v6976_v57 = vld [vmem:[#allocation2 + $0x108] sm:$0xe]  ;;  %v17410_v5 = vld [vmem:[#allocation2 + $0x118] sm:$0xf] }
 0x34b   : > { %7822 = vmatmul.mubr.bf16.gmra.mxu1 %v12289_v58  ;;  %v7198_v62 = vrot.slane %v14263_v13, 7  ;;  %v12339_v54 = vcombine.low %v17340_v36, %v17342_v20  ;;  %v6828_v35 = vor.u32 %v6827_v27, %v6823_v14  ;;  %v6832_v31 = vshll.u32 %v12103_v37, 16  ;;  %v14278_v2 = vld [vmem:[#allocation2 + $0x118] ss:$0 sps:$4 sm:$0xff]   ;;  %v6498_v14 = vld [vmem:[#allocation2 + $0x11c] sm:$0x1] }
 0x34c   : > { %7829 = vmatprep.mubr.bf16.mxu1 %v12292_v30  ;;  %v17393_v45 = vsel %vm14694_vm9, %v12261_v43, %v7423_v17  ;;  %v17397_v55 = vsel %vm14694_vm9, %v12262_v15, %v7427_v60  ;;  %v6830_v25 = vshrl.u32 %v12103_v37, 16  ;;  %v6839_v18 = vshll.u32 %v12104_v34, 16  ;;  %v14279_v24 = vld [vmem:[#allocation2 + $0x120] ss:$0 sps:$4 sm:$0xff]  }
 0x34d   : > { %v6834_v40 = vrot.slane %v6832_v31, 1  ;;  %v12215_v36 = vcombine.low %v6973_v1, %v7197_v3  ;;  %v12217_v20 = vsel %vm849_vm5, %v6493_v49, %v7197_v3  ;;  %v12218_v42 = vcombine.low %v6974_v21, %v7198_v62  ;;  %v17432_v31 = vld [vmem:[#allocation2 + $0x120] sm:$0xf] }
 0x34e   : > { %v12342_v19 = vcombine.low %v6821_v51, %v6828_v35  ;;  %v6841_v8 = vrot.slane %v6839_v18, 1  ;;  %v12220_v29 = vsel %vm849_vm5, %v6494_v52, %v7198_v62  ;;  %v12105_v44 = vcombine.low %v17389_v53, %v6495_v41  ;;  %v6499_v18 = vld [vmem:[#allocation2 + $0x124] sm:$0x1] }
 0x34f   : > { %v12291_v11 = vcombine.low %v7416_v16, %v17372_v23  ;;  %v12294_v63 = vcombine.high %v17393_v45, %v17397_v55  ;;  %v6837_v0 = vshrl.u32 %v12104_v34, 16  ;;  %v7431_v12 = vrot.slane %v12217_v20, 5  ;;  %v17408_v23 = vld [vmem:[#allocation2 + $0x110] sm:$0xf]  ;;  %v6497_v16 = vld [vmem:[#allocation2 + $0x114] sm:$0x1] }
 0x350   : > { %8151 = vmatmul.mubr.bf16.gmra.mxu0 %v12339_v54  ;;  %v12264_v9 = vrot.slane %v12218_v42, 9  ;;  %v7435_v6 = vrot.slane %v12220_v29, 5  ;;  %v12106_v46 = vcombine.low %v17399_v10, %v6496_v59  ;;  %v6846_v32 = vshll.u32 %v12105_v44, 16  ;;  %v6977_v20 = vld [vmem:[#allocation2 + $0x110] sm:$0xe] }
 0x351   : > { %8158 = vmatprep.mubr.bf16.mxu0 %v12342_v19  ;;  %v6835_v61 = vor.u32 %v6834_v40, %v6830_v25  ;;  %v6842_v49 = vor.u32 %v6841_v8, %v6837_v0  ;;  %v12263_v58 = vrot.slane %v12215_v36, 9  ;;  %v7200_v38 = vrot.slane %v14271_v39, 7  ;;  %v6978_v42 = vld [vmem:[#allocation2 + $0x118] sm:$0xe]  ;;  %v14288_v29 = vld [vmem:[#allocation2 + $0x128] ss:$0 sps:$4 sm:$0xff]  }
 0x352   : > { %v7199_v47 = vrot.slane %v14270_v26, 7  ;;  %v12293_v4 = vcombine.low %v17393_v45, %v17397_v55  ;;  %v12341_v52 = vcombine.low %v17358_v28, %v17360_v56  ;;  %v6848_v13 = vrot.slane %v6846_v32, 1 }
 0x353   : > { %7830 = vmatmul.mubr.bf16.gmra.mxu1 %v12291_v11  ;;  %v6853_v30 = vshll.u32 %v12106_v46, 16  ;;  %v17418_v50 = vsel %vm14694_vm9, %v12264_v9, %v7435_v6  ;;  %v6844_v27 = vshrl.u32 %v12105_v44, 16  ;;  %v12224_v17 = vcombine.low %v6976_v57, %v7200_v38  ;;  %v14289_v44 = vld [vmem:[#allocation2 + $0x130] ss:$0 sps:$4 sm:$0xff]  }
 0x354   : > { %7837 = vmatprep.mubr.bf16.mxu1 %v12294_v63  ;;  %v12221_v43 = vcombine.low %v6975_v48, %v7199_v47  ;;  %v12344_v60 = vcombine.low %v6835_v61, %v6842_v49  ;;  %v17422_v15 = vsel %vm14694_vm9, %v12263_v58, %v7431_v12  ;;  %v12223_v37 = vsel %vm849_vm5, %v6495_v41, %v7199_v47  ;;  %v6979_v48 = vld [vmem:[#allocation2 + $0x120] sm:$0xe] }
 0x355   : > { %v12226_v28 = vsel %vm849_vm5, %v6496_v59, %v7200_v38  ;;  %v6855_v56 = vrot.slane %v6853_v30, 1  ;;  %v17427_v34 = vcombine.low %v17408_v23, %v6497_v16  ;;  %v12108_v3 = vcombine.low %v17410_v5, %v6498_v14 }
 0x356   : > { %v7201_v51 = vrot.slane %v14278_v2, 7  ;;  %v12296_v1 = vcombine.high %v17422_v15, %v17418_v50  ;;  %v6849_v62 = vor.u32 %v6848_v13, %v6844_v27  ;;  %v6851_v54 = vshrl.u32 %v12106_v46, 16  ;;  %v17457_v2 = vld [vmem:[#allocation2 + $0x10] sm:$0xf] }
 0x357   : > { %v7202_v35 = vrot.slane %v14279_v24, 7  ;;  %v12265_v41 = vrot.slane %v12221_v43, 9  ;;  %v7439_v45 = vrot.slane %v12223_v37, 5  ;;  %v12266_v55 = vrot.slane %v12224_v17, 9  ;;  %v9800_v24 = vld [vmem:[#allocation2 + $0x14] sm:$0x1] }
 0x358   : > { %8159 = vmatmul.mubr.bf16.gmra.mxu0 %v12341_v52  ;;  %v7443_v25 = vrot.slane %v12226_v28, 5  ;;  %v12343_v21 = vcombine.low %v17374_v22, %v17380_v7  ;;  %v6860_v40 = vshll.u32 %v17427_v34, 16  ;;  %v6867_v36 = vshll.u32 %v12108_v3, 16  ;;  %v17441_v22 = vld [vmem:[#allocation2 + $0x128] sm:$0xf] }
 0x359   : > { %8166 = vmatprep.mubr.bf16.mxu0 %v12344_v60  ;;  %v6856_v59 = vor.u32 %v6855_v56, %v6851_v54  ;;  %v12227_v39 = vcombine.low %v6977_v20, %v7201_v51  ;;  %v12229_v19 = vsel %vm849_vm5, %v6497_v16, %v7201_v51  ;;  %v12230_v8 = vcombine.low %v6978_v42, %v7202_v35  ;;  %v6500_v7 = vld [vmem:[#allocation2 + $0x12c] sm:$0x1]  ;;  %v6980_v60 = vld [vmem:[#allocation2 + $0x128] sm:$0xe]  ;;  %v8264_v51 = vld [vmem:[#allocation2 + $0x10] sm:$0xe] }
 0x35a   : > { %v12295_v26 = vcombine.low %v17422_v15, %v17418_v50  ;;  %v6869_v11 = vrot.slane %v6867_v36, 1  ;;  %v12232_v63 = vsel %vm849_vm5, %v6498_v14, %v7202_v35  ;;  %v17444_v0 = vcombine.low %v17432_v31, %v6499_v18  ;;  %v9801_v50 = vld [vmem:[#allocation2 + $0x1c] sm:$0x1]  ;;  %v17493_v42 = vld [vmem:[#allocation2 + $0x28] sm:$0xf] }
 0x35b   : > { %7838 = vmatmul.mubr.bf16.gmra.mxu1 %v12293_v4  ;;  %v12346_v12 = vcombine.low %v6849_v62, %v6856_v59  ;;  %v17448_v9 = vsel %vm14694_vm9, %v12265_v41, %v7439_v45  ;;  %v17452_v6 = vsel %vm14694_vm9, %v12266_v55, %v7443_v25  ;;  %v6865_v46 = vshrl.u32 %v12108_v3, 16  ;;  %v17459_v4 = vld [vmem:[#allocation2 + $0x18] sm:$0xf]  ;;  %v8263_v3 = vld [vmem:[#allocation2 + $0x8] sm:$0xe] }
 0x35c   : > { %7845 = vmatprep.mubr.bf16.mxu1 %v12296_v1  ;;  %v6862_v32 = vrot.slane %v6860_v40, 1  ;;  %v12267_v61 = vrot.slane %v12227_v39, 9  ;;  %v7447_v49 = vrot.slane %v12229_v19, 5  ;;  %v12268_v58 = vrot.slane %v12230_v8, 9  ;;  %v9802_v59 = vld [vmem:[#allocation2 + $0x24] sm:$0x1] }
 0x35d   : > { %v7451_v57 = vrot.slane %v12232_v63, 5  ;;  %v17455_v38 = vcombine.low %v17441_v22, %v6500_v7  ;;  %v7203_v16 = vrot.slane %v14288_v29, 7  ;;  %v7204_v47 = vrot.slane %v14289_v44, 7  ;;  %v9803_v44 = vld [vmem:[#allocation2 + $0x2c] sm:$0x1] }
 0x35e   : > { %v12345_v52 = vcombine.low %v17389_v53, %v17399_v10  ;;  %v6858_v13 = vshrl.u32 %v17427_v34, 16  ;;  %v6870_v30 = vor.u32 %v6869_v11, %v6865_v46  ;;  %v6874_v14 = vshll.u32 %v17444_v0, 16  ;;  %v17471_v53 = vld [vmem:[#allocation2 + $0xc] sm:$0x1]  ;;  %v17473_v10 = vld [vmem:[#allocation2 + $0x14] sm:$0x1] }
 0x35f   : > { %v12297_v27 = vcombine.low %v17448_v9, %v17452_v6  ;;  %v12298_v43 = vcombine.high %v17448_v9, %v17452_v6  ;;  %v12347_v17 = vcombine.low %v17408_v23, %v17410_v5  ;;  %v12233_v15 = vcombine.low %v6979_v48, %v7203_v16 }
 0x360   : > { %8167 = vmatmul.mubr.bf16.gmra.mxu0 %v12343_v21  ;;  %v6863_v37 = vor.u32 %v6862_v32, %v6858_v13  ;;  %v6872_v28 = vshrl.u32 %v17444_v0, 16  ;;  %v12235_v56 = vsel %vm849_vm5, %v6499_v18, %v7203_v16  ;;  %v12236_v34 = vcombine.low %v6980_v60, %v7204_v47  ;;  %v17489_v18 = vld [vmem:[#allocation2 + $0x20] sm:$0xf]  ;;  %v8199_v60 = vld [vmem:[#allocation2 + $0x8] sm:$0xf] }
 0x361   : > { %8174 = vmatprep.mubr.bf16.mxu0 %v12346_v12  ;;  %v17479_v1 = vsel %vm14694_vm9, %v12267_v61, %v7447_v49  ;;  %v17483_v62 = vsel %vm14694_vm9, %v12268_v58, %v7451_v57  ;;  %v6881_v54 = vshll.u32 %v17455_v38, 16  ;;  %v12238_v35 = vsel %vm849_vm5, %v6500_v7, %v7204_v47 }
 0x362   : > { %v12348_v41 = vcombine.low %v6863_v37, %v6870_v30  ;;  %v6876_v45 = vrot.slane %v6874_v14, 1  ;;  %v12543_v55 = vcombine.low %v17457_v2, %v9800_v24  ;;  %v12544_v25 = vcombine.low %v17459_v4, %v9801_v50 }
 0x363   : > { %7846 = vmatmul.mubr.bf16.gmra.mxu1 %v12295_v26  ;;  %v12269_v21 = vrot.slane %v12233_v15, 9  ;;  %v7455_v40 = vrot.slane %v12235_v56, 5  ;;  %v12367_v36 = vcombine.low %v8263_v3, %v17471_v53  ;;  %v12368_v20 = vcombine.low %v8264_v51, %v17473_v10  ;;  %v8201_v15 = vld [vmem:[#allocation2 + $0x10] sm:$0xf] }
 0x364   : > { %7853 = vmatprep.mubr.bf16.mxu1 %v12298_v43  ;;  %v12299_v39 = vcombine.low %v17479_v1, %v17483_v62  ;;  %v12270_v19 = vrot.slane %v12236_v34, 9  ;;  %v7459_v8 = vrot.slane %v12238_v35, 5  ;;  %v9995_v29 = vshll.u32 %v12543_v55, 16  ;;  %v17525_v35 = vld [vmem:[#allocation2 + $0x24] sm:$0x1] }
 0x365   : > { %v12300_v26 = vcombine.high %v17479_v1, %v17483_v62  ;;  %v6879_v11 = vshrl.u32 %v17455_v38, 16  ;;  %v6883_v63 = vrot.slane %v6881_v54, 1  ;;  %v10002_v7 = vshll.u32 %v12544_v25, 16  ;;  %v17523_v54 = vld [vmem:[#allocation2 + $0x1c] sm:$0x1] }
 0x366   : > { %v6877_v0 = vor.u32 %v6876_v45, %v6872_v28  ;;  %v12349_v12 = vcombine.low %v17432_v31, %v17441_v22  ;;  %v12575_v9 = vcombine.low %v17457_v2, %v17459_v4  ;;  %v8522_v6 = vshll.u32 %v12367_v36, 16  ;;  %v8266_v45 = vld [vmem:[#allocation2 + $0x20] sm:$0xe]  ;;  %v8203_v22 = vld [vmem:[#allocation2 + $0x18] sm:$0xf] }
 0x367   : > { %v17506_v46 = vsel %vm14694_vm9, %v12269_v21, %v7455_v40  ;;  %v8529_v32 = vshll.u32 %v12368_v20, 16  ;;  %v17509_v61 = vcombine.low %v17489_v18, %v9802_v59  ;;  %v12546_v49 = vcombine.low %v17493_v42, %v9803_v44 }
 0x368   : > { %8175 = vmatmul.mubr.bf16.gmra.mxu0 %v12345_v52  ;;  %v17514_v58 = vsel %vm14694_vm9, %v12270_v19, %v7459_v8  ;;  %v9997_v48 = vrot.slane %v9995_v29, 1  ;;  %v8520_v57 = vshrl.u32 %v12367_v36, 16  ;;  %v8524_v38 = vrot.slane %v8522_v6, 1  ;;  %v17530_v36 = vld [vmem:[#allocation2 + $0x30] sm:$0xf] }
 0x369   : > { %8182 = vmatprep.mubr.bf16.mxu0 %v12348_v41  ;;  %v6884_v16 = vor.u32 %v6883_v63, %v6879_v11  ;;  %v10004_v47 = vrot.slane %v10002_v7, 1  ;;  %v8527_v52 = vshrl.u32 %v12368_v20, 16  ;;  %v8531_v13 = vrot.slane %v8529_v32, 1  ;;  %v8265_v41 = vld [vmem:[#allocation2 + $0x18] sm:$0xe] }
 0x36a   : > { %v9993_v30 = vshrl.u32 %v12543_v55, 16  ;;  %v10000_v14 = vshrl.u32 %v12544_v25, 16  ;;  %v8525_v24 = vor.u32 %v8524_v38, %v8520_v57  ;;  %v10016_v50 = vshll.u32 %v12546_v49, 16  ;;  %v17532_v20 = vld [vmem:[#allocation2 + $0x38] sm:$0xf] }
 0x36b   : > { %7854 = vmatmul.mubr.bf16.gmra.mxu1 %v12297_v27  ;;  %v12350_v43 = vcombine.low %v6877_v0, %v6884_v16  ;;  %v12301_v27 = vcombine.low %v17506_v46, %v17514_v58  ;;  %v8532_v37 = vor.u32 %v8531_v13, %v8527_v52  ;;  %v10009_v28 = vshll.u32 %v17509_v61, 16  ;;  %v9804_v29 = vld [vmem:[#allocation2 + $0x34] sm:$0x1]  ;;  %v9805_v63 = vld [vmem:[#allocation2 + $0x3c] sm:$0x1] }
 0x36c   : > { %7861 = vmatprep.mubr.bf16.mxu1 %v12300_v26  ;;  %v12302_v56 = vcombine.high %v17506_v46, %v17514_v58  ;;  %v9998_v34 = vor.u32 %v9997_v48, %v9993_v30  ;;  %v12399_v3 = vcombine.low %v8199_v60, %v8525_v24  ;;  %v12401_v51 = vsel %vm849_vm5, %v17471_v53, %v8525_v24  ;;  %v8267_v52 = vld [vmem:[#allocation2 + $0x28] sm:$0xe] }
 0x36d   : > { %v10005_v55 = vor.u32 %v10004_v47, %v10000_v14  ;;  %v12402_v25 = vcombine.low %v8201_v15, %v8532_v37  ;;  %v12404_v21 = vsel %vm849_vm5, %v17473_v10, %v8532_v37  ;;  %v10007_v40 = vshrl.u32 %v17509_v61, 16  ;;  %v17546_v47 = vld [vmem:[#allocation2 + $0x2c] sm:$0x1] }
 0x36e   : > { %v8872_v53 = vshrl.u32 %v12399_v3, 16  ;;  %v8875_v59 = vshll.u32 %v12399_v3, 16  ;;  %v10014_v19 = vshrl.u32 %v12546_v49, 16  ;;  %v10018_v8 = vrot.slane %v10016_v50, 1  ;;  %v8268_v3 = vld [vmem:[#allocation2 + $0x30] sm:$0xe] }
 0x36f   : > { %v8881_v44 = vshll.u32 %v12401_v51, 16  ;;  %v8886_v26 = vshrl.u32 %v12402_v25, 16  ;;  %v8889_v11 = vshll.u32 %v12402_v25, 16  ;;  %v10011_v10 = vrot.slane %v10009_v28, 1 }
 0x370   : > { %8183 = vmatmul.mubr.bf16.gmra.mxu0 %v12347_v17  ;;  %v12576_v7 = vcombine.low %v9998_v34, %v10005_v55  ;;  %v8874_v0 = vrot.slane %v8872_v53, 4  ;;  %v8877_v6 = vrot.slane %v8875_v59, 5  ;;  %v8895_v23 = vshll.u32 %v12404_v21, 16  ;;  %v17552_v34 = vld [vmem:[#allocation2 + $0x34] sm:$0x1] }
 0x371   : > { %8190 = vmatprep.mubr.bf16.mxu0 %v12350_v43  ;;  %v8888_v5 = vrot.slane %v8886_v26, 4  ;;  %v8891_v17 = vrot.slane %v8889_v11, 5  ;;  %v12369_v32 = vcombine.low %v8265_v41, %v17523_v54  ;;  %v12370_v61 = vcombine.low %v8266_v45, %v17525_v35  ;;  %v8205_v59 = vld [vmem:[#allocation2 + $0x20] sm:$0xf] }
 0x372   : > { %v8878_v49 = vor.u32 %v8877_v6, %v8874_v0  ;;  %v17542_v48 = vor.u32 %v10018_v8, %v10014_v19  ;;  %v12547_v57 = vcombine.low %v17530_v36, %v9804_v29  ;;  %v12548_v38 = vcombine.low %v17532_v20, %v9805_v63  ;;  %v17569_v0 = vld [vmem:[#allocation2 + $0x40] sm:$0xf] }
 0x373   : > { %7862 = vmatmul.mubr.bf16.gmra.mxu1 %v12299_v39  ;;  %v8883_v1 = vrot.slane %v8881_v44, 5  ;;  %v8892_v62 = vor.u32 %v8891_v17, %v8888_v5  ;;  %v10012_v39 = vor.u32 %v10011_v10, %v10007_v40  ;;  %v8536_v16 = vshll.u32 %v12369_v32, 16  ;;  %v9806_v17 = vld [vmem:[#allocation2 + $0x44] sm:$0x1] }
 0x374   : > { %7869 = vmatprep.mubr.bf16.mxu1 %v12302_v56  ;;  %v8879_v13 = vrot.slane %v8878_v49, 4  ;;  %v8897_v30 = vrot.slane %v8895_v23, 5  ;;  %v8543_v14 = vshll.u32 %v12370_v61, 16  ;;  %v10023_v24 = vshll.u32 %v12547_v57, 16 }
 0x375   : > { %v8893_v50 = vrot.slane %v8892_v62, 4  ;;  %v8534_v43 = vshrl.u32 %v12369_v32, 16  ;;  %v8538_v60 = vrot.slane %v8536_v16, 1  ;;  %v10030_v15 = vshll.u32 %v12548_v38, 16  ;;  %v14314_v16 = vld [vmem:[%s18951_s3 + $0x230] sm:$0xff]  }
 0x376   : > { %v12578_v37 = vcombine.low %v10012_v39, %v17542_v48  ;;  %v8541_v28 = vshrl.u32 %v12370_v61, 16  ;;  %v8545_v56 = vrot.slane %v8543_v14, 1  ;;  %v12371_v51 = vcombine.low %v8267_v52, %v17546_v47  ;;  %v9807_v39 = vld [vmem:[#allocation2 + $0x4c] sm:$0x1] }
 0x377   : > { %v8884_v45 = vsel %vm15399_vm12, %v8879_v13, %v8883_v1  ;;  %v8898_v55 = vsel %vm15399_vm12, %v8893_v50, %v8897_v30  ;;  %v8539_v25 = vor.u32 %v8538_v60, %v8534_v43  ;;  %v10025_v21 = vrot.slane %v10023_v24, 1  ;;  %v8207_v30 = vld [vmem:[#allocation2 + $0x28] sm:$0xf] }
 0x378   : > { %8191 = vmatmul.mubr.bf16.gmra.mxu0 %v12349_v12  ;;  %v12496_v31 = vcombine.high %v8884_v45, %v8898_v55  ;;  %v8546_v12 = vor.u32 %v8545_v56, %v8541_v28  ;;  %v10021_v40 = vshrl.u32 %v12547_v57, 16  ;;  %v10028_v53 = vshrl.u32 %v12548_v38, 16  ;;  %v17571_v57 = vld [vmem:[#allocation2 + $0x48] sm:$0xf] }
 0x379   : > { %10472 = vmatprep.mubr.bf16.mxu0 %v12576_v7  ;;  %v12405_v19 = vcombine.low %v8203_v22, %v8539_v25  ;;  %v12407_v8 = vsel %vm849_vm5, %v17523_v54, %v8539_v25  ;;  %v10032_v29 = vrot.slane %v10030_v15, 1  ;;  %v12372_v44 = vcombine.low %v8268_v3, %v17552_v34  ;;  %v14417_v15 = vld [vmem:[%s18951_s3 + $0x238] sm:$0xff]  }
 0x37a   : > { %v12495_v26 = vcombine.low %v8884_v45, %v8898_v55  ;;  %v12408_v11 = vcombine.low %v8205_v59, %v8546_v12  ;;  %v12410_v46 = vsel %vm849_vm5, %v17525_v35, %v8546_v12  ;;  %v8550_v58 = vshll.u32 %v12371_v51, 16  ;;  %v14325_v55 = vld [vmem:[%s18951_s3 + $0x228] sm:$0xff]   ;;  %v17594_v12 = vld [vmem:[#allocation2 + $0x3c] sm:$0x1] }
 0x37b   : > { %7870 = vmatmul.mubr.bf16.gmra.mxu1 %v12301_v27  ;;  %v8900_v27 = vshrl.u32 %v12405_v19, 16  ;;  %v8903_v10 = vshll.u32 %v12405_v19, 16  ;;  %v8909_v63 = vshll.u32 %v12407_v8, 16  ;;  %v17567_v7 = vor.u32 %v10025_v21, %v10021_v40  ;;  %v17600_v8 = vld [vmem:[#allocation2 + $0x44] sm:$0x1] }
 0x37c   : > { %9607 = vmatprep.mubr.bf16.mxu1 %v12496_v31  ;;  %v8914_v6 = vshrl.u32 %v12408_v11, 16  ;;  %v8917_v23 = vshll.u32 %v12408_v11, 16  ;;  %v8548_v54 = vshrl.u32 %v12371_v51, 16  ;;  %v8552_v5 = vrot.slane %v8550_v58, 1  ;;  %v8209_v31 = vld [vmem:[#allocation2 + $0x30] sm:$0xf] }
 0x37d   : > { %v8902_v32 = vrot.slane %v8900_v27, 4  ;;  %v8905_v61 = vrot.slane %v8903_v10, 5  ;;  %v8923_v49 = vshll.u32 %v12410_v46, 16  ;;  %v10033_v48 = vor.u32 %v10032_v29, %v10028_v53  ;;  %v8269_v29 = vld [vmem:[#allocation2 + $0x38] sm:$0xe] }
 0x37e   : > { %v8916_v35 = vrot.slane %v8914_v6, 4  ;;  %v8919_v38 = vrot.slane %v8917_v23, 5  ;;  %v8553_v1 = vor.u32 %v8552_v5, %v8548_v54  ;;  %v8557_v62 = vshll.u32 %v12372_v44, 16  ;;  %v17602_v46 = vld [vmem:[#allocation2 + $0x60] sm:$0xf] }
 0x37f   : > { %v8906_v52 = vor.u32 %v8905_v61, %v8902_v32  ;;  %v8911_v13 = vrot.slane %v8909_v63, 5  ;;  %v8555_v14 = vshrl.u32 %v12372_v44, 16  ;;  %v12549_v24 = vcombine.low %v17569_v0, %v9806_v17  ;;  %v8270_v44 = vld [vmem:[#allocation2 + $0x40] sm:$0xe]  ;;  %v17609_v17 = vld [vmem:[#allocation2 + $0x68] sm:$0xf] }
 0x380   : > { %10473 = vmatmul.mubr.bf16.vlgmr.msra.gmra.mxu0 %v12575_v9  ;;  %v8920_v50 = vor.u32 %v8919_v38, %v8916_v35  ;;  %v8559_v2 = vrot.slane %v8557_v62, 1  ;;  %v12411_v4 = vcombine.low %v8207_v30, %v8553_v1  ;;  %v12413_v9 = vsel %vm849_vm5, %v17546_v47, %v8553_v1  ;;  %v9809_v35 = vld [vmem:[#allocation2 + $0x6c] sm:$0x1]  ;;  %v17616_v30 = vld [vmem:[#allocation2 + $0x64] sm:$0x1] }
 0x381   : > { %10480 = vmatprep.mubr.bf16.mxu0 %v12578_v37  ;;  %v8907_v43 = vrot.slane %v8906_v52, 4  ;;  %v8925_v60 = vrot.slane %v8923_v49, 5  ;;  %v12550_v37 = vcombine.low %v17571_v57, %v9807_v39  ;;  %v10037_v28 = vshll.u32 %v12549_v24, 16 }
 0x382   : > { %v8921_v56 = vrot.slane %v8920_v50, 4  ;;  %v8560_v3 = vor.u32 %v8559_v2, %v8555_v14  ;;  %v8928_v51 = vshrl.u32 %v12411_v4, 16  ;;  %v8931_v45 = vshll.u32 %v12411_v4, 16  ;;  %v8271_v4 = vld [vmem:[#allocation2 + $0x58] sm:$0xe] }
 0x383   : > { %9608 = vmatmul.mubr.bf16.vlgmr.msra.gmra.mxu1 %v12495_v26  ;;  %v8912_v47 = vsel %vm15399_vm12, %v8907_v43, %v8911_v13  ;;  %v12577_v25 = vcombine.low %v17489_v18, %v17493_v42  ;;  %v12580_v21 = vcombine.low %v17567_v7, %v10033_v48  ;;  %v8937_v22 = vshll.u32 %v12413_v9, 16  ;;  %v9808_v7 = vld [vmem:[#allocation2 + $0x64] sm:$0x1]  ;;  %v17614_v13 = vld [vmem:[#allocation2 + $0x5c] sm:$0x1] }
 0x384   : > { %13868 = vmatpush3.bf16.msra.mxu1 %v14417_v15  ;;  %v8926_v40 = vsel %vm15399_vm12, %v8921_v56, %v8925_v60  ;;  %v12414_v53 = vcombine.low %v8209_v31, %v8560_v3  ;;  %v12416_v59 = vsel %vm849_vm5, %v17552_v34, %v8560_v3  ;;  %v8930_v19 = vrot.slane %v8928_v51, 4  ;;  %v14336_v34 = vld [vmem:[%s18951_s3 + $0x220] sm:$0xff]   ;;  %v14347_v9 = vld [vmem:[%s18951_s3 + $0x218] sm:$0xff]   ;;  %v14358_v31 = vld [vmem:[%s18951_s3 + $0x210] sm:$0xff]  }
 0x385   : > { %13869 = vmatprep.subr.bf16.mxu1 %v14314_v16  ;;  %v12498_v26 = vcombine.high %v8912_v47, %v8926_v40  ;;  %v8933_v18 = vrot.slane %v8931_v45, 5  ;;  %v10039_v42 = vrot.slane %v10037_v28, 1  ;;  %v10042_v11 = vshrl.u32 %v12550_v37, 16  ;;  %v8272_v28 = vld [vmem:[#allocation2 + $0x60] sm:$0xe] }
 0x386   : > { %v12497_v58 = vcombine.low %v8912_v47, %v8926_v40  ;;  %v8942_v27 = vshrl.u32 %v12414_v53, 16  ;;  %v8945_v10 = vshll.u32 %v12414_v53, 16  ;;  %v10044_v63 = vshll.u32 %v12550_v37, 16  ;;  %v8211_v40 = vld [vmem:[#allocation2 + $0x38] sm:$0xf] }
 0x387   : > { %9615 = vmatprep.mubr.bf16.mxu1 %v12498_v26  ;;  %v8934_v6 = vor.u32 %v8933_v18, %v8930_v19  ;;  %v8951_v23 = vshll.u32 %v12416_v59, 16  ;;  %v12579_v54 = vcombine.low %v17530_v36, %v17532_v20  ;;  %v10035_v5 = vshrl.u32 %v12549_v24, 16 }
 0x388   : > { %13870 = vmatpush3.bf16.msra.mxu1 %v14314_v16  ;;  %10481 = vmatmul.mubr.bf16.gmra.mxu0 %v12577_v25  ;;  %v8944_v32 = vrot.slane %v8942_v27, 4  ;;  %v8947_v61 = vrot.slane %v8945_v10, 5  ;;  %v10046_v49 = vrot.slane %v10044_v63, 1  ;;  %v12373_v48 = vcombine.low %v8269_v29, %v17594_v12  ;;  %v17635_v63 = vld [vmem:[#allocation2 + $0x70] sm:$0xf] }
 0x389   : > { %13871 = vmatprep.subr.bf16.mxu1 %v14325_v55  ;;  %10488 = vmatprep.mubr.bf16.mxu0 %v12580_v21  ;;  %v8935_v38 = vrot.slane %v8934_v6, 4  ;;  %v10040_v1 = vor.u32 %v10039_v42, %v10035_v5  ;;  %v12374_v62 = vcombine.low %v8270_v44, %v17600_v8  ;;  %v12551_v39 = vcombine.low %v17602_v46, %v9808_v7  ;;  %v8213_v44 = vld [vmem:[#allocation2 + $0x40] sm:$0xf] }
 0x38a   : > { %v8939_v16 = vrot.slane %v8937_v22, 5  ;;  %v8948_v52 = vor.u32 %v8947_v61, %v8944_v32  ;;  %v10047_v36 = vor.u32 %v10046_v49, %v10042_v11  ;;  %v8564_v20 = vshll.u32 %v12373_v48, 16  ;;  %v9810_v49 = vld [vmem:[#allocation2 + $0x74] sm:$0x1] }
 0x38b   : > { %9616 = vmatmul.mubr.bf16.gmra.mxu1 %v12497_v58  ;;  %v8953_v14 = vrot.slane %v8951_v23, 5  ;;  %v8562_v24 = vshrl.u32 %v12373_v48, 16  ;;  %v8571_v50 = vshll.u32 %v12374_v62, 16  ;;  %v12552_v2 = vcombine.low %v17609_v17, %v9809_v35 }
 0x38c   : > { %13872 = vmatpush3.bf16.msra.mxu1 %v14325_v55  ;;  %v8940_v43 = vsel %vm15399_vm12, %v8935_v38, %v8939_v16  ;;  %v8949_v60 = vrot.slane %v8948_v52, 4  ;;  %v8566_v15 = vrot.slane %v8564_v20, 1  ;;  %v8569_v37 = vshrl.u32 %v12374_v62, 16  ;;  %v9811_v62 = vld [vmem:[#allocation2 + $0x7c] sm:$0x1] }
 0x38d   : > { %13873 = vmatprep.subr.bf16.mxu1 %v14336_v34  ;;  %v12582_v56 = vcombine.low %v10040_v1, %v10047_v36  ;;  %v8573_v3 = vrot.slane %v8571_v50, 1  ;;  %v10051_v51 = vshll.u32 %v12551_v39, 16  ;;  %v10058_v45 = vshll.u32 %v12552_v2, 16 }
 0x38e   : > { %v8954_v55 = vsel %vm15399_vm12, %v8949_v60, %v8953_v14  ;;  %v8567_v47 = vor.u32 %v8566_v15, %v8562_v24  ;;  %v10049_v25 = vshrl.u32 %v12551_v39, 16  ;;  %v12375_v21 = vcombine.low %v8271_v4, %v17614_v13 }
 0x38f   : > { %v12500_v22 = vcombine.high %v8940_v43, %v8954_v55  ;;  %v8574_v53 = vor.u32 %v8573_v3, %v8569_v37  ;;  %v10053_v59 = vrot.slane %v10051_v51, 1  ;;  %v12376_v19 = vcombine.low %v8272_v28, %v17616_v30 }
 0x390   : > { %13874 = vmatpush3.bf16.msra.mxu1 %v14336_v34  ;;  %10489 = vmatmul.mubr.bf16.gmra.mxu0 %v12579_v54  ;;  %v12499_v29 = vcombine.low %v8940_v43, %v8954_v55  ;;  %v12417_v26 = vcombine.low %v8211_v40, %v8567_v47  ;;  %v12419_v18 = vsel %vm849_vm5, %v17594_v12, %v8567_v47  ;;  %v10060_v42 = vrot.slane %v10058_v45, 1  ;;  %v17637_v54 = vld [vmem:[#allocation2 + $0x78] sm:$0xf]  ;;  %v14369_v12 = vld [vmem:[%s18951_s3 + $0x208] sm:$0xff]   ;;  %v8217_v55 = vld [vmem:[#allocation2 + $0x60] sm:$0xf] }
 0x391   : > { %10496 = vmatprep.mubr.bf16.mxu0 %v12582_v56  ;;  %13875 = vmatprep.subr.bf16.mxu1 %v14347_v9  ;;  %v12420_v11 = vcombine.low %v8213_v44, %v8574_v53  ;;  %v12422_v58 = vsel %vm849_vm5, %v17600_v8, %v8574_v53  ;;  %v10054_v27 = vor.u32 %v10053_v59, %v10049_v25  ;;  %v10056_v10 = vshrl.u32 %v12552_v2, 16  ;;  %v8215_v43 = vld [vmem:[#allocation2 + $0x58] sm:$0xf]  ;;  %v17654_v59 = vld [vmem:[#allocation2 + $0x6c] sm:$0x1] }
 0x392   : > { %9623 = vmatprep.mubr.bf16.mxu1 %v12500_v22  ;;  %v8956_v7 = vshrl.u32 %v12417_v26, 16  ;;  %v8959_v34 = vshll.u32 %v12417_v26, 16  ;;  %v8965_v6 = vshll.u32 %v12419_v18, 16  ;;  %v8979_v23 = vshll.u32 %v12422_v58, 16  ;;  %v8273_v44 = vld [vmem:[#allocation2 + $0x68] sm:$0xe] }
 0x393   : > { %9624 = vmatmul.mubr.bf16.gmra.mxu1 %v12499_v29  ;;  %v8970_v5 = vshrl.u32 %v12420_v11, 16  ;;  %v8973_v32 = vshll.u32 %v12420_v11, 16  ;;  %v10061_v8 = vor.u32 %v10060_v42, %v10056_v10  ;;  %v8578_v61 = vshll.u32 %v12375_v21, 16  ;;  %v17658_v29 = vld [vmem:[#allocation2 + $0x74] sm:$0x1] }
 0x394   : > { %13876 = vmatpush3.bf16.msra.mxu1 %v14347_v9  ;;  %v8958_v48 = vrot.slane %v8956_v7, 4  ;;  %v8961_v35 = vrot.slane %v8959_v34, 5  ;;  %v12581_v38 = vcombine.low %v17569_v0, %v17571_v57  ;;  %v8576_v1 = vshrl.u32 %v12375_v21, 16  ;;  %v8274_v58 = vld [vmem:[#allocation2 + $0x70] sm:$0xe] }
 0x395   : > { %13877 = vmatprep.subr.bf16.mxu1 %v14358_v31  ;;  %v8972_v39 = vrot.slane %v8970_v5, 4  ;;  %v8975_v16 = vrot.slane %v8973_v32, 5  ;;  %v12584_v52 = vcombine.low %v10054_v27, %v10061_v8  ;;  %v8580_v36 = vrot.slane %v8578_v61, 1  ;;  %v17663_v5 = vld [vmem:[#allocation2 + $0x88] sm:$0xf] }
 0x396   : > { %v8962_v20 = vor.u32 %v8961_v35, %v8958_v48  ;;  %v8967_v14 = vrot.slane %v8965_v6, 5  ;;  %v8585_v24 = vshll.u32 %v12376_v19, 16  ;;  %v12553_v50 = vcombine.low %v17635_v63, %v9810_v49  ;;  %v9812_v32 = vld [vmem:[#allocation2 + $0x84] sm:$0x1]  ;;  %v9813_v35 = vld [vmem:[#allocation2 + $0x8c] sm:$0x1] }
 0x397   : > { %v8976_v2 = vor.u32 %v8975_v16, %v8972_v39  ;;  %v8981_v4 = vrot.slane %v8979_v23, 5  ;;  %v8581_v9 = vor.u32 %v8580_v36, %v8576_v1  ;;  %v12554_v0 = vcombine.low %v17637_v54, %v9811_v62  ;;  %v17670_v36 = vld [vmem:[#allocation2 + $0x84] sm:$0x1] }
 0x398   : > { %13878 = vmatpush3.bf16.msra.mxu1 %v14358_v31  ;;  %10497 = vmatmul.mubr.bf16.gmra.mxu0 %v12581_v38  ;;  %v8963_v57 = vrot.slane %v8962_v20, 4  ;;  %v8583_v60 = vshrl.u32 %v12376_v19, 16  ;;  %v8587_v15 = vrot.slane %v8585_v24, 1  ;;  %v10065_v37 = vshll.u32 %v12553_v50, 16  ;;  %v17666_v38 = vld [vmem:[#allocation2 + $0x7c] sm:$0x1] }
 0x399   : > { %13879 = vmatprep.subr.bf16.mxu1 %v14369_v12  ;;  %10504 = vmatprep.mubr.bf16.mxu0 %v12584_v52  ;;  %v8977_v28 = vrot.slane %v8976_v2, 4  ;;  %v12423_v56 = vcombine.low %v8215_v43, %v8581_v9  ;;  %v12425_v3 = vsel %vm849_vm5, %v17614_v13, %v8581_v9  ;;  %v12583_v51 = vcombine.low %v17602_v46, %v17609_v17  ;;  %v8275_v2 = vld [vmem:[#allocation2 + $0x78] sm:$0xe] }
 0x39a   : > { %v8968_v45 = vsel %vm15399_vm12, %v8963_v57, %v8967_v14  ;;  %v8588_v47 = vor.u32 %v8587_v15, %v8583_v60  ;;  %v10063_v25 = vshrl.u32 %v12553_v50, 16  ;;  %v10067_v21 = vrot.slane %v10065_v37, 1 }
 0x39b   : > { %v8982_v31 = vsel %vm15399_vm12, %v8977_v28, %v8981_v4  ;;  %v8984_v22 = vshrl.u32 %v12423_v56, 16  ;;  %v8987_v40 = vshll.u32 %v12423_v56, 16  ;;  %v10072_v53 = vshll.u32 %v12554_v0, 16  ;;  %v8276_v4 = vld [vmem:[#allocation2 + $0x80] sm:$0xe] }
 0x39c   : > { %13880 = vmatpush3.bf16.msra.mxu1 %v14369_v12  ;;  %v12502_v13 = vcombine.high %v8968_v45, %v8982_v31  ;;  %v12426_v19 = vcombine.low %v8217_v55, %v8588_v47  ;;  %v12428_v46 = vsel %vm849_vm5, %v17616_v30, %v8588_v47  ;;  %v8993_v17 = vshll.u32 %v12425_v3, 16  ;;  %v17661_v12 = vld [vmem:[#allocation2 + $0x80] sm:$0xf] }
 0x39d   : > { %v12501_v26 = vcombine.low %v8968_v45, %v8982_v31  ;;  %v8986_v18 = vrot.slane %v8984_v22, 4  ;;  %v8989_v42 = vrot.slane %v8987_v40, 5  ;;  %v9007_v11 = vshll.u32 %v12428_v46, 16  ;;  %v8221_v40 = vld [vmem:[#allocation2 + $0x70] sm:$0xf] }
 0x39e   : > { %9631 = vmatprep.mubr.bf16.mxu1 %v12502_v13  ;;  %v8998_v27 = vshrl.u32 %v12426_v19, 16  ;;  %v9001_v10 = vshll.u32 %v12426_v19, 16  ;;  %v10070_v7 = vshrl.u32 %v12554_v0, 16  ;;  %v10074_v34 = vrot.slane %v10072_v53, 1  ;;  %v14380_v19 = vld [vmem:[%s18951_s3 + $0x200] sm:$0xff]  }
 0x39f   : > { %9632 = vmatmul.mubr.bf16.gmra.mxu1 %v12501_v26  ;;  %v8990_v6 = vor.u32 %v8989_v42, %v8986_v18  ;;  %v10068_v23 = vor.u32 %v10067_v21, %v10063_v25  ;;  %v12377_v30 = vcombine.low %v8273_v44, %v17654_v59  ;;  %v12378_v48 = vcombine.low %v8274_v58, %v17658_v29 }
 0x3a0   : > { %10505 = vmatmul.mubr.bf16.gmra.mxu0 %v12583_v51  ;;  %v9000_v8 = vrot.slane %v8998_v27, 4  ;;  %v9003_v61 = vrot.slane %v9001_v10, 5  ;;  %v10075_v49 = vor.u32 %v10074_v34, %v10070_v7  ;;  %v8995_v39 = vrot.slane %v8993_v17, 5  ;;  %v17695_v10 = vld [vmem:[#allocation2 + $0x90] sm:$0xf]  ;;  %13881 = vmatprep.subr.bf16.mxu1 %v14380_v19 }
 0x3a1   : > { %v8991_v62 = vrot.slane %v8990_v6, 4  ;;  %v9009_v16 = vrot.slane %v9007_v11, 5  ;;  %v8592_v52 = vshll.u32 %v12377_v30, 16  ;;  %v8590_v24 = vshrl.u32 %v12377_v30, 16  ;;  %13882 = vmatpush3.bf16.msra.mxu1 %v14380_v19  ;;  %v17723_v19 = vld [vmem:[#allocation2 + $0x8c] sm:$0x1] }
 0x3a2   : > { %v17668_v1 = vpop.f32.mrf.mxu0  ;;  %v9004_v20 = vor.u32 %v9003_v61, %v9000_v8  ;;  %v12586_v14 = vcombine.low %v10068_v23, %v10075_v49  ;;  %v8599_v50 = vshll.u32 %v12378_v48, 16  ;;  %v12585_v0 = vcombine.low %v17635_v63, %v17637_v54  ;;  %v8219_v54 = vld [vmem:[#allocation2 + $0x68] sm:$0xf]  ;;  %v9815_v49 = vld [vmem:[#allocation2 + $0x9c] sm:$0x1] }
 0x3a3   : > { %v8594_v9 = vrot.slane %v8592_v52, 1  ;;  %v12555_v57 = vcombine.low %v17661_v12, %v9812_v32  ;;  %v12556_v43 = vcombine.low %v17663_v5, %v9813_v35  ;;  %v8996_v60 = vsel %vm15399_vm12, %v8991_v62, %v8995_v39 }
 0x3a4   : > { %v9005_v15 = vrot.slane %v9004_v20, 4  ;;  %10512 = vmatprep.mubr.bf16.mxu0 %v12586_v14  ;;  %v8597_v37 = vshrl.u32 %v12378_v48, 16  ;;  %v8601_v28 = vrot.slane %v8599_v50, 1  ;;  %v17678_v56 = vpop.f32.mrf.mxu0  ;;  %v12379_v45 = vcombine.low %v8275_v2, %v17666_v38 }
 0x3a5   : > { %v8595_v3 = vor.u32 %v8594_v9, %v8590_v24  ;;  %v10079_v51 = vshll.u32 %v12555_v57, 16  ;;  %v17682_v55 = vcombine.low %v8276_v4, %v17670_v36  ;;  %v10077_v25 = vshrl.u32 %v12555_v57, 16 }
 0x3a6   : > { %v9010_v63 = vsel %vm15399_vm12, %v9005_v15, %v9009_v16  ;;  %v8602_v47 = vor.u32 %v8601_v28, %v8597_v37  ;;  %v10086_v21 = vshll.u32 %v12556_v43, 16  ;;  %v17693_v18 = vpop.f32.mrf.mxu0  ;;  %v10084_v58 = vshrl.u32 %v12556_v43, 16 }
 0x3a7   : > { %v12503_v31 = vcombine.low %v8996_v60, %v9010_v63  ;;  %v12504_v22 = vcombine.high %v8996_v60, %v9010_v63  ;;  %v12429_v53 = vcombine.low %v8219_v54, %v8595_v3  ;;  %v12431_v13 = vsel %vm849_vm5, %v17654_v59, %v8595_v3  ;;  %v17697_v59 = vld [vmem:[#allocation2 + $0x98] sm:$0xf] }
 0x3a8   : > { %10513 = vmatmul.mubr.bf16.gmra.mxu0 %v12585_v0  ;;  %v12432_v46 = vcombine.low %v8221_v40, %v8602_v47  ;;  %v12434_v17 = vsel %vm849_vm5, %v17658_v29, %v8602_v47  ;;  %v9021_v44 = vshll.u32 %v12431_v13, 16  ;;  %v10081_v26 = vrot.slane %v10079_v51, 1  ;;  %v9814_v29 = vld [vmem:[#allocation2 + $0x94] sm:$0x1]  ;;  %v17701_v52 = vpop.f32.mrf.mxu0  ;;  %v8223_v54 = vld [vmem:[#allocation2 + $0x78] sm:$0xf] }
 0x3a9   : > { %9639 = vmatprep.mubr.bf16.mxu1 %v12504_v22  ;;  %v9012_v42 = vshrl.u32 %v12429_v53, 16  ;;  %v9015_v11 = vshll.u32 %v12429_v53, 16  ;;  %v10088_v27 = vrot.slane %v10086_v21, 1  ;;  %v8604_v23 = vshrl.u32 %v12379_v45, 16  ;;  %v8225_v22 = vld [vmem:[#allocation2 + $0x80] sm:$0xf] }
 0x3aa   : > { %9640 = vmatmul.mubr.bf16.gmra.mxu1 %v12503_v31  ;;  %v9026_v7 = vshrl.u32 %v12432_v46, 16  ;;  %v9029_v34 = vshll.u32 %v12432_v46, 16  ;;  %v10082_v6 = vor.u32 %v10081_v26, %v10077_v25  ;;  %v9035_v8 = vshll.u32 %v12434_v17, 16 }
 0x3ab   : > { %v9014_v30 = vrot.slane %v9012_v42, 4  ;;  %v9017_v32 = vrot.slane %v9015_v11, 5  ;;  %v10089_v61 = vor.u32 %v10088_v27, %v10084_v58  ;;  %v9023_v35 = vrot.slane %v9021_v44, 5  ;;  %v17727_v42 = vld [vmem:[#allocation2 + $0x94] sm:$0x1] }
 0x3ac   : > { %v9028_v62 = vrot.slane %v9026_v7, 4  ;;  %v9031_v39 = vrot.slane %v9029_v34, 5  ;;  %v8606_v16 = vshll.u32 %v12379_v45, 16  ;;  %v8613_v24 = vshll.u32 %v17682_v55, 16  ;;  %v8277_v11 = vld [vmem:[#allocation2 + $0x88] sm:$0xe] }
 0x3ad   : > { %v17699_v48 = vpop.f32.mrf.mxu1  ;;  %v9018_v20 = vor.u32 %v9017_v32, %v9014_v30  ;;  %v12588_v14 = vcombine.low %v10082_v6, %v10089_v61  ;;  %v12587_v50 = vcombine.low %v17661_v12, %v17663_v5  ;;  %v12557_v0 = vcombine.low %v17695_v10, %v9814_v29  ;;  %v8278_v58 = vld [vmem:[#allocation2 + $0x90] sm:$0xe] }
 0x3ae   : > { %v9032_v4 = vor.u32 %v9031_v39, %v9028_v62  ;;  %v8608_v9 = vrot.slane %v8606_v16, 1  ;;  %v12558_v57 = vcombine.low %v17697_v59, %v9815_v49  ;;  %v9037_v60 = vrot.slane %v9035_v8, 5  ;;  %v17713_v45 = vpop.f32.mrf.mxu0 }
 0x3af   : > { %v17706_v2 = vpop.f32.mrf.mxu1  ;;  %v9019_v43 = vrot.slane %v9018_v20, 4  ;;  %10520 = vmatprep.mubr.bf16.mxu0 %v12588_v14  ;;  %v8611_v15 = vshrl.u32 %v17682_v55, 16  ;;  %v8615_v37 = vrot.slane %v8613_v24, 1  ;;  %v10091_v12 = vshrl.u32 %v12557_v0, 16  ;;  %v17736_v24 = vld [vmem:[#allocation2 + $0xb8] sm:$0xf] }
 0x3b0   : > { %v9033_v3 = vrot.slane %v9032_v4, 4  ;;  %v8609_v51 = vor.u32 %v8608_v9, %v8604_v23  ;;  %10521 = vmatmul.mubr.bf16.gmra.mxu0 %v12587_v50  ;;  %v10093_v5 = vshll.u32 %v12557_v0, 16  ;;  %v10098_v25 = vshrl.u32 %v12558_v57, 16  ;;  %v17729_v23 = vld [vmem:[#allocation2 + $0xb0] sm:$0xf] }
 0x3b1   : > { %v17711_v28 = vpop.f32.mrf.mxu1  ;;  %v9024_v63 = vsel %vm15399_vm12, %v9019_v43, %v9023_v35  ;;  %v8616_v47 = vor.u32 %v8615_v37, %v8611_v15  ;;  %v10100_v21 = vshll.u32 %v12558_v57, 16  ;;  %v12381_v14 = vcombine.low %v8277_v11, %v17723_v19  ;;  %v9817_v50 = vld [vmem:[#allocation2 + $0xbc] sm:$0x1] }
 0x3b2   : > { %v9038_v55 = vsel %vm15399_vm12, %v9033_v3, %v9037_v60  ;;  %v12435_v40 = vcombine.low %v8223_v54, %v8609_v51  ;;  %v12437_v53 = vsel %vm849_vm5, %v17666_v38, %v8609_v51  ;;  %v10095_v13 = vrot.slane %v10093_v5, 1  ;;  %v17731_v38 = vpop.f32.mrf.mxu0 }
 0x3b3   : > { %v17717_v31 = vpop.f32.mrf.mxu1  ;;  %v12505_v46 = vcombine.low %v9024_v63, %v9038_v55  ;;  %v12506_v17 = vcombine.high %v9024_v63, %v9038_v55  ;;  %v12438_v44 = vcombine.low %v8225_v22, %v8616_v47  ;;  %v12440_v26 = vsel %vm849_vm5, %v17670_v36, %v8616_v47  ;;  %v9816_v36 = vld [vmem:[#allocation2 + $0xb4] sm:$0x1]  ;;  %v17747_v47 = vld [vmem:[#allocation2 + $0xac] sm:$0x1] }
 0x3b4   : > { %v9040_v27 = vshrl.u32 %v12435_v40, 16  ;;  %v9043_v7 = vshll.u32 %v12435_v40, 16  ;;  %v9049_v34 = vshll.u32 %v12437_v53, 16  ;;  %v9063_v6 = vshll.u32 %v12440_v26, 16  ;;  %v17740_v43 = vpop.f32.mrf.mxu0  ;;  %v8279_v40 = vld [vmem:[#allocation2 + $0xa8] sm:$0xe] }
 0x3b5   : > { %v17733_v29 = vpop.f32.mrf.mxu1  ;;  %9647 = vmatprep.mubr.bf16.mxu1 %v12506_v17  ;;  %v9054_v30 = vshrl.u32 %v12438_v44, 16  ;;  %v9057_v32 = vshll.u32 %v12438_v44, 16  ;;  %v10096_v8 = vor.u32 %v10095_v13, %v10091_v12  ;;  %v10102_v61 = vrot.slane %v10100_v21, 1 }
 0x3b6   : > { %9648 = vmatmul.mubr.bf16.gmra.mxu1 %v12505_v46  ;;  %v9042_v49 = vrot.slane %v9040_v27, 4  ;;  %v9045_v35 = vrot.slane %v9043_v7, 5  ;;  %v9051_v62 = vrot.slane %v9049_v34, 5  ;;  %v9065_v9 = vrot.slane %v9063_v6, 5  ;;  %v17757_v27 = vld [vmem:[#allocation2 + $0xb4] sm:$0x1] }
 0x3b7   : > { %v9056_v39 = vrot.slane %v9054_v30, 4  ;;  %v9059_v16 = vrot.slane %v9057_v32, 5  ;;  %v10103_v20 = vor.u32 %v10102_v61, %v10098_v25  ;;  %v12382_v0 = vcombine.low %v8278_v58, %v17727_v42  ;;  %v17742_v60 = vpop.f32.mrf.mxu1  ;;  %v8280_v7 = vld [vmem:[#allocation2 + $0xb0] sm:$0xe]  ;;  %v8227_v6 = vld [vmem:[#allocation2 + $0x88] sm:$0xf] }
 0x3b8   : > { %v9046_v4 = vor.u32 %v9045_v35, %v9042_v49  ;;  %v12559_v57 = vcombine.low %v17729_v23, %v9816_v36  ;;  %v8620_v3 = vshll.u32 %v12381_v14, 16  ;;  %v12589_v51 = vcombine.low %v17695_v10, %v17697_v59  ;;  %v17751_v59 = vpop.f32.mrf.mxu0  ;;  %v8229_v36 = vld [vmem:[#allocation2 + $0x90] sm:$0xf] }
 0x3b9   : > { %v9060_v15 = vor.u32 %v9059_v16, %v9056_v39  ;;  %v12590_v37 = vcombine.low %v10096_v8, %v10103_v20  ;;  %v8618_v5 = vshrl.u32 %v12381_v14, 16  ;;  %v8627_v63 = vshll.u32 %v12382_v0, 16  ;;  %v17753_v17 = vpop.f32.mrf.mxu1 }
 0x3ba   : > { %v9047_v12 = vrot.slane %v9046_v4, 4  ;;  %v12560_v54 = vcombine.low %v17736_v24, %v9817_v50  ;;  %v8622_v21 = vrot.slane %v8620_v3, 1  ;;  %v8625_v55 = vshrl.u32 %v12382_v0, 16 }
 0x3bb   : > { %v9061_v25 = vrot.slane %v9060_v15, 4  ;;  %10528 = vmatprep.mubr.bf16.mxu0 %v12590_v37  ;;  %v10107_v22 = vshll.u32 %v12559_v57, 16  ;;  %v8629_v13 = vrot.slane %v8627_v63, 1  ;;  %v10105_v46 = vshrl.u32 %v12559_v57, 16  ;;  %v17767_v4 = vpop.f32.mrf.mxu1  ;;  %v17769_v57 = vld [vmem:[#allocation2 + $0xc0] sm:$0xf] }
 0x3bc   : > { %v9052_v53 = vsel %vm15399_vm12, %v9047_v12, %v9051_v62  ;;  %10529 = vmatmul.mubr.bf16.gmra.mxu0 %v12589_v51  ;;  %v10114_v10 = vshll.u32 %v12560_v54, 16  ;;  %v8623_v26 = vor.u32 %v8622_v21, %v8618_v5  ;;  %v10112_v58 = vshrl.u32 %v12560_v54, 16  ;;  %v9818_v15 = vld [vmem:[#allocation2 + $0xc4] sm:$0x1]  ;;  %v17771_v12 = vld [vmem:[#allocation2 + $0xc8] sm:$0xf] }
 0x3bd   : > { %v9066_v44 = vsel %vm15399_vm12, %v9061_v25, %v9065_v9  ;;  %v10109_v11 = vrot.slane %v10107_v22, 1  ;;  %v8630_v30 = vor.u32 %v8629_v13, %v8625_v55  ;;  %v12383_v8 = vcombine.low %v8279_v40, %v17747_v47  ;;  %v9819_v25 = vld [vmem:[#allocation2 + $0xcc] sm:$0x1] }
 0x3be   : > { %v12508_v34 = vcombine.high %v9052_v53, %v9066_v44  ;;  %v10116_v32 = vrot.slane %v10114_v10, 1  ;;  %v12507_v61 = vcombine.low %v9052_v53, %v9066_v44  ;;  %v12441_v49 = vcombine.low %v8227_v6, %v8623_v26 }
 0x3bf   : > { %v12443_v35 = vsel %vm849_vm5, %v17723_v19, %v8623_v26  ;;  %v10110_v62 = vor.u32 %v10109_v11, %v10105_v46  ;;  %v12444_v39 = vcombine.low %v8229_v36, %v8630_v30  ;;  %v12446_v16 = vsel %vm849_vm5, %v17727_v42, %v8630_v30 }
 0x3c0   : > { %9655 = vmatprep.mubr.bf16.mxu1 %v12508_v34  ;;  %v10117_v20 = vor.u32 %v10116_v32, %v10112_v58  ;;  %v12384_v14 = vcombine.low %v8280_v7, %v17757_v27  ;;  %v9068_v9 = vshrl.u32 %v12441_v49, 16  ;;  %v9071_v0 = vshll.u32 %v12441_v49, 16  ;;  %v8231_v49 = vld [vmem:[#allocation2 + $0xa8] sm:$0xf] }
 0x3c1   : > { %v17765_v50 = vpop.f32.mrf.mxu0  ;;  %9656 = vmatmul.mubr.bf16.gmra.mxu1 %v12507_v61  ;;  %v9077_v19 = vshll.u32 %v12443_v35, 16  ;;  %v9082_v37 = vshrl.u32 %v12444_v39, 16  ;;  %v9085_v3 = vshll.u32 %v12444_v39, 16  ;;  %v9091_v63 = vshll.u32 %v12446_v16, 16  ;;  %v8233_v16 = vld [vmem:[#allocation2 + $0xb0] sm:$0xf] }
 0x3c2   : > { %v12592_v51 = vcombine.low %v10110_v62, %v10117_v20  ;;  %v9070_v42 = vrot.slane %v9068_v9, 4  ;;  %v9073_v5 = vrot.slane %v9071_v0, 5  ;;  %v8634_v54 = vshll.u32 %v12383_v8, 16 }
 0x3c3   : > { %v9084_v21 = vrot.slane %v9082_v37, 4  ;;  %v9087_v55 = vrot.slane %v9085_v3, 5  ;;  %v8632_v22 = vshrl.u32 %v12383_v8, 16  ;;  %v8641_v40 = vshll.u32 %v12384_v14, 16  ;;  %v17773_v53 = vpop.f32.mrf.mxu0 }
 0x3c4   : > { %10536 = vmatprep.mubr.bf16.mxu0 %v12592_v51  ;;  %v17775_v13 = vpop.f32.mrf.mxu1  ;;  %v9074_v46 = vor.u32 %v9073_v5, %v9070_v42  ;;  %v8636_v10 = vrot.slane %v8634_v54, 1  ;;  %v12591_v44 = vcombine.low %v17729_v23, %v17736_v24  ;;  %v12561_v26 = vcombine.low %v17769_v57, %v9818_v15  ;;  %v17795_v54 = vld [vmem:[#allocation2 + $0xc4] sm:$0x1] }
 0x3c5   : > { %v9088_v11 = vor.u32 %v9087_v55, %v9084_v21  ;;  %v8639_v58 = vshrl.u32 %v12384_v14, 16  ;;  %v8643_v7 = vrot.slane %v8641_v40, 1  ;;  %v12562_v34 = vcombine.low %v17771_v12, %v9819_v25  ;;  %v17781_v39 = vpop.f32.mrf.mxu0  ;;  %v8281_v25 = vld [vmem:[#allocation2 + $0xb8] sm:$0xe]  ;;  %v8282_v40 = vld [vmem:[#allocation2 + $0xc0] sm:$0xe] }
 0x3c6   : > { %v9075_v6 = vrot.slane %v9074_v46, 4  ;;  %v9079_v30 = vrot.slane %v9077_v19, 5  ;;  %v8637_v32 = vor.u32 %v8636_v10, %v8632_v22  ;;  %10537 = vmatmul.mubr.bf16.gmra.mxu0 %v12591_v44  ;;  %v10121_v8 = vshll.u32 %v12561_v26, 16  ;;  %v17783_v23 = vpop.f32.mrf.mxu1 }
 0x3c7   : > { %v9089_v61 = vrot.slane %v9088_v11, 4  ;;  %v9093_v36 = vrot.slane %v9091_v63, 5  ;;  %v8644_v35 = vor.u32 %v8643_v7, %v8639_v58  ;;  %v10128_v62 = vshll.u32 %v12562_v34, 16  ;;  %v17793_v63 = vld [vmem:[#allocation2 + $0xbc] sm:$0x1]  ;;  %v17797_v46 = vpop.f32.mrf.mxu0 }
 0x3c8   : > { %v9080_v24 = vsel %vm15399_vm12, %v9075_v6, %v9079_v30  ;;  %v12447_v20 = vcombine.low %v8231_v49, %v8637_v32  ;;  %v12449_v14 = vsel %vm849_vm5, %v17747_v47, %v8637_v32  ;;  %v10123_v9 = vrot.slane %v10121_v8, 1  ;;  %v17799_v10 = vpop.f32.mrf.mxu1  ;;  %v9820_v8 = vld [vmem:[#allocation2 + $0xd4] sm:$0x1] }
 0x3c9   : > { %v9094_v0 = vsel %vm15399_vm12, %v9089_v61, %v9093_v36  ;;  %v12450_v15 = vcombine.low %v8233_v16, %v8644_v35  ;;  %v12452_v19 = vsel %vm849_vm5, %v17757_v27, %v8644_v35  ;;  %v9105_v37 = vshll.u32 %v12449_v14, 16  ;;  %v9821_v14 = vld [vmem:[#allocation2 + $0xdc] sm:$0x1] }
 0x3ca   : > { %v12510_v3 = vcombine.high %v9080_v24, %v9094_v0  ;;  %v9096_v51 = vshrl.u32 %v12447_v20, 16  ;;  %v9099_v42 = vshll.u32 %v12447_v20, 16  ;;  %v10119_v5 = vshrl.u32 %v12561_v26, 16  ;;  %v17801_v26 = vld [vmem:[#allocation2 + $0xd0] sm:$0xf] }
 0x3cb   : > { %v12509_v21 = vcombine.low %v9080_v24, %v9094_v0  ;;  %v9110_v47 = vshrl.u32 %v12450_v15, 16  ;;  %v9113_v55 = vshll.u32 %v12450_v15, 16  ;;  %v9119_v22 = vshll.u32 %v12452_v19, 16  ;;  %v17809_v20 = vld [vmem:[#allocation2 + $0xd8] sm:$0xf] }
 0x3cc   : > { %9663 = vmatprep.mubr.bf16.mxu1 %v12510_v3  ;;  %v9098_v27 = vrot.slane %v9096_v51, 4  ;;  %v9101_v44 = vrot.slane %v9099_v42, 5  ;;  %v10126_v11 = vshrl.u32 %v12562_v34, 16  ;;  %v10130_v58 = vrot.slane %v10128_v62, 1 }
 0x3cd   : > { %9664 = vmatmul.mubr.bf16.gmra.mxu1 %v12509_v21  ;;  %v9107_v7 = vrot.slane %v9105_v37, 5  ;;  %v9112_v6 = vrot.slane %v9110_v47, 4  ;;  %v9115_v30 = vrot.slane %v9113_v55, 5  ;;  %v10124_v32 = vor.u32 %v10123_v9, %v10119_v5  ;;  %v17813_v9 = vpop.f32.mrf.mxu1 }
 0x3ce   : > { %v9102_v61 = vor.u32 %v9101_v44, %v9098_v27  ;;  %v9121_v36 = vrot.slane %v9119_v22, 5  ;;  %v10131_v49 = vor.u32 %v10130_v58, %v10126_v11  ;;  %v13477_v35 = vadd.f32 %v17678_v56, %v17668_v1  ;;  %v17829_v22 = vld [vmem:[#allocation2 + $0xcc] sm:$0x1] }
 0x3cf   : > { %v9116_v24 = vor.u32 %v9115_v30, %v9112_v6  ;;  %v12385_v16 = vcombine.low %v8281_v25, %v17793_v63  ;;  %v12386_v34 = vcombine.low %v8282_v40, %v17795_v54  ;;  %v13365_v62 = vadd.f32 %v17706_v2, %v17699_v48 }
 0x3d0   : > { %v9103_v15 = vrot.slane %v9102_v61, 4  ;;  %v12594_v19 = vcombine.low %v10124_v32, %v10131_v49  ;;  %v13480_v1 = vadd.f32 %v17701_v52, %v17693_v18  ;;  %v12563_v56 = vcombine.low %v17801_v26, %v9820_v8  ;;  %v8235_v61 = vld [vmem:[#allocation2 + $0xb8] sm:$0xf] }
 0x3d1   : > { %v17811_v0 = vpop.f32.mrf.mxu0  ;;  %v9117_v37 = vrot.slane %v9116_v24, 4  ;;  %v8646_v3 = vshrl.u32 %v12385_v16, 16  ;;  %v8648_v51 = vshll.u32 %v12385_v16, 16  ;;  %v12593_v48 = vcombine.low %v17769_v57, %v17771_v12  ;;  %v8283_v57 = vld [vmem:[#allocation2 + $0xc8] sm:$0xe] }
 0x3d2   : > { %10544 = vmatprep.mubr.bf16.mxu0 %v12594_v19  ;;  %v8653_v42 = vshrl.u32 %v12386_v34, 16  ;;  %v8655_v5 = vshll.u32 %v12386_v34, 16  ;;  %v17822_v25 = vadd.f32 %v13477_v35, %v13365_v62  ;;  %v12564_v21 = vcombine.low %v17809_v20, %v9821_v14 }
 0x3d3   : > { %v17820_v2 = vpop.f32.mrf.mxu0  ;;  %v9108_v18 = vsel %vm15399_vm12, %v9103_v15, %v9107_v7  ;;  %v9122_v52 = vsel %vm15399_vm12, %v9117_v37, %v9121_v36  ;;  %v8650_v47 = vrot.slane %v8648_v51, 1  ;;  %10545 = vmatmul.mubr.bf16.gmra.mxu0 %v12593_v48  ;;  %v10135_v55 = vshll.u32 %v12563_v56, 16  ;;  %v8237_v36 = vld [vmem:[#allocation2 + $0xc0] sm:$0xf] }
 0x3d4   : > { %19363 = vst [vmem:[#allocation14_spill] sm:$0xff] %v17822_v25  ;;  %v12511_v27 = vcombine.low %v9108_v18, %v9122_v52  ;;  %v12512_v44 = vcombine.high %v9108_v18, %v9122_v52  ;;  %v8657_v11 = vrot.slane %v8655_v5, 1  ;;  %v10133_v58 = vshrl.u32 %v12563_v56, 16  ;;  %v17854_v5 = vld [vmem:[#allocation2 + $0xe0] sm:$0xf] }
 0x3d5   : > { %v17831_v12 = vpop.f32.mrf.mxu0  ;;  %v8651_v6 = vor.u32 %v8650_v47, %v8646_v3  ;;  %v10137_v30 = vrot.slane %v10135_v55, 1  ;;  %v10142_v7 = vshll.u32 %v12564_v21, 16  ;;  %v13483_v32 = vadd.f32 %v17731_v38, %v17713_v45  ;;  %v17844_v45 = vld [vmem:[#allocation2 + $0xd4] sm:$0x1]  ;;  %v8284_v38 = vld [vmem:[#allocation2 + $0xd0] sm:$0xe] }
 0x3d6   : > { %v17833_v40 = vpop.f32.mrf.mxu1  ;;  %9671 = vmatprep.mubr.bf16.mxu1 %v12512_v44  ;;  %v8658_v49 = vor.u32 %v8657_v11, %v8653_v42  ;;  %v10140_v35 = vshrl.u32 %v12564_v21, 16  ;;  %v13368_v24 = vadd.f32 %v17717_v31, %v17711_v28  ;;  %v12387_v16 = vcombine.low %v8283_v57, %v17829_v22  ;;  %v17857_v55 = vld [vmem:[#allocation2 + $0xe8] sm:$0xf]  ;;  %v9822_v11 = vld [vmem:[#allocation2 + $0xe4] sm:$0x1] }
 0x3d7   : > { %9672 = vmatmul.mubr.bf16.gmra.mxu1 %v12511_v27  ;;  %v12453_v34 = vcombine.low %v8235_v61, %v8651_v6  ;;  %v12455_v62 = vsel %vm849_vm5, %v17793_v63, %v8651_v6  ;;  %v10138_v14 = vor.u32 %v10137_v30, %v10133_v58  ;;  %v10144_v15 = vrot.slane %v10142_v7, 1  ;;  %v17846_v19 = vpop.f32.mrf.mxu0 }
 0x3d8   : > { %v17837_v8 = vpop.f32.mrf.mxu1  ;;  %v12456_v37 = vcombine.low %v8237_v36, %v8658_v49  ;;  %v12458_v28 = vsel %vm849_vm5, %v17795_v54, %v8658_v49  ;;  %v9133_v31 = vshll.u32 %v12455_v62, 16  ;;  %v17852_v3 = vadd.f32 %v13480_v1, %v13368_v24  ;;  %v9823_v36 = vld [vmem:[#allocation2 + $0xec] sm:$0x1] }
 0x3d9   : > { %v9124_v51 = vshrl.u32 %v12453_v34, 16  ;;  %v9127_v48 = vshll.u32 %v12453_v34, 16  ;;  %v9147_v42 = vshll.u32 %v12458_v28, 16  ;;  %v10145_v63 = vor.u32 %v10144_v15, %v10140_v35 }
 0x3da   : > { %v17848_v56 = vpop.f32.mrf.mxu1  ;;  %19364 = vst [vmem:[#allocation15_spill] sm:$0xff] %v17852_v3  ;;  %v9135_v21 = vrot.slane %v9133_v31, 5  ;;  %v9138_v18 = vshrl.u32 %v12456_v37, 16  ;;  %v9141_v52 = vshll.u32 %v12456_v37, 16  ;;  %v12388_v47 = vcombine.low %v8284_v38, %v17844_v45 }
 0x3db   : > { %v9126_v27 = vrot.slane %v9124_v51, 4  ;;  %v9129_v54 = vrot.slane %v9127_v48, 5  ;;  %v9149_v44 = vrot.slane %v9147_v42, 5  ;;  %v12596_v1 = vcombine.low %v10138_v14, %v10145_v63 }
 0x3dc   : > { %v17859_v57 = vpop.f32.mrf.mxu1  ;;  %v9140_v6 = vrot.slane %v9138_v18, 4  ;;  %v9143_v30 = vrot.slane %v9141_v52, 5  ;;  %v8660_v7 = vshrl.u32 %v12387_v16, 16  ;;  %v8662_v61 = vshll.u32 %v12387_v16, 16 }
 0x3dd   : > { %v9130_v49 = vor.u32 %v9129_v54, %v9126_v27  ;;  %10552 = vmatprep.mubr.bf16.mxu0 %v12596_v1  ;;  %v8667_v35 = vshrl.u32 %v12388_v47, 16  ;;  %v8669_v24 = vshll.u32 %v12388_v47, 16  ;;  %v13371_v34 = vadd.f32 %v17742_v60, %v17733_v29 }
 0x3de   : > { %v9144_v15 = vor.u32 %v9143_v30, %v9140_v6  ;;  %v8664_v38 = vrot.slane %v8662_v61, 1  ;;  %v12595_v14 = vcombine.low %v17801_v26, %v17809_v20  ;;  %v12565_v37 = vcombine.low %v17854_v5, %v9822_v11  ;;  %v8239_v20 = vld [vmem:[#allocation2 + $0xc8] sm:$0xf]  ;;  %v8241_v11 = vld [vmem:[#allocation2 + $0xd0] sm:$0xf] }
 0x3df   : > { %v17861_v58 = vpop.f32.mrf.mxu0  ;;  %v9131_v16 = vrot.slane %v9130_v49, 4  ;;  %v8671_v31 = vrot.slane %v8669_v24, 1  ;;  %v17872_v51 = vadd.f32 %v13483_v32, %v13371_v34  ;;  %v12566_v48 = vcombine.low %v17857_v55, %v9823_v36  ;;  %v17889_v36 = vld [vmem:[#allocation2 + $0x20] sm:$0xe] }
 0x3e0   : > { %v9145_v29 = vrot.slane %v9144_v15, 4  ;;  %v8665_v60 = vor.u32 %v8664_v38, %v8660_v7  ;;  %10553 = vmatmul.mubr.bf16.gmra.mxu0 %v12595_v14  ;;  %v10147_v63 = vshrl.u32 %v12565_v37, 16  ;;  %v10149_v18 = vshll.u32 %v12565_v37, 16  ;;  %19366 = vst [vmem:[#allocation16_spill] sm:$0xff] %v17889_v36  ;;  %v17986_v36 = vld [vmem:[#allocation2 + $0x110] sm:$0xf] }
 0x3e1   : > { %v17865_v62 = vpop.f32.mrf.mxu0  ;;  %19365 = vst [vmem:[#allocation18_spill] sm:$0xff] %v17872_v51  ;;  %v9136_v26 = vsel %vm15399_vm12, %v9131_v16, %v9135_v21  ;;  %v8672_v47 = vor.u32 %v8671_v31, %v8667_v35  ;;  %v10154_v27 = vshrl.u32 %v12566_v48, 16  ;;  %v10156_v54 = vshll.u32 %v12566_v48, 16  ;;  %v17895_v48 = vld [vmem:[#allocation2 + $0xdc] sm:$0x1] }
 0x3e2   : > { %v17870_v28 = vpop.f32.mrf.mxu1  ;;  %v9150_v1 = vsel %vm15399_vm12, %v9145_v29, %v9149_v44  ;;  %v12459_v6 = vcombine.low %v8239_v20, %v8665_v60  ;;  %v12461_v30 = vsel %vm849_vm5, %v17829_v22, %v8665_v60  ;;  %v10151_v7 = vrot.slane %v10149_v18, 1  ;;  %v17900_v18 = vld [vmem:[#allocation2 + $0x24] sm:$0x1] }
 0x3e3   : > { %v17875_v42 = vpop.f32.mrf.mxu0  ;;  %v12513_v21 = vcombine.low %v9136_v26, %v9150_v1  ;;  %v12514_v49 = vcombine.high %v9136_v26, %v9150_v1  ;;  %v12462_v35 = vcombine.low %v8241_v11, %v8672_v47  ;;  %v12464_v24 = vsel %vm849_vm5, %v17844_v45, %v8672_v47  ;;  %19367 = vst [vmem:[#allocation17_spill] sm:$0xff] %v17900_v18  ;;  %v8285_v47 = vld [vmem:[#allocation2 + $0xd8] sm:$0xe]  ;;  %v8245_v45 = vld [vmem:[#allocation2 + $0xe0] sm:$0xf] }
 0x3e4   : > { %v17877_v52 = vpop.f32.mrf.mxu1  ;;  %v9152_v34 = vshrl.u32 %v12459_v6, 16  ;;  %v9155_v15 = vshll.u32 %v12459_v6, 16  ;;  %v9161_v38 = vshll.u32 %v12461_v30, 16  ;;  %v9175_v44 = vshll.u32 %v12464_v24, 16  ;;  %v17905_v6 = vld [vmem:[#allocation2 + $0xe4] sm:$0x1] }
 0x3e5   : > { %v17881_v32 = vpop.f32.mrf.mxu0  ;;  %9679 = vmatprep.mubr.bf16.mxu1 %v12514_v49  ;;  %v9166_v37 = vshrl.u32 %v12462_v35, 16  ;;  %v9169_v22 = vshll.u32 %v12462_v35, 16  ;;  %v10152_v16 = vor.u32 %v10151_v7, %v10147_v63  ;;  %v10158_v31 = vrot.slane %v10156_v54, 1  ;;  %v8286_v30 = vld [vmem:[#allocation2 + $0xe0] sm:$0xe] }
 0x3e6   : > { %v17887_v61 = vpop.f32.mrf.mxu1  ;;  %9680 = vmatmul.mubr.bf16.gmra.mxu1 %v12513_v21  ;;  %v9154_v26 = vrot.slane %v9152_v34, 4  ;;  %v9157_v20 = vrot.slane %v9155_v15, 5  ;;  %v13486_v1 = vadd.f32 %v17751_v59, %v17740_v43  ;;  %v9163_v24 = vrot.slane %v9161_v38, 5 }
 0x3e7   : > { %v9168_v11 = vrot.slane %v9166_v37, 4  ;;  %v9171_v63 = vrot.slane %v9169_v22, 5  ;;  %v10159_v54 = vor.u32 %v10158_v31, %v10154_v27  ;;  %v13489_v21 = vadd.f32 %v17773_v53, %v17765_v50  ;;  %v17916_v37 = vld [vmem:[#allocation2 + $0x108] sm:$0xf]  ;;  %v9825_v22 = vld [vmem:[#allocation2 + $0x10c] sm:$0x1] }
 0x3e8   : > { %v17893_v14 = vpop.f32.mrf.mxu1  ;;  %v17897_v29 = vpop.f32.mrf.mxu0  ;;  %v9158_v35 = vor.u32 %v9157_v20, %v9154_v26  ;;  %v13374_v34 = vadd.f32 %v17767_v4, %v17753_v17  ;;  %v9177_v43 = vrot.slane %v9175_v44, 5  ;;  %v12389_v27 = vcombine.low %v8285_v47, %v17895_v48  ;;  %v17927_v4 = vld [vmem:[#allocation2 + $0x100] sm:$0xf]  ;;  %v9824_v53 = vld [vmem:[#allocation2 + $0x104] sm:$0x1] }
 0x3e9   : > { %v9172_v15 = vor.u32 %v9171_v63, %v9168_v11  ;;  %v12598_v59 = vcombine.low %v10152_v16, %v10159_v54  ;;  %v12390_v50 = vcombine.low %v8286_v30, %v17905_v6  ;;  %v13377_v17 = vadd.f32 %v17783_v23, %v17775_v13 }
 0x3ea   : > { %v17907_v7 = vpop.f32.mrf.mxu0  ;;  %v9159_v26 = vrot.slane %v9158_v35, 4  ;;  %v17922_v38 = vadd.f32 %v13486_v1, %v13374_v34  ;;  %v13492_v16 = vadd.f32 %v17797_v46, %v17781_v39  ;;  %v8676_v20 = vshll.u32 %v12389_v27, 16 }
 0x3eb   : > { %v17909_v49 = vpop.f32.mrf.mxu1  ;;  %v9173_v44 = vrot.slane %v9172_v15, 4  ;;  %10560 = vmatprep.mubr.bf16.mxu0 %v12598_v59  ;;  %v12597_v47 = vcombine.low %v17854_v5, %v17857_v55  ;;  %v8674_v13 = vshrl.u32 %v12389_v27, 16  ;;  %v8683_v23 = vshll.u32 %v12390_v50, 16  ;;  %v17953_v59 = vld [vmem:[#allocation2 + $0xfc] sm:$0x1] }
 0x3ec   : > { %v17918_v31 = vpop.f32.mrf.mxu0  ;;  %19368 = vst [vmem:[#allocation20_spill] sm:$0xff] %v17922_v38  ;;  %v9164_v63 = vsel %vm15399_vm12, %v9159_v26, %v9163_v24  ;;  %v17939_v54 = vadd.f32 %v13489_v21, %v13377_v17  ;;  %v8678_v35 = vrot.slane %v8676_v20, 1  ;;  %v12567_v39 = vcombine.low %v17927_v4, %v9824_v53  ;;  %v8243_v20 = vld [vmem:[#allocation2 + $0xd8] sm:$0xf] }
 0x3ed   : > { %v17920_v60 = vpop.f32.mrf.mxu1  ;;  %v9178_v30 = vsel %vm15399_vm12, %v9173_v44, %v9177_v43  ;;  %10561 = vmatmul.mubr.bf16.gmra.mxu0 %v12597_v47  ;;  %v12568_v46 = vcombine.low %v17916_v37, %v9825_v22  ;;  %v8681_v15 = vshrl.u32 %v12390_v50, 16  ;;  %v8685_v24 = vrot.slane %v8683_v23, 1  ;;  %v8287_v43 = vld [vmem:[#allocation2 + $0xf8] sm:$0xe] }
 0x3ee   : > { %v17933_v11 = vpop.f32.mrf.mxu0  ;;  %19369 = vst [vmem:[#allocation22_spill] sm:$0xff] %v17939_v54  ;;  %v12516_v34 = vcombine.high %v9164_v63, %v9178_v30  ;;  %v17951_v21 = vadd.f32 %v17820_v2, %v17811_v0  ;;  %v12515_v27 = vcombine.low %v9164_v63, %v9178_v30  ;;  %v8679_v26 = vor.u32 %v8678_v35, %v8674_v13  ;;  %v17961_v2 = vld [vmem:[#allocation2 + $0x28] sm:$0xe] }
 0x3ef   : > { %v17935_v1 = vpop.f32.mrf.mxu1  ;;  %v10161_v17 = vshrl.u32 %v12567_v39, 16  ;;  %v10163_v53 = vshll.u32 %v12567_v39, 16  ;;  %v8686_v47 = vor.u32 %v8685_v24, %v8681_v15  ;;  %v10168_v50 = vshrl.u32 %v12568_v46, 16  ;;  %19370 = vst [vmem:[#allocation19_spill] sm:$0xff] %v17961_v2  ;;  %v17972_v24 = vld [vmem:[#allocation2 + $0x104] sm:$0x1] }
 0x3f0   : > { %v17945_v5 = vpop.f32.mrf.mxu0  ;;  %9687 = vmatprep.mubr.bf16.mxu1 %v12516_v34  ;;  %v10170_v23 = vshll.u32 %v12568_v46, 16  ;;  %v13380_v0 = vadd.f32 %v17813_v9, %v17799_v10  ;;  %v12465_v63 = vcombine.low %v8243_v20, %v8679_v26  ;;  %v12467_v13 = vsel %vm849_vm5, %v17895_v48, %v8679_v26  ;;  %v8288_v48 = vld [vmem:[#allocation2 + $0x100] sm:$0xe] }
 0x3f1   : > { %v17947_v55 = vpop.f32.mrf.mxu1  ;;  %9688 = vmatmul.mubr.bf16.gmra.mxu1 %v12515_v27  ;;  %v10165_v30 = vrot.slane %v10163_v53, 1  ;;  %v12391_v35 = vcombine.low %v8287_v43, %v17953_v59  ;;  %v12468_v15 = vcombine.low %v8245_v45, %v8686_v47  ;;  %v12470_v46 = vsel %vm849_vm5, %v17905_v6, %v8686_v47  ;;  %v17988_v53 = vld [vmem:[#allocation2 + $0x114] sm:$0x1] }
 0x3f2   : > { %v17955_v44 = vpop.f32.mrf.mxu0  ;;  %v9189_v10 = vshll.u32 %v12467_v13, 16  ;;  %v10172_v9 = vrot.slane %v10170_v23, 1  ;;  %v9180_v27 = vshrl.u32 %v12465_v63, 16  ;;  %v9183_v20 = vshll.u32 %v12465_v63, 16  ;;  %19372 = vst [vmem:[#allocation25_spill] sm:$0xff] %v17988_v53 }
 0x3f3   : > { %v17957_v22 = vpop.f32.mrf.mxu1  ;;  %v9203_v54 = vshll.u32 %v12470_v46, 16  ;;  %v10166_v38 = vor.u32 %v10165_v30, %v10161_v17  ;;  %v9194_v51 = vshrl.u32 %v12468_v15, 16  ;;  %v9197_v45 = vshll.u32 %v12468_v15, 16 }
 0x3f4   : > { %v17966_v39 = vpop.f32.mrf.mxu0  ;;  %v10173_v3 = vor.u32 %v10172_v9, %v10168_v50  ;;  %v9182_v25 = vrot.slane %v9180_v27, 4  ;;  %v9185_v6 = vrot.slane %v9183_v20, 5  ;;  %v9191_v47 = vrot.slane %v9189_v10, 5  ;;  %v17994_v10 = vld [vmem:[#allocation2 + $0x11c] sm:$0x1] }
 0x3f5   : > { %v17968_v34 = vpop.f32.mrf.mxu1  ;;  %v17979_v23 = vadd.f32 %v13492_v16, %v13380_v0  ;;  %v9196_v17 = vrot.slane %v9194_v51, 4  ;;  %v9199_v30 = vrot.slane %v9197_v45, 5  ;;  %v12392_v33 = vcombine.low %v8288_v48, %v17972_v24  ;;  %v17992_v0 = vld [vmem:[#allocation2 + $0x118] sm:$0xf]  ;;  %19373 = vst [vmem:[#allocation26_spill] sm:$0xff] %v17994_v10 }
 0x3f6   : > { %v17974_v26 = vpop.f32.mrf.mxu0  ;;  %v12600_v46 = vcombine.low %v10166_v38, %v10173_v3  ;;  %v9186_v15 = vor.u32 %v9185_v6, %v9182_v25  ;;  %v9205_v50 = vrot.slane %v9203_v54, 5  ;;  %v8690_v9 = vshll.u32 %v12391_v35, 16 }
 0x3f7   : > { %v17976_v43 = vpop.f32.mrf.mxu1  ;;  %19371 = vst [vmem:[#allocation21_spill] sm:$0xff] %v17979_v23  ;;  %v13383_v16 = vadd.f32 %v17837_v8, %v17833_v40  ;;  %v9200_v3 = vor.u32 %v9199_v30, %v9196_v17  ;;  %v8688_v38 = vshrl.u32 %v12391_v35, 16  ;;  %v8697_v20 = vshll.u32 %v12392_v33, 16 }
 0x3f8   : > { %v17981_v13 = vpop.f32.mrf.mxu0  ;;  %10568 = vmatprep.mubr.bf16.mxu0 %v12600_v46  ;;  %v12599_v25 = vcombine.low %v17927_v4, %v17916_v37  ;;  %v9187_v54 = vrot.slane %v9186_v15, 4  ;;  %v8692_v48 = vrot.slane %v8690_v9, 1  ;;  %v12569_v40 = vcombine.low %v17986_v36, %v17988_v53 }
 0x3f9   : > { %v17983_v63 = vpop.f32.mrf.mxu1  ;;  %v18003_v45 = vadd.f32 %v17951_v21, %v13383_v16  ;;  %v9201_v23 = vrot.slane %v9200_v3, 4  ;;  %v8695_v17 = vshrl.u32 %v12392_v33, 16  ;;  %v8699_v30 = vrot.slane %v8697_v20, 1  ;;  %v8247_v3 = vld [vmem:[#allocation2 + $0xf8] sm:$0xf] }
 0x3fa   : > { %v17996_v27 = vpop.f32.mrf.mxu0  ;;  %10569 = vmatmul.mubr.bf16.gmra.mxu0 %v12599_v25  ;;  %v12570_v35 = vcombine.low %v17992_v0, %v17994_v10  ;;  %v9192_v37 = vsel %vm15399_vm12, %v9187_v54, %v9191_v47  ;;  %v8693_v4 = vor.u32 %v8692_v48, %v8688_v38  ;;  %v10175_v21 = vshrl.u32 %v12569_v40, 16  ;;  %v8249_v10 = vld [vmem:[#allocation2 + $0x100] sm:$0xf] }
 0x3fb   : > { %v17998_v51 = vpop.f32.mrf.mxu1  ;;  %19374 = vst [vmem:[#allocation23_spill] sm:$0xff] %v18003_v45  ;;  %v10177_v46 = vshll.u32 %v12569_v40, 16  ;;  %v9206_v16 = vsel %vm15399_vm12, %v9201_v23, %v9205_v50  ;;  %v8700_v33 = vor.u32 %v8699_v30, %v8695_v17 }
 0x3fc   : > { %v18007_v8 = vpop.f32.mrf.mxu0  ;;  %v10182_v20 = vshrl.u32 %v12570_v35, 16  ;;  %v10184_v25 = vshll.u32 %v12570_v35, 16  ;;  %v12517_v45 = vcombine.low %v9192_v37, %v9206_v16  ;;  %v12518_v53 = vcombine.high %v9192_v37, %v9206_v16  ;;  %v18029_v16 = vld [vmem:[#allocation2 + $0x10c] sm:$0x1] }
 0x3fd   : > { %v18009_v6 = vpop.f32.mrf.mxu1  ;;  %v12471_v2 = vcombine.low %v8247_v3, %v8693_v4  ;;  %v12473_v47 = vsel %vm849_vm5, %v17953_v59, %v8693_v4  ;;  %v12474_v48 = vcombine.low %v8249_v10, %v8700_v33  ;;  %v12476_v40 = vsel %vm849_vm5, %v17972_v24, %v8700_v33  ;;  %v8289_v3 = vld [vmem:[#allocation2 + $0x108] sm:$0xe] }
 0x3fe   : > { %v18015_v15 = vpop.f32.mrf.mxu0  ;;  %v9217_v23 = vshll.u32 %v12473_v47, 16  ;;  %v10179_v50 = vrot.slane %v10177_v46, 1  ;;  %9695 = vmatprep.mubr.bf16.mxu1 %v12518_v53  ;;  %v9231_v35 = vshll.u32 %v12476_v40, 16  ;;  %v10186_v37 = vrot.slane %v10184_v25, 1  ;;  %v18037_v46 = vld [vmem:[#allocation2 + $0x114] sm:$0x1] }
 0x3ff   : > { %v18017_v9 = vpop.f32.mrf.mxu1  ;;  %v9208_v17 = vshrl.u32 %v12471_v2, 16  ;;  %v9211_v30 = vshll.u32 %v12471_v2, 16  ;;  %9696 = vmatmul.mubr.bf16.gmra.mxu1 %v12517_v45  ;;  %v13498_v10 = vadd.f32 %v17846_v19, %v17831_v12  ;;  %v9222_v24 = vshrl.u32 %v12474_v48, 16  ;;  %v8290_v40 = vld [vmem:[#allocation2 + $0x110] sm:$0xe] }
 0x400   : > { %19375 = vst [vmem:[#allocation24_spill] sm:$0xff] %v18017_v9  ;;  %v18023_v38 = vpop.f32.mrf.mxu0  ;;  %v9219_v4 = vrot.slane %v9217_v23, 5  ;;  %v9225_v33 = vshll.u32 %v12474_v48, 16  ;;  %v10180_v47 = vor.u32 %v10179_v50, %v10175_v21  ;;  %v10187_v25 = vor.u32 %v10186_v37, %v10182_v20  ;;  %v18047_v19 = vld [vmem:[#allocation2 + $0x124] sm:$0x1] }
 0x401   : > { %19376 = vst [vmem:[#allocation28_spill] sm:$0xff] %v18023_v38  ;;  %v18025_v54 = vpop.f32.mrf.mxu1  ;;  %v9210_v53 = vrot.slane %v9208_v17, 4  ;;  %v9213_v2 = vrot.slane %v9211_v30, 5  ;;  %v9224_v45 = vrot.slane %v9222_v24, 4  ;;  %v9233_v18 = vrot.slane %v9231_v35, 5  ;;  %19380 = vst [vmem:[#allocation31_spill] sm:$0xff] %v18047_v19 }
 0x402   : > { %19377 = vst [vmem:[#allocation29_spill] sm:$0xff] %v18025_v54  ;;  %v18031_v9 = vpop.f32.mrf.mxu0  ;;  %v18039_v54 = vld [vmem:[#allocation2 + $0x120] sm:$0xf]  ;;  %v13501_v12 = vadd.f32 %v17865_v62, %v17861_v58  ;;  %v12602_v23 = vcombine.low %v10180_v47, %v10187_v25  ;;  %v13386_v21 = vadd.f32 %v17859_v57, %v17848_v56  ;;  %v13504_v20 = vadd.f32 %v17881_v32, %v17875_v42  ;;  %v18061_v62 = vld [vmem:[#allocation2 + $0x128] sm:$0xf] }
 0x403   : > { %19378 = vst [vmem:[#allocation27_spill] sm:$0xff] %v18031_v9  ;;  %v18033_v59 = vpop.f32.mrf.mxu1  ;;  %v9214_v48 = vor.u32 %v9213_v2, %v9210_v53  ;;  %v12393_v35 = vcombine.low %v8289_v3, %v18029_v16  ;;  %v12394_v37 = vcombine.low %v8290_v40, %v18037_v46  ;;  %v13389_v58 = vadd.f32 %v17877_v52, %v17870_v28  ;;  %v18063_v24 = vld [vmem:[#allocation2 + $0x12c] sm:$0x1] }
 0x404   : > { %19379 = vst [vmem:[#allocation30_spill] sm:$0xff] %v18033_v59  ;;  %v18041_v38 = vpop.f32.mrf.mxu0  ;;  %v9227_v59 = vrot.slane %v9225_v33, 5  ;;  %19381 = vst [vmem:[#allocation33_spill] sm:$0xff] %v18063_v24  ;;  %10576 = vmatprep.mubr.bf16.mxu0 %v12602_v23  ;;  %v18065_v57 = vadd.f32 %v13498_v10, %v13386_v21  ;;  %v12601_v42 = vcombine.low %v17986_v36, %v17992_v0  ;;  %v18081_v0 = vld [vmem:[#allocation2 + $0x11c] sm:$0x1] }
 0x405   : > { %v18043_v9 = vpop.f32.mrf.mxu1  ;;  %v9215_v56 = vrot.slane %v9214_v48, 4  ;;  %v12571_v32 = vcombine.low %v18039_v54, %v18047_v19  ;;  %v8702_v28 = vshrl.u32 %v12393_v35, 16  ;;  %v8704_v52 = vshll.u32 %v12393_v35, 16 }
 0x406   : > { %v18053_v50 = vpop.f32.mrf.mxu0  ;;  %v9228_v30 = vor.u32 %v9227_v59, %v9224_v45  ;;  %19382 = vst [vmem:[#allocation32_spill] sm:$0xff] %v18065_v57  ;;  %v8709_v53 = vshrl.u32 %v12394_v37, 16  ;;  %v8711_v47 = vshll.u32 %v12394_v37, 16  ;;  %v18077_v10 = vadd.f32 %v13501_v12, %v13389_v58  ;;  %10577 = vmatmul.mubr.bf16.gmra.mxu0 %v12601_v42 }
 0x407   : > { %v18055_v17 = vpop.f32.mrf.mxu1  ;;  %v9220_v2 = vsel %vm15399_vm12, %v9215_v56, %v9219_v4  ;;  %v12572_v36 = vcombine.low %v18061_v62, %v18063_v24  ;;  %v8706_v48 = vrot.slane %v8704_v52, 1  ;;  %v10189_v23 = vshrl.u32 %v12571_v32, 16  ;;  %v8291_v4 = vld [vmem:[#allocation2 + $0x118] sm:$0xe] }
 0x408   : > { %v18071_v3 = vpop.f32.mrf.mxu0  ;;  %v9229_v33 = vrot.slane %v9228_v30, 4  ;;  %19383 = vst [vmem:[#allocation34_spill] sm:$0xff] %v18077_v10  ;;  %v10191_v21 = vshll.u32 %v12571_v32, 16  ;;  %v8713_v35 = vrot.slane %v8711_v47, 1  ;;  %v13507_v24 = vadd.f32 %v17907_v7, %v17897_v29 }
 0x409   : > { %v18073_v59 = vpop.f32.mrf.mxu1  ;;  %v10196_v37 = vshrl.u32 %v12572_v36, 16  ;;  %v8707_v42 = vor.u32 %v8706_v48, %v8702_v28  ;;  %v10198_v57 = vshll.u32 %v12572_v36, 16  ;;  %v13392_v32 = vadd.f32 %v17893_v14, %v17887_v61  ;;  %v18108_v48 = vld [vmem:[#allocation2 + $0x124] sm:$0x1]  ;;  %v8292_v61 = vld [vmem:[#allocation2 + $0x120] sm:$0xe] }
 0x40a   : > { %v18083_v25 = vpop.f32.mrf.mxu0  ;;  %v9234_v45 = vsel %vm15399_vm12, %v9229_v33, %v9233_v18  ;;  %v10193_v10 = vrot.slane %v10191_v21, 1  ;;  %v8251_v18 = vld [vmem:[#allocation2 + $0x108] sm:$0xf]  ;;  %v8253_v33 = vld [vmem:[#allocation2 + $0x110] sm:$0xf]  ;;  %v8714_v52 = vor.u32 %v8713_v35, %v8709_v53  ;;  %v12395_v47 = vcombine.low %v8291_v4, %v18081_v0 }
 0x40b   : > { %v18085_v40 = vpop.f32.mrf.mxu1  ;;  %v12519_v30 = vcombine.low %v9220_v2, %v9234_v45  ;;  %v12520_v12 = vcombine.high %v9220_v2, %v9234_v45  ;;  %v18099_v2 = vadd.f32 %v17933_v11, %v17918_v31  ;;  %v12477_v36 = vcombine.low %v8251_v18, %v8707_v42  ;;  %v18121_v35 = vld [vmem:[#allocation2 + $0x130] sm:$0xf] }
 0x40c   : > { %v18089_v58 = vpop.f32.mrf.mxu0  ;;  %v12479_v29 = vsel %vm849_vm5, %v18029_v16, %v8707_v42  ;;  %v10194_v7 = vor.u32 %v10193_v10, %v10189_v23  ;;  %v10200_v53 = vrot.slane %v10198_v57, 1  ;;  %v12480_v14 = vcombine.low %v8253_v33, %v8714_v52 }
 0x40d   : > { %v18091_v56 = vpop.f32.mrf.mxu1  ;;  %9703 = vmatprep.mubr.bf16.mxu1 %v12520_v12  ;;  %v12482_v31 = vsel %vm849_vm5, %v18037_v46, %v8714_v52  ;;  %v9245_v11 = vshll.u32 %v12479_v29, 16  ;;  %v18112_v21 = vadd.f32 %v13504_v20, %v13392_v32  ;;  %v9236_v10 = vshrl.u32 %v12477_v36, 16  ;;  %v18124_v20 = vld [vmem:[#allocation2 + $0x138] sm:$0xf] }
 0x40e   : > { %v18102_v45 = vpop.f32.mrf.mxu0  ;;  %9704 = vmatmul.mubr.bf16.gmra.mxu1 %v12519_v30  ;;  %v18118_v30 = vld [vmem:[#allocation2 + $0x2c] sm:$0x1]  ;;  %v9239_v57 = vshll.u32 %v12477_v36, 16  ;;  %v10201_v23 = vor.u32 %v10200_v53, %v10196_v37  ;;  %v9250_v42 = vshrl.u32 %v12480_v14, 16  ;;  %v9253_v18 = vshll.u32 %v12480_v14, 16 }
 0x40f   : > { %v18104_v28 = vpop.f32.mrf.mxu1  ;;  %19385 = vst [vmem:[#allocation37_spill] sm:$0xff] %v18112_v21  ;;  %v9259_v33 = vshll.u32 %v12482_v31, 16  ;;  %v12396_v46 = vcombine.low %v8292_v61, %v18108_v48  ;;  %v9238_v29 = vrot.slane %v9236_v10, 4  ;;  %v9247_v19 = vrot.slane %v9245_v11, 5  ;;  %v18132_v14 = vld [vmem:[#allocation2 + $0x13c] sm:$0x1] }
 0x410   : > { %19384 = vst [vmem:[#allocation35_spill] sm:$0xff] %v18104_v28  ;;  %v18114_v4 = vpop.f32.mrf.mxu0  ;;  %v9241_v21 = vrot.slane %v9239_v57, 5  ;;  %v12604_v16 = vcombine.low %v10194_v7, %v10201_v23  ;;  %v9252_v37 = vrot.slane %v9250_v42, 4  ;;  %v9255_v36 = vrot.slane %v9253_v18, 5  ;;  %19391 = vst [vmem:[#allocation42_spill] sm:$0xff] %v18132_v14 }
 0x411   : > { %19386 = vst [vmem:[#allocation36_spill] sm:$0xff] %v18114_v4  ;;  %v18116_v12 = vpop.f32.mrf.mxu1  ;;  %v8716_v53 = vshrl.u32 %v12395_v47, 16  ;;  %v8718_v28 = vshll.u32 %v12395_v47, 16  ;;  %v13395_v11 = vadd.f32 %v17920_v60, %v17909_v49  ;;  %v12603_v57 = vcombine.low %v18039_v54, %v18061_v62 }
 0x412   : > { %19387 = vst [vmem:[#allocation38_spill] sm:$0xff] %v18116_v12  ;;  %v18126_v52 = vpop.f32.mrf.mxu0  ;;  %v18130_v12 = vld [vmem:[#allocation2 + $0x134] sm:$0x1]  ;;  %v9242_v4 = vor.u32 %v9241_v21, %v9238_v29  ;;  %10584 = vmatprep.mubr.bf16.mxu0 %v12604_v16  ;;  %v9256_v7 = vor.u32 %v9255_v36, %v9252_v37  ;;  %v9261_v49 = vrot.slane %v9259_v33, 5  ;;  %v8255_v36 = vld [vmem:[#allocation2 + $0x118] sm:$0xf] }
 0x413   : > { %19388 = vst [vmem:[#allocation39_spill] sm:$0xff] %v18126_v52  ;;  %v18128_v32 = vpop.f32.mrf.mxu1  ;;  %19390 = vst [vmem:[#allocation40_spill] sm:$0xff] %v18130_v12  ;;  %v8723_v52 = vshrl.u32 %v12396_v46, 16  ;;  %v8720_v10 = vrot.slane %v8718_v28, 1  ;;  %v12573_v47 = vcombine.low %v18121_v35, %v18130_v12  ;;  %v18148_v16 = vadd.f32 %v13507_v24, %v13395_v11  ;;  %10585 = vmatmul.mubr.bf16.gmra.mxu0 %v12603_v57 }
 0x414   : > { %19389 = vst [vmem:[#allocation41_spill] sm:$0xff] %v18128_v32  ;;  %v18134_v31 = vpop.f32.mrf.mxu0  ;;  %v8725_v32 = vshll.u32 %v12396_v46, 16  ;;  %v9243_v18 = vrot.slane %v9242_v4, 4  ;;  %v12574_v46 = vcombine.low %v18124_v20, %v18132_v14  ;;  %v9257_v60 = vrot.slane %v9256_v7, 4 }
 0x415   : > { %v18136_v61 = vpop.f32.mrf.mxu1  ;;  %19392 = vst [vmem:[#allocation43_spill] sm:$0xff] %v18148_v16  ;;  %v8721_v28 = vor.u32 %v8720_v10, %v8716_v53  ;;  %v10205_v29 = vshll.u32 %v12573_v47, 16  ;;  %v8257_v16 = vld [vmem:[#allocation2 + $0x120] sm:$0xf] }
 0x416   : > { %v18144_v23 = vpop.f32.mrf.mxu0  ;;  %v8727_v21 = vrot.slane %v8725_v32, 1  ;;  %v9248_v37 = vsel %vm15399_vm12, %v9243_v18, %v9247_v19  ;;  %v10203_v32 = vshrl.u32 %v12573_v47, 16  ;;  %v10212_v24 = vshll.u32 %v12574_v46, 16 }
 0x417   : > { %v18146_v42 = vpop.f32.mrf.mxu1  ;;  %v9262_v11 = vsel %vm15399_vm12, %v9257_v60, %v9261_v49  ;;  %v12483_v7 = vcombine.low %v8255_v36, %v8721_v28  ;;  %v12485_v33 = vsel %vm849_vm5, %v18081_v0, %v8721_v28  ;;  %v10207_v53 = vrot.slane %v10205_v29, 1 }
 0x418   : > { %v18152_v54 = vpop.f32.mrf.mxu0  ;;  %v8728_v4 = vor.u32 %v8727_v21, %v8723_v52  ;;  %v12521_v14 = vcombine.low %v9248_v37, %v9262_v11  ;;  %v12522_v12 = vcombine.high %v9248_v37, %v9262_v11  ;;  %v10210_v18 = vshrl.u32 %v12574_v46, 16  ;;  %v18174_v37 = vld [vmem:[#allocation2 + $0x134] sm:$0x1] }
 0x419   : > { %v18154_v62 = vpop.f32.mrf.mxu1  ;;  %v9264_v47 = vshrl.u32 %v12483_v7, 16  ;;  %v9267_v21 = vshll.u32 %v12483_v7, 16  ;;  %v9273_v60 = vshll.u32 %v12485_v33, 16  ;;  %v10208_v29 = vor.u32 %v10207_v53, %v10203_v32 }
 0x41a   : > { %19393 = vst [vmem:[#allocation45_spill] sm:$0xff] %v18154_v62  ;;  %v18162_v10 = vpop.f32.mrf.mxu0  ;;  %v12486_v19 = vcombine.low %v8257_v16, %v8728_v4  ;;  %v12488_v52 = vsel %vm849_vm5, %v18108_v48, %v8728_v4  ;;  %9711 = vmatprep.mubr.bf16.mxu1 %v12522_v12  ;;  %v10214_v62 = vrot.slane %v10212_v24, 1  ;;  %v8293_v48 = vld [vmem:[#allocation2 + $0x128] sm:$0xe]  ;;  %v13513_v24 = vadd.f32 %v17955_v44, %v17945_v5 }
 0x41b   : > { %v18164_v57 = vpop.f32.mrf.mxu1  ;;  %9712 = vmatmul.mubr.bf16.gmra.mxu1 %v12521_v14  ;;  %v9266_v16 = vrot.slane %v9264_v47, 4  ;;  %v9269_v46 = vrot.slane %v9267_v21, 5  ;;  %v9275_v32 = vrot.slane %v9273_v60, 5  ;;  %v13398_v14 = vadd.f32 %v17947_v55, %v17935_v1 }
 0x41c   : > { %19394 = vst [vmem:[#allocation44_spill] sm:$0xff] %v18164_v57  ;;  %v18168_v49 = vpop.f32.mrf.mxu0  ;;  %v9278_v0 = vshrl.u32 %v12486_v19, 16  ;;  %v9281_v28 = vshll.u32 %v12486_v19, 16  ;;  %v18172_v57 = vld [vmem:[#allocation2 + $0x12c] sm:$0x1]  ;;  %v10215_v12 = vor.u32 %v10214_v62, %v10210_v18  ;;  %v13401_v1 = vadd.f32 %v17968_v34, %v17957_v22 }
 0x41d   : > { %19395 = vst [vmem:[#allocation46_spill] sm:$0xff] %v18168_v49  ;;  %v18170_v36 = vpop.f32.mrf.mxu1  ;;  %v8294_v49 = vld [vmem:[#allocation2 + $0x130] sm:$0xe]  ;;  %v9270_v19 = vor.u32 %v9269_v46, %v9266_v16  ;;  %v12397_v62 = vcombine.low %v8293_v48, %v18172_v57  ;;  %v13519_v48 = vadd.f32 %v17996_v27, %v17981_v13 }
 0x41e   : > { %19396 = vst [vmem:[#allocation47_spill] sm:$0xff] %v18170_v36  ;;  %v18176_v4 = vpop.f32.mrf.mxu0  ;;  %v9280_v7 = vrot.slane %v9278_v0, 4  ;;  %v9283_v33 = vrot.slane %v9281_v28, 5  ;;  %v9287_v36 = vshll.u32 %v12488_v52, 16  ;;  %v13516_v0 = vadd.f32 %v17974_v26, %v17966_v39 }
 0x41f   : > { %19397 = vst [vmem:[#allocation49_spill] sm:$0xff] %v18176_v4  ;;  %v18178_v11 = vpop.f32.mrf.mxu1  ;;  %v12606_v4 = vcombine.low %v10208_v29, %v10215_v12  ;;  %v9271_v18 = vrot.slane %v9270_v19, 4  ;;  %v18192_v52 = vadd.f32 %v18099_v2, %v13398_v14  ;;  %v12398_v5 = vcombine.low %v8294_v49, %v18174_v37 }
 0x420   : > { %v18184_v53 = vpop.f32.mrf.mxu0  ;;  %v9284_v21 = vor.u32 %v9283_v33, %v9280_v7  ;;  %v9289_v28 = vrot.slane %v9287_v36, 5  ;;  %v8732_v29 = vshll.u32 %v12397_v62, 16  ;;  %v12605_v39 = vcombine.low %v18121_v35, %v18124_v20 }
 0x421   : > { %v18186_v47 = vpop.f32.mrf.mxu1  ;;  %19398 = vst [vmem:[#allocation48_spill] sm:$0xff] %v18192_v52  ;;  %10592 = vmatprep.mubr.bf16.mxu0 %v12606_v4  ;;  %v9276_v26 = vsel %vm15399_vm12, %v9271_v18, %v9275_v32  ;;  %v8730_v2 = vshrl.u32 %v12397_v62, 16  ;;  %v8739_v16 = vshll.u32 %v12398_v5, 16  ;;  %v18205_v49 = vadd.f32 %v13513_v24, %v13401_v1  ;;  %v19401_v62 = vld [vmem:[#allocation17_spill] sm:$0xff]  ;;  %v10639_v52 = vld [vmem:[#allocation2 + $0x40] sm:$0xe] }
 0x422   : > { %v18197_v55 = vpop.f32.mrf.mxu0  ;;  %v9285_v60 = vrot.slane %v9284_v21, 4  ;;  %v8734_v36 = vrot.slane %v8732_v29, 1  ;;  %10593 = vmatmul.mubr.bf16.gmra.mxu0 %v12605_v39  ;;  %v13404_v35 = vadd.f32 %v17983_v63, %v17976_v43  ;;  %v8737_v4 = vshrl.u32 %v12398_v5, 16  ;;  %v8259_v21 = vld [vmem:[#allocation2 + $0x128] sm:$0xf]  ;;  %v19463_v5 = vld [vmem:[#allocation37_spill] sm:$0xff] }
 0x423   : > { %v18199_v44 = vpop.f32.mrf.mxu1  ;;  %19399 = vst [vmem:[#allocation50_spill] sm:$0xff] %v18205_v49  ;;  %v8741_v7 = vrot.slane %v8739_v16, 1  ;;  %v13522_v33 = vadd.f32 %v18015_v15, %v18007_v8  ;;  %v13407_v43 = vadd.f32 %v18009_v6, %v17998_v51  ;;  %v19402_v8 = vrot.slane %v19401_v62, 5  ;;  %v19403_v15 = vld [vmem:[#allocation16_spill] sm:$0xff]  ;;  %v19407_v51 = vld [vmem:[#allocation27_spill] sm:$0xff] }
 0x424   : > { %v18207_v46 = vpop.f32.mrf.mxu0  ;;  %v9290_v34 = vsel %vm15399_vm12, %v9285_v60, %v9289_v28  ;;  %v8735_v24 = vor.u32 %v8734_v36, %v8730_v2  ;;  %v18223_v14 = vadd.f32 %v13516_v0, %v13404_v35  ;;  %v19404_v18 = vrot.slane %v19403_v15, 9  ;;  %v8261_v0 = vld [vmem:[#allocation2 + $0x130] sm:$0xf]  ;;  %v19406_v29 = vld [vmem:[#allocation28_spill] sm:$0xff] }
 0x425   : > { %v18209_v22 = vpop.f32.mrf.mxu1  ;;  %v12524_v20 = vcombine.high %v9276_v26, %v9290_v34  ;;  %v12523_v32 = vcombine.low %v9276_v26, %v9290_v34  ;;  %v8742_v13 = vor.u32 %v8741_v7, %v8737_v4  ;;  %v13525_v6 = vadd.f32 %v19407_v51, %v19406_v29  ;;  %v19409_v26 = vld [vmem:[#allocation19_spill] sm:$0xff]  ;;  %v18260_v7 = vld [vmem:[#allocation2 + $0x4c] sm:$0x1] }
 0x426   : > { %v18219_v12 = vpop.f32.mrf.mxu0  ;;  %19400 = vst [vmem:[#allocation51_spill] sm:$0xff] %v18223_v14  ;;  %v18237_v1 = vsel %vm14694_vm9, %v19404_v18, %v19402_v8  ;;  %v12489_v60 = vcombine.low %v8259_v21, %v8735_v24  ;;  %v12491_v28 = vsel %vm849_vm5, %v18172_v57, %v8735_v24  ;;  %v19408_v39 = vrot.slane %v18118_v30, 5  ;;  %v18251_v34 = vld [vmem:[#allocation2 + $0x44] sm:$0x1]  ;;  %v19415_v30 = vld [vmem:[#allocation29_spill] sm:$0xff] }
 0x427   : > { %v18221_v19 = vpop.f32.mrf.mxu1  ;;  %9719 = vmatprep.mubr.bf16.mxu1 %v12524_v20  ;;  %v19410_v2 = vrot.slane %v19409_v26, 9  ;;  %v10723_v36 = vrot.slane %v18251_v34, 5  ;;  %v12492_v35 = vcombine.low %v8261_v0, %v8742_v13  ;;  %v12494_v20 = vsel %vm849_vm5, %v18174_v37, %v8742_v13  ;;  %v10633_v0 = vld [vmem:[#allocation2 + $0x10] sm:$0xe]  ;;  %v19414_v34 = vld [vmem:[#allocation24_spill] sm:$0xff] }
 0x428   : > { %v18227_v63 = vpop.f32.mrf.mxu0  ;;  %9720 = vmatmul.mubr.bf16.gmra.mxu1 %v12523_v32  ;;  %v18263_v32 = vld [vmem:[#allocation2 + $0x74] sm:$0x1]  ;;  %v9292_v21 = vshrl.u32 %v12489_v60, 16  ;;  %v9295_v62 = vshll.u32 %v12489_v60, 16  ;;  %v9301_v8 = vshll.u32 %v12491_v28, 16  ;;  %v18266_v29 = vadd.f32 %v13519_v48, %v13407_v43 }
 0x429   : > { %v18229_v27 = vpop.f32.mrf.mxu1  ;;  %v18249_v16 = vsel %vm14694_vm9, %v19410_v2, %v19408_v39  ;;  %v9306_v15 = vshrl.u32 %v12492_v35, 16  ;;  %v9309_v18 = vshll.u32 %v12492_v35, 16  ;;  %v9315_v26 = vshll.u32 %v12494_v20, 16  ;;  %v10634_v2 = vld [vmem:[#allocation2 + $0x18] sm:$0xe] }
 0x42a   : > { %v18256_v57 = vpop.f32.mrf.mxu0  ;;  %19412 = vst [vmem:[#allocation52_spill] sm:$0xff] %v18266_v29  ;;  %v9294_v51 = vrot.slane %v9292_v21, 4  ;;  %v9297_v39 = vrot.slane %v9295_v62, 5  ;;  %v13410_v14 = vadd.f32 %v19415_v30, %v19414_v34  ;;  %v13528_v48 = vadd.f32 %v18053_v50, %v18041_v38  ;;  %v14423_v62 = vld [vmem:[#allocation2 + $0x14] sm:$0x1] }
 0x42b   : > { %v18258_v4 = vpop.f32.mrf.mxu1  ;;  %v9308_v24 = vrot.slane %v9306_v15, 4  ;;  %v9311_v49 = vrot.slane %v9309_v18, 5  ;;  %v12623_v21 = vrot.slane %v10633_v0, 9  ;;  %v10699_v20 = vrot.slane %v14423_v62, 5  ;;  %v14424_v18 = vld [vmem:[#allocation2 + $0x1c] sm:$0x1] }
 0x42c   : > { %19411 = vst [vmem:[#allocation54_spill] sm:$0xff] %v18258_v4  ;;  %v18268_v37 = vpop.f32.mrf.mxu0  ;;  %v9298_v35 = vor.u32 %v9297_v39, %v9294_v51  ;;  %v18282_v29 = vadd.f32 %v13522_v33, %v13410_v14  ;;  %v12624_v15 = vrot.slane %v10634_v2, 9  ;;  %v10703_v34 = vrot.slane %v14424_v18, 5  ;;  %v10640_v4 = vld [vmem:[#allocation2 + $0x48] sm:$0xe] }
 0x42d   : > { %v18270_v13 = vpop.f32.mrf.mxu1  ;;  %v9312_v30 = vor.u32 %v9311_v49, %v9308_v24  ;;  %v9303_v51 = vrot.slane %v9301_v8, 5  ;;  %v13531_v0 = vadd.f32 %v18083_v25, %v18071_v3  ;;  %v13416_v33 = vadd.f32 %v18073_v59, %v18055_v17  ;;  %v10637_v24 = vld [vmem:[#allocation2 + $0x30] sm:$0xe]  ;;  %v14425_v62 = vld [vmem:[#allocation2 + $0x7c] sm:$0x1] }
 0x42e   : > { %19413 = vst [vmem:[#allocation53_spill] sm:$0xff] %v18270_v13  ;;  %v18278_v43 = vpop.f32.mrf.mxu0  ;;  %v19417_v13 = vld [vmem:[#allocation30_spill] sm:$0xff]  ;;  %v9317_v14 = vrot.slane %v9315_v26, 5  ;;  %v12629_v2 = vrot.slane %v10639_v52, 9  ;;  %v10743_v18 = vrot.slane %v14425_v62, 5  ;;  %v10700_v8 = vsel %vm14694_vm9, %v12623_v21, %v10699_v20 }
 0x42f   : > { %v18280_v28 = vpop.f32.mrf.mxu1  ;;  %v13413_v60 = vadd.f32 %v18043_v9, %v19417_v13  ;;  %v9313_v49 = vrot.slane %v9312_v30, 4  ;;  %v12630_v3 = vrot.slane %v10640_v4, 9  ;;  %v13534_v52 = vadd.f32 %v18102_v45, %v18089_v58  ;;  %v10638_v30 = vld [vmem:[#allocation2 + $0x38] sm:$0xe]  ;;  %v14426_v58 = vld [vmem:[#allocation2 + $0x34] sm:$0x1] }
 0x430   : > { %19416 = vst [vmem:[#allocation56_spill] sm:$0xff] %v18280_v28  ;;  %v18286_v38 = vpop.f32.mrf.mxu0  ;;  %v9299_v28 = vrot.slane %v9298_v35, 4  ;;  %v18302_v35 = vadd.f32 %v13528_v48, %v13416_v33  ;;  %v18310_v25 = vsel %vm14694_vm9, %v12629_v2, %v10723_v36  ;;  %v10704_v4 = vsel %vm14694_vm9, %v12624_v15, %v10703_v34  ;;  %v10644_v36 = vld [vmem:[#allocation2 + $0x78] sm:$0xe]  ;;  %v19420_v34 = vld [vmem:[#allocation36_spill] sm:$0xff]  ;;  %v19422_v2 = vld [vmem:[#allocation35_spill] sm:$0xff] }
 0x431   : > { %v18288_v50 = vpop.f32.mrf.mxu1  ;;  %v18294_v39 = vadd.f32 %v13525_v6, %v13413_v60  ;;  %v9318_v59 = vsel %vm15399_vm12, %v9313_v49, %v9317_v14  ;;  %v10643_v6 = vld [vmem:[#allocation2 + $0x70] sm:$0xe]  ;;  %v19419_v41 = vrot.slane %v18260_v7, 5  ;;  %v10715_v45 = vrot.slane %v14426_v58, 5  ;;  %v19421_v14 = vld [vmem:[#allocation39_spill] sm:$0xff]  ;;  %v19423_v62 = vld [vmem:[#allocation38_spill] sm:$0xff] }
 0x432   : > { %v18296_v9 = vpop.f32.mrf.mxu0  ;;  %19418 = vst [vmem:[#allocation58_spill] sm:$0xff] %v18302_v35  ;;  %v9304_v17 = vsel %vm15399_vm12, %v9299_v28, %v9303_v51  ;;  %v12627_v28 = vrot.slane %v10637_v24, 9  ;;  %v13419_v33 = vadd.f32 %v18091_v56, %v18085_v40  ;;  %v12655_v7 = vcombine.low %v10700_v8, %v10704_v4  ;;  %v14428_v4 = vld [vmem:[#allocation2 + $0x3c] sm:$0x1] }
 0x433   : > { %v18298_v13 = vpop.f32.mrf.mxu1  ;;  %v12526_v48 = vcombine.high %v9304_v17, %v9318_v59  ;;  %v18324_v21 = vsel %vm14694_vm9, %v12630_v3, %v19419_v41  ;;  %v12525_v20 = vcombine.low %v9304_v17, %v9318_v59  ;;  %v13537_v24 = vadd.f32 %v19421_v14, %v19420_v34  ;;  %v14427_v59 = vld [vmem:[#allocation2 + $0x94] sm:$0x1] }
 0x434   : > { %v18314_v26 = vpop.f32.mrf.mxu0  ;;  %v13422_v3 = vadd.f32 %v19423_v62, %v19422_v2  ;;  %v12633_v17 = vrot.slane %v10643_v6, 9  ;;  %v10755_v41 = vrot.slane %v14427_v59, 5  ;;  %v18338_v58 = vadd.f32 %v13531_v0, %v13419_v33  ;;  %v10647_v6 = vld [vmem:[#allocation2 + $0x90] sm:$0xe]  ;;  %v10648_v2 = vld [vmem:[#allocation2 + $0x98] sm:$0xe] }
 0x435   : > { %v18316_v60 = vpop.f32.mrf.mxu1  ;;  %9727 = vmatprep.mubr.bf16.mxu1 %v12526_v48  ;;  %v12634_v51 = vrot.slane %v10644_v36, 9  ;;  %v13540_v40 = vadd.f32 %v18144_v23, %v18134_v31  ;;  %v12628_v8 = vrot.slane %v10638_v30, 9  ;;  %v10719_v34 = vrot.slane %v14428_v4, 5  ;;  %v14429_v62 = vld [vmem:[#allocation2 + $0x9c] sm:$0x1] }
 0x436   : > { %v18330_v49 = vpop.f32.mrf.mxu0  ;;  %9728 = vmatmul.mubr.bf16.gmra.mxu1 %v12525_v20  ;;  %19424 = vst [vmem:[#allocation55_spill] sm:$0xff] %v18338_v58  ;;  %v18346_v14 = vadd.f32 %v13534_v52, %v13422_v3  ;;  %v10759_v20 = vrot.slane %v14429_v62, 5  ;;  %v10716_v0 = vsel %vm14694_vm9, %v12627_v28, %v10715_v45  ;;  %v19426_v36 = vrot.slane %v18263_v32, 5  ;;  %v19428_v45 = vld [vmem:[#allocation45_spill] sm:$0xff] }
 0x437   : > { %v18332_v15 = vpop.f32.mrf.mxu1  ;;  %13883 = vmatprep.mubr.bf16.mxu1 %v12655_v7  ;;  %v18358_v23 = vsel %vm14694_vm9, %v12634_v51, %v10743_v18  ;;  %v19427_v7 = vld [vmem:[#allocation41_spill] sm:$0xff]  ;;  %v13543_v32 = vadd.f32 %v18162_v10, %v18152_v54  ;;  %v13428_v3 = vadd.f32 %v19428_v45, %v18146_v42  ;;  %v10641_v18 = vld [vmem:[#allocation2 + $0x60] sm:$0xe]  ;;  %v12637_v51 = vrot.slane %v10647_v6, 9  ;;  %v19431_v54 = vld [vmem:[#allocation46_spill] sm:$0xff] }
 0x438   : > { %v18342_v56 = vpop.f32.mrf.mxu0  ;;  %19425 = vst [vmem:[#allocation57_spill] sm:$0xff] %v18346_v14  ;;  %v18354_v31 = vsel %vm14694_vm9, %v12633_v17, %v19426_v36  ;;  %v13425_v28 = vadd.f32 %v18136_v61, %v19427_v7  ;;  %v14430_v17 = vld [vmem:[#allocation2 + $0xc4] sm:$0x1]  ;;  %v12638_v4 = vrot.slane %v10648_v2, 9  ;;  %v10720_v33 = vsel %vm14694_vm9, %v12628_v8, %v10719_v34  ;;  %v10642_v14 = vld [vmem:[#allocation2 + $0x68] sm:$0xe] }
 0x439   : > { %v18344_v48 = vpop.f32.mrf.mxu1  ;;  %v10771_v59 = vrot.slane %v14430_v17, 5  ;;  %v18380_v7 = vadd.f32 %v13540_v40, %v13428_v3  ;;  %v19432_v10 = vld [vmem:[#allocation49_spill] sm:$0xff]  ;;  %v10651_v45 = vld [vmem:[#allocation2 + $0xc0] sm:$0xe]  ;;  %v14431_v17 = vld [vmem:[#allocation2 + $0xcc] sm:$0x1]  ;;  %v12657_v6 = vcombine.low %v10716_v0, %v10720_v33  ;;  %v18386_v2 = vsel %vm14694_vm9, %v12637_v51, %v10755_v41 }
 0x43a   : > { %v18360_v30 = vpop.f32.mrf.mxu0  ;;  %v18378_v61 = vadd.f32 %v13537_v24, %v13425_v28  ;;  %v13546_v42 = vadd.f32 %v19432_v10, %v19431_v54  ;;  %v10775_v58 = vrot.slane %v14431_v17, 5  ;;  %v18390_v35 = vsel %vm14694_vm9, %v12638_v4, %v10759_v20  ;;  %v10652_v8 = vld [vmem:[#allocation2 + $0xc8] sm:$0xe]  ;;  %v14432_v28 = vld [vmem:[#allocation2 + $0x64] sm:$0x1] }
 0x43b   : > { %v18362_v52 = vpop.f32.mrf.mxu1  ;;  %19430 = vst [vmem:[#allocation62_spill] sm:$0xff] %v18380_v7  ;;  %v12631_v34 = vrot.slane %v10641_v18, 9  ;;  %v10731_v3 = vrot.slane %v14432_v28, 5  ;;  %v19433_v0 = vld [vmem:[#allocation44_spill] sm:$0xff]  ;;  %v19434_v33 = vld [vmem:[#allocation47_spill] sm:$0xff]  ;;  %v19435_v41 = vcombine.low %v18237_v1, %v18249_v16  ;;  %v12632_v20 = vrot.slane %v10642_v14, 9 }
 0x43c   : > { %v18372_v62 = vpop.f32.mrf.mxu0  ;;  %19429 = vst [vmem:[#allocation60_spill] sm:$0xff] %v18378_v61  ;;  %v13431_v10 = vadd.f32 %v19434_v33, %v19433_v0  ;;  %v13549_v51 = vadd.f32 %v18197_v55, %v18184_v53  ;;  %v13434_v4 = vadd.f32 %v18186_v47, %v18178_v11  ;;  %v12641_v18 = vrot.slane %v10651_v45, 9  ;;  %v14433_v54 = vld [vmem:[#allocation2 + $0x6c] sm:$0x1]  ;;  %v14434_v16 = vld [vmem:[#allocation2 + $0xe4] sm:$0x1] }
 0x43d   : > { %v18374_v36 = vpop.f32.mrf.mxu1  ;;  %v10735_v7 = vrot.slane %v14433_v54, 5  ;;  %v12642_v33 = vrot.slane %v10652_v8, 9  ;;  %v13552_v1 = vadd.f32 %v18219_v12, %v18207_v46  ;;  %v10787_v14 = vrot.slane %v14434_v16, 5  ;;  %v14435_v53 = vld [vmem:[#allocation2 + $0xec] sm:$0x1] }
 0x43e   : > { %v18392_v24 = vpop.f32.mrf.mxu0  ;;  %13884 = vmatmul.mubr.bf16.vlgmr.msra.gmra.mxu1 %v19435_v41  ;;  %v18411_v0 = vadd.f32 %v13543_v32, %v13431_v10  ;;  %v10791_v55 = vrot.slane %v14435_v53, 5  ;;  %v18415_v41 = vadd.f32 %v13546_v42, %v13434_v4  ;;  %v10655_v11 = vld [vmem:[#allocation2 + $0xe0] sm:$0xe]  ;;  %v10656_v47 = vld [vmem:[#allocation2 + $0xe8] sm:$0xe]  ;;  %v10732_v32 = vsel %vm14694_vm9, %v12631_v34, %v10731_v3 }
 0x43f   : > { %v18394_v40 = vpop.f32.mrf.mxu1  ;;  %13887 = vmatprep.mubr.bf16.mxu1 %v12657_v6  ;;  %v19438_v6 = vld [vmem:[#allocation25_spill] sm:$0xff]  ;;  %v18426_v46 = vsel %vm14694_vm9, %v12641_v18, %v10771_v59  ;;  %v18430_v12 = vsel %vm14694_vm9, %v12642_v33, %v10775_v58  ;;  %v10645_v42 = vld [vmem:[#allocation2 + $0x80] sm:$0xe]  ;;  %v13437_v10 = vadd.f32 %v18209_v22, %v18199_v44  ;;  %v13555_v4 = vadd.f32 %v18256_v57, %v18227_v63  ;;  %v19439_v18 = vld [vmem:[#allocation26_spill] sm:$0xff] }
 0x440   : > { %v18407_v17 = vpop.f32.mrf.mxu0  ;;  %19436 = vst [vmem:[#allocation59_spill] sm:$0xff] %v18411_v0  ;;  %19437 = vst [vmem:[#allocation61_spill] sm:$0xff] %v18415_v41  ;;  %v10803_v54 = vrot.slane %v19438_v6, 5  ;;  %v13440_v34 = vadd.f32 %v18229_v27, %v18221_v19  ;;  %v10807_v58 = vrot.slane %v19439_v18, 5  ;;  %v10736_v33 = vsel %vm14694_vm9, %v12632_v20, %v10735_v7  ;;  %v10646_v16 = vld [vmem:[#allocation2 + $0x88] sm:$0xe] }
 0x441   : > { %v18409_v28 = vpop.f32.mrf.mxu1  ;;  %v12645_v53 = vrot.slane %v10655_v11, 9  ;;  %v12646_v6 = vrot.slane %v10656_v47, 9  ;;  %v12659_v8 = vcombine.low %v10732_v32, %v10736_v33  ;;  %v18447_v44 = vadd.f32 %v13549_v51, %v13437_v10  ;;  %v10659_v63 = vld [vmem:[#allocation2 + $0x110] sm:$0xe]  ;;  %v14436_v18 = vld [vmem:[#allocation2 + $0x84] sm:$0x1] }
 0x442   : > { %v18417_v45 = vpop.f32.mrf.mxu0  ;;  %v18449_v22 = vadd.f32 %v13552_v1, %v13440_v34  ;;  %v13558_v19 = vadd.f32 %v18278_v43, %v18268_v37  ;;  %v12635_v41 = vrot.slane %v10645_v42, 9  ;;  %v10747_v0 = vrot.slane %v14436_v18, 5  ;;  %v10660_v51 = vld [vmem:[#allocation2 + $0x118] sm:$0xe]  ;;  %v14437_v43 = vld [vmem:[#allocation2 + $0x8c] sm:$0x1] }
 0x443   : > { %v18419_v61 = vpop.f32.mrf.mxu1  ;;  %v18457_v7 = vsel %vm14694_vm9, %v12645_v53, %v10787_v14  ;;  %v18461_v20 = vsel %vm14694_vm9, %v12646_v6, %v10791_v55  ;;  %v19440_v1 = vcombine.low %v18310_v25, %v18324_v21  ;;  %v12636_v37 = vrot.slane %v10646_v16, 9  ;;  %v19441_v32 = vld [vmem:[#allocation54_spill] sm:$0xff]  ;;  %v19442_v42 = vld [vmem:[#allocation53_spill] sm:$0xff]  ;;  %v19443_v34 = vld [vmem:[#allocation56_spill] sm:$0xff] }
 0x444   : > { %v18440_v3 = vpop.f32.mrf.mxu0  ;;  %v10751_v11 = vrot.slane %v14437_v43, 5  ;;  %v12666_v47 = vcombine.low %v18457_v7, %v18461_v20  ;;  %v13443_v10 = vadd.f32 %v19442_v42, %v19441_v32  ;;  %v13561_v55 = vadd.f32 %v18296_v9, %v18286_v38  ;;  %v10649_v21 = vld [vmem:[#allocation2 + $0xb0] sm:$0xe]  ;;  %v19444_v43 = vld [vmem:[#allocation40_spill] sm:$0xff] }
 0x445   : > { %v18442_v59 = vpop.f32.mrf.mxu1  ;;  %v13446_v33 = vadd.f32 %v18288_v50, %v19443_v34  ;;  %v12649_v53 = vrot.slane %v10659_v63, 9  ;;  %v12650_v6 = vrot.slane %v10660_v51, 9  ;;  %v13564_v18 = vadd.f32 %v18330_v49, %v18314_v26  ;;  %v10663_v9 = vld [vmem:[#allocation2 + $0x130] sm:$0xe]  ;;  %v10664_v50 = vld [vmem:[#allocation2 + $0x138] sm:$0xe] }
 0x446   : > { %v13703_v27 = vpop.f32.mrf.mxu0  ;;  %13888 = vmatmul.mubr.bf16.gmra.mxu1 %v19440_v1  ;;  %v18476_v16 = vadd.f32 %v13555_v4, %v13443_v10  ;;  %v10819_v32 = vrot.slane %v19444_v43, 5  ;;  %v19445_v63 = vld [vmem:[#allocation42_spill] sm:$0xff]  ;;  %v10752_v4 = vsel %vm14694_vm9, %v12636_v37, %v10751_v11  ;;  %v13452_v37 = vadd.f32 %v18344_v48, %v18332_v15 }
 0x447   : > { %v18453_v57 = vpop.f32.mrf.mxu1  ;;  %13891 = vmatprep.mubr.bf16.mxu1 %v12659_v8  ;;  %v10748_v8 = vsel %vm14694_vm9, %v12635_v41, %v10747_v0  ;;  %v18483_v38 = vadd.f32 %v13558_v19, %v13446_v33  ;;  %v10823_v42 = vrot.slane %v19445_v63, 5  ;;  %v18490_v51 = vsel %vm14694_vm9, %v12649_v53, %v10803_v54  ;;  %v10650_v53 = vld [vmem:[#allocation2 + $0xb8] sm:$0xe] }
 0x448   : > { %v18474_v25 = vpop.f32.mrf.mxu0  ;;  %v18494_v26 = vsel %vm14694_vm9, %v12650_v6, %v10807_v58  ;;  %v13449_v41 = vadd.f32 %v18316_v60, %v18298_v13  ;;  %v13567_v19 = vadd.f32 %v18360_v30, %v18342_v56  ;;  %v12661_v54 = vcombine.low %v10748_v8, %v10752_v4  ;;  %v14438_v6 = vld [vmem:[#allocation2 + $0xb4] sm:$0x1]  ;;  %v19449_v8 = vld [vmem:[#allocation14_spill] sm:$0xff] }
 0x449   : > { %v13591_v14 = vpop.f32.mrf.mxu1  ;;  %v12639_v10 = vrot.slane %v10649_v21, 9  ;;  %v12653_v34 = vrot.slane %v10663_v9, 9  ;;  %v12654_v58 = vrot.slane %v10664_v50, 9  ;;  %v10763_v43 = vrot.slane %v14438_v6, 5  ;;  %v10653_v50 = vld [vmem:[#allocation2 + $0xd0] sm:$0xe] }
 0x44a   : > { %v18504_v11 = vpop.f32.mrf.mxu0  ;;  %v18506_v63 = vadd.f32 %v13561_v55, %v13449_v41  ;;  %v18508_v0 = vadd.f32 %v13564_v18, %v13452_v37  ;;  %v13570_v13 = vadd.f32 %v18392_v24, %v18372_v62  ;;  %v19446_v60 = vcombine.low %v18354_v31, %v18358_v23  ;;  %v19451_v4 = vld [vmem:[#allocation18_spill] sm:$0xff] }
 0x44b   : > { %v13593_v1 = vpop.f32.mrf.mxu1  ;;  %v18517_v15 = vsel %vm14694_vm9, %v12653_v34, %v10819_v32  ;;  %v18521_v56 = vsel %vm14694_vm9, %v12654_v58, %v10823_v42  ;;  %v13455_v48 = vadd.f32 %v18374_v36, %v18362_v52  ;;  %v18527_v30 = vadd.f32 %v18417_v45, %v18407_v17  ;;  %v14439_v36 = vld [vmem:[#allocation2 + $0xbc] sm:$0x1]  ;;  %v10654_v37 = vld [vmem:[#allocation2 + $0xd8] sm:$0xe]  ;;  %v14440_v58 = vld [vmem:[#allocation2 + $0xd4] sm:$0x1] }
 0x44c   : > { %v12670_v31 = vcombine.low %v18517_v15, %v18521_v56  ;;  %v13458_v23 = vadd.f32 %v18409_v28, %v18394_v40  ;;  %v18534_v24 = vadd.f32 %v13703_v27, %v18440_v3  ;;  %v13589_v55 = vadd.f32 %v18442_v59, %v18419_v61  ;;  %v18538_v21 = vpop.f32.mrf.mxu0  ;;  %v19450_v3 = vld [vmem:[#allocation15_spill] sm:$0xff] }
 0x44d   : > { %v13594_v49 = vpop.f32.mrf.mxu1  ;;  %v12640_v52 = vrot.slane %v10650_v53, 9  ;;  %v10767_v17 = vrot.slane %v14439_v36, 5  ;;  %v18540_v45 = vadd.f32 %v13567_v19, %v13455_v48  ;;  %v13592_v18 = vadd.f32 %v13591_v14, %v18453_v57  ;;  %v19452_v14 = vld [vmem:[#allocation20_spill] sm:$0xff]  ;;  %v14441_v48 = vld [vmem:[#allocation2 + $0xdc] sm:$0x1]  ;;  %v19455_v36 = vld [vmem:[#allocation21_spill] sm:$0xff] }
 0x44e   : > { %13892 = vmatmul.mubr.bf16.gmra.mxu1 %v19446_v60  ;;  %v18543_v32 = vadd.f32 %v13570_v13, %v13458_v23  ;;  %v18546_v9 = vadd.f32 %v13589_v55, %v19449_v8  ;;  %v13595_v40 = vadd.f32 %v13594_v49, %v13593_v1  ;;  %v10764_v28 = vsel %vm14694_vm9, %v12639_v10, %v10763_v43  ;;  %v18553_v42 = vpop.f32.mrf.mxu0  ;;  %v19454_v43 = vld [vmem:[#allocation22_spill] sm:$0xff] }
 0x44f   : > { %v13596_v33 = vpop.f32.mrf.mxu1  ;;  %13895 = vmatprep.mubr.bf16.mxu1 %v12661_v54  ;;  %19447 = vst [vmem:[#allocation63_spill] sm:$0xff] %v18540_v45  ;;  %v18551_v61 = vadd.f32 %v13592_v18, %v19450_v3  ;;  %v10768_v57 = vsel %vm14694_vm9, %v12640_v52, %v10767_v17  ;;  %v19453_v10 = vcombine.low %v18386_v2, %v18390_v35  ;;  %v12643_v34 = vrot.slane %v10653_v50, 9  ;;  %v10657_v35 = vld [vmem:[#allocation2 + $0x100] sm:$0xe] }
 0x450   : > { %19448 = vst [vmem:[#allocation65_spill] sm:$0xff] %v18543_v32  ;;  %v18556_v41 = vadd.f32 %v13595_v40, %v19451_v4  ;;  %v12663_v49 = vcombine.low %v10764_v28, %v10768_v57  ;;  %v18566_v6 = vpop.f32.mrf.mxu0  ;;  %v12644_v60 = vrot.slane %v10654_v37, 9  ;;  %v10658_v40 = vld [vmem:[#allocation2 + $0x108] sm:$0xe]  ;;  %v19456_v28 = vcombine.low %v18426_v46, %v18430_v12 }
 0x451   : > { %v13597_v62 = vpop.f32.mrf.mxu1  ;;  %v12647_v3 = vrot.slane %v10657_v35, 9  ;;  %v12648_v57 = vrot.slane %v10658_v40, 9 }
 0x452   : > { %v13598_v59 = vadd.f32 %v13597_v62, %v13596_v33  ;;  %v10779_v33 = vrot.slane %v14440_v58, 5  ;;  %v10783_v62 = vrot.slane %v14441_v48, 5  ;;  %v18573_v2 = vpop.f32.mrf.mxu0  ;;  %v19457_v58 = vld [vmem:[#allocation23_spill] sm:$0xff] }
 0x453   : > { %v13599_v27 = vpop.f32.mrf.mxu1 }
 0x454   : > { %v18561_v19 = vadd.f32 %v13598_v59, %v19452_v14  ;;  %v10780_v52 = vsel %vm14694_vm9, %v12643_v34, %v10779_v33  ;;  %v10784_v18 = vsel %vm14694_vm9, %v12644_v60, %v10783_v62  ;;  %v14442_v59 = vld [vmem:[#allocation2 + $0x104] sm:$0x1]  ;;  %v18583_v50 = vpop.f32.mrf.mxu0  ;;  %v14443_v14 = vld [vmem:[#allocation2 + $0x10c] sm:$0x1] }
 0x455   : > { %v13600_v1 = vpop.f32.mrf.mxu1  ;;  %v12665_v8 = vcombine.low %v10780_v52, %v10784_v18  ;;  %v19458_v62 = vld [vmem:[#allocation31_spill] sm:$0xff] }
 0x456   : > { %v13601_v54 = vadd.f32 %v13600_v1, %v13599_v27  ;;  %13896 = vmatmul.mubr.bf16.gmra.mxu1 %v19453_v10  ;;  %v10795_v27 = vrot.slane %v14442_v59, 5  ;;  %v10799_v1 = vrot.slane %v14443_v14, 5  ;;  %v10661_v10 = vld [vmem:[#allocation2 + $0x120] sm:$0xe]  ;;  %v18587_v34 = vpop.f32.mrf.mxu0 }
 0x457   : > { %v13602_v53 = vpop.f32.mrf.mxu1  ;;  %13899 = vmatprep.mubr.bf16.mxu1 %v12663_v49  ;;  %v12651_v48 = vrot.slane %v10661_v10, 9 }
 0x458   : > { %v18569_v13 = vadd.f32 %v13601_v54, %v19454_v43  ;;  %v10796_v37 = vsel %vm14694_vm9, %v12647_v3, %v10795_v27  ;;  %v10800_v12 = vsel %vm14694_vm9, %v12648_v57, %v10799_v1  ;;  %v10662_v43 = vld [vmem:[#allocation2 + $0x128] sm:$0xe]  ;;  %v18598_v52 = vpop.f32.mrf.mxu0  ;;  %v19462_v1 = vld [vmem:[#allocation34_spill] sm:$0xff] }
 0x459   : > { %v13603_v23 = vpop.f32.mrf.mxu1  ;;  %v12652_v35 = vrot.slane %v10662_v43, 9 }
 0x45a   : > { %v13604_v55 = vadd.f32 %v13603_v23, %v13602_v53  ;;  %v12667_v53 = vcombine.low %v10796_v37, %v10800_v12  ;;  %v10811_v23 = vrot.slane %v19458_v62, 5  ;;  %v18606_v59 = vpop.f32.mrf.mxu0 }
 0x45c   : > { %v18576_v17 = vadd.f32 %v13604_v55, %v19455_v36  ;;  %v19459_v36 = vld [vmem:[#allocation33_spill] sm:$0xff]  ;;  %v18613_v14 = vpop.f32.mrf.mxu0 }
 0x45d   : > { %v10815_v18 = vrot.slane %v19459_v36, 5 }
 0x45e   : > { %13900 = vmatmul.mubr.bf16.gmra.mxu1 %v19456_v28  ;;  %v10812_v28 = vsel %vm14694_vm9, %v12651_v48, %v10811_v23  ;;  %v18618_v10 = vpop.f32.mrf.mxu0 }
 0x45f   : > { %13903 = vmatprep.mubr.bf16.mxu1 %v12665_v8  ;;  %v13605_v4 = vpop.f32.mrf.mxu1  ;;  %v19460_v8 = vld [vmem:[#allocation32_spill] sm:$0xff]  ;;  %v10816_v7 = vsel %vm14694_vm9, %v12652_v35, %v10815_v18  ;;  %v18642_v18 = vadd.f32 %v18527_v30, %v18546_v9  ;;  %v18658_v30 = vadd.f32 %v18534_v24, %v18551_v61 }
 0x460   : > { %v19465_v35 = vld [vmem:[#allocation48_spill] sm:$0xff] }
 0x461   : > { %v13606_v49 = vpop.f32.mrf.mxu1 }
 0x462   : > { %v13607_v54 = vadd.f32 %v13606_v49, %v13605_v4  ;;  %v19461_v4 = vcombine.low %v18490_v51, %v18494_v26  ;;  %v18626_v26 = vpop.f32.mrf.mxu0 }
 0x463   : > { %v13608_v46 = vpop.f32.mrf.mxu1 }
 0x464   : > { %v18592_v33 = vadd.f32 %v13607_v54, %v19457_v58  ;;  %v18628_v43 = vpop.f32.mrf.mxu0 }
 0x465   : > { %v13609_v60 = vpop.f32.mrf.mxu1 }
 0x466   : > { %13904 = vmatmul.mubr.bf16.gmra.mxu1 %v12666_v47  ;;  %v13610_v55 = vadd.f32 %v13609_v60, %v13608_v46  ;;  %v12669_v47 = vcombine.low %v10812_v28, %v10816_v7  ;;  %v19464_v60 = vld [vmem:[#allocation43_spill] sm:$0xff] }
 0x467   : > { %13907 = vmatprep.mubr.bf16.mxu1 %v12667_v53 }
 0x468   : > { %v18602_v40 = vadd.f32 %v13610_v55, %v19460_v8  ;;  %v18633_v55 = vpop.f32.mrf.mxu0 }
 0x46a   : > { %v13611_v3 = vpop.f32.mrf.mxu1  ;;  %v18638_v56 = vpop.f32.mrf.mxu0 }
 0x46c   : > { %v13612_v20 = vpop.f32.mrf.mxu1 }
 0x46d   : > { %v13613_v27 = vadd.f32 %v13612_v20, %v13611_v3  ;;  %v19466_v3 = vld [vmem:[#allocation50_spill] sm:$0xff]  ;;  %v18647_v20 = vpop.f32.mrf.mxu0 }
 0x46e   : > { %13908 = vmatmul.mubr.bf16.gmra.mxu1 %v19461_v4  ;;  %v13614_v57 = vpop.f32.mrf.mxu1  ;;  %v19467_v4 = vld [vmem:[#allocation51_spill] sm:$0xff] }
 0x46f   : > { %13911 = vmatprep.mubr.bf16.mxu1 %v12669_v47  ;;  %v18616_v49 = vadd.f32 %v13613_v27, %v19462_v1  ;;  %v13713_v1 = vadd.f32 %v18573_v2, %v18566_v6 }
 0x470   : > { %v13615_v37 = vpop.f32.mrf.mxu1 }
 0x471   : > { %v13616_v54 = vadd.f32 %v13615_v37, %v13614_v57  ;;  %v18654_v37 = vpop.f32.mrf.mxu0  ;;  %v18661_v9 = vadd.f32 %v13713_v1, %v18569_v13 }
 0x473   : > { %v18621_v46 = vadd.f32 %v13616_v54, %v19463_v5  ;;  %v18663_v5 = vpop.f32.mrf.mxu0 }
 0x476   : > { %13912 = vmatmul.mubr.bf16.gmra.mxu1 %v12670_v31  ;;  %v13617_v51 = vpop.f32.mrf.mxu1 }
 0x478   : > { %v13618_v12 = vpop.f32.mrf.mxu1 }
 0x479   : > { %v13619_v58 = vadd.f32 %v13618_v12, %v13617_v51 }
 0x47a   : > { %v13620_v53 = vpop.f32.mrf.mxu1 }
 0x47b   : > { %v18631_v48 = vadd.f32 %v13619_v58, %v19464_v60  ;;  %v19469_v60 = vld [vmem:[#allocation52_spill] sm:$0xff] }
 0x47c   : > { %v13621_v62 = vpop.f32.mrf.mxu1 }
 0x47d   : > { %v13622_v23 = vadd.f32 %v13621_v62, %v13620_v53  ;;  %v18665_v53 = vpop.f32.mrf.mxu0 }
 0x47f   : > { %v18636_v36 = vadd.f32 %v13622_v23, %v19465_v35  ;;  %v18670_v23 = vpop.f32.mrf.mxu0 }
 0x481   : > { %v13623_v15 = vpop.f32.mrf.mxu1  ;;  %v18675_v35 = vpop.f32.mrf.mxu0 }
 0x483   : > { %v13624_v31 = vpop.f32.mrf.mxu1 }
 0x484   : > { %v13625_v8 = vadd.f32 %v13624_v31, %v13623_v15 }
 0x485   : > { %v13626_v28 = vpop.f32.mrf.mxu1 }
 0x486   : > { %v18645_v7 = vadd.f32 %v13625_v8, %v19466_v3  ;;  %v18680_v3 = vpop.f32.mrf.mxu0 }
 0x487   : > { %v13627_v47 = vpop.f32.mrf.mxu1 }
 0x488   : > { %v13628_v27 = vadd.f32 %v13627_v47, %v13626_v28  ;;  %v18685_v1 = vpop.f32.mrf.mxu0 }
 0x48a   : > { %v18650_v57 = vadd.f32 %v13628_v27, %v19467_v4  ;;  %v19471_v27 = vld [vmem:[#allocation58_spill] sm:$0xff] }
 0x48c   : > { %19468 = vst [vmem:[#allocation64_spill] sm:$0xff] %v18650_v57  ;;  %v19485_v57 = vld [vmem:[#allocation59_spill] sm:$0xff] }
 0x48d   : > { %v13629_v54 = vpop.f32.mrf.mxu1 }
 0x48f   : > { %v13630_v51 = vpop.f32.mrf.mxu1 }
 0x490   : > { %v13631_v12 = vadd.f32 %v13630_v51, %v13629_v54 }
 0x491   : > { %v13632_v58 = vpop.f32.mrf.mxu1 }
 0x492   : > { %v18668_v62 = vadd.f32 %v13631_v12, %v19469_v60 }
 0x493   : > { %v13633_v6 = vpop.f32.mrf.mxu1 }
 0x494   : > { %v13634_v2 = vadd.f32 %v13633_v6, %v13632_v58  ;;  %v19473_v6 = vld [vmem:[#allocation55_spill] sm:$0xff] }
 0x496   : > { %v18673_v24 = vadd.f32 %v13634_v2, %v18282_v29  ;;  %v18687_v29 = vpop.f32.mrf.mxu0 }
 0x497   : > { %v13635_v61 = vpop.f32.mrf.mxu1 }
 0x498   : > { %v18689_v58 = vpop.f32.mrf.mxu0 }
 0x499   : > { %v13636_v13 = vpop.f32.mrf.mxu1 }
 0x49a   : > { %v13637_v15 = vadd.f32 %v13636_v13, %v13635_v61  ;;  %v18694_v13 = vpop.f32.mrf.mxu0 }
 0x49b   : > { %v13638_v31 = vpop.f32.mrf.mxu1 }
 0x49c   : > { %v18678_v8 = vadd.f32 %v13637_v15, %v18294_v39  ;;  %v19475_v15 = vld [vmem:[#allocation57_spill] sm:$0xff] }
 0x49d   : > { %v13639_v28 = vpop.f32.mrf.mxu1 }
 0x49e   : > { %19470 = vst [vmem:[#allocation66_spill] sm:$0xff] %v18678_v8  ;;  %v13640_v47 = vadd.f32 %v13639_v28, %v13638_v31 }
 0x4a0   : > { %v18683_v4 = vadd.f32 %v13640_v47, %v19471_v27  ;;  %v18699_v47 = vpop.f32.mrf.mxu0 }
 0x4a2   : > { %19472 = vst [vmem:[#allocation67_spill] sm:$0xff] %v18683_v4 }
 0x4a6   : > { %v13641_v54 = vpop.f32.mrf.mxu1 }
 0x4a8   : > { %v13642_v51 = vpop.f32.mrf.mxu1 }
 0x4a9   : > { %v13643_v12 = vadd.f32 %v13642_v51, %v13641_v54  ;;  %v18701_v54 = vpop.f32.mrf.mxu0  ;;  %v19478_v51 = vld [vmem:[#allocation60_spill] sm:$0xff] }
 0x4aa   : > { %v13644_v60 = vpop.f32.mrf.mxu1  ;;  %19477 = vst [vmem:[#allocation70_spill] sm:$0xff] %v18701_v54 }
 0x4ab   : > { %v18692_v39 = vadd.f32 %v13643_v12, %v19473_v6  ;;  %v18706_v8 = vpop.f32.mrf.mxu0 }
 0x4ac   : > { %v13645_v2 = vpop.f32.mrf.mxu1  ;;  %19480 = vst [vmem:[#allocation73_spill] sm:$0xff] %v18706_v8 }
 0x4ad   : > { %19474 = vst [vmem:[#allocation69_spill] sm:$0xff] %v18692_v39  ;;  %v13646_v61 = vadd.f32 %v13645_v2, %v13644_v60  ;;  %v19481_v60 = vld [vmem:[#allocation62_spill] sm:$0xff] }
 0x4af   : > { %v18697_v31 = vadd.f32 %v13646_v61, %v19475_v15  ;;  %v18711_v61 = vpop.f32.mrf.mxu0 }
 0x4b0   : > { %19483 = vst [vmem:[#allocation74_spill] sm:$0xff] %v18711_v61 }
 0x4b1   : > { %19476 = vst [vmem:[#allocation68_spill] sm:$0xff] %v18697_v31  ;;  %v13647_v28 = vpop.f32.mrf.mxu1  ;;  %v18713_v31 = vpop.f32.mrf.mxu0 }
 0x4b2   : > { %19484 = vst [vmem:[#allocation109_spill] sm:$0xff] %v18713_v31 }
 0x4b3   : > { %v13648_v27 = vpop.f32.mrf.mxu1 }
 0x4b4   : > { %v13649_v32 = vadd.f32 %v13648_v27, %v13647_v28 }
 0x4b5   : > { %v13650_v45 = vpop.f32.mrf.mxu1 }
 0x4b6   : > { %v18704_v4 = vadd.f32 %v13649_v32, %v19478_v51  ;;  %v18718_v32 = vpop.f32.mrf.mxu0 }
 0x4b7   : > { %v13651_v12 = vpop.f32.mrf.mxu1 }
 0x4b8   : > { %19479 = vst [vmem:[#allocation71_spill] sm:$0xff] %v18704_v4  ;;  %v13652_v6 = vadd.f32 %v13651_v12, %v13650_v45  ;;  %v19487_v12 = vld [vmem:[#allocation61_spill] sm:$0xff] }
 0x4ba   : > { %v18709_v2 = vadd.f32 %v13652_v6, %v19481_v60  ;;  %v18723_v6 = vpop.f32.mrf.mxu0 }
 0x4bc   : > { %19482 = vst [vmem:[#allocation72_spill] sm:$0xff] %v18709_v2  ;;  %v18725_v2 = vpop.f32.mrf.mxu0 }
 0x4bf   : > { %v13653_v15 = vpop.f32.mrf.mxu1 }
 0x4c1   : > { %v13654_v39 = vpop.f32.mrf.mxu1 }
 0x4c2   : > { %v13655_v28 = vadd.f32 %v13654_v39, %v13653_v15 }
 0x4c3   : > { %v13656_v27 = vpop.f32.mrf.mxu1 }
 0x4c4   : > { %v18716_v54 = vadd.f32 %v13655_v28, %v19485_v57  ;;  %v18730_v57 = vpop.f32.mrf.mxu0 }
 0x4c5   : > { %v13657_v51 = vpop.f32.mrf.mxu1 }
 0x4c6   : > { %19486 = vst [vmem:[#allocation112_spill] sm:$0xff] %v18716_v54  ;;  %v13658_v45 = vadd.f32 %v13657_v51, %v13656_v27  ;;  %v18735_v51 = vpop.f32.mrf.mxu0 }
 0x4c7   : > { %19491 = vst [vmem:[#allocation78_spill] sm:$0xff] %v18735_v51 }
 0x4c8   : > { %v18721_v4 = vadd.f32 %v13658_v45, %v19487_v12  ;;  %v18737_v45 = vpop.f32.mrf.mxu0 }
 0x4c9   : > { %19492 = vst [vmem:[#allocation79_spill] sm:$0xff] %v18737_v45 }
 0x4ca   : > { %19488 = vst [vmem:[#allocation75_spill] sm:$0xff] %v18721_v4  ;;  %v18739_v54 = vpop.f32.mrf.mxu0 }
 0x4cb   : > { %19493 = vst [vmem:[#allocation81_spill] sm:$0xff] %v18739_v54 }
 0x4ce   : > { %v13659_v60 = vpop.f32.mrf.mxu1 }
 0x4d0   : > { %v13660_v61 = vpop.f32.mrf.mxu1 }
 0x4d1   : > { %v13661_v31 = vadd.f32 %v13660_v61, %v13659_v60 }
 0x4d2   : > { %v13662_v8 = vpop.f32.mrf.mxu1 }
 0x4d3   : > { %v18728_v39 = vadd.f32 %v13661_v31, %v18447_v44 }
 0x4d4   : > { %v13663_v15 = vpop.f32.mrf.mxu1 }
 0x4d5   : > { %19489 = vst [vmem:[#allocation77_spill] sm:$0xff] %v18728_v39  ;;  %v13664_v28 = vadd.f32 %v13663_v15, %v13662_v8  ;;  %v18744_v39 = vpop.f32.mrf.mxu0 }
 0x4d7   : > { %v18733_v27 = vadd.f32 %v13664_v28, %v18449_v22  ;;  %v18749_v15 = vpop.f32.mrf.mxu0 }
 0x4d9   : > { %19490 = vst [vmem:[#allocation76_spill] sm:$0xff] %v18733_v27  ;;  %v18751_v51 = vpop.f32.mrf.mxu0 }
 0x4db   : > { %v13665_v12 = vpop.f32.mrf.mxu1 }
 0x4dd   : > { %v13666_v4 = vpop.f32.mrf.mxu1 }
 0x4de   : > { %v13667_v61 = vadd.f32 %v13666_v4, %v13665_v12 }
 0x4df   : > { %v13668_v60 = vpop.f32.mrf.mxu1 }
 0x4e0   : > { %v18742_v44 = vadd.f32 %v13667_v61, %v18476_v16  ;;  %v18756_v61 = vpop.f32.mrf.mxu0 }
 0x4e1   : > { %v13669_v31 = vpop.f32.mrf.mxu1 }
 0x4e2   : > { %19494 = vst [vmem:[#allocation80_spill] sm:$0xff] %v18742_v44  ;;  %v13670_v8 = vadd.f32 %v13669_v31, %v13668_v60 }
 0x4e4   : > { %v18747_v22 = vadd.f32 %v13670_v8, %v18483_v38  ;;  %v18761_v38 = vpop.f32.mrf.mxu0 }
 0x4e6   : > { %19495 = vst [vmem:[#allocation82_spill] sm:$0xff] %v18747_v22  ;;  %v18765_v8 = vpop.f32.mrf.mxu0  ;;  %v18785_v22 = vld [vmem:[%s18952_s4] ss:$0 sm:$0xff] }
 0x4e8   : > { %v13671_v28 = vpop.f32.mrf.mxu1 }
 0x4ea   : > { %v13672_v27 = vpop.f32.mrf.mxu1 }
 0x4eb   : > { %v13673_v45 = vadd.f32 %v13672_v27, %v13671_v28 }
 0x4ec   : > { %v13674_v54 = vpop.f32.mrf.mxu1 }
 0x4ed   : > { %v18754_v4 = vadd.f32 %v13673_v45, %v18506_v63  ;;  %v13707_v63 = vadd.f32 %v18504_v11, %v18474_v25  ;;  %v18773_v45 = vpop.f32.mrf.mxu0 }
 0x4ee   : > { %v13675_v16 = vpop.f32.mrf.mxu1 }
 0x4ef   : > { %19496 = vst [vmem:[#allocation83_spill] sm:$0xff] %v18754_v4  ;;  %v13676_v12 = vadd.f32 %v13675_v16, %v13674_v54 }
 0x4f1   : > { %v18759_v60 = vadd.f32 %v13676_v12, %v18508_v0  ;;  %v10603_v0 = vadd.f32 %v13707_v63, %v18556_v41  ;;  %v13710_v12 = vadd.f32 %v18553_v42, %v18538_v21  ;;  %v13719_v41 = vadd.f32 %v18606_v59, %v18598_v52 }
 0x4f3   : > { %19497 = vst [vmem:[#allocation85_spill] sm:$0xff] %v18759_v60  ;;  %v18780_v60 = vpop.f32.mrf.mxu0  ;;  %v10604_v11 = vadd.f32 %v13710_v12, %v18561_v19  ;;  %v13722_v19 = vadd.f32 %v18618_v10, %v18613_v14 }
 0x4f4   : > { %19500 = vst [vmem:[#allocation87_spill] sm:$0xff] %v18780_v60 }
 0x4f5   : > { %v18791_v63 = vpop.f32.mrf.mxu0  ;;  %v10608_v14 = vadd.f32 %v13722_v19, %v18602_v40  ;;  %v13725_v40 = vadd.f32 %v18628_v43, %v18626_v26  ;;  %v13734_v19 = vadd.f32 %v18665_v53, %v18663_v5 }
 0x4f6   : > { %v18763_v31 = vpop.f32.mrf.mxu1 }
 0x4f7   : > { %v18800_v52 = vpop.f32.mrf.mxu0 }
 0x4f8   : > { %v18767_v27 = vpop.f32.mrf.mxu1 }
 0x4fa   : > { %v18769_v28 = vpop.f32.mrf.mxu1 }
 0x4fb   : > { %19498 = vst [vmem:[#allocation84_spill] sm:$0xff] %v18769_v28 }
 0x4fc   : > { %v18775_v54 = vpop.f32.mrf.mxu1 }
 0x4fd   : > { %19499 = vst [vmem:[#allocation86_spill] sm:$0xff] %v18775_v54 }
 0x4fe   : > { %v13885_v16 = vpop.f32.mrf.mxu1 }
 0x4ff   : > { %v11116_v4 = vadd.f32 %v13885_v16, %v10603_v0 }
 0x500   : > { %v10987_v28 = vpop.f32.mrf.mxu1 }
 0x501   : > { %v11114_v25 = vadd.f32 %v10987_v28, %v18642_v18  ;;  %v11155_v21 = vadd.f32 %v18785_v22, %v11116_v4  ;;  %v10607_v18 = vadd.f32 %v13719_v41, %v18592_v33 }
 0x502   : > { %v13886_v54 = vpop.f32.mrf.mxu1 }
 0x503   : > { %v11117_v42 = vadd.f32 %v13886_v54, %v10604_v11  ;;  %v11153_v16 = vadd.f32 %v18785_v22, %v11114_v25  ;;  %v11187_v59 = vmax.f32 %v11155_v21, 0.0  ;;  %v13716_v25 = vadd.f32 %v18587_v34, %v18583_v50  ;;  %v18816_v34 = vpop.f32.mrf.mxu0 }
 0x504   : > { %v10990_v0 = vpop.f32.mrf.mxu1  ;;  %v13731_v11 = vadd.f32 %v18654_v37, %v18647_v20 }
 0x505   : > { %v11156_v60 = vadd.f32 %v18785_v22, %v11117_v42  ;;  %v11115_v44 = vadd.f32 %v10990_v0, %v18658_v30  ;;  %v11185_v10 = vmax.f32 %v11153_v16, 0.0  ;;  %v10606_v0 = vadd.f32 %v13716_v25, %v18576_v17  ;;  %v18830_v17 = vpop.f32.mrf.mxu0 }
 0x506   : > { %v13889_v28 = vpop.f32.mrf.mxu1  ;;  %v10611_v37 = vadd.f32 %v13731_v11, %v18631_v48  ;;  %v10612_v48 = vadd.f32 %v13734_v19, %v18636_v36  ;;  %v13737_v36 = vadd.f32 %v18675_v35, %v18670_v23 }
 0x507   : > { %v11188_v12 = vmax.f32 %v11156_v60, 0.0  ;;  %v11154_v4 = vadd.f32 %v18785_v22, %v11115_v44  ;;  %v11120_v54 = vadd.f32 %v13889_v28, %v10607_v18 }
 0x508   : > { %v11003_v33 = vpop.f32.mrf.mxu1 }
 0x509   : > { %v12788_v30 = vpack.c.bf16 %v11188_v12, %v11187_v59  ;;  %v11186_v60 = vmax.f32 %v11154_v4, 0.0  ;;  %v11118_v44 = vadd.f32 %v11003_v33, %v18661_v9  ;;  %v11159_v21 = vadd.f32 %v18785_v22, %v11120_v54 }
 0x50a   : > { %v13890_v50 = vpop.f32.mrf.mxu1  ;;  %v10609_v59 = vadd.f32 %v13725_v40, %v18616_v49  ;;  %v13728_v54 = vadd.f32 %v18638_v56, %v18633_v55  ;;  %v13743_v49 = vadd.f32 %v18689_v58, %v18687_v29 }
 0x50b   : > { %12860 = vst [vmem:[%s18810_s14 + $0x8] sm:$0xff] %v12788_v30   ;;  %v12783_v41 = vpack.c.bf16 %v11186_v60, %v11185_v10  ;;  %v11121_v42 = vadd.f32 %v13890_v50, %v10608_v14  ;;  %v11157_v9 = vadd.f32 %v18785_v22, %v11118_v44  ;;  %v11191_v12 = vmax.f32 %v11159_v21, 0.0  ;;  %v18838_v30 = vpop.f32.mrf.mxu0 }
 0x50c   : > { %v11006_v16 = vpop.f32.mrf.mxu1  ;;  %v10610_v55 = vadd.f32 %v13728_v54, %v18621_v46  ;;  %v10615_v58 = vadd.f32 %v13743_v49, %v18668_v62  ;;  %v13746_v21 = vadd.f32 %v18699_v47, %v18694_v13 }
 0x50d   : > { %12784 = vst [vmem:[%s18810_s14] sm:$0xff] %v12783_v41   ;;  %v11160_v18 = vadd.f32 %v18785_v22, %v11121_v42  ;;  %v11119_v20 = vadd.f32 %v11006_v16, %v10606_v0  ;;  %v11189_v33 = vmax.f32 %v11157_v9, 0.0  ;;  %v10613_v0 = vadd.f32 %v13737_v36, %v18645_v7  ;;  %v18852_v46 = vpop.f32.mrf.mxu0  ;;  %v19506_v36 = vld [vmem:[#allocation74_spill] sm:$0xff] }
 0x50e   : > { %v13893_v28 = vpop.f32.mrf.mxu1  ;;  %v13740_v9 = vadd.f32 %v18685_v1, %v18680_v3  ;;  %v10616_v62 = vadd.f32 %v13746_v21, %v18673_v24  ;;  %v13755_v7 = vadd.f32 %v18723_v6, %v18718_v32  ;;  %v19501_v3 = vld [vmem:[#allocation64_spill] sm:$0xff]  ;;  %v19504_v6 = vld [vmem:[#allocation69_spill] sm:$0xff] }
 0x50f   : > { %v11192_v26 = vmax.f32 %v11160_v18, 0.0  ;;  %v11158_v43 = vadd.f32 %v18785_v22, %v11119_v20  ;;  %v11124_v4 = vadd.f32 %v13893_v28, %v10611_v37  ;;  %v18860_v28 = vpop.f32.mrf.mxu0 }
 0x510   : > { %v11019_v25 = vpop.f32.mrf.mxu1  ;;  %v10614_v1 = vadd.f32 %v13740_v9, %v19501_v3  ;;  %v19513_v3 = vld [vmem:[#allocation71_spill] sm:$0xff] }
 0x511   : > { %v12798_v5 = vpack.c.bf16 %v11192_v26, %v11191_v12  ;;  %v11190_v53 = vmax.f32 %v11158_v43, 0.0  ;;  %v11122_v14 = vadd.f32 %v11019_v25, %v10609_v59  ;;  %v11163_v44 = vadd.f32 %v18785_v22, %v11124_v4  ;;  %v19502_v43 = vld [vmem:[#allocation70_spill] sm:$0xff]  ;;  %v19503_v4 = vld [vmem:[#allocation73_spill] sm:$0xff] }
 0x512   : > { %v13894_v10 = vpop.f32.mrf.mxu1  ;;  %v13749_v24 = vadd.f32 %v19503_v4, %v19502_v43 }
 0x513   : > { %12862 = vst [vmem:[%s18810_s14 + $0x18] sm:$0xff] %v12798_v5   ;;  %v12793_v60 = vpack.c.bf16 %v11190_v53, %v11189_v33  ;;  %v11125_v11 = vadd.f32 %v13894_v10, %v10612_v48  ;;  %v11161_v50 = vadd.f32 %v18785_v22, %v11122_v14  ;;  %v11195_v40 = vmax.f32 %v11163_v44, 0.0  ;;  %v19505_v14 = vld [vmem:[#allocation66_spill] sm:$0xff]  ;;  %v18874_v10 = vpop.f32.mrf.mxu0 }
 0x514   : > { %v11022_v56 = vpop.f32.mrf.mxu1  ;;  %v10619_v33 = vadd.f32 %v13755_v7, %v19504_v6  ;;  %v13758_v5 = vadd.f32 %v18730_v57, %v18725_v2  ;;  %v10617_v49 = vadd.f32 %v13749_v24, %v19505_v14 }
 0x515   : > { %12861 = vst [vmem:[%s18810_s14 + $0x10] sm:$0xff] %v12793_v60   ;;  %v11164_v41 = vadd.f32 %v18785_v22, %v11125_v11  ;;  %v11123_v29 = vadd.f32 %v11022_v56, %v10610_v55  ;;  %v11193_v20 = vmax.f32 %v11161_v50, 0.0  ;;  %v19507_v56 = vld [vmem:[#allocation109_spill] sm:$0xff] }
 0x516   : > { %v13897_v42 = vpop.f32.mrf.mxu1  ;;  %v13752_v50 = vadd.f32 %v19507_v56, %v19506_v36 }
 0x517   : > { %v11196_v23 = vmax.f32 %v11164_v41, 0.0  ;;  %v11162_v35 = vadd.f32 %v18785_v22, %v11123_v29  ;;  %v11128_v16 = vadd.f32 %v13897_v42, %v10615_v58  ;;  %v19508_v29 = vld [vmem:[#allocation68_spill] sm:$0xff] }
 0x518   : > { %v11035_v18 = vpop.f32.mrf.mxu1  ;;  %v10620_v58 = vadd.f32 %v13758_v5, %v19508_v29 }
 0x519   : > { %v12808_v13 = vpack.c.bf16 %v11196_v23, %v11195_v40  ;;  %v11194_v47 = vmax.f32 %v11162_v35, 0.0  ;;  %v11126_v37 = vadd.f32 %v11035_v18, %v10613_v0  ;;  %v11167_v12 = vadd.f32 %v18785_v22, %v11128_v16  ;;  %v19509_v40 = vld [vmem:[#allocation67_spill] sm:$0xff]  ;;  %v18883_v16 = vpop.f32.mrf.mxu0 }
 0x51a   : > { %v13898_v19 = vpop.f32.mrf.mxu1  ;;  %v10618_v23 = vadd.f32 %v13752_v50, %v19509_v40  ;;  %v13767_v35 = vadd.f32 %v18751_v51, %v18749_v15  ;;  %v13770_v51 = vadd.f32 %v18761_v38, %v18756_v61  ;;  %v13773_v50 = vadd.f32 %v18773_v45, %v18765_v8 }
 0x51b   : > { %12864 = vst [vmem:[%s18810_s14 + $0x28] sm:$0xff] %v12808_v13   ;;  %v12803_v59 = vpack.c.bf16 %v11194_v47, %v11193_v20  ;;  %v11129_v26 = vadd.f32 %v13898_v19, %v10616_v62  ;;  %v11165_v25 = vadd.f32 %v18785_v22, %v11126_v37  ;;  %v11199_v60 = vmax.f32 %v11167_v12, 0.0  ;;  %v19510_v20 = vld [vmem:[#allocation78_spill] sm:$0xff]  ;;  %v19511_v13 = vld [vmem:[#allocation79_spill] sm:$0xff]  ;;  %v19512_v12 = vld [vmem:[#allocation112_spill] sm:$0xff]  ;;  %v13789_v43 = vpop.f32.mrf.mxu0 }
 0x51c   : > { %v11038_v54 = vpop.f32.mrf.mxu1  ;;  %v13761_v47 = vadd.f32 %v19511_v13, %v19510_v20  ;;  %v19521_v20 = vld [vmem:[#allocation84_spill] sm:$0xff]  ;;  %v19522_v13 = vld [vmem:[#allocation86_spill] sm:$0xff] }
 0x51d   : > { %12863 = vst [vmem:[%s18810_s14 + $0x20] sm:$0xff] %v12803_v59   ;;  %v11168_v48 = vadd.f32 %v18785_v22, %v11129_v26  ;;  %v11127_v32 = vadd.f32 %v11038_v54, %v10614_v1  ;;  %v11197_v21 = vmax.f32 %v11165_v25, 0.0  ;;  %v10623_v26 = vadd.f32 %v13767_v35, %v19512_v12  ;;  %v19519_v35 = vld [vmem:[#allocation87_spill] sm:$0xff] }
 0x51e   : > { %v13901_v53 = vpop.f32.mrf.mxu1  ;;  %v10621_v1 = vadd.f32 %v13761_v47, %v19513_v3  ;;  %v13682_v47 = vadd.f32 %v19522_v13, %v19521_v20 }
 0x51f   : > { %v11200_v44 = vmax.f32 %v11168_v48, 0.0  ;;  %v11166_v11 = vadd.f32 %v18785_v22, %v11127_v32  ;;  %v11132_v55 = vadd.f32 %v13901_v53, %v10619_v33  ;;  %v19514_v48 = vld [vmem:[#allocation81_spill] sm:$0xff]  ;;  %v19515_v33 = vld [vmem:[#allocation75_spill] sm:$0xff] }
 0x520   : > { %v11051_v41 = vpop.f32.mrf.mxu1  ;;  %v13764_v32 = vadd.f32 %v18744_v39, %v19514_v48  ;;  %v10624_v5 = vadd.f32 %v13770_v51, %v19515_v33  ;;  %v19524_v51 = vld [vmem:[#allocation76_spill] sm:$0xff] }
 0x521   : > { %v12818_v2 = vpack.c.bf16 %v11200_v44, %v11199_v60  ;;  %v11198_v57 = vmax.f32 %v11166_v11, 0.0  ;;  %v11130_v42 = vadd.f32 %v11051_v41, %v10617_v49  ;;  %v11171_v18 = vadd.f32 %v18785_v22, %v11132_v55  ;;  %v19516_v60 = vld [vmem:[#allocation72_spill] sm:$0xff]  ;;  %v13790_v55 = vpop.f32.mrf.mxu0 }
 0x522   : > { %v13902_v0 = vpop.f32.mrf.mxu1  ;;  %v10622_v44 = vadd.f32 %v13764_v32, %v19516_v60  ;;  %v13779_v11 = vadd.f32 %v18816_v34, %v18800_v52  ;;  %v13679_v41 = vadd.f32 %v18767_v27, %v18763_v31  ;;  %v19517_v52 = vld [vmem:[#allocation80_spill] sm:$0xff]  ;;  %v13791_v3 = vadd.f32 %v13790_v55, %v13789_v43 }
 0x523   : > { %12866 = vst [vmem:[%s18810_s14 + $0x38] sm:$0xff] %v12818_v2   ;;  %v12813_v9 = vpack.c.bf16 %v11198_v57, %v11197_v21  ;;  %v11133_v62 = vadd.f32 %v13902_v0, %v10620_v58  ;;  %v11169_v7 = vadd.f32 %v18785_v22, %v11130_v42  ;;  %v11203_v4 = vmax.f32 %v11171_v18, 0.0  ;;  %v19518_v0 = vld [vmem:[#allocation77_spill] sm:$0xff]  ;;  %v19520_v18 = vld [vmem:[#allocation63_spill] sm:$0xff] }
 0x524   : > { %v11054_v37 = vpop.f32.mrf.mxu1  ;;  %v10627_v34 = vadd.f32 %v13779_v11, %v19517_v52  ;;  %v13782_v57 = vadd.f32 %v18838_v30, %v18830_v17  ;;  %v10625_v40 = vadd.f32 %v13773_v50, %v19518_v0  ;;  %v19523_v17 = vld [vmem:[#allocation82_spill] sm:$0xff] }
 0x525   : > { %12865 = vst [vmem:[%s18810_s14 + $0x30] sm:$0xff] %v12813_v9   ;;  %v11172_v19 = vadd.f32 %v18785_v22, %v11133_v62  ;;  %v11131_v59 = vadd.f32 %v11054_v37, %v10618_v23  ;;  %v11201_v53 = vmax.f32 %v11169_v7, 0.0  ;;  %v13792_v23 = vpop.f32.mrf.mxu0  ;;  %v13776_v9 = vadd.f32 %v18791_v63, %v19519_v35 }
 0x526   : > { %v13905_v15 = vpop.f32.mrf.mxu1  ;;  %v9766_v62 = vadd.f32 %v13679_v41, %v19520_v18  ;;  %v10628_v30 = vadd.f32 %v13782_v57, %v19523_v17 }
 0x527   : > { %v11204_v24 = vmax.f32 %v11172_v19, 0.0  ;;  %v11170_v54 = vadd.f32 %v18785_v22, %v11131_v59  ;;  %v11136_v25 = vadd.f32 %v13905_v15, %v10623_v26  ;;  %v10626_v15 = vadd.f32 %v13776_v9, %v19524_v51 }
 0x528   : > { %v11067_v6 = vpop.f32.mrf.mxu1 }
 0x529   : > { %v12828_v14 = vpack.c.bf16 %v11204_v24, %v11203_v4  ;;  %v11202_v61 = vmax.f32 %v11170_v54, 0.0  ;;  %v11134_v38 = vadd.f32 %v11067_v6, %v10621_v1  ;;  %v11175_v56 = vadd.f32 %v18785_v22, %v11136_v25  ;;  %v13793_v1 = vpop.f32.mrf.mxu0  ;;  %v19525_v25 = vld [vmem:[#allocation65_spill] sm:$0xff] }
 0x52a   : > { %v13906_v49 = vpop.f32.mrf.mxu1  ;;  %v13785_v54 = vadd.f32 %v18860_v28, %v18852_v46  ;;  %v9767_v48 = vadd.f32 %v13682_v47, %v19525_v25  ;;  %v13794_v43 = vadd.f32 %v13793_v1, %v13792_v23  ;;  %v13788_v28 = vadd.f32 %v18883_v16, %v18874_v10 }
 0x52b   : > { %12868 = vst [vmem:[%s18810_s14 + $0x48] sm:$0xff] %v12828_v14   ;;  %v12823_v36 = vpack.c.bf16 %v11202_v61, %v11201_v53  ;;  %v11137_v39 = vadd.f32 %v13906_v49, %v10624_v5  ;;  %v11173_v58 = vadd.f32 %v18785_v22, %v11134_v38  ;;  %v11207_v8 = vmax.f32 %v11175_v56, 0.0  ;;  %v19526_v61 = vld [vmem:[#allocation83_spill] sm:$0xff] }
 0x52c   : > { %v11070_v29 = vpop.f32.mrf.mxu1  ;;  %v10631_v53 = vadd.f32 %v13791_v3, %v9766_v62  ;;  %v10629_v38 = vadd.f32 %v13785_v54, %v19526_v61  ;;  %v10632_v55 = vadd.f32 %v13794_v43, %v9767_v48 }
 0x52d   : > { %12867 = vst [vmem:[%s18810_s14 + $0x40] sm:$0xff] %v12823_v36   ;;  %v11176_v21 = vadd.f32 %v18785_v22, %v11137_v39  ;;  %v11135_v2 = vadd.f32 %v11070_v29, %v10622_v44  ;;  %v11205_v7 = vmax.f32 %v11173_v58, 0.0 }
 0x52e   : > { %v13909_v42 = vpop.f32.mrf.mxu1 }
 0x52f   : > { %v11208_v45 = vmax.f32 %v11176_v21, 0.0  ;;  %v11174_v31 = vadd.f32 %v18785_v22, %v11135_v2  ;;  %v11140_v27 = vadd.f32 %v13909_v42, %v10627_v34  ;;  %v19527_v2 = vld [vmem:[#allocation85_spill] sm:$0xff] }
 0x530   : > { %v11083_v37 = vpop.f32.mrf.mxu1  ;;  %v10630_v52 = vadd.f32 %v13788_v28, %v19527_v2 }
 0x531   : > { %v12838_v19 = vpack.c.bf16 %v11208_v45, %v11207_v8  ;;  %v11206_v59 = vmax.f32 %v11174_v31, 0.0  ;;  %v11138_v12 = vadd.f32 %v11083_v37, %v10625_v40  ;;  %v11179_v4 = vadd.f32 %v18785_v22, %v11140_v27 }
 0x532   : > { %v13910_v26 = vpop.f32.mrf.mxu1 }
 0x533   : > { %12870 = vst [vmem:[%s18810_s14 + $0x58] sm:$0xff] %v12838_v19   ;;  %v12833_v63 = vpack.c.bf16 %v11206_v59, %v11205_v7  ;;  %v11141_v24 = vadd.f32 %v13910_v26, %v10628_v30  ;;  %v11177_v6 = vadd.f32 %v18785_v22, %v11138_v12  ;;  %v11211_v49 = vmax.f32 %v11179_v4, 0.0 }
 0x534   : > { %v11086_v32 = vpop.f32.mrf.mxu1 }
 0x535   : > { %12869 = vst [vmem:[%s18810_s14 + $0x50] sm:$0xff] %v12833_v63   ;;  %v11180_v33 = vadd.f32 %v18785_v22, %v11141_v24  ;;  %v11139_v5 = vadd.f32 %v11086_v32, %v10626_v15  ;;  %v11209_v36 = vmax.f32 %v11177_v6, 0.0 }
 0x536   : > { %v13913_v14 = vpop.f32.mrf.mxu1 }
 0x537   : > { %v11212_v60 = vmax.f32 %v11180_v33, 0.0  ;;  %v11178_v44 = vadd.f32 %v18785_v22, %v11139_v5  ;;  %v11144_v46 = vadd.f32 %v13913_v14, %v10631_v53 }
 0x538   : > { %v11099_v11 = vpop.f32.mrf.mxu1 }
 0x539   : > { %v12848_v56 = vpack.c.bf16 %v11212_v60, %v11211_v49  ;;  %v11210_v39 = vmax.f32 %v11178_v44, 0.0  ;;  %v11142_v50 = vadd.f32 %v11099_v11, %v10629_v38  ;;  %v11183_v58 = vadd.f32 %v18785_v22, %v11144_v46 }
 0x53a   : > { %v13914_v41 = vpop.f32.mrf.mxu1 }
 0x53b   : > { %12872 = vst [vmem:[%s18810_s14 + $0x68] sm:$0xff] %v12848_v56   ;;  %v12843_v29 = vpack.c.bf16 %v11210_v39, %v11209_v36  ;;  %v11145_v21 = vadd.f32 %v13914_v41, %v10632_v55  ;;  %v11181_v10 = vadd.f32 %v18785_v22, %v11142_v50  ;;  %v11215_v42 = vmax.f32 %v11183_v58, 0.0 }
 0x53c   : > { %v11102_v34 = vpop.f32.mrf.mxu1 }
 0x53d   : > { %12871 = vst [vmem:[%s18810_s14 + $0x60] sm:$0xff] %v12843_v29   ;;  %v11184_v16 = vadd.f32 %v18785_v22, %v11145_v21  ;;  %v11143_v57 = vadd.f32 %v11102_v34, %v10630_v52  ;;  %v11213_v23 = vmax.f32 %v11181_v10, 0.0 }
 0x53f   : > { %v11216_v0 = vmax.f32 %v11184_v16, 0.0  ;;  %v11182_v40 = vadd.f32 %v18785_v22, %v11143_v57 }
 0x541   : > { %v12858_v8 = vpack.c.bf16 %v11216_v0, %v11215_v42  ;;  %v11214_v45 = vmax.f32 %v11182_v40, 0.0 }
 0x543   : > { %12874 = vst [vmem:[%s18810_s14 + $0x78] sm:$0xff] %v12858_v8   ;;  %v12853_v31 = vpack.c.bf16 %v11214_v45, %v11213_v23 }
 0x545   : > { %12873 = vst [vmem:[%s18810_s14 + $0x70] sm:$0xff] %v12853_v31  }
 0x546 PF: > { %s15_s18 = sadd.s32 1, %s14450_s18  }
 0x547   : > { %p12_p4 = scmp.ge.s32.totalorder %s15_s18, 4  }
 0x549   :  { %14 = sbr.rel (!%p12_p4) target bundleno = 1 (0x1), region = 73 }

</bundles_post_ra>
